<compile_context>
chip_gen: v5e
topology: v5e:2x2
jax: 0.10.0
libtpu: 0.0.40
codegen_flags: <defaults>
</compile_context>

<pallas_src>
import jax
import jax.numpy as jnp
import numpy as np
from jax.experimental import pallas as pl
from jax.experimental.pallas import tpu as pltpu

# ---------------------------------------------------------------------------
# Model hyper-parameters (match the PyTorch module defaults)
# ---------------------------------------------------------------------------
E = 64          # encoder_hidden_size
H = 64          # decoder_hidden_size
T = 12
F = 11          # out_feats
N_PRED = 6
TN = T + N_PRED - 1          # 17 precomputed input projections

# Lane-aligned gate layout
NG = 4                       # LSTM gates: i, f, g, o (PyTorch order)
GP = 128                     # per-gate lane pitch (>= H, multiple of 128)
GW = NG * GP                 # 512 = total padded gate width
HP = 128                     # padded hidden / cell width (cols H..HP-1 stay 0)
W_TOT = 2 * GW + GP          # 1152: [whh | ff_h@W_y | ff_h] fused hidden weight
OUT_W = N_PRED * GP          # 768: lane-dense output (one 128-lane block/step)


# ---------------------------------------------------------------------------
# One-time (wrapper side) weight fusion + lane-aligned padding
# ---------------------------------------------------------------------------
def prepare_decoder_params(raw):
    f32 = jnp.float32
    fc_w = jnp.asarray(raw["fc_w"], f32)     # (F, E+F)
    fc_b = jnp.asarray(raw["fc_b"], f32)     # (F,)
    ff_w = jnp.asarray(raw["ff_w"], f32)     # (F, H+E)
    ff_b = jnp.asarray(raw["ff_b"], f32)     # (F,)
    w_ih = jnp.asarray(raw["w_ih"], f32)     # (4H, F)
    w_hh = jnp.asarray(raw["w_hh"], f32)     # (4H, H)
    b_ih = jnp.asarray(raw["b_ih"], f32)     # (4H,)
    b_hh = jnp.asarray(raw["b_hh"], f32)     # (4H,)

    fc_wt_ctx = fc_w[:, :E].T                # (E, F)
    fc_wt_y = fc_w[:, E:].T                  # (F, F)
    ff_wt_h = ff_w[:, :H].T                  # (H, F)
    ff_wt_ctx = ff_w[:, H:].T                # (E, F)
    wih_t = w_ih.T                           # (F, 4H)
    whh_t = w_hh.T                           # (H, 4H)
    bias = b_ih + b_hh                       # (4H,)

    # Fold fc (Linear E+F -> F) into the LSTM input projection:
    #   gates_pre = ctx @ W_ctx_g + y @ W_y_g + b_g + h @ whh
    w_ctx_g = fc_wt_ctx @ wih_t              # (E, 4H)
    w_y_g = fc_wt_y @ wih_t                  # (F, 4H)
    b_g = fc_b @ wih_t + bias                # (4H,)
    # Feedback path for free-running steps: y_pred -> fc -> gates, folded into
    # the hidden projection (y_pred = h @ ff_h + ctx_ff).
    w_fb_g = ff_wt_h @ w_y_g                 # (H, 4H)

    def gate_pad(m):
        # (rows, 4H) -> (rows, GW): gate k occupies lanes [k*GP, k*GP+H)
        rows = m.shape[0]
        out = jnp.zeros((rows, GW), f32)
        for k in range(NG):
            out = out.at[:, k * GP:k * GP + H].set(m[:, k * H:(k + 1) * H])
        return out

    w_y_gp = gate_pad(w_y_g)                 # (F, GW)
    w_ctx_gp = gate_pad(w_ctx_g)             # (E, GW)
    b_gp = gate_pad(b_g[None, :])            # (1, GW)

    # fused hidden-dependent weights: [whh | ff_h@W_y | ff_h], rows padded to HP
    w_h_fused = jnp.zeros((HP, W_TOT), f32)
    w_h_fused = w_h_fused.at[:H, 0:GW].set(gate_pad(whh_t))
    w_h_fused = w_h_fused.at[:H, GW:2 * GW].set(gate_pad(w_fb_g))
    w_h_fused = w_h_fused.at[:H, 2 * GW:2 * GW + F].set(ff_wt_h)

    # fc_final context part, padded to a full 128-lane block (cols F.. are 0)
    ff_ctx_p = jnp.zeros((E, GP), f32).at[:, :F].set(ff_wt_ctx)
    ff_b_p = jnp.zeros((1, GP), f32).at[0, :F].set(ff_b)

    return {
        "w_y_gp": w_y_gp,
        "w_ctx_gp": w_ctx_gp,
        "b_gp": b_gp,
        "w_h_fused": w_h_fused,
        "ff_ctx_p": ff_ctx_p,
        "ff_b_p": ff_b_p,
    }


# ---------------------------------------------------------------------------
# Kernel
# ---------------------------------------------------------------------------
def _decoder_kernel(tf_ref,                                  # SMEM (scalar prefetch)
                    ctx_ref, y_ref,                          # activations
                    w_y_ref, w_ctx_ref, b_g_ref,             # weights
                    w_hf_ref, w_ffc_ref, ff_b_ref,
                    out_ref,                                 # output
                    xin_ref):                                # VMEM scratch
    f32 = jnp.float32
    bt = ctx_ref.shape[0]
    ctx = ctx_ref[...]                                       # (bt, E)

    # ---- per-tile constants, hoisted off the serial chain -------------------
    gate_const = (jnp.dot(ctx, w_ctx_ref[...], preferred_element_type=f32)
                  + b_g_ref[...])                            # (bt, GW)
    ctx_ff = (jnp.dot(ctx, w_ffc_ref[...], preferred_element_type=f32)
              + ff_b_ref[...])                               # (bt, GP), cols F.. = 0
    # gate constant for free-running steps (includes ctx_ff @ W_y)
    gc_free = gate_const + jnp.dot(ctx_ff[:, :F], w_y_ref[...],
                                   preferred_element_type=f32)

    # ---- ONE batched matmul: warm-up + teacher-forced input projections -----
    y_flat = y_ref[...].reshape(TN * bt, F)
    xin_ref[...] = jnp.dot(y_flat, w_y_ref[...],
                           preferred_element_type=f32).reshape(TN, bt, GW)

    def sigm(x):                        # single-EUP sigmoid
        return 0.5 * jnp.tanh(0.5 * x) + 0.5

    def lstm_update(pre, cell):
        # per-gate 128-lane blocks -> every slice is vreg-aligned (no XLU)
        i = sigm(pre[:, 0 * GP:1 * GP])
        f = sigm(pre[:, 1 * GP:2 * GP])
        g = jnp.tanh(pre[:, 2 * GP:3 * GP])
        o = sigm(pre[:, 3 * GP:4 * GP])
        cell = f * cell + i * g
        return o * jnp.tanh(cell), cell

    # ---- warm-up recurrence: ONE fused hidden matmul per serial step --------
    def warm_body(t, carry):
        hf, cell = carry
        pre = gate_const + xin_ref[t] + hf[:, :GW]
        hidden, cell = lstm_update(pre, cell)
        hf = jnp.dot(hidden, w_hf_ref[...], preferred_element_type=f32)
        return hf, cell

    hf, cell = jax.lax.fori_loop(
        0, T, warm_body,
        (jnp.zeros((bt, W_TOT), f32), jnp.zeros((bt, GP), f32)),
        unroll=True)

    # hf columns: [h@whh (GW) | h@(ff_h@W_y) (GW) | h@ff_h (GP)]
    out_ref[:, 0:GP] = hf[:, 2 * GW:] + ctx_ff               # prediction 0

    # ---- autoregressive predictions: ONE dependent matmul per step ----------
    for t in range(1, N_PRED):
        w_tf = tf_ref[t - 1].astype(f32)                     # runtime 0/1 flag
        tf_term = gate_const + xin_ref[T + t - 1]            # y_targ @ W_y (precomp.)
        fr_term = gc_free + hf[:, GW:2 * GW]                 # y_pred @ W_y (fused)
        pre = hf[:, :GW] + w_tf * tf_term + (1.0 - w_tf) * fr_term
        hidden, cell = lstm_update(pre, cell)
        hf = jnp.dot(hidden, w_hf_ref[...], preferred_element_type=f32)
        out_ref[:, t * GP:(t + 1) * GP] = hf[:, 2 * GW:] + ctx_ff


# ---------------------------------------------------------------------------
# Wrapper
# ---------------------------------------------------------------------------
def _tile_plan(B):
    """Return (padded_B, batch_tile): big sublane-aligned tiles, grid>=2 when
    possible so the two v7x TensorCores both get work."""
    ceil_to = lambda x, m: -(-x // m) * m
    if B <= 16:
        Bp = ceil_to(B, 8)
        return Bp, Bp                       # one tile, tiny batch
    if B <= 256:
        Bp = ceil_to(B, 16)
        return Bp, Bp // 2                  # grid = 2
    Bp = ceil_to(B, 128)
    return Bp, 128                          # big MXU-filling tiles, grid >= 3


def decoder_forward(input_encoded, y_hists, y_targs, raw_params, tf_flags):
    B = input_encoded.shape[0]
    # context = mean over the encoder sequence: computed here so the (B,S,E)
    # tensor is never shipped into the kernel.
    context = jnp.mean(jnp.asarray(input_encoded, jnp.float32), axis=1)   # (B,E)
    yh = jnp.transpose(jnp.asarray(y_hists, jnp.float32), (1, 0, 2))      # (T,B,F)
    yt = jnp.transpose(jnp.asarray(y_targs, jnp.float32), (1, 0, 2))      # (5,B,F)
    y_all = jnp.concatenate([yh, yt], axis=0)                             # (TN,B,F)

    Bp, bt = _tile_plan(B)
    if Bp != B:
        context = jnp.pad(context, ((0, Bp - B), (0, 0)))
        y_all = jnp.pad(y_all, ((0, 0), (0, Bp - B), (0, 0)))

    tf_arr = jnp.asarray(np.asarray(tf_flags, dtype=np.int32))            # (5,)
    assert tf_arr.shape == (N_PRED - 1,)
    p = prepare_decoder_params(raw_params)

    w_full = lambda i, tf: (0, 0)           # whole weight array, every grid step
    grid_spec = pltpu.PrefetchScalarGridSpec(
        num_scalar_prefetch=1,
        grid=(Bp // bt,),
        in_specs=[
            pl.BlockSpec((bt, E), lambda i, tf: (i, 0)),              # context
            pl.BlockSpec((TN, bt, F), lambda i, tf: (0, i, 0)),       # y_all
            pl.BlockSpec((F, GW), w_full),                            # w_y_gp
            pl.BlockSpec((E, GW), w_full),                            # w_ctx_gp
            pl.BlockSpec((1, GW), w_full),                            # b_gp
            pl.BlockSpec((HP, W_TOT), w_full),                        # w_h_fused
            pl.BlockSpec((E, GP), w_full),                            # ff_ctx_p
            pl.BlockSpec((1, GP), w_full),                            # ff_b_p
        ],
        out_specs=pl.BlockSpec((bt, OUT_W), lambda i, tf: (i, 0)),
        scratch_shapes=[pltpu.VMEM((TN, bt, GW), jnp.float32)],
    )

    out = pl.pallas_call(
        _decoder_kernel,
        out_shape=jax.ShapeDtypeStruct((Bp, OUT_W), jnp.float32),
        grid_spec=grid_spec,
        compiler_params=pltpu.CompilerParams(
            dimension_semantics=("parallel",),
            vmem_limit_bytes=32 << 20),
    )(tf_arr, context, y_all,
      p["w_y_gp"], p["w_ctx_gp"], p["b_gp"],
      p["w_h_fused"], p["ff_ctx_p"], p["ff_b_p"])

    # lane-dense (Bp, N_PRED*128) -> (B, N_PRED, F)
    return out[:B].reshape(B, N_PRED, GP)[:, :, :F]


# ---------------------------------------------------------------------------
# Pure numpy reference, faithful (un-fused) math of the PyTorch module
# ---------------------------------------------------------------------------
def decoder_reference(input_encoded, y_hists, y_targs, raw, tf_flags):
    enc = np.asarray(input_encoded, np.float32)
    yh = np.asarray(y_hists, np.float32)
    yt = np.asarray(y_targs, np.float32)
    p = {k: np.asarray(v, np.float32) for k, v in raw.items()}

    def sigmoid(x):
        return 1.0 / (1.0 + np.exp(-x))

    B = enc.shape[0]
    context = enc.mean(axis=1)
    hidden = np.zeros((B, H), np.float32)
    cell = np.zeros((B, H), np.float32)

    def fc(x):
        return x @ p["fc_w"].T + p["fc_b"]

    def fc_final(x):
        return x @ p["ff_w"].T + p["ff_b"]

    def lstm_step(x, h, c):
        gates = x @ p["w_ih"].T + h @ p["w_hh"].T + p["b_ih"] + p["b_hh"]
        i = sigmoid(gates[:, 0 * H:1 * H])
        f = sigmoid(gates[:, 1 * H:2 * H])
        g = np.tanh(gates[:, 2 * H:3 * H])
        o = sigmoid(gates[:, 3 * H:4 * H])
        c2 = f * c + i * g
        return o * np.tanh(c2), c2

    for t in range(T):
        hidden, cell = lstm_step(fc(np.concatenate([context, yh[:, t, :]], 1)),
                                 hidden, cell)
    preds = np.zeros((B, N_PRED, F), np.float32)
    preds[:, 0, :] = fc_final(np.concatenate([hidden, context], 1))
    for t in range(1, N_PRED):
        y = yt[:, t - 1, :] if tf_flags[t - 1] else preds[:, t - 1, :]
        hidden, cell = lstm_step(fc(np.concatenate([context, y], 1)),
                                 hidden, cell)
        preds[:, t, :] = fc_final(np.concatenate([hidden, context], 1))
    return preds


# ---------------------------------------------------------------------------
if __name__ == "__main__":
    B, S = 4, 10          # batch, encoder sequence length
    key = jax.random.PRNGKey(0)
    ks = jax.random.split(key, 12)

    bound = 1.0 / np.sqrt(H)
    raw = {
        "fc_w": jax.random.normal(ks[0], (F, E + F), jnp.float32),        # normal_()
        "fc_b": jax.random.uniform(ks[1], (F,), jnp.float32, -bound, bound),
        "ff_w": jax.random.normal(ks[2], (F, H + E), jnp.float32) / np.sqrt(H + E),
        "ff_b": jax.random.uniform(ks[3], (F,), jnp.float32, -bound, bound),
        "w_ih": jax.random.uniform(ks[4], (4 * H, F), jnp.float32, -bound, bound),
        "w_hh": jax.random.uniform(ks[5], (4 * H, H), jnp.float32, -bound, bound),
        "b_ih": jax.random.uniform(ks[6], (4 * H,), jnp.float32, -bound, bound),
        "b_hh": jax.random.uniform(ks[7], (4 * H,), jnp.float32, -bound, bound),
    }

    input_encoded = jax.random.normal(ks[8], (B, S, E), jnp.float32)
    y_hists = jax.random.normal(ks[9], (B, T, F), jnp.float32) * 0.1
    y_targs = jax.random.normal(ks[10], (B, N_PRED - 1, F), jnp.float32) * 0.1

    # teacher-forcing coin flips (torch.rand(1) < 0.5) drawn once on the host;
    # passed to the kernel as a runtime int32 flag vector (no recompiles).
    teacher_force = 0.5
    flips = jax.device_get(jax.random.uniform(ks[11], (N_PRED - 1,)))
    tf_flags = tuple(bool(v < teacher_force) for v in flips)

    out = decoder_forward(input_encoded, y_hists, y_targs, raw, tf_flags)
    out = jax.block_until_ready(out)

    ref = decoder_reference(input_encoded, y_hists, y_targs, raw, tf_flags)
    np.testing.assert_allclose(np.asarray(out), ref, rtol=1e-2, atol=1e-2)
    assert out.shape == (B, N_PRED, F)

    print("KERNEL_OK")
</pallas_src>

<mosaic_0001>
module attributes {stable_mosaic.version = 11 : i64} {
  func.func @_decoder_kernel(%arg0: i32, %arg1: memref<5xi32, #tpu.memory_space<smem>>, %arg2: memref<8x64xf32, #tpu.memory_space<vmem>>, %arg3: memref<17x8x11xf32, #tpu.memory_space<vmem>>, %arg4: memref<11x512xf32, #tpu.memory_space<vmem>>, %arg5: memref<64x512xf32, #tpu.memory_space<vmem>>, %arg6: memref<1x512xf32, #tpu.memory_space<vmem>>, %arg7: memref<128x1152xf32, #tpu.memory_space<vmem>>, %arg8: memref<64x128xf32, #tpu.memory_space<vmem>>, %arg9: memref<1x128xf32, #tpu.memory_space<vmem>>, %arg10: memref<8x768xf32, #tpu.memory_space<vmem>>, %arg11: memref<17x8x512xf32, #tpu.memory_space<vmem>>) attributes {dimension_semantics = [#tpu.dimension_semantics<parallel>], iteration_bounds = array<i64: 1>, scalar_prefetch = 1 : i64, scratch_operands = 1 : i64, tpu.core_type = #tpu.core_type<tc>, window_params = [{transform_indices = @transform_0, window_bounds = array<i64: 8, 64>}, {transform_indices = @transform_1, window_bounds = array<i64: 17, 8, 11>}, {pipeline_mode = #tpu.pipeline_mode<synchronous>, transform_indices = @transform_2, window_bounds = array<i64: 11, 512>}, {pipeline_mode = #tpu.pipeline_mode<synchronous>, transform_indices = @transform_3, window_bounds = array<i64: 64, 512>}, {pipeline_mode = #tpu.pipeline_mode<synchronous>, transform_indices = @transform_4, window_bounds = array<i64: 1, 512>}, {pipeline_mode = #tpu.pipeline_mode<synchronous>, transform_indices = @transform_5, window_bounds = array<i64: 128, 1152>}, {pipeline_mode = #tpu.pipeline_mode<synchronous>, transform_indices = @transform_6, window_bounds = array<i64: 64, 128>}, {pipeline_mode = #tpu.pipeline_mode<synchronous>, transform_indices = @transform_7, window_bounds = array<i64: 1, 128>}, {transform_indices = @transform_8, window_bounds = array<i64: 8, 768>}]} {
    %c0 = arith.constant 0 : index
    %c0_0 = arith.constant 0 : index
    %0 = vector.load %arg2[%c0, %c0_0] : memref<8x64xf32, #tpu.memory_space<vmem>>, vector<8x64xf32>
    %c0_1 = arith.constant 0 : index
    %c0_2 = arith.constant 0 : index
    %1 = vector.load %arg5[%c0_1, %c0_2] : memref<64x512xf32, #tpu.memory_space<vmem>>, vector<64x512xf32>
    %cst = arith.constant dense<0.000000e+00> : vector<8x512xf32>
    %2 = tpu.matmul %0, %1, %cst {dimension_numbers = #tpu.dot_dimension_numbers<[1], [0], [0], [1], [0, 0, 1, 1], [], []>} : vector<8x64xf32>, vector<64x512xf32>, vector<8x512xf32> -> vector<8x512xf32>
    %c0_3 = arith.constant 0 : index
    %c0_4 = arith.constant 0 : index
    %3 = vector.load %arg6[%c0_3, %c0_4] : memref<1x512xf32, #tpu.memory_space<vmem>>, vector<1x512xf32>
    %4 = vector.broadcast %3 : vector<1x512xf32> to vector<8x512xf32>
    %5 = arith.addf %2, %4 : vector<8x512xf32>
    %c0_5 = arith.constant 0 : index
    %c0_6 = arith.constant 0 : index
    %6 = vector.load %arg8[%c0_5, %c0_6] : memref<64x128xf32, #tpu.memory_space<vmem>>, vector<64x128xf32>
    %cst_7 = arith.constant dense<0.000000e+00> : vector<8x128xf32>
    %7 = tpu.matmul %0, %6, %cst_7 {dimension_numbers = #tpu.dot_dimension_numbers<[1], [0], [0], [1], [0, 0, 1, 1], [], []>} : vector<8x64xf32>, vector<64x128xf32>, vector<8x128xf32> -> vector<8x128xf32>
    %c0_8 = arith.constant 0 : index
    %c0_9 = arith.constant 0 : index
    %8 = vector.load %arg9[%c0_8, %c0_9] : memref<1x128xf32, #tpu.memory_space<vmem>>, vector<1x128xf32>
    %9 = vector.broadcast %8 : vector<1x128xf32> to vector<8x128xf32>
    %10 = arith.addf %7, %9 : vector<8x128xf32>
    %11 = vector.extract_strided_slice %10 {offsets = [0, 0], sizes = [8, 11], strides = [1, 1]} : vector<8x128xf32> to vector<8x11xf32>
    %c0_10 = arith.constant 0 : index
    %c0_11 = arith.constant 0 : index
    %12 = vector.load %arg4[%c0_10, %c0_11] : memref<11x512xf32, #tpu.memory_space<vmem>>, vector<11x512xf32>
    %cst_12 = arith.constant dense<0.000000e+00> : vector<8x512xf32>
    %13 = tpu.matmul %11, %12, %cst_12 {dimension_numbers = #tpu.dot_dimension_numbers<[1], [0], [0], [1], [0, 0, 1, 1], [], []>} : vector<8x11xf32>, vector<11x512xf32>, vector<8x512xf32> -> vector<8x512xf32>
    %14 = arith.addf %5, %13 : vector<8x512xf32>
    %c0_13 = arith.constant 0 : index
    %c0_14 = arith.constant 0 : index
    %c0_15 = arith.constant 0 : index
    %15 = vector.load %arg3[%c0_13, %c0_14, %c0_15] : memref<17x8x11xf32, #tpu.memory_space<vmem>>, vector<17x8x11xf32>
    %16 = vector.shape_cast %15 : vector<17x8x11xf32> to vector<136x11xf32>
    %c0_16 = arith.constant 0 : index
    %c0_17 = arith.constant 0 : index
    %17 = vector.load %arg4[%c0_16, %c0_17] : memref<11x512xf32, #tpu.memory_space<vmem>>, vector<11x512xf32>
    %cst_18 = arith.constant dense<0.000000e+00> : vector<136x512xf32>
    %18 = tpu.matmul %16, %17, %cst_18 {dimension_numbers = #tpu.dot_dimension_numbers<[1], [0], [0], [1], [0, 0, 1, 1], [], []>} : vector<136x11xf32>, vector<11x512xf32>, vector<136x512xf32> -> vector<136x512xf32>
    %19 = vector.shape_cast %18 : vector<136x512xf32> to vector<17x8x512xf32>
    %c0_19 = arith.constant 0 : index
    %c0_20 = arith.constant 0 : index
    %c0_21 = arith.constant 0 : index
    %20 = vector.load %arg11[%c0_19, %c0_20, %c0_21] : memref<17x8x512xf32, #tpu.memory_space<vmem>>, vector<17x8x512xf32>
    tpu.vector_store %arg11[%c0_19, %c0_20, %c0_21], %19 {strides = array<i32>} : memref<17x8x512xf32, #tpu.memory_space<vmem>>, vector<17x8x512xf32>,
    %cst_22 = arith.constant 0.000000e+00 : f32
    %21 = vector.broadcast %cst_22 : f32 to vector<8x1152xf32>
    %cst_23 = arith.constant 0.000000e+00 : f32
    %22 = vector.broadcast %cst_23 : f32 to vector<8x128xf32>
    %c0_i32 = arith.constant 0 : i32
    %23 = arith.index_cast %c0_i32 : i32 to index
    %c0_24 = arith.constant 0 : index
    %c0_25 = arith.constant 0 : index
    %24 = vector.load %arg11[%23, %c0_24, %c0_25] : memref<17x8x512xf32, #tpu.memory_space<vmem>>, vector<1x8x512xf32>
    %25 = vector.shape_cast %24 : vector<1x8x512xf32> to vector<8x512xf32>
    %26 = arith.addf %5, %25 : vector<8x512xf32>
    %27 = vector.extract_strided_slice %21 {offsets = [0, 0], sizes = [8, 512], strides = [1, 1]} : vector<8x1152xf32> to vector<8x512xf32>
    %28 = arith.addf %26, %27 : vector<8x512xf32>
    %29 = vector.extract_strided_slice %28 {offsets = [0, 0], sizes = [8, 128], strides = [1, 1]} : vector<8x512xf32> to vector<8x128xf32>
    %cst_26 = arith.constant 5.000000e-01 : f32
    %30 = vector.broadcast %cst_26 : f32 to vector<8x128xf32>
    %31 = arith.mulf %30, %29 : vector<8x128xf32>
    %32 = math.tanh %31 : vector<8x128xf32>
    %cst_27 = arith.constant 5.000000e-01 : f32
    %33 = vector.broadcast %cst_27 : f32 to vector<8x128xf32>
    %34 = arith.mulf %33, %32 : vector<8x128xf32>
    %cst_28 = arith.constant 5.000000e-01 : f32
    %35 = vector.broadcast %cst_28 : f32 to vector<8x128xf32>
    %36 = arith.addf %34, %35 : vector<8x128xf32>
    %37 = vector.extract_strided_slice %28 {offsets = [0, 128], sizes = [8, 128], strides = [1, 1]} : vector<8x512xf32> to vector<8x128xf32>
    %cst_29 = arith.constant 5.000000e-01 : f32
    %38 = vector.broadcast %cst_29 : f32 to vector<8x128xf32>
    %39 = arith.mulf %38, %37 : vector<8x128xf32>
    %40 = math.tanh %39 : vector<8x128xf32>
    %cst_30 = arith.constant 5.000000e-01 : f32
    %41 = vector.broadcast %cst_30 : f32 to vector<8x128xf32>
    %42 = arith.mulf %41, %40 : vector<8x128xf32>
    %cst_31 = arith.constant 5.000000e-01 : f32
    %43 = vector.broadcast %cst_31 : f32 to vector<8x128xf32>
    %44 = arith.addf %42, %43 : vector<8x128xf32>
    %45 = vector.extract_strided_slice %28 {offsets = [0, 256], sizes = [8, 128], strides = [1, 1]} : vector<8x512xf32> to vector<8x128xf32>
    %46 = math.tanh %45 : vector<8x128xf32>
    %47 = vector.extract_strided_slice %28 {offsets = [0, 384], sizes = [8, 128], strides = [1, 1]} : vector<8x512xf32> to vector<8x128xf32>
    %cst_32 = arith.constant 5.000000e-01 : f32
    %48 = vector.broadcast %cst_32 : f32 to vector<8x128xf32>
    %49 = arith.mulf %48, %47 : vector<8x128xf32>
    %50 = math.tanh %49 : vector<8x128xf32>
    %cst_33 = arith.constant 5.000000e-01 : f32
    %51 = vector.broadcast %cst_33 : f32 to vector<8x128xf32>
    %52 = arith.mulf %51, %50 : vector<8x128xf32>
    %cst_34 = arith.constant 5.000000e-01 : f32
    %53 = vector.broadcast %cst_34 : f32 to vector<8x128xf32>
    %54 = arith.addf %52, %53 : vector<8x128xf32>
    %55 = arith.mulf %44, %22 : vector<8x128xf32>
    %56 = arith.mulf %36, %46 : vector<8x128xf32>
    %57 = arith.addf %55, %56 : vector<8x128xf32>
    %58 = math.tanh %57 : vector<8x128xf32>
    %59 = arith.mulf %54, %58 : vector<8x128xf32>
    %c0_35 = arith.constant 0 : index
    %c0_36 = arith.constant 0 : index
    %60 = vector.load %arg7[%c0_35, %c0_36] : memref<128x1152xf32, #tpu.memory_space<vmem>>, vector<128x1152xf32>
    %cst_37 = arith.constant dense<0.000000e+00> : vector<8x1152xf32>
    %61 = tpu.matmul %59, %60, %cst_37 {dimension_numbers = #tpu.dot_dimension_numbers<[1], [0], [0], [1], [0, 0, 1, 1], [], []>} : vector<8x128xf32>, vector<128x1152xf32>, vector<8x1152xf32> -> vector<8x1152xf32>
    %c1_i32 = arith.constant 1 : i32
    %62 = arith.index_cast %c1_i32 : i32 to index
    %c0_38 = arith.constant 0 : index
    %c0_39 = arith.constant 0 : index
    %63 = vector.load %arg11[%62, %c0_38, %c0_39] : memref<17x8x512xf32, #tpu.memory_space<vmem>>, vector<1x8x512xf32>
    %64 = vector.shape_cast %63 : vector<1x8x512xf32> to vector<8x512xf32>
    %65 = arith.addf %5, %64 : vector<8x512xf32>
    %66 = vector.extract_strided_slice %61 {offsets = [0, 0], sizes = [8, 512], strides = [1, 1]} : vector<8x1152xf32> to vector<8x512xf32>
    %67 = arith.addf %65, %66 : vector<8x512xf32>
    %68 = vector.extract_strided_slice %67 {offsets = [0, 0], sizes = [8, 128], strides = [1, 1]} : vector<8x512xf32> to vector<8x128xf32>
    %cst_40 = arith.constant 5.000000e-01 : f32
    %69 = vector.broadcast %cst_40 : f32 to vector<8x128xf32>
    %70 = arith.mulf %69, %68 : vector<8x128xf32>
    %71 = math.tanh %70 : vector<8x128xf32>
    %cst_41 = arith.constant 5.000000e-01 : f32
    %72 = vector.broadcast %cst_41 : f32 to vector<8x128xf32>
    %73 = arith.mulf %72, %71 : vector<8x128xf32>
    %cst_42 = arith.constant 5.000000e-01 : f32
    %74 = vector.broadcast %cst_42 : f32 to vector<8x128xf32>
    %75 = arith.addf %73, %74 : vector<8x128xf32>
    %76 = vector.extract_strided_slice %67 {offsets = [0, 128], sizes = [8, 128], strides = [1, 1]} : vector<8x512xf32> to vector<8x128xf32>
    %cst_43 = arith.constant 5.000000e-01 : f32
    %77 = vector.broadcast %cst_43 : f32 to vector<8x128xf32>
    %78 = arith.mulf %77, %76 : vector<8x128xf32>
    %79 = math.tanh %78 : vector<8x128xf32>
    %cst_44 = arith.constant 5.000000e-01 : f32
    %80 = vector.broadcast %cst_44 : f32 to vector<8x128xf32>
    %81 = arith.mulf %80, %79 : vector<8x128xf32>
    %cst_45 = arith.constant 5.000000e-01 : f32
    %82 = vector.broadcast %cst_45 : f32 to vector<8x128xf32>
    %83 = arith.addf %81, %82 : vector<8x128xf32>
    %84 = vector.extract_strided_slice %67 {offsets = [0, 256], sizes = [8, 128], strides = [1, 1]} : vector<8x512xf32> to vector<8x128xf32>
    %85 = math.tanh %84 : vector<8x128xf32>
    %86 = vector.extract_strided_slice %67 {offsets = [0, 384], sizes = [8, 128], strides = [1, 1]} : vector<8x512xf32> to vector<8x128xf32>
    %cst_46 = arith.constant 5.000000e-01 : f32
    %87 = vector.broadcast %cst_46 : f32 to vector<8x128xf32>
    %88 = arith.mulf %87, %86 : vector<8x128xf32>
    %89 = math.tanh %88 : vector<8x128xf32>
    %cst_47 = arith.constant 5.000000e-01 : f32
    %90 = vector.broadcast %cst_47 : f32 to vector<8x128xf32>
    %91 = arith.mulf %90, %89 : vector<8x128xf32>
    %cst_48 = arith.constant 5.000000e-01 : f32
    %92 = vector.broadcast %cst_48 : f32 to vector<8x128xf32>
    %93 = arith.addf %91, %92 : vector<8x128xf32>
    %94 = arith.mulf %83, %57 : vector<8x128xf32>
    %95 = arith.mulf %75, %85 : vector<8x128xf32>
    %96 = arith.addf %94, %95 : vector<8x128xf32>
    %97 = math.tanh %96 : vector<8x128xf32>
    %98 = arith.mulf %93, %97 : vector<8x128xf32>
    %c0_49 = arith.constant 0 : index
    %c0_50 = arith.constant 0 : index
    %99 = vector.load %arg7[%c0_49, %c0_50] : memref<128x1152xf32, #tpu.memory_space<vmem>>, vector<128x1152xf32>
    %cst_51 = arith.constant dense<0.000000e+00> : vector<8x1152xf32>
    %100 = tpu.matmul %98, %99, %cst_51 {dimension_numbers = #tpu.dot_dimension_numbers<[1], [0], [0], [1], [0, 0, 1, 1], [], []>} : vector<8x128xf32>, vector<128x1152xf32>, vector<8x1152xf32> -> vector<8x1152xf32>
    %c2_i32 = arith.constant 2 : i32
    %101 = arith.index_cast %c2_i32 : i32 to index
    %c0_52 = arith.constant 0 : index
    %c0_53 = arith.constant 0 : index
    %102 = vector.load %arg11[%101, %c0_52, %c0_53] : memref<17x8x512xf32, #tpu.memory_space<vmem>>, vector<1x8x512xf32>
    %103 = vector.shape_cast %102 : vector<1x8x512xf32> to vector<8x512xf32>
    %104 = arith.addf %5, %103 : vector<8x512xf32>
    %105 = vector.extract_strided_slice %100 {offsets = [0, 0], sizes = [8, 512], strides = [1, 1]} : vector<8x1152xf32> to vector<8x512xf32>
    %106 = arith.addf %104, %105 : vector<8x512xf32>
    %107 = vector.extract_strided_slice %106 {offsets = [0, 0], sizes = [8, 128], strides = [1, 1]} : vector<8x512xf32> to vector<8x128xf32>
    %cst_54 = arith.constant 5.000000e-01 : f32
    %108 = vector.broadcast %cst_54 : f32 to vector<8x128xf32>
    %109 = arith.mulf %108, %107 : vector<8x128xf32>
    %110 = math.tanh %109 : vector<8x128xf32>
    %cst_55 = arith.constant 5.000000e-01 : f32
    %111 = vector.broadcast %cst_55 : f32 to vector<8x128xf32>
    %112 = arith.mulf %111, %110 : vector<8x128xf32>
    %cst_56 = arith.constant 5.000000e-01 : f32
    %113 = vector.broadcast %cst_56 : f32 to vector<8x128xf32>
    %114 = arith.addf %112, %113 : vector<8x128xf32>
    %115 = vector.extract_strided_slice %106 {offsets = [0, 128], sizes = [8, 128], strides = [1, 1]} : vector<8x512xf32> to vector<8x128xf32>
    %cst_57 = arith.constant 5.000000e-01 : f32
    %116 = vector.broadcast %cst_57 : f32 to vector<8x128xf32>
    %117 = arith.mulf %116, %115 : vector<8x128xf32>
    %118 = math.tanh %117 : vector<8x128xf32>
    %cst_58 = arith.constant 5.000000e-01 : f32
    %119 = vector.broadcast %cst_58 : f32 to vector<8x128xf32>
    %120 = arith.mulf %119, %118 : vector<8x128xf32>
    %cst_59 = arith.constant 5.000000e-01 : f32
    %121 = vector.broadcast %cst_59 : f32 to vector<8x128xf32>
    %122 = arith.addf %120, %121 : vector<8x128xf32>
    %123 = vector.extract_strided_slice %106 {offsets = [0, 256], sizes = [8, 128], strides = [1, 1]} : vector<8x512xf32> to vector<8x128xf32>
    %124 = math.tanh %123 : vector<8x128xf32>
    %125 = vector.extract_strided_slice %106 {offsets = [0, 384], sizes = [8, 128], strides = [1, 1]} : vector<8x512xf32> to vector<8x128xf32>
    %cst_60 = arith.constant 5.000000e-01 : f32
    %126 = vector.broadcast %cst_60 : f32 to vector<8x128xf32>
    %127 = arith.mulf %126, %125 : vector<8x128xf32>
    %128 = math.tanh %127 : vector<8x128xf32>
    %cst_61 = arith.constant 5.000000e-01 : f32
    %129 = vector.broadcast %cst_61 : f32 to vector<8x128xf32>
    %130 = arith.mulf %129, %128 : vector<8x128xf32>
    %cst_62 = arith.constant 5.000000e-01 : f32
    %131 = vector.broadcast %cst_62 : f32 to vector<8x128xf32>
    %132 = arith.addf %130, %131 : vector<8x128xf32>
    %133 = arith.mulf %122, %96 : vector<8x128xf32>
    %134 = arith.mulf %114, %124 : vector<8x128xf32>
    %135 = arith.addf %133, %134 : vector<8x128xf32>
    %136 = math.tanh %135 : vector<8x128xf32>
    %137 = arith.mulf %132, %136 : vector<8x128xf32>
    %c0_63 = arith.constant 0 : index
    %c0_64 = arith.constant 0 : index
    %138 = vector.load %arg7[%c0_63, %c0_64] : memref<128x1152xf32, #tpu.memory_space<vmem>>, vector<128x1152xf32>
    %cst_65 = arith.constant dense<0.000000e+00> : vector<8x1152xf32>
    %139 = tpu.matmul %137, %138, %cst_65 {dimension_numbers = #tpu.dot_dimension_numbers<[1], [0], [0], [1], [0, 0, 1, 1], [], []>} : vector<8x128xf32>, vector<128x1152xf32>, vector<8x1152xf32> -> vector<8x1152xf32>
    %c3_i32 = arith.constant 3 : i32
    %140 = arith.index_cast %c3_i32 : i32 to index
    %c0_66 = arith.constant 0 : index
    %c0_67 = arith.constant 0 : index
    %141 = vector.load %arg11[%140, %c0_66, %c0_67] : memref<17x8x512xf32, #tpu.memory_space<vmem>>, vector<1x8x512xf32>
    %142 = vector.shape_cast %141 : vector<1x8x512xf32> to vector<8x512xf32>
    %143 = arith.addf %5, %142 : vector<8x512xf32>
    %144 = vector.extract_strided_slice %139 {offsets = [0, 0], sizes = [8, 512], strides = [1, 1]} : vector<8x1152xf32> to vector<8x512xf32>
    %145 = arith.addf %143, %144 : vector<8x512xf32>
    %146 = vector.extract_strided_slice %145 {offsets = [0, 0], sizes = [8, 128], strides = [1, 1]} : vector<8x512xf32> to vector<8x128xf32>
    %cst_68 = arith.constant 5.000000e-01 : f32
    %147 = vector.broadcast %cst_68 : f32 to vector<8x128xf32>
    %148 = arith.mulf %147, %146 : vector<8x128xf32>
    %149 = math.tanh %148 : vector<8x128xf32>
    %cst_69 = arith.constant 5.000000e-01 : f32
    %150 = vector.broadcast %cst_69 : f32 to vector<8x128xf32>
    %151 = arith.mulf %150, %149 : vector<8x128xf32>
    %cst_70 = arith.constant 5.000000e-01 : f32
    %152 = vector.broadcast %cst_70 : f32 to vector<8x128xf32>
    %153 = arith.addf %151, %152 : vector<8x128xf32>
    %154 = vector.extract_strided_slice %145 {offsets = [0, 128], sizes = [8, 128], strides = [1, 1]} : vector<8x512xf32> to vector<8x128xf32>
    %cst_71 = arith.constant 5.000000e-01 : f32
    %155 = vector.broadcast %cst_71 : f32 to vector<8x128xf32>
    %156 = arith.mulf %155, %154 : vector<8x128xf32>
    %157 = math.tanh %156 : vector<8x128xf32>
    %cst_72 = arith.constant 5.000000e-01 : f32
    %158 = vector.broadcast %cst_72 : f32 to vector<8x128xf32>
    %159 = arith.mulf %158, %157 : vector<8x128xf32>
    %cst_73 = arith.constant 5.000000e-01 : f32
    %160 = vector.broadcast %cst_73 : f32 to vector<8x128xf32>
    %161 = arith.addf %159, %160 : vector<8x128xf32>
    %162 = vector.extract_strided_slice %145 {offsets = [0, 256], sizes = [8, 128], strides = [1, 1]} : vector<8x512xf32> to vector<8x128xf32>
    %163 = math.tanh %162 : vector<8x128xf32>
    %164 = vector.extract_strided_slice %145 {offsets = [0, 384], sizes = [8, 128], strides = [1, 1]} : vector<8x512xf32> to vector<8x128xf32>
    %cst_74 = arith.constant 5.000000e-01 : f32
    %165 = vector.broadcast %cst_74 : f32 to vector<8x128xf32>
    %166 = arith.mulf %165, %164 : vector<8x128xf32>
    %167 = math.tanh %166 : vector<8x128xf32>
    %cst_75 = arith.constant 5.000000e-01 : f32
    %168 = vector.broadcast %cst_75 : f32 to vector<8x128xf32>
    %169 = arith.mulf %168, %167 : vector<8x128xf32>
    %cst_76 = arith.constant 5.000000e-01 : f32
    %170 = vector.broadcast %cst_76 : f32 to vector<8x128xf32>
    %171 = arith.addf %169, %170 : vector<8x128xf32>
    %172 = arith.mulf %161, %135 : vector<8x128xf32>
    %173 = arith.mulf %153, %163 : vector<8x128xf32>
    %174 = arith.addf %172, %173 : vector<8x128xf32>
    %175 = math.tanh %174 : vector<8x128xf32>
    %176 = arith.mulf %171, %175 : vector<8x128xf32>
    %c0_77 = arith.constant 0 : index
    %c0_78 = arith.constant 0 : index
    %177 = vector.load %arg7[%c0_77, %c0_78] : memref<128x1152xf32, #tpu.memory_space<vmem>>, vector<128x1152xf32>
    %cst_79 = arith.constant dense<0.000000e+00> : vector<8x1152xf32>
    %178 = tpu.matmul %176, %177, %cst_79 {dimension_numbers = #tpu.dot_dimension_numbers<[1], [0], [0], [1], [0, 0, 1, 1], [], []>} : vector<8x128xf32>, vector<128x1152xf32>, vector<8x1152xf32> -> vector<8x1152xf32>
    %c4_i32 = arith.constant 4 : i32
    %179 = arith.index_cast %c4_i32 : i32 to index
    %c0_80 = arith.constant 0 : index
    %c0_81 = arith.constant 0 : index
    %180 = vector.load %arg11[%179, %c0_80, %c0_81] : memref<17x8x512xf32, #tpu.memory_space<vmem>>, vector<1x8x512xf32>
    %181 = vector.shape_cast %180 : vector<1x8x512xf32> to vector<8x512xf32>
    %182 = arith.addf %5, %181 : vector<8x512xf32>
    %183 = vector.extract_strided_slice %178 {offsets = [0, 0], sizes = [8, 512], strides = [1, 1]} : vector<8x1152xf32> to vector<8x512xf32>
    %184 = arith.addf %182, %183 : vector<8x512xf32>
    %185 = vector.extract_strided_slice %184 {offsets = [0, 0], sizes = [8, 128], strides = [1, 1]} : vector<8x512xf32> to vector<8x128xf32>
    %cst_82 = arith.constant 5.000000e-01 : f32
    %186 = vector.broadcast %cst_82 : f32 to vector<8x128xf32>
    %187 = arith.mulf %186, %185 : vector<8x128xf32>
    %188 = math.tanh %187 : vector<8x128xf32>
    %cst_83 = arith.constant 5.000000e-01 : f32
    %189 = vector.broadcast %cst_83 : f32 to vector<8x128xf32>
    %190 = arith.mulf %189, %188 : vector<8x128xf32>
    %cst_84 = arith.constant 5.000000e-01 : f32
    %191 = vector.broadcast %cst_84 : f32 to vector<8x128xf32>
    %192 = arith.addf %190, %191 : vector<8x128xf32>
    %193 = vector.extract_strided_slice %184 {offsets = [0, 128], sizes = [8, 128], strides = [1, 1]} : vector<8x512xf32> to vector<8x128xf32>
    %cst_85 = arith.constant 5.000000e-01 : f32
    %194 = vector.broadcast %cst_85 : f32 to vector<8x128xf32>
    %195 = arith.mulf %194, %193 : vector<8x128xf32>
    %196 = math.tanh %195 : vector<8x128xf32>
    %cst_86 = arith.constant 5.000000e-01 : f32
    %197 = vector.broadcast %cst_86 : f32 to vector<8x128xf32>
    %198 = arith.mulf %197, %196 : vector<8x128xf32>
    %cst_87 = arith.constant 5.000000e-01 : f32
    %199 = vector.broadcast %cst_87 : f32 to vector<8x128xf32>
    %200 = arith.addf %198, %199 : vector<8x128xf32>
    %201 = vector.extract_strided_slice %184 {offsets = [0, 256], sizes = [8, 128], strides = [1, 1]} : vector<8x512xf32> to vector<8x128xf32>
    %202 = math.tanh %201 : vector<8x128xf32>
    %203 = vector.extract_strided_slice %184 {offsets = [0, 384], sizes = [8, 128], strides = [1, 1]} : vector<8x512xf32> to vector<8x128xf32>
    %cst_88 = arith.constant 5.000000e-01 : f32
    %204 = vector.broadcast %cst_88 : f32 to vector<8x128xf32>
    %205 = arith.mulf %204, %203 : vector<8x128xf32>
    %206 = math.tanh %205 : vector<8x128xf32>
    %cst_89 = arith.constant 5.000000e-01 : f32
    %207 = vector.broadcast %cst_89 : f32 to vector<8x128xf32>
    %208 = arith.mulf %207, %206 : vector<8x128xf32>
    %cst_90 = arith.constant 5.000000e-01 : f32
    %209 = vector.broadcast %cst_90 : f32 to vector<8x128xf32>
    %210 = arith.addf %208, %209 : vector<8x128xf32>
    %211 = arith.mulf %200, %174 : vector<8x128xf32>
    %212 = arith.mulf %192, %202 : vector<8x128xf32>
    %213 = arith.addf %211, %212 : vector<8x128xf32>
    %214 = math.tanh %213 : vector<8x128xf32>
    %215 = arith.mulf %210, %214 : vector<8x128xf32>
    %c0_91 = arith.constant 0 : index
    %c0_92 = arith.constant 0 : index
    %216 = vector.load %arg7[%c0_91, %c0_92] : memref<128x1152xf32, #tpu.memory_space<vmem>>, vector<128x1152xf32>
    %cst_93 = arith.constant dense<0.000000e+00> : vector<8x1152xf32>
    %217 = tpu.matmul %215, %216, %cst_93 {dimension_numbers = #tpu.dot_dimension_numbers<[1], [0], [0], [1], [0, 0, 1, 1], [], []>} : vector<8x128xf32>, vector<128x1152xf32>, vector<8x1152xf32> -> vector<8x1152xf32>
    %c5_i32 = arith.constant 5 : i32
    %218 = arith.index_cast %c5_i32 : i32 to index
    %c0_94 = arith.constant 0 : index
    %c0_95 = arith.constant 0 : index
    %219 = vector.load %arg11[%218, %c0_94, %c0_95] : memref<17x8x512xf32, #tpu.memory_space<vmem>>, vector<1x8x512xf32>
    %220 = vector.shape_cast %219 : vector<1x8x512xf32> to vector<8x512xf32>
    %221 = arith.addf %5, %220 : vector<8x512xf32>
    %222 = vector.extract_strided_slice %217 {offsets = [0, 0], sizes = [8, 512], strides = [1, 1]} : vector<8x1152xf32> to vector<8x512xf32>
    %223 = arith.addf %221, %222 : vector<8x512xf32>
    %224 = vector.extract_strided_slice %223 {offsets = [0, 0], sizes = [8, 128], strides = [1, 1]} : vector<8x512xf32> to vector<8x128xf32>
    %cst_96 = arith.constant 5.000000e-01 : f32
    %225 = vector.broadcast %cst_96 : f32 to vector<8x128xf32>
    %226 = arith.mulf %225, %224 : vector<8x128xf32>
    %227 = math.tanh %226 : vector<8x128xf32>
    %cst_97 = arith.constant 5.000000e-01 : f32
    %228 = vector.broadcast %cst_97 : f32 to vector<8x128xf32>
    %229 = arith.mulf %228, %227 : vector<8x128xf32>
    %cst_98 = arith.constant 5.000000e-01 : f32
    %230 = vector.broadcast %cst_98 : f32 to vector<8x128xf32>
    %231 = arith.addf %229, %230 : vector<8x128xf32>
    %232 = vector.extract_strided_slice %223 {offsets = [0, 128], sizes = [8, 128], strides = [1, 1]} : vector<8x512xf32> to vector<8x128xf32>
    %cst_99 = arith.constant 5.000000e-01 : f32
    %233 = vector.broadcast %cst_99 : f32 to vector<8x128xf32>
    %234 = arith.mulf %233, %232 : vector<8x128xf32>
    %235 = math.tanh %234 : vector<8x128xf32>
    %cst_100 = arith.constant 5.000000e-01 : f32
    %236 = vector.broadcast %cst_100 : f32 to vector<8x128xf32>
    %237 = arith.mulf %236, %235 : vector<8x128xf32>
    %cst_101 = arith.constant 5.000000e-01 : f32
    %238 = vector.broadcast %cst_101 : f32 to vector<8x128xf32>
    %239 = arith.addf %237, %238 : vector<8x128xf32>
    %240 = vector.extract_strided_slice %223 {offsets = [0, 256], sizes = [8, 128], strides = [1, 1]} : vector<8x512xf32> to vector<8x128xf32>
    %241 = math.tanh %240 : vector<8x128xf32>
    %242 = vector.extract_strided_slice %223 {offsets = [0, 384], sizes = [8, 128], strides = [1, 1]} : vector<8x512xf32> to vector<8x128xf32>
    %cst_102 = arith.constant 5.000000e-01 : f32
    %243 = vector.broadcast %cst_102 : f32 to vector<8x128xf32>
    %244 = arith.mulf %243, %242 : vector<8x128xf32>
    %245 = math.tanh %244 : vector<8x128xf32>
    %cst_103 = arith.constant 5.000000e-01 : f32
    %246 = vector.broadcast %cst_103 : f32 to vector<8x128xf32>
    %247 = arith.mulf %246, %245 : vector<8x128xf32>
    %cst_104 = arith.constant 5.000000e-01 : f32
    %248 = vector.broadcast %cst_104 : f32 to vector<8x128xf32>
    %249 = arith.addf %247, %248 : vector<8x128xf32>
    %250 = arith.mulf %239, %213 : vector<8x128xf32>
    %251 = arith.mulf %231, %241 : vector<8x128xf32>
    %252 = arith.addf %250, %251 : vector<8x128xf32>
    %253 = math.tanh %252 : vector<8x128xf32>
    %254 = arith.mulf %249, %253 : vector<8x128xf32>
    %c0_105 = arith.constant 0 : index
    %c0_106 = arith.constant 0 : index
    %255 = vector.load %arg7[%c0_105, %c0_106] : memref<128x1152xf32, #tpu.memory_space<vmem>>, vector<128x1152xf32>
    %cst_107 = arith.constant dense<0.000000e+00> : vector<8x1152xf32>
    %256 = tpu.matmul %254, %255, %cst_107 {dimension_numbers = #tpu.dot_dimension_numbers<[1], [0], [0], [1], [0, 0, 1, 1], [], []>} : vector<8x128xf32>, vector<128x1152xf32>, vector<8x1152xf32> -> vector<8x1152xf32>
    %c6_i32 = arith.constant 6 : i32
    %257 = arith.index_cast %c6_i32 : i32 to index
    %c0_108 = arith.constant 0 : index
    %c0_109 = arith.constant 0 : index
    %258 = vector.load %arg11[%257, %c0_108, %c0_109] : memref<17x8x512xf32, #tpu.memory_space<vmem>>, vector<1x8x512xf32>
    %259 = vector.shape_cast %258 : vector<1x8x512xf32> to vector<8x512xf32>
    %260 = arith.addf %5, %259 : vector<8x512xf32>
    %261 = vector.extract_strided_slice %256 {offsets = [0, 0], sizes = [8, 512], strides = [1, 1]} : vector<8x1152xf32> to vector<8x512xf32>
    %262 = arith.addf %260, %261 : vector<8x512xf32>
    %263 = vector.extract_strided_slice %262 {offsets = [0, 0], sizes = [8, 128], strides = [1, 1]} : vector<8x512xf32> to vector<8x128xf32>
    %cst_110 = arith.constant 5.000000e-01 : f32
    %264 = vector.broadcast %cst_110 : f32 to vector<8x128xf32>
    %265 = arith.mulf %264, %263 : vector<8x128xf32>
    %266 = math.tanh %265 : vector<8x128xf32>
    %cst_111 = arith.constant 5.000000e-01 : f32
    %267 = vector.broadcast %cst_111 : f32 to vector<8x128xf32>
    %268 = arith.mulf %267, %266 : vector<8x128xf32>
    %cst_112 = arith.constant 5.000000e-01 : f32
    %269 = vector.broadcast %cst_112 : f32 to vector<8x128xf32>
    %270 = arith.addf %268, %269 : vector<8x128xf32>
    %271 = vector.extract_strided_slice %262 {offsets = [0, 128], sizes = [8, 128], strides = [1, 1]} : vector<8x512xf32> to vector<8x128xf32>
    %cst_113 = arith.constant 5.000000e-01 : f32
    %272 = vector.broadcast %cst_113 : f32 to vector<8x128xf32>
    %273 = arith.mulf %272, %271 : vector<8x128xf32>
    %274 = math.tanh %273 : vector<8x128xf32>
    %cst_114 = arith.constant 5.000000e-01 : f32
    %275 = vector.broadcast %cst_114 : f32 to vector<8x128xf32>
    %276 = arith.mulf %275, %274 : vector<8x128xf32>
    %cst_115 = arith.constant 5.000000e-01 : f32
    %277 = vector.broadcast %cst_115 : f32 to vector<8x128xf32>
    %278 = arith.addf %276, %277 : vector<8x128xf32>
    %279 = vector.extract_strided_slice %262 {offsets = [0, 256], sizes = [8, 128], strides = [1, 1]} : vector<8x512xf32> to vector<8x128xf32>
    %280 = math.tanh %279 : vector<8x128xf32>
    %281 = vector.extract_strided_slice %262 {offsets = [0, 384], sizes = [8, 128], strides = [1, 1]} : vector<8x512xf32> to vector<8x128xf32>
    %cst_116 = arith.constant 5.000000e-01 : f32
    %282 = vector.broadcast %cst_116 : f32 to vector<8x128xf32>
    %283 = arith.mulf %282, %281 : vector<8x128xf32>
    %284 = math.tanh %283 : vector<8x128xf32>
    %cst_117 = arith.constant 5.000000e-01 : f32
    %285 = vector.broadcast %cst_117 : f32 to vector<8x128xf32>
    %286 = arith.mulf %285, %284 : vector<8x128xf32>
    %cst_118 = arith.constant 5.000000e-01 : f32
    %287 = vector.broadcast %cst_118 : f32 to vector<8x128xf32>
    %288 = arith.addf %286, %287 : vector<8x128xf32>
    %289 = arith.mulf %278, %252 : vector<8x128xf32>
    %290 = arith.mulf %270, %280 : vector<8x128xf32>
    %291 = arith.addf %289, %290 : vector<8x128xf32>
    %292 = math.tanh %291 : vector<8x128xf32>
    %293 = arith.mulf %288, %292 : vector<8x128xf32>
    %c0_119 = arith.constant 0 : index
    %c0_120 = arith.constant 0 : index
    %294 = vector.load %arg7[%c0_119, %c0_120] : memref<128x1152xf32, #tpu.memory_space<vmem>>, vector<128x1152xf32>
    %cst_121 = arith.constant dense<0.000000e+00> : vector<8x1152xf32>
    %295 = tpu.matmul %293, %294, %cst_121 {dimension_numbers = #tpu.dot_dimension_numbers<[1], [0], [0], [1], [0, 0, 1, 1], [], []>} : vector<8x128xf32>, vector<128x1152xf32>, vector<8x1152xf32> -> vector<8x1152xf32>
    %c7_i32 = arith.constant 7 : i32
    %296 = arith.index_cast %c7_i32 : i32 to index
    %c0_122 = arith.constant 0 : index
    %c0_123 = arith.constant 0 : index
    %297 = vector.load %arg11[%296, %c0_122, %c0_123] : memref<17x8x512xf32, #tpu.memory_space<vmem>>, vector<1x8x512xf32>
    %298 = vector.shape_cast %297 : vector<1x8x512xf32> to vector<8x512xf32>
    %299 = arith.addf %5, %298 : vector<8x512xf32>
    %300 = vector.extract_strided_slice %295 {offsets = [0, 0], sizes = [8, 512], strides = [1, 1]} : vector<8x1152xf32> to vector<8x512xf32>
    %301 = arith.addf %299, %300 : vector<8x512xf32>
    %302 = vector.extract_strided_slice %301 {offsets = [0, 0], sizes = [8, 128], strides = [1, 1]} : vector<8x512xf32> to vector<8x128xf32>
    %cst_124 = arith.constant 5.000000e-01 : f32
    %303 = vector.broadcast %cst_124 : f32 to vector<8x128xf32>
    %304 = arith.mulf %303, %302 : vector<8x128xf32>
    %305 = math.tanh %304 : vector<8x128xf32>
    %cst_125 = arith.constant 5.000000e-01 : f32
    %306 = vector.broadcast %cst_125 : f32 to vector<8x128xf32>
    %307 = arith.mulf %306, %305 : vector<8x128xf32>
    %cst_126 = arith.constant 5.000000e-01 : f32
    %308 = vector.broadcast %cst_126 : f32 to vector<8x128xf32>
    %309 = arith.addf %307, %308 : vector<8x128xf32>
    %310 = vector.extract_strided_slice %301 {offsets = [0, 128], sizes = [8, 128], strides = [1, 1]} : vector<8x512xf32> to vector<8x128xf32>
    %cst_127 = arith.constant 5.000000e-01 : f32
    %311 = vector.broadcast %cst_127 : f32 to vector<8x128xf32>
    %312 = arith.mulf %311, %310 : vector<8x128xf32>
    %313 = math.tanh %312 : vector<8x128xf32>
    %cst_128 = arith.constant 5.000000e-01 : f32
    %314 = vector.broadcast %cst_128 : f32 to vector<8x128xf32>
    %315 = arith.mulf %314, %313 : vector<8x128xf32>
    %cst_129 = arith.constant 5.000000e-01 : f32
    %316 = vector.broadcast %cst_129 : f32 to vector<8x128xf32>
    %317 = arith.addf %315, %316 : vector<8x128xf32>
    %318 = vector.extract_strided_slice %301 {offsets = [0, 256], sizes = [8, 128], strides = [1, 1]} : vector<8x512xf32> to vector<8x128xf32>
    %319 = math.tanh %318 : vector<8x128xf32>
    %320 = vector.extract_strided_slice %301 {offsets = [0, 384], sizes = [8, 128], strides = [1, 1]} : vector<8x512xf32> to vector<8x128xf32>
    %cst_130 = arith.constant 5.000000e-01 : f32
    %321 = vector.broadcast %cst_130 : f32 to vector<8x128xf32>
    %322 = arith.mulf %321, %320 : vector<8x128xf32>
    %323 = math.tanh %322 : vector<8x128xf32>
    %cst_131 = arith.constant 5.000000e-01 : f32
    %324 = vector.broadcast %cst_131 : f32 to vector<8x128xf32>
    %325 = arith.mulf %324, %323 : vector<8x128xf32>
    %cst_132 = arith.constant 5.000000e-01 : f32
    %326 = vector.broadcast %cst_132 : f32 to vector<8x128xf32>
    %327 = arith.addf %325, %326 : vector<8x128xf32>
    %328 = arith.mulf %317, %291 : vector<8x128xf32>
    %329 = arith.mulf %309, %319 : vector<8x128xf32>
    %330 = arith.addf %328, %329 : vector<8x128xf32>
    %331 = math.tanh %330 : vector<8x128xf32>
    %332 = arith.mulf %327, %331 : vector<8x128xf32>
    %c0_133 = arith.constant 0 : index
    %c0_134 = arith.constant 0 : index
    %333 = vector.load %arg7[%c0_133, %c0_134] : memref<128x1152xf32, #tpu.memory_space<vmem>>, vector<128x1152xf32>
    %cst_135 = arith.constant dense<0.000000e+00> : vector<8x1152xf32>
    %334 = tpu.matmul %332, %333, %cst_135 {dimension_numbers = #tpu.dot_dimension_numbers<[1], [0], [0], [1], [0, 0, 1, 1], [], []>} : vector<8x128xf32>, vector<128x1152xf32>, vector<8x1152xf32> -> vector<8x1152xf32>
    %c8_i32 = arith.constant 8 : i32
    %335 = arith.index_cast %c8_i32 : i32 to index
    %c0_136 = arith.constant 0 : index
    %c0_137 = arith.constant 0 : index
    %336 = vector.load %arg11[%335, %c0_136, %c0_137] : memref<17x8x512xf32, #tpu.memory_space<vmem>>, vector<1x8x512xf32>
    %337 = vector.shape_cast %336 : vector<1x8x512xf32> to vector<8x512xf32>
    %338 = arith.addf %5, %337 : vector<8x512xf32>
    %339 = vector.extract_strided_slice %334 {offsets = [0, 0], sizes = [8, 512], strides = [1, 1]} : vector<8x1152xf32> to vector<8x512xf32>
    %340 = arith.addf %338, %339 : vector<8x512xf32>
    %341 = vector.extract_strided_slice %340 {offsets = [0, 0], sizes = [8, 128], strides = [1, 1]} : vector<8x512xf32> to vector<8x128xf32>
    %cst_138 = arith.constant 5.000000e-01 : f32
    %342 = vector.broadcast %cst_138 : f32 to vector<8x128xf32>
    %343 = arith.mulf %342, %341 : vector<8x128xf32>
    %344 = math.tanh %343 : vector<8x128xf32>
    %cst_139 = arith.constant 5.000000e-01 : f32
    %345 = vector.broadcast %cst_139 : f32 to vector<8x128xf32>
    %346 = arith.mulf %345, %344 : vector<8x128xf32>
    %cst_140 = arith.constant 5.000000e-01 : f32
    %347 = vector.broadcast %cst_140 : f32 to vector<8x128xf32>
    %348 = arith.addf %346, %347 : vector<8x128xf32>
    %349 = vector.extract_strided_slice %340 {offsets = [0, 128], sizes = [8, 128], strides = [1, 1]} : vector<8x512xf32> to vector<8x128xf32>
    %cst_141 = arith.constant 5.000000e-01 : f32
    %350 = vector.broadcast %cst_141 : f32 to vector<8x128xf32>
    %351 = arith.mulf %350, %349 : vector<8x128xf32>
    %352 = math.tanh %351 : vector<8x128xf32>
    %cst_142 = arith.constant 5.000000e-01 : f32
    %353 = vector.broadcast %cst_142 : f32 to vector<8x128xf32>
    %354 = arith.mulf %353, %352 : vector<8x128xf32>
    %cst_143 = arith.constant 5.000000e-01 : f32
    %355 = vector.broadcast %cst_143 : f32 to vector<8x128xf32>
    %356 = arith.addf %354, %355 : vector<8x128xf32>
    %357 = vector.extract_strided_slice %340 {offsets = [0, 256], sizes = [8, 128], strides = [1, 1]} : vector<8x512xf32> to vector<8x128xf32>
    %358 = math.tanh %357 : vector<8x128xf32>
    %359 = vector.extract_strided_slice %340 {offsets = [0, 384], sizes = [8, 128], strides = [1, 1]} : vector<8x512xf32> to vector<8x128xf32>
    %cst_144 = arith.constant 5.000000e-01 : f32
    %360 = vector.broadcast %cst_144 : f32 to vector<8x128xf32>
    %361 = arith.mulf %360, %359 : vector<8x128xf32>
    %362 = math.tanh %361 : vector<8x128xf32>
    %cst_145 = arith.constant 5.000000e-01 : f32
    %363 = vector.broadcast %cst_145 : f32 to vector<8x128xf32>
    %364 = arith.mulf %363, %362 : vector<8x128xf32>
    %cst_146 = arith.constant 5.000000e-01 : f32
    %365 = vector.broadcast %cst_146 : f32 to vector<8x128xf32>
    %366 = arith.addf %364, %365 : vector<8x128xf32>
    %367 = arith.mulf %356, %330 : vector<8x128xf32>
    %368 = arith.mulf %348, %358 : vector<8x128xf32>
    %369 = arith.addf %367, %368 : vector<8x128xf32>
    %370 = math.tanh %369 : vector<8x128xf32>
    %371 = arith.mulf %366, %370 : vector<8x128xf32>
    %c0_147 = arith.constant 0 : index
    %c0_148 = arith.constant 0 : index
    %372 = vector.load %arg7[%c0_147, %c0_148] : memref<128x1152xf32, #tpu.memory_space<vmem>>, vector<128x1152xf32>
    %cst_149 = arith.constant dense<0.000000e+00> : vector<8x1152xf32>
    %373 = tpu.matmul %371, %372, %cst_149 {dimension_numbers = #tpu.dot_dimension_numbers<[1], [0], [0], [1], [0, 0, 1, 1], [], []>} : vector<8x128xf32>, vector<128x1152xf32>, vector<8x1152xf32> -> vector<8x1152xf32>
    %c9_i32 = arith.constant 9 : i32
    %374 = arith.index_cast %c9_i32 : i32 to index
    %c0_150 = arith.constant 0 : index
    %c0_151 = arith.constant 0 : index
    %375 = vector.load %arg11[%374, %c0_150, %c0_151] : memref<17x8x512xf32, #tpu.memory_space<vmem>>, vector<1x8x512xf32>
    %376 = vector.shape_cast %375 : vector<1x8x512xf32> to vector<8x512xf32>
    %377 = arith.addf %5, %376 : vector<8x512xf32>
    %378 = vector.extract_strided_slice %373 {offsets = [0, 0], sizes = [8, 512], strides = [1, 1]} : vector<8x1152xf32> to vector<8x512xf32>
    %379 = arith.addf %377, %378 : vector<8x512xf32>
    %380 = vector.extract_strided_slice %379 {offsets = [0, 0], sizes = [8, 128], strides = [1, 1]} : vector<8x512xf32> to vector<8x128xf32>
    %cst_152 = arith.constant 5.000000e-01 : f32
    %381 = vector.broadcast %cst_152 : f32 to vector<8x128xf32>
    %382 = arith.mulf %381, %380 : vector<8x128xf32>
    %383 = math.tanh %382 : vector<8x128xf32>
    %cst_153 = arith.constant 5.000000e-01 : f32
    %384 = vector.broadcast %cst_153 : f32 to vector<8x128xf32>
    %385 = arith.mulf %384, %383 : vector<8x128xf32>
    %cst_154 = arith.constant 5.000000e-01 : f32
    %386 = vector.broadcast %cst_154 : f32 to vector<8x128xf32>
    %387 = arith.addf %385, %386 : vector<8x128xf32>
    %388 = vector.extract_strided_slice %379 {offsets = [0, 128], sizes = [8, 128], strides = [1, 1]} : vector<8x512xf32> to vector<8x128xf32>
    %cst_155 = arith.constant 5.000000e-01 : f32
    %389 = vector.broadcast %cst_155 : f32 to vector<8x128xf32>
    %390 = arith.mulf %389, %388 : vector<8x128xf32>
    %391 = math.tanh %390 : vector<8x128xf32>
    %cst_156 = arith.constant 5.000000e-01 : f32
    %392 = vector.broadcast %cst_156 : f32 to vector<8x128xf32>
    %393 = arith.mulf %392, %391 : vector<8x128xf32>
    %cst_157 = arith.constant 5.000000e-01 : f32
    %394 = vector.broadcast %cst_157 : f32 to vector<8x128xf32>
    %395 = arith.addf %393, %394 : vector<8x128xf32>
    %396 = vector.extract_strided_slice %379 {offsets = [0, 256], sizes = [8, 128], strides = [1, 1]} : vector<8x512xf32> to vector<8x128xf32>
    %397 = math.tanh %396 : vector<8x128xf32>
    %398 = vector.extract_strided_slice %379 {offsets = [0, 384], sizes = [8, 128], strides = [1, 1]} : vector<8x512xf32> to vector<8x128xf32>
    %cst_158 = arith.constant 5.000000e-01 : f32
    %399 = vector.broadcast %cst_158 : f32 to vector<8x128xf32>
    %400 = arith.mulf %399, %398 : vector<8x128xf32>
    %401 = math.tanh %400 : vector<8x128xf32>
    %cst_159 = arith.constant 5.000000e-01 : f32
    %402 = vector.broadcast %cst_159 : f32 to vector<8x128xf32>
    %403 = arith.mulf %402, %401 : vector<8x128xf32>
    %cst_160 = arith.constant 5.000000e-01 : f32
    %404 = vector.broadcast %cst_160 : f32 to vector<8x128xf32>
    %405 = arith.addf %403, %404 : vector<8x128xf32>
    %406 = arith.mulf %395, %369 : vector<8x128xf32>
    %407 = arith.mulf %387, %397 : vector<8x128xf32>
    %408 = arith.addf %406, %407 : vector<8x128xf32>
    %409 = math.tanh %408 : vector<8x128xf32>
    %410 = arith.mulf %405, %409 : vector<8x128xf32>
    %c0_161 = arith.constant 0 : index
    %c0_162 = arith.constant 0 : index
    %411 = vector.load %arg7[%c0_161, %c0_162] : memref<128x1152xf32, #tpu.memory_space<vmem>>, vector<128x1152xf32>
    %cst_163 = arith.constant dense<0.000000e+00> : vector<8x1152xf32>
    %412 = tpu.matmul %410, %411, %cst_163 {dimension_numbers = #tpu.dot_dimension_numbers<[1], [0], [0], [1], [0, 0, 1, 1], [], []>} : vector<8x128xf32>, vector<128x1152xf32>, vector<8x1152xf32> -> vector<8x1152xf32>
    %c10_i32 = arith.constant 10 : i32
    %413 = arith.index_cast %c10_i32 : i32 to index
    %c0_164 = arith.constant 0 : index
    %c0_165 = arith.constant 0 : index
    %414 = vector.load %arg11[%413, %c0_164, %c0_165] : memref<17x8x512xf32, #tpu.memory_space<vmem>>, vector<1x8x512xf32>
    %415 = vector.shape_cast %414 : vector<1x8x512xf32> to vector<8x512xf32>
    %416 = arith.addf %5, %415 : vector<8x512xf32>
    %417 = vector.extract_strided_slice %412 {offsets = [0, 0], sizes = [8, 512], strides = [1, 1]} : vector<8x1152xf32> to vector<8x512xf32>
    %418 = arith.addf %416, %417 : vector<8x512xf32>
    %419 = vector.extract_strided_slice %418 {offsets = [0, 0], sizes = [8, 128], strides = [1, 1]} : vector<8x512xf32> to vector<8x128xf32>
    %cst_166 = arith.constant 5.000000e-01 : f32
    %420 = vector.broadcast %cst_166 : f32 to vector<8x128xf32>
    %421 = arith.mulf %420, %419 : vector<8x128xf32>
    %422 = math.tanh %421 : vector<8x128xf32>
    %cst_167 = arith.constant 5.000000e-01 : f32
    %423 = vector.broadcast %cst_167 : f32 to vector<8x128xf32>
    %424 = arith.mulf %423, %422 : vector<8x128xf32>
    %cst_168 = arith.constant 5.000000e-01 : f32
    %425 = vector.broadcast %cst_168 : f32 to vector<8x128xf32>
    %426 = arith.addf %424, %425 : vector<8x128xf32>
    %427 = vector.extract_strided_slice %418 {offsets = [0, 128], sizes = [8, 128], strides = [1, 1]} : vector<8x512xf32> to vector<8x128xf32>
    %cst_169 = arith.constant 5.000000e-01 : f32
    %428 = vector.broadcast %cst_169 : f32 to vector<8x128xf32>
    %429 = arith.mulf %428, %427 : vector<8x128xf32>
    %430 = math.tanh %429 : vector<8x128xf32>
    %cst_170 = arith.constant 5.000000e-01 : f32
    %431 = vector.broadcast %cst_170 : f32 to vector<8x128xf32>
    %432 = arith.mulf %431, %430 : vector<8x128xf32>
    %cst_171 = arith.constant 5.000000e-01 : f32
    %433 = vector.broadcast %cst_171 : f32 to vector<8x128xf32>
    %434 = arith.addf %432, %433 : vector<8x128xf32>
    %435 = vector.extract_strided_slice %418 {offsets = [0, 256], sizes = [8, 128], strides = [1, 1]} : vector<8x512xf32> to vector<8x128xf32>
    %436 = math.tanh %435 : vector<8x128xf32>
    %437 = vector.extract_strided_slice %418 {offsets = [0, 384], sizes = [8, 128], strides = [1, 1]} : vector<8x512xf32> to vector<8x128xf32>
    %cst_172 = arith.constant 5.000000e-01 : f32
    %438 = vector.broadcast %cst_172 : f32 to vector<8x128xf32>
    %439 = arith.mulf %438, %437 : vector<8x128xf32>
    %440 = math.tanh %439 : vector<8x128xf32>
    %cst_173 = arith.constant 5.000000e-01 : f32
    %441 = vector.broadcast %cst_173 : f32 to vector<8x128xf32>
    %442 = arith.mulf %441, %440 : vector<8x128xf32>
    %cst_174 = arith.constant 5.000000e-01 : f32
    %443 = vector.broadcast %cst_174 : f32 to vector<8x128xf32>
    %444 = arith.addf %442, %443 : vector<8x128xf32>
    %445 = arith.mulf %434, %408 : vector<8x128xf32>
    %446 = arith.mulf %426, %436 : vector<8x128xf32>
    %447 = arith.addf %445, %446 : vector<8x128xf32>
    %448 = math.tanh %447 : vector<8x128xf32>
    %449 = arith.mulf %444, %448 : vector<8x128xf32>
    %c0_175 = arith.constant 0 : index
    %c0_176 = arith.constant 0 : index
    %450 = vector.load %arg7[%c0_175, %c0_176] : memref<128x1152xf32, #tpu.memory_space<vmem>>, vector<128x1152xf32>
    %cst_177 = arith.constant dense<0.000000e+00> : vector<8x1152xf32>
    %451 = tpu.matmul %449, %450, %cst_177 {dimension_numbers = #tpu.dot_dimension_numbers<[1], [0], [0], [1], [0, 0, 1, 1], [], []>} : vector<8x128xf32>, vector<128x1152xf32>, vector<8x1152xf32> -> vector<8x1152xf32>
    %c11_i32 = arith.constant 11 : i32
    %452 = arith.index_cast %c11_i32 : i32 to index
    %c0_178 = arith.constant 0 : index
    %c0_179 = arith.constant 0 : index
    %453 = vector.load %arg11[%452, %c0_178, %c0_179] : memref<17x8x512xf32, #tpu.memory_space<vmem>>, vector<1x8x512xf32>
    %454 = vector.shape_cast %453 : vector<1x8x512xf32> to vector<8x512xf32>
    %455 = arith.addf %5, %454 : vector<8x512xf32>
    %456 = vector.extract_strided_slice %451 {offsets = [0, 0], sizes = [8, 512], strides = [1, 1]} : vector<8x1152xf32> to vector<8x512xf32>
    %457 = arith.addf %455, %456 : vector<8x512xf32>
    %458 = vector.extract_strided_slice %457 {offsets = [0, 0], sizes = [8, 128], strides = [1, 1]} : vector<8x512xf32> to vector<8x128xf32>
    %cst_180 = arith.constant 5.000000e-01 : f32
    %459 = vector.broadcast %cst_180 : f32 to vector<8x128xf32>
    %460 = arith.mulf %459, %458 : vector<8x128xf32>
    %461 = math.tanh %460 : vector<8x128xf32>
    %cst_181 = arith.constant 5.000000e-01 : f32
    %462 = vector.broadcast %cst_181 : f32 to vector<8x128xf32>
    %463 = arith.mulf %462, %461 : vector<8x128xf32>
    %cst_182 = arith.constant 5.000000e-01 : f32
    %464 = vector.broadcast %cst_182 : f32 to vector<8x128xf32>
    %465 = arith.addf %463, %464 : vector<8x128xf32>
    %466 = vector.extract_strided_slice %457 {offsets = [0, 128], sizes = [8, 128], strides = [1, 1]} : vector<8x512xf32> to vector<8x128xf32>
    %cst_183 = arith.constant 5.000000e-01 : f32
    %467 = vector.broadcast %cst_183 : f32 to vector<8x128xf32>
    %468 = arith.mulf %467, %466 : vector<8x128xf32>
    %469 = math.tanh %468 : vector<8x128xf32>
    %cst_184 = arith.constant 5.000000e-01 : f32
    %470 = vector.broadcast %cst_184 : f32 to vector<8x128xf32>
    %471 = arith.mulf %470, %469 : vector<8x128xf32>
    %cst_185 = arith.constant 5.000000e-01 : f32
    %472 = vector.broadcast %cst_185 : f32 to vector<8x128xf32>
    %473 = arith.addf %471, %472 : vector<8x128xf32>
    %474 = vector.extract_strided_slice %457 {offsets = [0, 256], sizes = [8, 128], strides = [1, 1]} : vector<8x512xf32> to vector<8x128xf32>
    %475 = math.tanh %474 : vector<8x128xf32>
    %476 = vector.extract_strided_slice %457 {offsets = [0, 384], sizes = [8, 128], strides = [1, 1]} : vector<8x512xf32> to vector<8x128xf32>
    %cst_186 = arith.constant 5.000000e-01 : f32
    %477 = vector.broadcast %cst_186 : f32 to vector<8x128xf32>
    %478 = arith.mulf %477, %476 : vector<8x128xf32>
    %479 = math.tanh %478 : vector<8x128xf32>
    %cst_187 = arith.constant 5.000000e-01 : f32
    %480 = vector.broadcast %cst_187 : f32 to vector<8x128xf32>
    %481 = arith.mulf %480, %479 : vector<8x128xf32>
    %cst_188 = arith.constant 5.000000e-01 : f32
    %482 = vector.broadcast %cst_188 : f32 to vector<8x128xf32>
    %483 = arith.addf %481, %482 : vector<8x128xf32>
    %484 = arith.mulf %473, %447 : vector<8x128xf32>
    %485 = arith.mulf %465, %475 : vector<8x128xf32>
    %486 = arith.addf %484, %485 : vector<8x128xf32>
    %487 = math.tanh %486 : vector<8x128xf32>
    %488 = arith.mulf %483, %487 : vector<8x128xf32>
    %c0_189 = arith.constant 0 : index
    %c0_190 = arith.constant 0 : index
    %489 = vector.load %arg7[%c0_189, %c0_190] : memref<128x1152xf32, #tpu.memory_space<vmem>>, vector<128x1152xf32>
    %cst_191 = arith.constant dense<0.000000e+00> : vector<8x1152xf32>
    %490 = tpu.matmul %488, %489, %cst_191 {dimension_numbers = #tpu.dot_dimension_numbers<[1], [0], [0], [1], [0, 0, 1, 1], [], []>} : vector<8x128xf32>, vector<128x1152xf32>, vector<8x1152xf32> -> vector<8x1152xf32>
    %c12_i32 = arith.constant 12 : i32
    %491 = vector.extract_strided_slice %490 {offsets = [0, 1024], sizes = [8, 128], strides = [1, 1]} : vector<8x1152xf32> to vector<8x128xf32>
    %492 = arith.addf %491, %10 : vector<8x128xf32>
    %c0_192 = arith.constant 0 : index
    %c0_193 = arith.constant 0 : index
    %493 = vector.load %arg10[%c0_192, %c0_193] : memref<8x768xf32, #tpu.memory_space<vmem>>, vector<8x128xf32>
    tpu.vector_store %arg10[%c0_192, %c0_193], %492 {strides = array<i32>} : memref<8x768xf32, #tpu.memory_space<vmem>>, vector<8x128xf32>,
    %c0_194 = arith.constant 0 : index
    %494 = memref.load %arg1[%c0_194] : memref<5xi32, #tpu.memory_space<smem>>
    %495 = arith.sitofp %494 : i32 to f32
    %c12 = arith.constant 12 : index
    %c0_195 = arith.constant 0 : index
    %c0_196 = arith.constant 0 : index
    %496 = vector.load %arg11[%c12, %c0_195, %c0_196] : memref<17x8x512xf32, #tpu.memory_space<vmem>>, vector<1x8x512xf32>
    %497 = vector.shape_cast %496 : vector<1x8x512xf32> to vector<8x512xf32>
    %498 = arith.addf %5, %497 : vector<8x512xf32>
    %499 = vector.extract_strided_slice %490 {offsets = [0, 512], sizes = [8, 512], strides = [1, 1]} : vector<8x1152xf32> to vector<8x512xf32>
    %500 = arith.addf %14, %499 : vector<8x512xf32>
    %501 = vector.extract_strided_slice %490 {offsets = [0, 0], sizes = [8, 512], strides = [1, 1]} : vector<8x1152xf32> to vector<8x512xf32>
    %502 = vector.broadcast %495 : f32 to vector<8x512xf32>
    %503 = arith.mulf %502, %498 : vector<8x512xf32>
    %504 = arith.addf %501, %503 : vector<8x512xf32>
    %cst_197 = arith.constant 1.000000e+00 : f32
    %505 = arith.subf %cst_197, %495 : f32
    %506 = vector.broadcast %505 : f32 to vector<8x512xf32>
    %507 = arith.mulf %506, %500 : vector<8x512xf32>
    %508 = arith.addf %504, %507 : vector<8x512xf32>
    %509 = vector.extract_strided_slice %508 {offsets = [0, 0], sizes = [8, 128], strides = [1, 1]} : vector<8x512xf32> to vector<8x128xf32>
    %cst_198 = arith.constant 5.000000e-01 : f32
    %510 = vector.broadcast %cst_198 : f32 to vector<8x128xf32>
    %511 = arith.mulf %510, %509 : vector<8x128xf32>
    %512 = math.tanh %511 : vector<8x128xf32>
    %cst_199 = arith.constant 5.000000e-01 : f32
    %513 = vector.broadcast %cst_199 : f32 to vector<8x128xf32>
    %514 = arith.mulf %513, %512 : vector<8x128xf32>
    %cst_200 = arith.constant 5.000000e-01 : f32
    %515 = vector.broadcast %cst_200 : f32 to vector<8x128xf32>
    %516 = arith.addf %514, %515 : vector<8x128xf32>
    %517 = vector.extract_strided_slice %508 {offsets = [0, 128], sizes = [8, 128], strides = [1, 1]} : vector<8x512xf32> to vector<8x128xf32>
    %cst_201 = arith.constant 5.000000e-01 : f32
    %518 = vector.broadcast %cst_201 : f32 to vector<8x128xf32>
    %519 = arith.mulf %518, %517 : vector<8x128xf32>
    %520 = math.tanh %519 : vector<8x128xf32>
    %cst_202 = arith.constant 5.000000e-01 : f32
    %521 = vector.broadcast %cst_202 : f32 to vector<8x128xf32>
    %522 = arith.mulf %521, %520 : vector<8x128xf32>
    %cst_203 = arith.constant 5.000000e-01 : f32
    %523 = vector.broadcast %cst_203 : f32 to vector<8x128xf32>
    %524 = arith.addf %522, %523 : vector<8x128xf32>
    %525 = vector.extract_strided_slice %508 {offsets = [0, 256], sizes = [8, 128], strides = [1, 1]} : vector<8x512xf32> to vector<8x128xf32>
    %526 = math.tanh %525 : vector<8x128xf32>
    %527 = vector.extract_strided_slice %508 {offsets = [0, 384], sizes = [8, 128], strides = [1, 1]} : vector<8x512xf32> to vector<8x128xf32>
    %cst_204 = arith.constant 5.000000e-01 : f32
    %528 = vector.broadcast %cst_204 : f32 to vector<8x128xf32>
    %529 = arith.mulf %528, %527 : vector<8x128xf32>
    %530 = math.tanh %529 : vector<8x128xf32>
    %cst_205 = arith.constant 5.000000e-01 : f32
    %531 = vector.broadcast %cst_205 : f32 to vector<8x128xf32>
    %532 = arith.mulf %531, %530 : vector<8x128xf32>
    %cst_206 = arith.constant 5.000000e-01 : f32
    %533 = vector.broadcast %cst_206 : f32 to vector<8x128xf32>
    %534 = arith.addf %532, %533 : vector<8x128xf32>
    %535 = arith.mulf %524, %486 : vector<8x128xf32>
    %536 = arith.mulf %516, %526 : vector<8x128xf32>
    %537 = arith.addf %535, %536 : vector<8x128xf32>
    %538 = math.tanh %537 : vector<8x128xf32>
    %539 = arith.mulf %534, %538 : vector<8x128xf32>
    %c0_207 = arith.constant 0 : index
    %c0_208 = arith.constant 0 : index
    %540 = vector.load %arg7[%c0_207, %c0_208] : memref<128x1152xf32, #tpu.memory_space<vmem>>, vector<128x1152xf32>
    %cst_209 = arith.constant dense<0.000000e+00> : vector<8x1152xf32>
    %541 = tpu.matmul %539, %540, %cst_209 {dimension_numbers = #tpu.dot_dimension_numbers<[1], [0], [0], [1], [0, 0, 1, 1], [], []>} : vector<8x128xf32>, vector<128x1152xf32>, vector<8x1152xf32> -> vector<8x1152xf32>
    %542 = vector.extract_strided_slice %541 {offsets = [0, 1024], sizes = [8, 128], strides = [1, 1]} : vector<8x1152xf32> to vector<8x128xf32>
    %543 = arith.addf %542, %10 : vector<8x128xf32>
    %c0_210 = arith.constant 0 : index
    %c128 = arith.constant 128 : index
    %544 = vector.load %arg10[%c0_210, %c128] : memref<8x768xf32, #tpu.memory_space<vmem>>, vector<8x128xf32>
    tpu.vector_store %arg10[%c0_210, %c128], %543 {strides = array<i32>} : memref<8x768xf32, #tpu.memory_space<vmem>>, vector<8x128xf32>,
    %c1 = arith.constant 1 : index
    %545 = memref.load %arg1[%c1] : memref<5xi32, #tpu.memory_space<smem>>
    %546 = arith.sitofp %545 : i32 to f32
    %c13 = arith.constant 13 : index
    %c0_211 = arith.constant 0 : index
    %c0_212 = arith.constant 0 : index
    %547 = vector.load %arg11[%c13, %c0_211, %c0_212] : memref<17x8x512xf32, #tpu.memory_space<vmem>>, vector<1x8x512xf32>
    %548 = vector.shape_cast %547 : vector<1x8x512xf32> to vector<8x512xf32>
    %549 = arith.addf %5, %548 : vector<8x512xf32>
    %550 = vector.extract_strided_slice %541 {offsets = [0, 512], sizes = [8, 512], strides = [1, 1]} : vector<8x1152xf32> to vector<8x512xf32>
    %551 = arith.addf %14, %550 : vector<8x512xf32>
    %552 = vector.extract_strided_slice %541 {offsets = [0, 0], sizes = [8, 512], strides = [1, 1]} : vector<8x1152xf32> to vector<8x512xf32>
    %553 = vector.broadcast %546 : f32 to vector<8x512xf32>
    %554 = arith.mulf %553, %549 : vector<8x512xf32>
    %555 = arith.addf %552, %554 : vector<8x512xf32>
    %cst_213 = arith.constant 1.000000e+00 : f32
    %556 = arith.subf %cst_213, %546 : f32
    %557 = vector.broadcast %556 : f32 to vector<8x512xf32>
    %558 = arith.mulf %557, %551 : vector<8x512xf32>
    %559 = arith.addf %555, %558 : vector<8x512xf32>
    %560 = vector.extract_strided_slice %559 {offsets = [0, 0], sizes = [8, 128], strides = [1, 1]} : vector<8x512xf32> to vector<8x128xf32>
    %cst_214 = arith.constant 5.000000e-01 : f32
    %561 = vector.broadcast %cst_214 : f32 to vector<8x128xf32>
    %562 = arith.mulf %561, %560 : vector<8x128xf32>
    %563 = math.tanh %562 : vector<8x128xf32>
    %cst_215 = arith.constant 5.000000e-01 : f32
    %564 = vector.broadcast %cst_215 : f32 to vector<8x128xf32>
    %565 = arith.mulf %564, %563 : vector<8x128xf32>
    %cst_216 = arith.constant 5.000000e-01 : f32
    %566 = vector.broadcast %cst_216 : f32 to vector<8x128xf32>
    %567 = arith.addf %565, %566 : vector<8x128xf32>
    %568 = vector.extract_strided_slice %559 {offsets = [0, 128], sizes = [8, 128], strides = [1, 1]} : vector<8x512xf32> to vector<8x128xf32>
    %cst_217 = arith.constant 5.000000e-01 : f32
    %569 = vector.broadcast %cst_217 : f32 to vector<8x128xf32>
    %570 = arith.mulf %569, %568 : vector<8x128xf32>
    %571 = math.tanh %570 : vector<8x128xf32>
    %cst_218 = arith.constant 5.000000e-01 : f32
    %572 = vector.broadcast %cst_218 : f32 to vector<8x128xf32>
    %573 = arith.mulf %572, %571 : vector<8x128xf32>
    %cst_219 = arith.constant 5.000000e-01 : f32
    %574 = vector.broadcast %cst_219 : f32 to vector<8x128xf32>
    %575 = arith.addf %573, %574 : vector<8x128xf32>
    %576 = vector.extract_strided_slice %559 {offsets = [0, 256], sizes = [8, 128], strides = [1, 1]} : vector<8x512xf32> to vector<8x128xf32>
    %577 = math.tanh %576 : vector<8x128xf32>
    %578 = vector.extract_strided_slice %559 {offsets = [0, 384], sizes = [8, 128], strides = [1, 1]} : vector<8x512xf32> to vector<8x128xf32>
    %cst_220 = arith.constant 5.000000e-01 : f32
    %579 = vector.broadcast %cst_220 : f32 to vector<8x128xf32>
    %580 = arith.mulf %579, %578 : vector<8x128xf32>
    %581 = math.tanh %580 : vector<8x128xf32>
    %cst_221 = arith.constant 5.000000e-01 : f32
    %582 = vector.broadcast %cst_221 : f32 to vector<8x128xf32>
    %583 = arith.mulf %582, %581 : vector<8x128xf32>
    %cst_222 = arith.constant 5.000000e-01 : f32
    %584 = vector.broadcast %cst_222 : f32 to vector<8x128xf32>
    %585 = arith.addf %583, %584 : vector<8x128xf32>
    %586 = arith.mulf %575, %537 : vector<8x128xf32>
    %587 = arith.mulf %567, %577 : vector<8x128xf32>
    %588 = arith.addf %586, %587 : vector<8x128xf32>
    %589 = math.tanh %588 : vector<8x128xf32>
    %590 = arith.mulf %585, %589 : vector<8x128xf32>
    %c0_223 = arith.constant 0 : index
    %c0_224 = arith.constant 0 : index
    %591 = vector.load %arg7[%c0_223, %c0_224] : memref<128x1152xf32, #tpu.memory_space<vmem>>, vector<128x1152xf32>
    %cst_225 = arith.constant dense<0.000000e+00> : vector<8x1152xf32>
    %592 = tpu.matmul %590, %591, %cst_225 {dimension_numbers = #tpu.dot_dimension_numbers<[1], [0], [0], [1], [0, 0, 1, 1], [], []>} : vector<8x128xf32>, vector<128x1152xf32>, vector<8x1152xf32> -> vector<8x1152xf32>
    %593 = vector.extract_strided_slice %592 {offsets = [0, 1024], sizes = [8, 128], strides = [1, 1]} : vector<8x1152xf32> to vector<8x128xf32>
    %594 = arith.addf %593, %10 : vector<8x128xf32>
    %c0_226 = arith.constant 0 : index
    %c256 = arith.constant 256 : index
    %595 = vector.load %arg10[%c0_226, %c256] : memref<8x768xf32, #tpu.memory_space<vmem>>, vector<8x128xf32>
    tpu.vector_store %arg10[%c0_226, %c256], %594 {strides = array<i32>} : memref<8x768xf32, #tpu.memory_space<vmem>>, vector<8x128xf32>,
    %c2 = arith.constant 2 : index
    %596 = memref.load %arg1[%c2] : memref<5xi32, #tpu.memory_space<smem>>
    %597 = arith.sitofp %596 : i32 to f32
    %c14 = arith.constant 14 : index
    %c0_227 = arith.constant 0 : index
    %c0_228 = arith.constant 0 : index
    %598 = vector.load %arg11[%c14, %c0_227, %c0_228] : memref<17x8x512xf32, #tpu.memory_space<vmem>>, vector<1x8x512xf32>
    %599 = vector.shape_cast %598 : vector<1x8x512xf32> to vector<8x512xf32>
    %600 = arith.addf %5, %599 : vector<8x512xf32>
    %601 = vector.extract_strided_slice %592 {offsets = [0, 512], sizes = [8, 512], strides = [1, 1]} : vector<8x1152xf32> to vector<8x512xf32>
    %602 = arith.addf %14, %601 : vector<8x512xf32>
    %603 = vector.extract_strided_slice %592 {offsets = [0, 0], sizes = [8, 512], strides = [1, 1]} : vector<8x1152xf32> to vector<8x512xf32>
    %604 = vector.broadcast %597 : f32 to vector<8x512xf32>
    %605 = arith.mulf %604, %600 : vector<8x512xf32>
    %606 = arith.addf %603, %605 : vector<8x512xf32>
    %cst_229 = arith.constant 1.000000e+00 : f32
    %607 = arith.subf %cst_229, %597 : f32
    %608 = vector.broadcast %607 : f32 to vector<8x512xf32>
    %609 = arith.mulf %608, %602 : vector<8x512xf32>
    %610 = arith.addf %606, %609 : vector<8x512xf32>
    %611 = vector.extract_strided_slice %610 {offsets = [0, 0], sizes = [8, 128], strides = [1, 1]} : vector<8x512xf32> to vector<8x128xf32>
    %cst_230 = arith.constant 5.000000e-01 : f32
    %612 = vector.broadcast %cst_230 : f32 to vector<8x128xf32>
    %613 = arith.mulf %612, %611 : vector<8x128xf32>
    %614 = math.tanh %613 : vector<8x128xf32>
    %cst_231 = arith.constant 5.000000e-01 : f32
    %615 = vector.broadcast %cst_231 : f32 to vector<8x128xf32>
    %616 = arith.mulf %615, %614 : vector<8x128xf32>
    %cst_232 = arith.constant 5.000000e-01 : f32
    %617 = vector.broadcast %cst_232 : f32 to vector<8x128xf32>
    %618 = arith.addf %616, %617 : vector<8x128xf32>
    %619 = vector.extract_strided_slice %610 {offsets = [0, 128], sizes = [8, 128], strides = [1, 1]} : vector<8x512xf32> to vector<8x128xf32>
    %cst_233 = arith.constant 5.000000e-01 : f32
    %620 = vector.broadcast %cst_233 : f32 to vector<8x128xf32>
    %621 = arith.mulf %620, %619 : vector<8x128xf32>
    %622 = math.tanh %621 : vector<8x128xf32>
    %cst_234 = arith.constant 5.000000e-01 : f32
    %623 = vector.broadcast %cst_234 : f32 to vector<8x128xf32>
    %624 = arith.mulf %623, %622 : vector<8x128xf32>
    %cst_235 = arith.constant 5.000000e-01 : f32
    %625 = vector.broadcast %cst_235 : f32 to vector<8x128xf32>
    %626 = arith.addf %624, %625 : vector<8x128xf32>
    %627 = vector.extract_strided_slice %610 {offsets = [0, 256], sizes = [8, 128], strides = [1, 1]} : vector<8x512xf32> to vector<8x128xf32>
    %628 = math.tanh %627 : vector<8x128xf32>
    %629 = vector.extract_strided_slice %610 {offsets = [0, 384], sizes = [8, 128], strides = [1, 1]} : vector<8x512xf32> to vector<8x128xf32>
    %cst_236 = arith.constant 5.000000e-01 : f32
    %630 = vector.broadcast %cst_236 : f32 to vector<8x128xf32>
    %631 = arith.mulf %630, %629 : vector<8x128xf32>
    %632 = math.tanh %631 : vector<8x128xf32>
    %cst_237 = arith.constant 5.000000e-01 : f32
    %633 = vector.broadcast %cst_237 : f32 to vector<8x128xf32>
    %634 = arith.mulf %633, %632 : vector<8x128xf32>
    %cst_238 = arith.constant 5.000000e-01 : f32
    %635 = vector.broadcast %cst_238 : f32 to vector<8x128xf32>
    %636 = arith.addf %634, %635 : vector<8x128xf32>
    %637 = arith.mulf %626, %588 : vector<8x128xf32>
    %638 = arith.mulf %618, %628 : vector<8x128xf32>
    %639 = arith.addf %637, %638 : vector<8x128xf32>
    %640 = math.tanh %639 : vector<8x128xf32>
    %641 = arith.mulf %636, %640 : vector<8x128xf32>
    %c0_239 = arith.constant 0 : index
    %c0_240 = arith.constant 0 : index
    %642 = vector.load %arg7[%c0_239, %c0_240] : memref<128x1152xf32, #tpu.memory_space<vmem>>, vector<128x1152xf32>
    %cst_241 = arith.constant dense<0.000000e+00> : vector<8x1152xf32>
    %643 = tpu.matmul %641, %642, %cst_241 {dimension_numbers = #tpu.dot_dimension_numbers<[1], [0], [0], [1], [0, 0, 1, 1], [], []>} : vector<8x128xf32>, vector<128x1152xf32>, vector<8x1152xf32> -> vector<8x1152xf32>
    %644 = vector.extract_strided_slice %643 {offsets = [0, 1024], sizes = [8, 128], strides = [1, 1]} : vector<8x1152xf32> to vector<8x128xf32>
    %645 = arith.addf %644, %10 : vector<8x128xf32>
    %c0_242 = arith.constant 0 : index
    %c384 = arith.constant 384 : index
    %646 = vector.load %arg10[%c0_242, %c384] : memref<8x768xf32, #tpu.memory_space<vmem>>, vector<8x128xf32>
    tpu.vector_store %arg10[%c0_242, %c384], %645 {strides = array<i32>} : memref<8x768xf32, #tpu.memory_space<vmem>>, vector<8x128xf32>,
    %c3 = arith.constant 3 : index
    %647 = memref.load %arg1[%c3] : memref<5xi32, #tpu.memory_space<smem>>
    %648 = arith.sitofp %647 : i32 to f32
    %c15 = arith.constant 15 : index
    %c0_243 = arith.constant 0 : index
    %c0_244 = arith.constant 0 : index
    %649 = vector.load %arg11[%c15, %c0_243, %c0_244] : memref<17x8x512xf32, #tpu.memory_space<vmem>>, vector<1x8x512xf32>
    %650 = vector.shape_cast %649 : vector<1x8x512xf32> to vector<8x512xf32>
    %651 = arith.addf %5, %650 : vector<8x512xf32>
    %652 = vector.extract_strided_slice %643 {offsets = [0, 512], sizes = [8, 512], strides = [1, 1]} : vector<8x1152xf32> to vector<8x512xf32>
    %653 = arith.addf %14, %652 : vector<8x512xf32>
    %654 = vector.extract_strided_slice %643 {offsets = [0, 0], sizes = [8, 512], strides = [1, 1]} : vector<8x1152xf32> to vector<8x512xf32>
    %655 = vector.broadcast %648 : f32 to vector<8x512xf32>
    %656 = arith.mulf %655, %651 : vector<8x512xf32>
    %657 = arith.addf %654, %656 : vector<8x512xf32>
    %cst_245 = arith.constant 1.000000e+00 : f32
    %658 = arith.subf %cst_245, %648 : f32
    %659 = vector.broadcast %658 : f32 to vector<8x512xf32>
    %660 = arith.mulf %659, %653 : vector<8x512xf32>
    %661 = arith.addf %657, %660 : vector<8x512xf32>
    %662 = vector.extract_strided_slice %661 {offsets = [0, 0], sizes = [8, 128], strides = [1, 1]} : vector<8x512xf32> to vector<8x128xf32>
    %cst_246 = arith.constant 5.000000e-01 : f32
    %663 = vector.broadcast %cst_246 : f32 to vector<8x128xf32>
    %664 = arith.mulf %663, %662 : vector<8x128xf32>
    %665 = math.tanh %664 : vector<8x128xf32>
    %cst_247 = arith.constant 5.000000e-01 : f32
    %666 = vector.broadcast %cst_247 : f32 to vector<8x128xf32>
    %667 = arith.mulf %666, %665 : vector<8x128xf32>
    %cst_248 = arith.constant 5.000000e-01 : f32
    %668 = vector.broadcast %cst_248 : f32 to vector<8x128xf32>
    %669 = arith.addf %667, %668 : vector<8x128xf32>
    %670 = vector.extract_strided_slice %661 {offsets = [0, 128], sizes = [8, 128], strides = [1, 1]} : vector<8x512xf32> to vector<8x128xf32>
    %cst_249 = arith.constant 5.000000e-01 : f32
    %671 = vector.broadcast %cst_249 : f32 to vector<8x128xf32>
    %672 = arith.mulf %671, %670 : vector<8x128xf32>
    %673 = math.tanh %672 : vector<8x128xf32>
    %cst_250 = arith.constant 5.000000e-01 : f32
    %674 = vector.broadcast %cst_250 : f32 to vector<8x128xf32>
    %675 = arith.mulf %674, %673 : vector<8x128xf32>
    %cst_251 = arith.constant 5.000000e-01 : f32
    %676 = vector.broadcast %cst_251 : f32 to vector<8x128xf32>
    %677 = arith.addf %675, %676 : vector<8x128xf32>
    %678 = vector.extract_strided_slice %661 {offsets = [0, 256], sizes = [8, 128], strides = [1, 1]} : vector<8x512xf32> to vector<8x128xf32>
    %679 = math.tanh %678 : vector<8x128xf32>
    %680 = vector.extract_strided_slice %661 {offsets = [0, 384], sizes = [8, 128], strides = [1, 1]} : vector<8x512xf32> to vector<8x128xf32>
    %cst_252 = arith.constant 5.000000e-01 : f32
    %681 = vector.broadcast %cst_252 : f32 to vector<8x128xf32>
    %682 = arith.mulf %681, %680 : vector<8x128xf32>
    %683 = math.tanh %682 : vector<8x128xf32>
    %cst_253 = arith.constant 5.000000e-01 : f32
    %684 = vector.broadcast %cst_253 : f32 to vector<8x128xf32>
    %685 = arith.mulf %684, %683 : vector<8x128xf32>
    %cst_254 = arith.constant 5.000000e-01 : f32
    %686 = vector.broadcast %cst_254 : f32 to vector<8x128xf32>
    %687 = arith.addf %685, %686 : vector<8x128xf32>
    %688 = arith.mulf %677, %639 : vector<8x128xf32>
    %689 = arith.mulf %669, %679 : vector<8x128xf32>
    %690 = arith.addf %688, %689 : vector<8x128xf32>
    %691 = math.tanh %690 : vector<8x128xf32>
    %692 = arith.mulf %687, %691 : vector<8x128xf32>
    %c0_255 = arith.constant 0 : index
    %c0_256 = arith.constant 0 : index
    %693 = vector.load %arg7[%c0_255, %c0_256] : memref<128x1152xf32, #tpu.memory_space<vmem>>, vector<128x1152xf32>
    %cst_257 = arith.constant dense<0.000000e+00> : vector<8x1152xf32>
    %694 = tpu.matmul %692, %693, %cst_257 {dimension_numbers = #tpu.dot_dimension_numbers<[1], [0], [0], [1], [0, 0, 1, 1], [], []>} : vector<8x128xf32>, vector<128x1152xf32>, vector<8x1152xf32> -> vector<8x1152xf32>
    %695 = vector.extract_strided_slice %694 {offsets = [0, 1024], sizes = [8, 128], strides = [1, 1]} : vector<8x1152xf32> to vector<8x128xf32>
    %696 = arith.addf %695, %10 : vector<8x128xf32>
    %c0_258 = arith.constant 0 : index
    %c512 = arith.constant 512 : index
    %697 = vector.load %arg10[%c0_258, %c512] : memref<8x768xf32, #tpu.memory_space<vmem>>, vector<8x128xf32>
    tpu.vector_store %arg10[%c0_258, %c512], %696 {strides = array<i32>} : memref<8x768xf32, #tpu.memory_space<vmem>>, vector<8x128xf32>,
    %c4 = arith.constant 4 : index
    %698 = memref.load %arg1[%c4] : memref<5xi32, #tpu.memory_space<smem>>
    %699 = arith.sitofp %698 : i32 to f32
    %c16 = arith.constant 16 : index
    %c0_259 = arith.constant 0 : index
    %c0_260 = arith.constant 0 : index
    %700 = vector.load %arg11[%c16, %c0_259, %c0_260] : memref<17x8x512xf32, #tpu.memory_space<vmem>>, vector<1x8x512xf32>
    %701 = vector.shape_cast %700 : vector<1x8x512xf32> to vector<8x512xf32>
    %702 = arith.addf %5, %701 : vector<8x512xf32>
    %703 = vector.extract_strided_slice %694 {offsets = [0, 512], sizes = [8, 512], strides = [1, 1]} : vector<8x1152xf32> to vector<8x512xf32>
    %704 = arith.addf %14, %703 : vector<8x512xf32>
    %705 = vector.extract_strided_slice %694 {offsets = [0, 0], sizes = [8, 512], strides = [1, 1]} : vector<8x1152xf32> to vector<8x512xf32>
    %706 = vector.broadcast %699 : f32 to vector<8x512xf32>
    %707 = arith.mulf %706, %702 : vector<8x512xf32>
    %708 = arith.addf %705, %707 : vector<8x512xf32>
    %cst_261 = arith.constant 1.000000e+00 : f32
    %709 = arith.subf %cst_261, %699 : f32
    %710 = vector.broadcast %709 : f32 to vector<8x512xf32>
    %711 = arith.mulf %710, %704 : vector<8x512xf32>
    %712 = arith.addf %708, %711 : vector<8x512xf32>
    %713 = vector.extract_strided_slice %712 {offsets = [0, 0], sizes = [8, 128], strides = [1, 1]} : vector<8x512xf32> to vector<8x128xf32>
    %cst_262 = arith.constant 5.000000e-01 : f32
    %714 = vector.broadcast %cst_262 : f32 to vector<8x128xf32>
    %715 = arith.mulf %714, %713 : vector<8x128xf32>
    %716 = math.tanh %715 : vector<8x128xf32>
    %cst_263 = arith.constant 5.000000e-01 : f32
    %717 = vector.broadcast %cst_263 : f32 to vector<8x128xf32>
    %718 = arith.mulf %717, %716 : vector<8x128xf32>
    %cst_264 = arith.constant 5.000000e-01 : f32
    %719 = vector.broadcast %cst_264 : f32 to vector<8x128xf32>
    %720 = arith.addf %718, %719 : vector<8x128xf32>
    %721 = vector.extract_strided_slice %712 {offsets = [0, 128], sizes = [8, 128], strides = [1, 1]} : vector<8x512xf32> to vector<8x128xf32>
    %cst_265 = arith.constant 5.000000e-01 : f32
    %722 = vector.broadcast %cst_265 : f32 to vector<8x128xf32>
    %723 = arith.mulf %722, %721 : vector<8x128xf32>
    %724 = math.tanh %723 : vector<8x128xf32>
    %cst_266 = arith.constant 5.000000e-01 : f32
    %725 = vector.broadcast %cst_266 : f32 to vector<8x128xf32>
    %726 = arith.mulf %725, %724 : vector<8x128xf32>
    %cst_267 = arith.constant 5.000000e-01 : f32
    %727 = vector.broadcast %cst_267 : f32 to vector<8x128xf32>
    %728 = arith.addf %726, %727 : vector<8x128xf32>
    %729 = vector.extract_strided_slice %712 {offsets = [0, 256], sizes = [8, 128], strides = [1, 1]} : vector<8x512xf32> to vector<8x128xf32>
    %730 = math.tanh %729 : vector<8x128xf32>
    %731 = vector.extract_strided_slice %712 {offsets = [0, 384], sizes = [8, 128], strides = [1, 1]} : vector<8x512xf32> to vector<8x128xf32>
    %cst_268 = arith.constant 5.000000e-01 : f32
    %732 = vector.broadcast %cst_268 : f32 to vector<8x128xf32>
    %733 = arith.mulf %732, %731 : vector<8x128xf32>
    %734 = math.tanh %733 : vector<8x128xf32>
    %cst_269 = arith.constant 5.000000e-01 : f32
    %735 = vector.broadcast %cst_269 : f32 to vector<8x128xf32>
    %736 = arith.mulf %735, %734 : vector<8x128xf32>
    %cst_270 = arith.constant 5.000000e-01 : f32
    %737 = vector.broadcast %cst_270 : f32 to vector<8x128xf32>
    %738 = arith.addf %736, %737 : vector<8x128xf32>
    %739 = arith.mulf %728, %690 : vector<8x128xf32>
    %740 = arith.mulf %720, %730 : vector<8x128xf32>
    %741 = arith.addf %739, %740 : vector<8x128xf32>
    %742 = math.tanh %741 : vector<8x128xf32>
    %743 = arith.mulf %738, %742 : vector<8x128xf32>
    %c0_271 = arith.constant 0 : index
    %c0_272 = arith.constant 0 : index
    %744 = vector.load %arg7[%c0_271, %c0_272] : memref<128x1152xf32, #tpu.memory_space<vmem>>, vector<128x1152xf32>
    %cst_273 = arith.constant dense<0.000000e+00> : vector<8x1152xf32>
    %745 = tpu.matmul %743, %744, %cst_273 {dimension_numbers = #tpu.dot_dimension_numbers<[1], [0], [0], [1], [0, 0, 1, 1], [], []>} : vector<8x128xf32>, vector<128x1152xf32>, vector<8x1152xf32> -> vector<8x1152xf32>
    %746 = vector.extract_strided_slice %745 {offsets = [0, 1024], sizes = [8, 128], strides = [1, 1]} : vector<8x1152xf32> to vector<8x128xf32>
    %747 = arith.addf %746, %10 : vector<8x128xf32>
    %c0_274 = arith.constant 0 : index
    %c640 = arith.constant 640 : index
    %748 = vector.load %arg10[%c0_274, %c640] : memref<8x768xf32, #tpu.memory_space<vmem>>, vector<8x128xf32>
    tpu.vector_store %arg10[%c0_274, %c640], %747 {strides = array<i32>} : memref<8x768xf32, #tpu.memory_space<vmem>>, vector<8x128xf32>,
    return
  }
  func.func @transform_0(%arg0: i32, %arg1: memref<5xi32, #tpu.memory_space<smem>>) -> (i32, i32) {
    %c0_i32 = arith.constant 0 : i32
    %c0_i32_0 = arith.constant 0 : i32
    return %arg0, %c0_i32 : i32, i32
  }
  func.func @transform_1(%arg0: i32, %arg1: memref<5xi32, #tpu.memory_space<smem>>) -> (i32, i32, i32) {
    %c0_i32 = arith.constant 0 : i32
    %c0_i32_0 = arith.constant 0 : i32
    %c0_i32_1 = arith.constant 0 : i32
    return %c0_i32, %arg0, %c0_i32_0 : i32, i32, i32
  }
  func.func @transform_2(%arg0: i32, %arg1: memref<5xi32, #tpu.memory_space<smem>>) -> (i32, i32) {
    %c0_i32 = arith.constant 0 : i32
    %c0_i32_0 = arith.constant 0 : i32
    %c0_i32_1 = arith.constant 0 : i32
    return %c0_i32, %c0_i32_0 : i32, i32
  }
  func.func @transform_3(%arg0: i32, %arg1: memref<5xi32, #tpu.memory_space<smem>>) -> (i32, i32) {
    %c0_i32 = arith.constant 0 : i32
    %c0_i32_0 = arith.constant 0 : i32
    %c0_i32_1 = arith.constant 0 : i32
    return %c0_i32, %c0_i32_0 : i32, i32
  }
  func.func @transform_4(%arg0: i32, %arg1: memref<5xi32, #tpu.memory_space<smem>>) -> (i32, i32) {
    %c0_i32 = arith.constant 0 : i32
    %c0_i32_0 = arith.constant 0 : i32
    %c0_i32_1 = arith.constant 0 : i32
    return %c0_i32, %c0_i32_0 : i32, i32
  }
  func.func @transform_5(%arg0: i32, %arg1: memref<5xi32, #tpu.memory_space<smem>>) -> (i32, i32) {
    %c0_i32 = arith.constant 0 : i32
    %c0_i32_0 = arith.constant 0 : i32
    %c0_i32_1 = arith.constant 0 : i32
    return %c0_i32, %c0_i32_0 : i32, i32
  }
  func.func @transform_6(%arg0: i32, %arg1: memref<5xi32, #tpu.memory_space<smem>>) -> (i32, i32) {
    %c0_i32 = arith.constant 0 : i32
    %c0_i32_0 = arith.constant 0 : i32
    %c0_i32_1 = arith.constant 0 : i32
    return %c0_i32, %c0_i32_0 : i32, i32
  }
  func.func @transform_7(%arg0: i32, %arg1: memref<5xi32, #tpu.memory_space<smem>>) -> (i32, i32) {
    %c0_i32 = arith.constant 0 : i32
    %c0_i32_0 = arith.constant 0 : i32
    %c0_i32_1 = arith.constant 0 : i32
    return %c0_i32, %c0_i32_0 : i32, i32
  }
  func.func @transform_8(%arg0: i32, %arg1: memref<5xi32, #tpu.memory_space<smem>>) -> (i32, i32) {
    %c0_i32 = arith.constant 0 : i32
    %c0_i32_0 = arith.constant 0 : i32
    return %arg0, %c0_i32 : i32, i32
  }
}

</mosaic_0001>

<bundles_post_ra>
// kernel: tpu_custom_call.1
= control target key start
LH: loop header
LB: loop body
LE: loop exit
PB: predicated region body
PF: predicated region fallthrough
CT: control target
= control target key end

     0   :  { %s4432_s12 = smov [#allocation4]   ;;  %s7597_s0 = inlined_call_operand.vmem [shape: s32[5], index: 0, kind: input, shape index: {}]   ;;  %s7598_s1 = inlined_call_operand.vmem [shape: f32[8,64], index: 1, kind: input, shape index: {}]   ;;  %s7599_s2 = inlined_call_operand.vmem [shape: f32[17,8,11], index: 2, kind: input, shape index: {}]   ;;  %s7600_s3 = inlined_call_operand.vmem [shape: f32[11,512], index: 3, kind: input, shape index: {}]   ;;  %s7601_s4 = inlined_call_operand.hbm [shape: f32[64,512], index: 4, kind: input, shape index: {}]   ;;  %s7602_s5 = inlined_call_operand.vmem [shape: f32[1,512], index: 5, kind: input, shape index: {}]   ;;  %s7603_s6 = inlined_call_operand.hbm [shape: f32[128,1152], index: 6, kind: input, shape index: {}]   ;;  %s7604_s7 = inlined_call_operand.vmem [shape: f32[64,128], index: 7, kind: input, shape index: {}]   ;;  %s7605_s8 = inlined_call_operand.vmem [shape: f32[1,128], index: 8, kind: input, shape index: {}]   ;;  %s7606_s9 = inlined_call_operand.hbm [shape: f32[8,768], index: 9, kind: output, shape index: {}]  }
   0x1   :  { %s15_s11 = sshll.u32 %s7597_s0, 4  ;;  %s16_s11 = int_to_ptr.vmem [resolvable:$true] %s15_s11 }
   0x2   :  { %18 = dma.vmem_to_smem %s16_s11, 16, %s4432_s12, [#allocation3] }
   0x3   :  { %4424 = dma.done.wait [#allocation3], 16 }
   0x4   :  { %4425 = vsyncadd [#allocation3], 4294967280 }
   0x5   :  { %21 = sfence }
   0x6   :  { %22 = vsyncpa [#allocation6], 0 }
   0x7   :  { %23 = vsyncpa [#allocation9], 0 }
   0x8   :  { %24 = vsyncpa [#allocation7], 0  ;;  %s35_s15 = sshll.u32 %s7601_s4, 4  ;;  %s4433_s16 = smov [#allocation5]   ;;  %s36_s15 = int_to_ptr.hbm [resolvable:$true] %s35_s15 }
   0x9   :  { %s37_s17 = sshll.u32 %s4433_s16, 4  ;;  %s50_s0 = sshll.u32 %s7603_s6, 4  ;;  %s38_s17 = int_to_ptr.vmem [resolvable:$true] %s37_s17  ;;  %s51_s0 = int_to_ptr.hbm [resolvable:$true] %s50_s0 }
   0xa   :  { %s4434_s20 = smov 512   ;;  %s4435_s21 = smov 32  }
   0xb   :  { %43 = dma.hbm_to_vmem [thread:$0]  %s36_s15, 4096, %s38_s17, [#allocation6], %s4434_s20, %s4434_s20, %s4435_s21  }
   0xc   :  { %s4436_s22 = smov [#allocation8]   ;;  %s4437_s24 = smov 1152  }
   0xd   :  { %s52_s23 = sshll.u32 %s4436_s22, 4  ;;  %s4438_s25 = smov 72   ;;  %s53_s23 = int_to_ptr.vmem [resolvable:$true] %s52_s23 }
   0xe   :  { %58 = dma.hbm_to_vmem [thread:$0]  %s51_s0, 18432, %s53_s23, [#allocation9], %s4437_s24, %s4437_s24, %s4438_s25  }
   0xf   :  { %4426 = dma.done.wait [#allocation6], 4096  }
  0x10   :  { %4427 = vsyncadd [#allocation6], 4294963200 }
  0x11   :  { %4428 = dma.done.wait [#allocation9], 18432  }
  0x12   :  { %4429 = vsyncadd [#allocation9], 4294948864  ;;  %v100_v0 = vld [vmem:[#allocation5 + $0xe0] sm:$0xff]  ;;  %v102_v8 = vld [vmem:[#allocation5 + $0xf0] sm:$0xff]  ;;  %vm114_vm0 = vcmask 523264   ;;  %vm242_vm1 = vcmask 1042432  }
  0x13   :  { %v96_v1 = vld [vmem:[#allocation5 + $0xc0] sm:$0xff]  ;;  %126 = vmatpush.msra.mxu0 %v100_v0  ;;  %v236_v10 = vld [vmem:[%s7600_s3 + $0x30] sm:$0x7]  ;;  %v205_v19 = vld [vmem:[%s7604_s7 + $0x38] sm:$0xff]  ;;  %vm238_vm2 = vcmask 89088   ;;  %s6909_s20 = sld [smem:[#allocation4 + $0x1]] }
  0x14   :  { %v92_v2 = vld [vmem:[#allocation5 + $0xa0] sm:$0xff]  ;;  %v98_v11 = vld [vmem:[#allocation5 + $0xd0] sm:$0xff]  ;;  %3953 = vmatpush.msk.msra.mxu3 %vm242_vm1, %v236_v10  ;;  %v203_v21 = vld [vmem:[%s7604_s7 + $0x28] sm:$0xff]  ;;  %s7389_s23 = sld [smem:[#allocation4 + $0x2]]  ;;  %s4439_s29 = smov [#allocation10]  }
  0x15   :  { %127 = vmatpush.msra.mxu0 %v96_v1  ;;  %v88_v3 = vld [vmem:[#allocation5 + $0x80] sm:$0xff]  ;;  %v232_v12 = vld [vmem:[%s7600_s3 + $0x10] sm:$0xff]  ;;  %v201_v23 = vld [vmem:[%s7604_s7 + $0x18] sm:$0xff]  ;;  %s7550_s4 = sld [smem:[#allocation4 + $0x3]]  ;;  %s3933_s11 = sshll.u32 %s7606_s9, 4  ;;  %s3934_s11 = int_to_ptr.hbm [resolvable:$true] %s3933_s11 }
  0x16   :  { %v84_v4 = vld [vmem:[#allocation5 + $0x60] sm:$0xff]  ;;  %v94_v13 = vld [vmem:[#allocation5 + $0xb0] sm:$0xff]  ;;  %310 = vmatpush.msra.mxu3 %v232_v12  ;;  %v199_v25 = vld [vmem:[%s7604_s7 + $0x8] sm:$0xff]  ;;  %s4032_s26 = sld [smem:[#allocation4 + $0x4]] }
  0x17   :  { %128 = vmatpush.msra.mxu0 %v92_v2  ;;  %v80_v5 = vld [vmem:[#allocation5 + $0x40] sm:$0xff]  ;;  %v90_v14 = vld [vmem:[#allocation5 + $0x90] sm:$0xff]  ;;  %v4552_v28 = vld [vmem:[%s7599_s2 + $0x8] sm:$0xff] }
  0x18   :  { %v76_v6 = vld [vmem:[#allocation5 + $0x20] sm:$0xff]  ;;  %v86_v15 = vld [vmem:[#allocation5 + $0x70] sm:$0xff]  ;;  %v4566_v30 = vld [vmem:[%s7599_s2 + $0x18] sm:$0xff] }
  0x19   :  { %129 = vmatpush.msra.mxu0 %v88_v3  ;;  %v72_v7 = vld [vmem:[#allocation5] sm:$0xff]  ;;  %v82_v16 = vld [vmem:[#allocation5 + $0x50] sm:$0xff]  ;;  %v4580_v32 = vld [vmem:[%s7599_s2 + $0x28] sm:$0xff]  ;;  %s2703_s21 = scvt.s32.f32 %s6909_s20 }
  0x1a   :  { %v4502_v9 = vld [vmem:[%s7598_s1] sm:$0xff]  ;;  %v78_v17 = vld [vmem:[#allocation5 + $0x30] sm:$0xff]  ;;  %v101_v34 = vld [vmem:[#allocation5 + $0xe8] sm:$0xff]  ;;  %s3081_s24 = scvt.s32.f32 %s7389_s23  ;;  %s3931_s1 = sshll.u32 %s4439_s29, 4  ;;  %s3932_s1 = int_to_ptr.vmem [resolvable:$true] %s3931_s1 }
  0x1b   :  { %130 = vmatpush.msra.mxu0 %v84_v4  ;;  %v74_v18 = vld [vmem:[#allocation5 + $0x10] sm:$0xff]  ;;  %v202_v22 = vld [vmem:[%s7604_s7 + $0x20] sm:$0xff]  ;;  %v97_v35 = vld [vmem:[#allocation5 + $0xc8] sm:$0xff]  ;;  %146 = vmatpush.msra.mxu1 %v101_v34  ;;  %s2726_s22 = ssub.f32 1.0, %s2703_s21 }
  0x1c   :  { %v204_v20 = vld [vmem:[%s7604_s7 + $0x30] sm:$0xff]  ;;  %v198_v26 = vld [vmem:[%s7604_s7] sm:$0xff]  ;;  %v93_v36 = vld [vmem:[#allocation5 + $0xa8] sm:$0xff]  ;;  %s3104_s25 = ssub.f32 1.0, %s3081_s24  ;;  %s3837_s27 = scvt.s32.f32 %s4032_s26 }
  0x1d   :  { %131 = vmatpush.msra.mxu0 %v80_v5  ;;  %v200_v24 = vld [vmem:[%s7604_s7 + $0x10] sm:$0xff]  ;;  %v4545_v27 = vld [vmem:[%s7599_s2] sm:$0xff]  ;;  %147 = vmatpush.msra.mxu1 %v97_v35  ;;  %v89_v37 = vld [vmem:[#allocation5 + $0x88] sm:$0xff]  ;;  %s3459_s7 = scvt.s32.f32 %s7550_s4 }
  0x1e   :  { %v4559_v29 = vld [vmem:[%s7599_s2 + $0x10] sm:$0xff]  ;;  %v4573_v31 = vld [vmem:[%s7599_s2 + $0x20] sm:$0xff]  ;;  %v4594_v38 = vld [vmem:[%s7599_s2 + $0x38] sm:$0xff]  ;;  %s3860_s28 = ssub.f32 1.0, %s3837_s27 }
  0x1f   :  { %132 = vmatpush.msra.mxu0 %v76_v6  ;;  %v4587_v33 = vld [vmem:[%s7599_s2 + $0x30] sm:$0xff]  ;;  %148 = vmatpush.msra.mxu1 %v93_v36  ;;  %v85_v39 = vld [vmem:[#allocation5 + $0x68] sm:$0xff]  ;;  %v4601_v43 = vld [vmem:[%s7599_s2 + $0x40] sm:$0xff]  ;;  %s3482_s6 = ssub.f32 1.0, %s3459_s7 }
  0x20   :  { %v81_v40 = vld [vmem:[#allocation5 + $0x48] sm:$0xff]  ;;  %v103_v44 = vld [vmem:[#allocation5 + $0xf8] sm:$0xff]  ;;  %v4617_v53 = vld [vmem:[%s7599_s2 + $0x50] sm:$0xff] }
  0x21   :  { %133 = vmatpush.msra.mxu0 %v72_v7  ;;  %149 = vmatpush.msra.mxu1 %v89_v37  ;;  %v77_v41 = vld [vmem:[#allocation5 + $0x28] sm:$0xff]  ;;  %v99_v45 = vld [vmem:[#allocation5 + $0xd8] sm:$0xff]  ;;  %v234_v54 = vld [vmem:[%s7600_s3 + $0x20] sm:$0x7] }
  0x22   :  { %3944 = vmatmul.msk.f32.vlgmr.msra.gmra.mxu0 %vm114_vm0, %v4502_v9  ;;  %v73_v42 = vld [vmem:[#allocation5 + $0x8] sm:$0xff]  ;;  %v95_v46 = vld [vmem:[#allocation5 + $0xb8] sm:$0xff]  ;;  %v230_v57 = vld [vmem:[%s7600_s3] sm:$0xff] }
  0x23   :  { %166 = vmatpush.msrb.mxu0 %v102_v8  ;;  %150 = vmatpush.msra.mxu1 %v85_v39  ;;  %v91_v47 = vld [vmem:[#allocation5 + $0x98] sm:$0xff]  ;;  %v4610_v48 = vld [vmem:[%s7599_s2 + $0x48] sm:$0xff]  ;;  %v4653_v60 = vld [vmem:[%s7599_s2 + $0x60] sm:$0xff] }
  0x24   :  { %v87_v49 = vld [vmem:[#allocation5 + $0x78] sm:$0xff]  ;;  %v235_v55 = vld [vmem:[%s7600_s3 + $0x28] sm:$0x7]  ;;  %v4674_v1 = vld [vmem:[%s7599_s2 + $0x70] sm:$0xff] }
  0x25   :  { %167 = vmatpush.msrb.mxu0 %v98_v11  ;;  %151 = vmatpush.msra.mxu1 %v81_v40  ;;  %v83_v50 = vld [vmem:[#allocation5 + $0x58] sm:$0xff]  ;;  %v231_v58 = vld [vmem:[%s7600_s3 + $0x8] sm:$0xff]  ;;  %v4041_v2 = vld [vmem:[%s7605_s8] ss:$0 sm:$0xff] }
  0x26   :  { %v79_v51 = vld [vmem:[#allocation5 + $0x38] sm:$0xff]  ;;  %3951 = vmatpush.msk.msra.mxu2 %vm242_vm1, %v235_v55  ;;  %3975 = vmatpush.msk.msrb.mxu3 %vm242_vm1, %v235_v55  ;;  %v4665_v63 = vld [vmem:[%s7599_s2 + $0x68] sm:$0xff]  ;;  %v4698_v7 = vld [vmem:[#allocation8 + $0x440] sm:$0xff] }
  0x27   :  { %168 = vmatpush.msrb.mxu0 %v94_v13  ;;  %152 = vmatpush.msra.mxu1 %v77_v41  ;;  %v75_v52 = vld [vmem:[#allocation5 + $0x18] sm:$0xff]  ;;  %v4706_v8 = vld [vmem:[%s7599_s2 + $0x80] sm:$0xff]  ;;  %v4720_v11 = vld [vmem:[#allocation8 + $0x448] sm:$0xff] }
  0x28   :  { %v4632_v56 = vld [vmem:[%s7599_s2 + $0x58] sm:$0xff]  ;;  %290 = vmatpush.msra.mxu2 %v231_v58  ;;  %490 = vmatpush.msrb.mxu3 %v231_v58  ;;  %v4733_v13 = vld [vmem:[#allocation8 + $0x3b0] sm:$0xff]  ;;  %v4812_v34 = vld [vmem:[#allocation8 + $0x2e0] sm:$0xff] }
  0x29   :  { %169 = vmatpush.msrb.mxu0 %v90_v14  ;;  %153 = vmatpush.msra.mxu1 %v73_v42  ;;  %v237_v59 = vld [vmem:[%s7600_s3 + $0x38] sm:$0x7]  ;;  %v4735_v14 = vld [vmem:[#allocation8 + $0x450] sm:$0xff]  ;;  %v4823_v35 = vld [vmem:[#allocation8 + $0x248] sm:$0xff] }
  0x2a   :  { %3945 = vmatmul.msk.f32.vlgmr.msra.gmra.mxu1 %vm114_vm0, %v4502_v9  ;;  %3957 = vmatpush.msk.msrb.mxu2 %vm242_vm1, %v234_v54  ;;  %v233_v61 = vld [vmem:[%s7600_s3 + $0x18] sm:$0xff]  ;;  %v4825_v36 = vld [vmem:[#allocation8 + $0x2e8] sm:$0xff]  ;;  %v4841_v39 = vld [vmem:[#allocation8 + $0x200] sm:$0xff] }
  0x2b   :  { %170 = vmatpush.msrb.mxu0 %v86_v15  ;;  %186 = vmatpush.msrb.mxu1 %v103_v44  ;;  %v4686_v5 = vld [vmem:[%s7599_s2 + $0x78] sm:$0xff]  ;;  %v4740_v15 = vld [vmem:[#allocation8 + $0x400] sm:$0xff]  ;;  %v4857_v41 = vld [vmem:[#allocation8 + $0x1b0] sm:$0xff] }
  0x2c   :  { %422 = vmatpush.msrb.mxu2 %v230_v57  ;;  %v4696_v6 = vld [vmem:[#allocation8 + $0x438] sm:$0xff]  ;;  %v4843_v40 = vld [vmem:[#allocation8 + $0x2a0] sm:$0xff] }
  0x2d   :  { %171 = vmatpush.msrb.mxu0 %v82_v16  ;;  %187 = vmatpush.msrb.mxu1 %v99_v45  ;;  %v4749_v16 = vld [vmem:[#allocation8 + $0x360] sm:$0xff]  ;;  %v4830_v37 = vld [vmem:[#allocation8 + $0x298] sm:$0xff]  ;;  %v4875_v45 = vld [vmem:[#allocation8 + $0x168] sm:$0xff] }
  0x2e   :  { %v4859_v42 = vld [vmem:[#allocation8 + $0x1b8] sm:$0xff]  ;;  %v4915_v55 = vld [vmem:[#allocation8 + $0x180] sm:$0xff] }
  0x2f   :  { %172 = vmatpush.msrb.mxu0 %v78_v17  ;;  %188 = vmatpush.msrb.mxu1 %v95_v46  ;;  %v4751_v17 = vld [vmem:[#allocation8 + $0x368] sm:$0xff]  ;;  %v4861_v44 = vld [vmem:[#allocation8 + $0x258] sm:$0xff]  ;;  %v4877_v46 = vld [vmem:[#allocation8 + $0x170] sm:$0xff]  ;;  %7951 = vst [vmem:[#allocation22_spill] sm:$0xff] %v4915_v55 }
  0x30   :  { %7945 = vst [vmem:[#allocation16_spill] sm:$0xff] %v4877_v46 }
  0x31   :  { %173 = vmatpush.msrb.mxu0 %v74_v18  ;;  %189 = vmatpush.msrb.mxu1 %v91_v47  ;;  %v4753_v18 = vld [vmem:[#allocation8 + $0x408] sm:$0xff]  ;;  %v4879_v47 = vld [vmem:[#allocation8 + $0x210] sm:$0xff] }
  0x32   :  { %3946 = vmatmul.msk.f32.vlgmr.msrb.gmra.mxu0 %vm114_vm0, %v4502_v9 }
  0x33   :  { %218 = vmatpush.msra.mxu0 %v205_v19  ;;  %190 = vmatpush.msrb.mxu1 %v87_v49  ;;  %v4758_v19 = vld [vmem:[#allocation8 + $0x3b8] sm:$0xff]  ;;  %v4893_v49 = vld [vmem:[#allocation8 + $0x120] sm:$0xff] }
  0x34   :  { %7946 = vst [vmem:[#allocation17_spill] sm:$0xff] %v4893_v49 }
  0x35   :  { %219 = vmatpush.msra.mxu0 %v204_v20  ;;  %191 = vmatpush.msrb.mxu1 %v83_v50  ;;  %v4767_v20 = vld [vmem:[#allocation8 + $0x318] sm:$0xff]  ;;  %v4895_v50 = vld [vmem:[#allocation8 + $0x128] sm:$0xff] }
  0x36   :  { %7947 = vst [vmem:[#allocation18_spill] sm:$0xff] %v4895_v50 }
  0x37   :  { %220 = vmatpush.msra.mxu0 %v203_v21  ;;  %192 = vmatpush.msrb.mxu1 %v79_v51  ;;  %v4769_v21 = vld [vmem:[#allocation8 + $0x320] sm:$0xff]  ;;  %v4897_v51 = vld [vmem:[#allocation8 + $0x1c8] sm:$0xff] }
  0x39   :  { %221 = vmatpush.msra.mxu0 %v202_v22  ;;  %193 = vmatpush.msrb.mxu1 %v75_v52  ;;  %v4771_v22 = vld [vmem:[#allocation8 + $0x3c0] sm:$0xff]  ;;  %v4911_v52 = vld [vmem:[#allocation8 + $0xd8] sm:$0xff] }
  0x3a   :  { %3947 = vmatmul.msk.f32.vlgmr.msrb.gmra.mxu1 %vm114_vm0, %v4502_v9  ;;  %7949 = vst [vmem:[#allocation20_spill] sm:$0xff] %v4911_v52 }
  0x3b   :  { %222 = vmatpush.msra.mxu0 %v201_v23  ;;  %3949 = vmatpush.msk.msra.mxu1 %vm242_vm1, %v234_v54  ;;  %v4776_v23 = vld [vmem:[#allocation8 + $0x370] sm:$0xff]  ;;  %v4913_v54 = vld [vmem:[#allocation8 + $0xe0] sm:$0xff] }
  0x3c   :  { %7950 = vst [vmem:[#allocation21_spill] sm:$0xff] %v4913_v54 }
  0x3d   :  { %223 = vmatpush.msra.mxu0 %v200_v24  ;;  %270 = vmatpush.msra.mxu1 %v230_v57  ;;  %v4785_v24 = vld [vmem:[#allocation8 + $0x2d0] sm:$0xff] }
  0x3e   :  { %v4924_v57 = vld [vmem:[#allocation8 + $0x130] sm:$0xff] }
  0x3f   :  { %224 = vmatpush.msra.mxu0 %v199_v25  ;;  %3955 = vmatpush.msk.msrb.mxu1 %vm242_vm1, %v237_v59  ;;  %v4787_v25 = vld [vmem:[#allocation8 + $0x2d8] sm:$0xff]  ;;  %7952 = vst [vmem:[#allocation23_spill] sm:$0xff] %v4924_v57 }
  0x41   :  { %225 = vmatpush.msra.mxu0 %v198_v26  ;;  %330 = vmatpush.msrb.mxu1 %v233_v61  ;;  %v4789_v26 = vld [vmem:[#allocation8 + $0x378] sm:$0xff] }
  0x42   :  { %3948 = vmatmul.msk.f32.vlgmr.msra.gmra.mxu0 %vm114_vm0, %v4502_v9  ;;  %v4716_v9 = vld [vmem:[#allocation8 + $0x3f0] sm:$0xff] }
  0x43   :  { %3993 = vmatpush.msk.msrb.mxu0 %vm242_vm1, %v236_v10  ;;  %v4718_v10 = vld [vmem:[#allocation8 + $0x3f8] sm:$0xff] }
  0x45   :  { %558 = vmatpush.msrb.mxu0 %v232_v12  ;;  %v4731_v12 = vld [vmem:[#allocation8 + $0x3a8] sm:$0xff] }
  0x47   :  { %961 = vmatpush.msra.mxu0 %v4720_v11 }
  0x49   :  { %962 = vmatpush.msra.mxu0 %v4740_v15 }
  0x4a   :  { %3994 = vmatmul.msk.f32.vlgmr.msrb.gmra.mxu0 %vm238_vm2, %v4545_v27 }
  0x4b   :  { %963 = vmatpush.msra.mxu0 %v4758_v19 }
  0x4d   :  { %964 = vmatpush.msra.mxu0 %v4776_v23 }
  0x52   :  { %3995 = vmatmul.msk.f32.gmra.mxu0 %vm238_vm2, %v4552_v28 }
  0x5a   :  { %3996 = vmatmul.msk.f32.gmra.mxu0 %vm238_vm2, %v4559_v29 }
  0x62   :  { %3997 = vmatmul.msk.f32.gmra.mxu0 %vm238_vm2, %v4566_v30 }
  0x6a   :  { %3998 = vmatmul.msk.f32.gmra.mxu0 %vm238_vm2, %v4573_v31 }
  0x72   :  { %3999 = vmatmul.msk.f32.gmra.mxu0 %vm238_vm2, %v4580_v32 }
  0x7a   :  { %4000 = vmatmul.msk.f32.gmra.mxu0 %vm238_vm2, %v4587_v33 }
  0x82   :  { %4001 = vmatmul.msk.f32.gmra.mxu0 %vm238_vm2, %v4594_v38 }
  0x8a   :  { %4002 = vmatmul.msk.f32.gmra.mxu0 %vm238_vm2, %v4601_v43 }
  0x92   :  { %4003 = vmatmul.msk.f32.gmra.mxu0 %vm238_vm2, %v4610_v48 }
  0x9a   :  { %4004 = vmatmul.msk.f32.gmra.mxu0 %vm238_vm2, %v4617_v53 }
  0x9f   :  { %v4660_v62 = vpop.f32.mrf.mxu0 }
  0xa2   :  { %4005 = vmatmul.msk.f32.gmra.mxu0 %vm238_vm2, %v4632_v56 }
  0xaa   :  { %4006 = vmatmul.msk.f32.gmra.mxu0 %vm238_vm2, %v4653_v60 }
  0xaf   :  { %v4669_v0 = vpop.f32.mrf.mxu0 }
  0xb2   :  { %4007 = vmatmul.msk.f32.gmra.mxu0 %vm238_vm2, %v4665_v63 }
  0xba   :  { %4008 = vmatmul.msk.f32.gmra.mxu0 %vm238_vm2, %v4674_v1 }
  0xbf   :  { %v227_v3 = vpop.f32.mrf.mxu0 }
  0xc0   :  { %v4681_v4 = vadd.f32 %v4041_v2, %v227_v3  ;;  %v4964_v3 = vld [vmem:[#allocation8 + $0x90] sm:$0xff] }
  0xc1   :  { %7958 = vst [vmem:[#allocation29_spill] sm:$0xff] %v4964_v3 }
  0xc2   :  { %7944 = vst [vmem:[#allocation15_spill] sm:$0xff] %v4681_v4  ;;  %3950 = vmatmul.msk.f32.vlgmr.msra.gmra.mxu1 %vm238_vm2, %v4681_v4  ;;  %3952 = vmatmul.msk.f32.vlgmr.msra.gmra.mxu2 %vm238_vm2, %v4681_v4 }
  0xc3   :  { %3954 = vmatmul.msk.f32.vlgmr.msra.gmra.mxu3 %vm238_vm2, %v4681_v4  ;;  %4009 = vmatmul.msk.f32.gmra.mxu0 %vm238_vm2, %v4686_v5 }
  0xc4   :  { %4011 = vmatpush.msk.msra.mxu1 %vm242_vm1, %v237_v59  ;;  %921 = vmatpush.msra.mxu2 %v4696_v6  ;;  %v4945_v59 = vld [vmem:[#allocation8 + $0x138] sm:$0xff] }
  0xc5   :  { %941 = vmatpush.msra.mxu3 %v4698_v7  ;;  %7954 = vst [vmem:[#allocation25_spill] sm:$0xff] %v4945_v59 }
  0xc6   :  { %626 = vmatpush.msra.mxu1 %v233_v61  ;;  %922 = vmatpush.msra.mxu2 %v4716_v9  ;;  %v4956_v61 = vld [vmem:[#allocation8 + $0xf0] sm:$0xff] }
  0xc7   :  { %942 = vmatpush.msra.mxu3 %v4718_v10  ;;  %7956 = vst [vmem:[#allocation27_spill] sm:$0xff] %v4956_v61 }
  0xc8   :  { %923 = vmatpush.msra.mxu2 %v4731_v12 }
  0xc9   :  { %943 = vmatpush.msra.mxu3 %v4733_v13 }
  0xca   :  { %3956 = vmatmul.msk.f32.vlgmr.msrb.gmra.mxu1 %vm238_vm2, %v4681_v4  ;;  %3958 = vmatmul.msk.f32.vlgmr.msrb.gmra.mxu2 %vm238_vm2, %v4545_v27  ;;  %v4969_v4 = vld [vmem:[#allocation8 + $0xa0] sm:$0xff] }
  0xcb   :  { %3976 = vmatmul.msk.f32.vlgmr.msrb.gmra.mxu3 %vm238_vm2, %v4545_v27  ;;  %4010 = vmatmul.msk.f32.gmra.mxu0 %vm238_vm2, %v4706_v8  ;;  %7960 = vst [vmem:[#allocation31_spill] sm:$0xff] %v4969_v4 }
  0xcc   :  { %981 = vmatpush.msrb.mxu1 %v4735_v14  ;;  %924 = vmatpush.msra.mxu2 %v4749_v16 }
  0xcd   :  { %944 = vmatpush.msra.mxu3 %v4751_v17 }
  0xce   :  { %982 = vmatpush.msrb.mxu1 %v4753_v18  ;;  %925 = vmatpush.msra.mxu2 %v4767_v20 }
  0xcf   :  { %945 = vmatpush.msra.mxu3 %v4769_v21 }
  0xd0   :  { %983 = vmatpush.msrb.mxu1 %v4771_v22  ;;  %926 = vmatpush.msra.mxu2 %v4785_v24 }
  0xd1   :  { %946 = vmatpush.msra.mxu3 %v4787_v25 }
  0xd2   :  { %3959 = vmatmul.msk.f32.gmra.mxu2 %vm238_vm2, %v4552_v28  ;;  %4012 = vmatmul.msk.f32.vlgmr.msra.gmra.mxu1 %vm238_vm2, %v4545_v27  ;;  %v4794_v27 = vld [vmem:[#allocation8 + $0x328] sm:$0xff] }
  0xd3   :  { %3977 = vmatmul.msk.f32.gmra.mxu3 %vm238_vm2, %v4552_v28  ;;  %984 = vmatpush.msrb.mxu1 %v4789_v26 }
  0xd4   :  { %965 = vmatpush.msra.mxu0 %v4794_v27 }
  0xd6   :  { %966 = vmatpush.msra.mxu0 %v4812_v34 }
  0xd8   :  { %967 = vmatpush.msra.mxu0 %v4830_v37 }
  0xda   :  { %3960 = vmatmul.msk.f32.gmra.mxu2 %vm238_vm2, %v4559_v29  ;;  %4013 = vmatmul.msk.f32.gmra.mxu1 %vm238_vm2, %v4552_v28  ;;  %v4803_v28 = vld [vmem:[#allocation8 + $0x288] sm:$0xff] }
  0xdb   :  { %3978 = vmatmul.msk.f32.gmra.mxu3 %vm238_vm2, %v4559_v29  ;;  %927 = vmatpush.msra.mxu2 %v4803_v28 }
  0xe2   :  { %3961 = vmatmul.msk.f32.gmra.mxu2 %vm238_vm2, %v4566_v30  ;;  %4014 = vmatmul.msk.f32.gmra.mxu1 %vm238_vm2, %v4559_v29  ;;  %v4805_v29 = vld [vmem:[#allocation8 + $0x290] sm:$0xff] }
  0xe3   :  { %3979 = vmatmul.msk.f32.gmra.mxu3 %vm238_vm2, %v4566_v30 }
  0xe4   :  { %947 = vmatpush.msra.mxu3 %v4805_v29 }
  0xe6   :  { %948 = vmatpush.msra.mxu3 %v4823_v35 }
  0xe8   :  { %949 = vmatpush.msra.mxu3 %v4841_v39 }
  0xea   :  { %3962 = vmatmul.msk.f32.gmra.mxu2 %vm238_vm2, %v4573_v31  ;;  %4015 = vmatmul.msk.f32.gmra.mxu1 %vm238_vm2, %v4566_v30  ;;  %v4807_v30 = vld [vmem:[#allocation8 + $0x330] sm:$0xff] }
  0xeb   :  { %3980 = vmatmul.msk.f32.gmra.mxu3 %vm238_vm2, %v4573_v31  ;;  %985 = vmatpush.msrb.mxu1 %v4807_v30 }
  0xec   :  { %950 = vmatpush.msra.mxu3 %v4859_v42 }
  0xed   :  { %986 = vmatpush.msrb.mxu1 %v4825_v36 }
  0xee   :  { %951 = vmatpush.msra.mxu3 %v4877_v46 }
  0xef   :  { %987 = vmatpush.msrb.mxu1 %v4843_v40 }
  0xf0   :  { %952 = vmatpush.msra.mxu3 %v4895_v50 }
  0xf1   :  { %988 = vmatpush.msrb.mxu1 %v4861_v44 }
  0xf2   :  { %3963 = vmatmul.msk.f32.gmra.mxu2 %vm238_vm2, %v4580_v32  ;;  %4016 = vmatmul.msk.f32.gmra.mxu1 %vm238_vm2, %v4573_v31  ;;  %v4821_v31 = vld [vmem:[#allocation8 + $0x240] sm:$0xff] }
  0xf3   :  { %3981 = vmatmul.msk.f32.gmra.mxu3 %vm238_vm2, %v4580_v32  ;;  %928 = vmatpush.msra.mxu2 %v4821_v31 }
  0xf4   :  { %989 = vmatpush.msrb.mxu1 %v4879_v47  ;;  %953 = vmatpush.msra.mxu3 %v4913_v54  ;;  %v4975_v54 = vld [vmem:[#allocation8 + $0xa8] sm:$0xff] }
  0xf5   :  { %7962 = vst [vmem:[#allocation33_spill] sm:$0xff] %v4975_v54 }
  0xf6   :  { %990 = vmatpush.msrb.mxu1 %v4897_v51 }
  0xf8   :  { %991 = vmatpush.msrb.mxu1 %v4915_v55 }
  0xfa   :  { %3964 = vmatmul.msk.f32.gmra.mxu2 %vm238_vm2, %v4587_v33  ;;  %4017 = vmatmul.msk.f32.gmra.mxu1 %vm238_vm2, %v4580_v32  ;;  %v4839_v32 = vld [vmem:[#allocation8 + $0x1f8] sm:$0xff] }
  0xfb   :  { %3982 = vmatmul.msk.f32.gmra.mxu3 %vm238_vm2, %v4587_v33  ;;  %929 = vmatpush.msra.mxu2 %v4839_v32 }
  0xfc   :  { %992 = vmatpush.msrb.mxu1 %v4945_v59 }
  0xfd   :  { %930 = vmatpush.msra.mxu2 %v4857_v41 }
  0xfe   :  { %993 = vmatpush.msrb.mxu1 %v4956_v61  ;;  %v4985_v61 = vld [vmem:[#allocation8 + $0x58] sm:$0xff] }
  0xff   :  { %931 = vmatpush.msra.mxu2 %v4875_v45  ;;  %7966 = vst [vmem:[#allocation37_spill] sm:$0xff] %v4985_v61 }
 0x100   :  { %994 = vmatpush.msrb.mxu1 %v4975_v54  ;;  %v4997_v54 = vld [vmem:[#allocation8 + $0x10] sm:$0xff] }
 0x101   :  { %932 = vmatpush.msra.mxu2 %v4893_v49  ;;  %7970 = vst [vmem:[#allocation41_spill] sm:$0xff] %v4997_v54 }
 0x102   :  { %3965 = vmatmul.msk.f32.gmra.mxu2 %vm238_vm2, %v4594_v38  ;;  %4018 = vmatmul.msk.f32.gmra.mxu1 %vm238_vm2, %v4587_v33  ;;  %v4854_v33 = vld [vmem:[#allocation8 + $0x250] sm:$0xff] }
 0x103   :  { %3983 = vmatmul.msk.f32.gmra.mxu3 %vm238_vm2, %v4594_v38  ;;  %968 = vmatpush.msra.mxu0 %v4854_v33 }
 0x104   :  { %933 = vmatpush.msra.mxu2 %v4911_v52 }
 0x106   :  { %934 = vmatpush.msra.mxu2 %v4964_v3 }
 0x10a   :  { %3966 = vmatmul.msk.f32.gmra.mxu2 %vm238_vm2, %v4601_v43  ;;  %4019 = vmatmul.msk.f32.gmra.mxu1 %vm238_vm2, %v4594_v38  ;;  %v4872_v38 = vld [vmem:[#allocation8 + $0x208] sm:$0xff] }
 0x10b   :  { %3984 = vmatmul.msk.f32.gmra.mxu3 %vm238_vm2, %v4601_v43  ;;  %969 = vmatpush.msra.mxu0 %v4872_v38 }
 0x112   :  { %3967 = vmatmul.msk.f32.gmra.mxu2 %vm238_vm2, %v4610_v48  ;;  %4020 = vmatmul.msk.f32.gmra.mxu1 %vm238_vm2, %v4601_v43  ;;  %v4890_v43 = vld [vmem:[#allocation8 + $0x1c0] sm:$0xff] }
 0x113   :  { %3985 = vmatmul.msk.f32.gmra.mxu3 %vm238_vm2, %v4610_v48  ;;  %970 = vmatpush.msra.mxu0 %v4890_v43 }
 0x11a   :  { %3968 = vmatmul.msk.f32.gmra.mxu2 %vm238_vm2, %v4617_v53  ;;  %4021 = vmatmul.msk.f32.gmra.mxu1 %vm238_vm2, %v4610_v48  ;;  %v4906_v48 = vld [vmem:[#allocation8 + $0x178] sm:$0xff] }
 0x11b   :  { %3986 = vmatmul.msk.f32.gmra.mxu3 %vm238_vm2, %v4617_v53  ;;  %7948 = vst [vmem:[#allocation19_spill] sm:$0xff] %v4906_v48  ;;  %971 = vmatpush.msra.mxu0 %v4906_v48 }
 0x11d   :  { %972 = vmatpush.msra.mxu0 %v4924_v57  ;;  %v4993_v57 = vld [vmem:[#allocation8 + $0x8] sm:$0xff] }
 0x11e   :  { %7969 = vst [vmem:[#allocation40_spill] sm:$0xff] %v4993_v57 }
 0x122   :  { %3969 = vmatmul.msk.f32.gmra.mxu2 %vm238_vm2, %v4632_v56  ;;  %4022 = vmatmul.msk.f32.gmra.mxu1 %vm238_vm2, %v4617_v53  ;;  %v155_v53 = vpop.f32.mrf.mxu1 }
 0x123   :  { %3987 = vmatmul.msk.f32.gmra.mxu3 %vm238_vm2, %v4632_v56 }
 0x12a   :  { %3970 = vmatmul.msk.f32.gmra.mxu2 %vm238_vm2, %v4653_v60  ;;  %4023 = vmatmul.msk.f32.gmra.mxu1 %vm238_vm2, %v4632_v56  ;;  %v4935_v56 = vpop.f32.mrf.mxu1 }
 0x12b   :  { %3988 = vmatmul.msk.f32.gmra.mxu3 %vm238_vm2, %v4653_v60 }
 0x132   :  { %3971 = vmatmul.msk.f32.gmra.mxu2 %vm238_vm2, %v4665_v63  ;;  %4024 = vmatmul.msk.f32.gmra.mxu1 %vm238_vm2, %v4653_v60  ;;  %v4954_v60 = vld [vmem:[#allocation8 + $0xe8] sm:$0xff] }
 0x133   :  { %3989 = vmatmul.msk.f32.gmra.mxu3 %vm238_vm2, %v4665_v63  ;;  %7955 = vst [vmem:[#allocation26_spill] sm:$0xff] %v4954_v60  ;;  %973 = vmatpush.msra.mxu0 %v4954_v60  ;;  %v4979_v60 = vld [vmem:[#allocation8 + $0x48] sm:$0xff] }
 0x134   :  { %7964 = vst [vmem:[#allocation35_spill] sm:$0xff] %v4979_v60  ;;  %935 = vmatpush.msra.mxu2 %v4979_v60 }
 0x135   :  { %974 = vmatpush.msra.mxu0 %v4969_v4 }
 0x137   :  { %975 = vmatpush.msra.mxu0 %v4985_v61 }
 0x139   :  { %976 = vmatpush.msra.mxu0 %v4997_v54 }
 0x13a   :  { %3972 = vmatmul.msk.f32.gmra.mxu2 %vm238_vm2, %v4674_v1  ;;  %4025 = vmatmul.msk.f32.gmra.mxu1 %vm238_vm2, %v4665_v63  ;;  %v104_v63 = vld [vmem:[%s7602_s5] sm:$0xf]  ;;  %s6712_s5 = sld [smem:[#allocation4]] }
 0x13b   :  { %3990 = vmatmul.msk.f32.gmra.mxu3 %vm238_vm2, %v4674_v1  ;;  %v106_v59 = vperm.slane %v104_v63, 0  ;;  %v107_v3 = vperm.slane %v104_v63, 1  ;;  %v108_v61 = vperm.slane %v104_v63, 2  ;;  %1072 = vmatpush.msrb.mxu0 %v4720_v11 }
 0x13d   :  { %v5009_v60 = vadd.f32 %v4660_v62, %v106_v59  ;;  %v5013_v4 = vadd.f32 %v155_v53, %v107_v3  ;;  %v5024_v53 = vadd.f32 %v4669_v0, %v108_v61  ;;  %1073 = vmatpush.msrb.mxu0 %v4740_v15 }
 0x13f   :  { %v4943_v58 = vpop.f32.mrf.mxu1  ;;  %7972 = vst [vmem:[#allocation43_spill] sm:$0xff] %v5009_v60  ;;  %1074 = vmatpush.msrb.mxu0 %v4758_v19 }
 0x140   :  { %7953 = vst [vmem:[#allocation24_spill] sm:$0xff] %v4943_v58  ;;  %s2325_s19 = scvt.s32.f32 %s6712_s5 }
 0x141   :  { %7973 = vst [vmem:[#allocation44_spill] sm:$0xff] %v5013_v4  ;;  %1075 = vmatpush.msrb.mxu0 %v4776_v23 }
 0x142   :  { %3973 = vmatmul.msk.f32.gmra.mxu2 %vm238_vm2, %v4686_v5  ;;  %4026 = vmatmul.msk.f32.gmra.mxu1 %vm238_vm2, %v4674_v1  ;;  %v4966_v1 = vld [vmem:[#allocation8 + $0x98] sm:$0xff]  ;;  %7974 = vst [vmem:[#allocation45_spill] sm:$0xff] %v5024_v53  ;;  %s2348_s0 = ssub.f32 1.0, %s2325_s19 }
 0x143   :  { %3991 = vmatmul.msk.f32.gmra.mxu3 %vm238_vm2, %v4686_v5  ;;  %7959 = vst [vmem:[#allocation30_spill] sm:$0xff] %v4966_v1  ;;  %1076 = vmatpush.msrb.mxu0 %v4794_v27 }
 0x144   :  { %954 = vmatpush.msra.mxu3 %v4966_v1  ;;  %v4989_v1 = vld [vmem:[#allocation8 + $0x60] sm:$0xff] }
 0x145   :  { %v4962_v2 = vpop.f32.mrf.mxu2  ;;  %7967 = vst [vmem:[#allocation38_spill] sm:$0xff] %v4989_v1  ;;  %995 = vmatpush.msrb.mxu1 %v4989_v1  ;;  %v109_v1 = vperm.slane %v104_v63, 3  ;;  %1077 = vmatpush.msrb.mxu0 %v4812_v34 }
 0x146   :  { %7957 = vst [vmem:[#allocation28_spill] sm:$0xff] %v4962_v2  ;;  %v4971_v58 = vpop.f32.mrf.mxu3  ;;  %v4981_v2 = vld [vmem:[#allocation8 + $0x50] sm:$0xff] }
 0x147   :  { %7961 = vst [vmem:[#allocation32_spill] sm:$0xff] %v4971_v58  ;;  %v4977_v52 = vpop.f32.mrf.mxu1  ;;  %v560_v58 = vpop.f32.mrf.mxu0  ;;  %955 = vmatpush.msra.mxu3 %v4981_v2  ;;  %v5027_v63 = vadd.f32 %v4935_v56, %v109_v1  ;;  %1078 = vmatpush.msrb.mxu0 %v4830_v37 }
 0x148   :  { %7963 = vst [vmem:[#allocation34_spill] sm:$0xff] %v4977_v52  ;;  %v4991_v52 = vld [vmem:[#allocation8] sm:$0xff] }
 0x149   :  { %7965 = vst [vmem:[#allocation36_spill] sm:$0xff] %v4981_v2  ;;  %v5003_v2 = vld [vmem:[#allocation8 + $0x18] sm:$0xff]  ;;  %936 = vmatpush.msra.mxu2 %v4991_v52  ;;  %956 = vmatpush.msra.mxu3 %v4993_v57 }
 0x14a   :  { %7968 = vst [vmem:[#allocation39_spill] sm:$0xff] %v4991_v52  ;;  %3974 = vmatmul.msk.f32.gmra.mxu2 %vm238_vm2, %v4706_v8  ;;  %4027 = vmatmul.msk.f32.gmra.mxu1 %vm238_vm2, %v4686_v5 }
 0x14b   :  { %7971 = vst [vmem:[#allocation42_spill] sm:$0xff] %v5003_v2  ;;  %3992 = vmatmul.msk.f32.gmra.mxu3 %vm238_vm2, %v4706_v8  ;;  %996 = vmatpush.msrb.mxu1 %v5003_v2 }
 0x14c   :  { %1032 = vmatpush.msrb.mxu2 %v4696_v6  ;;  %1052 = vmatpush.msrb.mxu3 %v4698_v7  ;;  %7975 = vst [vmem:[#allocation46_spill] sm:$0xff] %v5027_v63 }
 0x14d   :  { %v424_v50 = vpop.f32.mrf.mxu2  ;;  %1092 = vmatpush.msra.mxu1 %v4735_v14  ;;  %1079 = vmatpush.msrb.mxu0 %v4854_v33 }
 0x14e   :  { %v751_v5 = vadd.f32 %v424_v50, %v5009_v60  ;;  %v492_v49 = vpop.f32.mrf.mxu3  ;;  %1033 = vmatpush.msrb.mxu2 %v4716_v9  ;;  %1053 = vmatpush.msrb.mxu3 %v4718_v10  ;;  %v7998_v60 = vld [vmem:[#allocation30_spill] sm:$0xff] }
 0x14f   :  { %v752_v62 = vadd.f32 %v492_v49, %v5013_v4  ;;  %v628_v59 = vpop.f32.mrf.mxu1  ;;  %1093 = vmatpush.msra.mxu1 %v4753_v18  ;;  %v753_v49 = vadd.f32 %v560_v58, %v5024_v53  ;;  %v5034_v4 = vpop.f32.mrf.mxu0  ;;  %1080 = vmatpush.msrb.mxu0 %v4872_v38  ;;  %v7995_v53 = vld [vmem:[#allocation26_spill] sm:$0xff] }
 0x150   :  { %v759_v3 = vmul.f32 0.5, %v751_v5  ;;  %1034 = vmatpush.msrb.mxu2 %v4731_v12  ;;  %7976 = vst [vmem:[#allocation47_spill] sm:$0xff] %v5034_v4  ;;  %v754_v0 = vadd.f32 %v628_v59, %v5027_v63  ;;  %1054 = vmatpush.msrb.mxu3 %v4733_v13 }
 0x151   :  { %v763_v50 = vmul.f32 0.5, %v752_v62  ;;  %1094 = vmatpush.msra.mxu1 %v4771_v22  ;;  %1081 = vmatpush.msrb.mxu0 %v4890_v43 }
 0x152   :  { %4042 = vtanh.f32 %v759_v3  ;;  %4028 = vmatmul.msk.f32.gmra.mxu1 %vm238_vm2, %v4706_v8  ;;  %1035 = vmatpush.msrb.mxu2 %v4749_v16  ;;  %v768_v58 = vmul.f32 0.5, %v754_v0 }
 0x153   :  { %4044 = vtanh.f32 %v763_v50  ;;  %1055 = vmatpush.msrb.mxu3 %v4751_v17  ;;  %1095 = vmatpush.msra.mxu1 %v4789_v26 }
 0x154   :  { %4046 = vtanh.f32 %v753_v49  ;;  %1036 = vmatpush.msrb.mxu2 %v4767_v20  ;;  %1082 = vmatpush.msrb.mxu0 %v4906_v48 }
 0x155   :  { %v5044_v56 = vpop.f32.mrf.mxu2  ;;  %1056 = vmatpush.msrb.mxu3 %v4769_v21  ;;  %1096 = vmatpush.msra.mxu1 %v4807_v30  ;;  %4048 = vtanh.f32 %v768_v58 }
 0x156   :  { %7977 = vst [vmem:[#allocation48_spill] sm:$0xff] %v5044_v56  ;;  %v5048_v8 = vpop.f32.mrf.mxu3  ;;  %1037 = vmatpush.msrb.mxu2 %v4785_v24  ;;  %v7997_v56 = vld [vmem:[#allocation29_spill] sm:$0xff] }
 0x157   :  { %7978 = vst [vmem:[#allocation49_spill] sm:$0xff] %v5048_v8  ;;  %v5052_v61 = vpop.f32.mrf.mxu1  ;;  %1057 = vmatpush.msrb.mxu3 %v4787_v25  ;;  %1097 = vmatpush.msra.mxu1 %v4825_v36  ;;  %v5064_v49 = vpop.f32.mrf.mxu0  ;;  %v7996_v8 = vld [vmem:[#allocation27_spill] sm:$0xff] }
 0x158   :  { %7979 = vst [vmem:[#allocation50_spill] sm:$0xff] %v5052_v61  ;;  %v4043_v1 = vpop.eup %4042  ;;  %1038 = vmatpush.msrb.mxu2 %v4803_v28  ;;  %v7992_v61 = vld [vmem:[#allocation20_spill] sm:$0xff] }
 0x159   :  { %v4045_v5 = vpop.eup %4044  ;;  %v761_v62 = vmul.f32 0.5, %v4043_v1  ;;  %1058 = vmatpush.msrb.mxu3 %v4805_v29  ;;  %1098 = vmatpush.msra.mxu1 %v4843_v40  ;;  %7980 = vst [vmem:[#allocation51_spill] sm:$0xff] %v5064_v49 }
 0x15a   :  { %v765_v59 = vmul.f32 0.5, %v4045_v5  ;;  %v4047_v50 = vpop.eup %4046  ;;  %1039 = vmatpush.msrb.mxu2 %v4821_v31 }
 0x15b   :  { %v762_v3 = vadd.f32 0.5, %v761_v62  ;;  %1059 = vmatpush.msrb.mxu3 %v4823_v35  ;;  %1099 = vmatpush.msra.mxu1 %v4861_v44 }
 0x15c   :  { %v766_v0 = vadd.f32 0.5, %v765_v59  ;;  %1040 = vmatpush.msrb.mxu2 %v4839_v32  ;;  %v4049_v59 = vpop.eup %4048 }
 0x15d   :  { %v773_v1 = vmul.f32 %v4047_v50, %v762_v3  ;;  %v5068_v5 = vpop.f32.mrf.mxu2  ;;  %1060 = vmatpush.msrb.mxu3 %v4841_v39  ;;  %1100 = vmatpush.msra.mxu1 %v4879_v47  ;;  %v770_v50 = vmul.f32 0.5, %v4049_v59  ;;  %v7993_v59 = vld [vmem:[#allocation21_spill] sm:$0xff] }
 0x15e   :  { %7981 = vst [vmem:[#allocation52_spill] sm:$0xff] %v5068_v5  ;;  %v772_v58 = vmul.f32 0.0, %v766_v0  ;;  %v5072_v62 = vpop.f32.mrf.mxu3  ;;  %1041 = vmatpush.msrb.mxu2 %v4857_v41  ;;  %v7985_v0 = vld [vmem:[#allocation17_spill] sm:$0xff] }
 0x15f   :  { %7982 = vst [vmem:[#allocation53_spill] sm:$0xff] %v5072_v62  ;;  %v5076_v49 = vpop.f32.mrf.mxu1  ;;  %1061 = vmatpush.msrb.mxu3 %v4859_v42  ;;  %1101 = vmatpush.msra.mxu1 %v4897_v51  ;;  %v7989_v62 = vld [vmem:[#allocation25_spill] sm:$0xff]  ;;  %v5097_v5 = vpop.f32.mrf.mxu0  ;;  %v771_v63 = vadd.f32 0.5, %v770_v50 }
 0x160   :  { %7983 = vst [vmem:[#allocation54_spill] sm:$0xff] %v5076_v49  ;;  %v5080_v3 = vadd.f32 %v773_v1, %v772_v58  ;;  %1042 = vmatpush.msrb.mxu2 %v4875_v45  ;;  %v7986_v1 = vld [vmem:[#allocation18_spill] sm:$0xff]  ;;  %v7988_v49 = vld [vmem:[#allocation23_spill] sm:$0xff]  ;;  %v8003_v50 = vld [vmem:[#allocation37_spill] sm:$0xff] }
 0x161   :  { %1062 = vmatpush.msrb.mxu3 %v4877_v46  ;;  %1102 = vmatpush.msra.mxu1 %v4915_v55  ;;  %7990 = vst [vmem:[#allocation57_spill] sm:$0xff] %v5097_v5  ;;  %v7999_v5 = vld [vmem:[#allocation31_spill] sm:$0xff] }
 0x162   :  { %7984 = vst [vmem:[#allocation55_spill] sm:$0xff] %v5080_v3  ;;  %4050 = vtanh.f32 %v5080_v3  ;;  %1043 = vmatpush.msrb.mxu2 %v7985_v0  ;;  %1083 = vmatpush.msrb.mxu0 %v7988_v49 }
 0x163   :  { %1063 = vmatpush.msrb.mxu3 %v7986_v1  ;;  %1103 = vmatpush.msra.mxu1 %v7989_v62 }
 0x164   :  { %1044 = vmatpush.msrb.mxu2 %v7992_v61  ;;  %1084 = vmatpush.msrb.mxu0 %v7995_v53  ;;  %v8001_v61 = vld [vmem:[#allocation35_spill] sm:$0xff] }
 0x165   :  { %v5093_v58 = vpop.f32.mrf.mxu2  ;;  %1064 = vmatpush.msrb.mxu3 %v7993_v59  ;;  %1104 = vmatpush.msra.mxu1 %v7996_v8  ;;  %v8002_v59 = vld [vmem:[#allocation36_spill] sm:$0xff] }
 0x166   :  { %7987 = vst [vmem:[#allocation56_spill] sm:$0xff] %v5093_v58  ;;  %v5099_v3 = vpop.f32.mrf.mxu3  ;;  %1045 = vmatpush.msrb.mxu2 %v7997_v56  ;;  %1085 = vmatpush.msrb.mxu0 %v7999_v5 }
 0x167   :  { %7991 = vst [vmem:[#allocation58_spill] sm:$0xff] %v5099_v3  ;;  %v5103_v4 = vpop.f32.mrf.mxu1  ;;  %1065 = vmatpush.msrb.mxu3 %v7998_v60  ;;  %v8000_v3 = vld [vmem:[#allocation33_spill] sm:$0xff] }
 0x168   :  { %7994 = vst [vmem:[#allocation59_spill] sm:$0xff] %v5103_v4  ;;  %v4051_v58 = vpop.eup %4050  ;;  %1105 = vmatpush.msra.mxu1 %v8000_v3  ;;  %1046 = vmatpush.msrb.mxu2 %v8001_v61  ;;  %v8004_v4 = vld [vmem:[#allocation38_spill] sm:$0xff] }
 0x169   :  { %v776_v62 = vmul.f32 %v4051_v58, %v771_v63  ;;  %1066 = vmatpush.msrb.mxu3 %v8002_v59  ;;  %1086 = vmatpush.msrb.mxu0 %v8003_v50  ;;  %v5123_v63 = vpop.f32.mrf.mxu0 }
 0x16a   :  { %1106 = vmatpush.msra.mxu1 %v8004_v4  ;;  %1047 = vmatpush.msrb.mxu2 %v4991_v52  ;;  %8007 = vst [vmem:[#allocation62_spill] sm:$0xff] %v5123_v63 }
 0x16b   :  { %937 = vmatmul.f32.vlgmr.msra.gmra.mxu2 %v776_v62  ;;  %957 = vmatmul.f32.vlgmr.msra.gmra.mxu3 %v776_v62 }
 0x16c   :  { %977 = vmatmul.f32.vlgmr.msra.gmra.mxu0 %v776_v62  ;;  %997 = vmatmul.f32.vlgmr.msrb.gmra.mxu1 %v776_v62 }
 0x16d   :  { %v5115_v56 = vpop.f32.mrf.mxu2  ;;  %1067 = vmatpush.msrb.mxu3 %v4993_v57  ;;  %1087 = vmatpush.msrb.mxu0 %v4997_v54 }
 0x16e   :  { %8005 = vst [vmem:[#allocation60_spill] sm:$0xff] %v5115_v56  ;;  %v5117_v60 = vpop.f32.mrf.mxu3  ;;  %1107 = vmatpush.msra.mxu1 %v5003_v2  ;;  %1143 = vmatpush.msra.mxu2 %v4696_v6  ;;  %v8021_v56 = vld [vmem:[#allocation30_spill] sm:$0xff] }
 0x16f   :  { %8006 = vst [vmem:[#allocation61_spill] sm:$0xff] %v5117_v60  ;;  %v5125_v58 = vpop.f32.mrf.mxu1  ;;  %1163 = vmatpush.msra.mxu3 %v4698_v7  ;;  %1183 = vmatpush.msra.mxu0 %v4720_v11 }
 0x170   :  { %8008 = vst [vmem:[#allocation63_spill] sm:$0xff] %v5125_v58  ;;  %1203 = vmatpush.msrb.mxu1 %v4735_v14  ;;  %1144 = vmatpush.msra.mxu2 %v4716_v9 }
 0x171   :  { %1164 = vmatpush.msra.mxu3 %v4718_v10  ;;  %1184 = vmatpush.msra.mxu0 %v4740_v15  ;;  %v5151_v63 = vpop.f32.mrf.mxu0 }
 0x172   :  { %1204 = vmatpush.msrb.mxu1 %v4753_v18  ;;  %1145 = vmatpush.msra.mxu2 %v4731_v12  ;;  %8011 = vst [vmem:[#allocation66_spill] sm:$0xff] %v5151_v63 }
 0x173   :  { %1165 = vmatpush.msra.mxu3 %v4733_v13  ;;  %1185 = vmatpush.msra.mxu0 %v4758_v19 }
 0x174   :  { %1205 = vmatpush.msrb.mxu1 %v4771_v22  ;;  %1146 = vmatpush.msra.mxu2 %v4749_v16 }
 0x175   :  { %1166 = vmatpush.msra.mxu3 %v4751_v17  ;;  %1186 = vmatpush.msra.mxu0 %v4776_v23  ;;  %v5143_v62 = vpop.f32.mrf.mxu2 }
 0x176   :  { %1206 = vmatpush.msrb.mxu1 %v4789_v26  ;;  %8009 = vst [vmem:[#allocation64_spill] sm:$0xff] %v5143_v62  ;;  %v5145_v58 = vpop.f32.mrf.mxu3  ;;  %1147 = vmatpush.msra.mxu2 %v4767_v20 }
 0x177   :  { %8010 = vst [vmem:[#allocation65_spill] sm:$0xff] %v5145_v58  ;;  %1167 = vmatpush.msra.mxu3 %v4769_v21  ;;  %1187 = vmatpush.msra.mxu0 %v4794_v27  ;;  %v5153_v60 = vpop.f32.mrf.mxu1 }
 0x178   :  { %1207 = vmatpush.msrb.mxu1 %v4807_v30  ;;  %8012 = vst [vmem:[#allocation67_spill] sm:$0xff] %v5153_v60  ;;  %1148 = vmatpush.msra.mxu2 %v4785_v24 }
 0x179   :  { %1168 = vmatpush.msra.mxu3 %v4787_v25  ;;  %1188 = vmatpush.msra.mxu0 %v4812_v34  ;;  %v5179_v58 = vpop.f32.mrf.mxu0 }
 0x17a   :  { %1208 = vmatpush.msrb.mxu1 %v4825_v36  ;;  %1149 = vmatpush.msra.mxu2 %v4803_v28  ;;  %8015 = vst [vmem:[#allocation70_spill] sm:$0xff] %v5179_v58  ;;  %v8019_v58 = vld [vmem:[#allocation21_spill] sm:$0xff] }
 0x17b   :  { %1169 = vmatpush.msra.mxu3 %v4805_v29  ;;  %1189 = vmatpush.msra.mxu0 %v4830_v37 }
 0x17c   :  { %1209 = vmatpush.msrb.mxu1 %v4843_v40  ;;  %1150 = vmatpush.msra.mxu2 %v4821_v31 }
 0x17d   :  { %1170 = vmatpush.msra.mxu3 %v4823_v35  ;;  %1190 = vmatpush.msra.mxu0 %v4854_v33  ;;  %v5171_v60 = vpop.f32.mrf.mxu2 }
 0x17e   :  { %1210 = vmatpush.msrb.mxu1 %v4861_v44  ;;  %1151 = vmatpush.msra.mxu2 %v4839_v32  ;;  %8013 = vst [vmem:[#allocation68_spill] sm:$0xff] %v5171_v60  ;;  %v5173_v63 = vpop.f32.mrf.mxu3  ;;  %v8018_v60 = vld [vmem:[#allocation20_spill] sm:$0xff] }
 0x17f   :  { %1171 = vmatpush.msra.mxu3 %v4841_v39  ;;  %1191 = vmatpush.msra.mxu0 %v4872_v38  ;;  %8014 = vst [vmem:[#allocation69_spill] sm:$0xff] %v5173_v63  ;;  %v5181_v62 = vpop.f32.mrf.mxu1  ;;  %v8017_v63 = vld [vmem:[#allocation25_spill] sm:$0xff] }
 0x180   :  { %1211 = vmatpush.msrb.mxu1 %v4879_v47  ;;  %1152 = vmatpush.msra.mxu2 %v4857_v41  ;;  %8016 = vst [vmem:[#allocation71_spill] sm:$0xff] %v5181_v62  ;;  %v8020_v62 = vld [vmem:[#allocation29_spill] sm:$0xff] }
 0x181   :  { %1172 = vmatpush.msra.mxu3 %v4859_v42  ;;  %1192 = vmatpush.msra.mxu0 %v4890_v43 }
 0x182   :  { %1212 = vmatpush.msrb.mxu1 %v4897_v51  ;;  %1153 = vmatpush.msra.mxu2 %v4875_v45 }
 0x183   :  { %1173 = vmatpush.msra.mxu3 %v4877_v46  ;;  %1193 = vmatpush.msra.mxu0 %v4906_v48 }
 0x184   :  { %1213 = vmatpush.msrb.mxu1 %v4915_v55  ;;  %1154 = vmatpush.msra.mxu2 %v7985_v0 }
 0x185   :  { %1174 = vmatpush.msra.mxu3 %v7986_v1  ;;  %1194 = vmatpush.msra.mxu0 %v7988_v49  ;;  %v5199_v1 = vpop.f32.mrf.mxu2 }
 0x186   :  { %1214 = vmatpush.msrb.mxu1 %v8017_v63  ;;  %1155 = vmatpush.msra.mxu2 %v8018_v60  ;;  %8022 = vst [vmem:[#allocation72_spill] sm:$0xff] %v5199_v1  ;;  %v5201_v49 = vpop.f32.mrf.mxu3  ;;  %v8069_v63 = vld [vmem:[#allocation50_spill] sm:$0xff] }
 0x187   :  { %1175 = vmatpush.msra.mxu3 %v8019_v58  ;;  %1195 = vmatpush.msra.mxu0 %v7995_v53  ;;  %8023 = vst [vmem:[#allocation73_spill] sm:$0xff] %v5201_v49  ;;  %v8066_v58 = vld [vmem:[#allocation45_spill] sm:$0xff] }
 0x188   :  { %1215 = vmatpush.msrb.mxu1 %v7996_v8  ;;  %1156 = vmatpush.msra.mxu2 %v8020_v62  ;;  %v5207_v8 = vpop.f32.mrf.mxu0  ;;  %v5209_v62 = vpop.f32.mrf.mxu1 }
 0x189   :  { %1176 = vmatpush.msra.mxu3 %v8021_v56  ;;  %1196 = vmatpush.msra.mxu0 %v7999_v5  ;;  %8024 = vst [vmem:[#allocation74_spill] sm:$0xff] %v5207_v8 }
 0x18a   :  { %1216 = vmatpush.msrb.mxu1 %v8000_v3  ;;  %1157 = vmatpush.msra.mxu2 %v8001_v61  ;;  %8025 = vst [vmem:[#allocation75_spill] sm:$0xff] %v5209_v62  ;;  %v8065_v3 = vld [vmem:[#allocation49_spill] sm:$0xff] }
 0x18b   :  { %1177 = vmatpush.msra.mxu3 %v8002_v59  ;;  %1197 = vmatpush.msra.mxu0 %v8003_v50 }
 0x18c   :  { %1217 = vmatpush.msrb.mxu1 %v8004_v4  ;;  %1158 = vmatpush.msra.mxu2 %v4991_v52 }
 0x18d   :  { %1178 = vmatpush.msra.mxu3 %v4993_v57  ;;  %1198 = vmatpush.msra.mxu0 %v4997_v54  ;;  %v5215_v49 = vpop.f32.mrf.mxu2 }
 0x18e   :  { %1218 = vmatpush.msrb.mxu1 %v5003_v2  ;;  %8026 = vst [vmem:[#allocation76_spill] sm:$0xff] %v5215_v49  ;;  %v5217_v1 = vpop.f32.mrf.mxu3 }
 0x18f   :  { %8027 = vst [vmem:[#allocation77_spill] sm:$0xff] %v5217_v1 }
 0x190   :  { %v5219_v59 = vpop.f32.mrf.mxu0  ;;  %v5221_v50 = vpop.f32.mrf.mxu1 }
 0x191   :  { %8028 = vst [vmem:[#allocation78_spill] sm:$0xff] %v5219_v59 }
 0x192   :  { %8029 = vst [vmem:[#allocation79_spill] sm:$0xff] %v5221_v50 }
 0x195   :  { %v5223_v4 = vpop.f32.mrf.mxu2 }
 0x196   :  { %8030 = vst [vmem:[#allocation80_spill] sm:$0xff] %v5223_v4  ;;  %v5225_v8 = vpop.f32.mrf.mxu3 }
 0x197   :  { %8031 = vst [vmem:[#allocation81_spill] sm:$0xff] %v5225_v8 }
 0x198   :  { %v5227_v62 = vpop.f32.mrf.mxu0  ;;  %v5229_v52 = vpop.f32.mrf.mxu1 }
 0x199   :  { %8032 = vst [vmem:[#allocation82_spill] sm:$0xff] %v5227_v62 }
 0x19a   :  { %8033 = vst [vmem:[#allocation83_spill] sm:$0xff] %v5229_v52 }
 0x19d   :  { %v5231_v57 = vpop.f32.mrf.mxu2 }
 0x19e   :  { %8034 = vst [vmem:[#allocation84_spill] sm:$0xff] %v5231_v57  ;;  %v5233_v54 = vpop.f32.mrf.mxu3 }
 0x19f   :  { %8035 = vst [vmem:[#allocation85_spill] sm:$0xff] %v5233_v54 }
 0x1a0   :  { %v5235_v2 = vpop.f32.mrf.mxu0  ;;  %v5237_v49 = vpop.f32.mrf.mxu1 }
 0x1a1   :  { %8036 = vst [vmem:[#allocation86_spill] sm:$0xff] %v5235_v2 }
 0x1a2   :  { %8037 = vst [vmem:[#allocation87_spill] sm:$0xff] %v5237_v49 }
 0x1a5   :  { %v5239_v1 = vpop.f32.mrf.mxu2 }
 0x1a6   :  { %8038 = vst [vmem:[#allocation88_spill] sm:$0xff] %v5239_v1  ;;  %v5241_v59 = vpop.f32.mrf.mxu3 }
 0x1a7   :  { %8039 = vst [vmem:[#allocation89_spill] sm:$0xff] %v5241_v59 }
 0x1a8   :  { %v5243_v50 = vpop.f32.mrf.mxu0  ;;  %v5245_v4 = vpop.f32.mrf.mxu1 }
 0x1a9   :  { %8040 = vst [vmem:[#allocation90_spill] sm:$0xff] %v5243_v50 }
 0x1aa   :  { %8041 = vst [vmem:[#allocation91_spill] sm:$0xff] %v5245_v4 }
 0x1ad   :  { %v5247_v8 = vpop.f32.mrf.mxu2 }
 0x1ae   :  { %8042 = vst [vmem:[#allocation92_spill] sm:$0xff] %v5247_v8  ;;  %v5249_v62 = vpop.f32.mrf.mxu3 }
 0x1af   :  { %8043 = vst [vmem:[#allocation93_spill] sm:$0xff] %v5249_v62 }
 0x1b0   :  { %v5251_v52 = vpop.f32.mrf.mxu0  ;;  %v5253_v57 = vpop.f32.mrf.mxu1 }
 0x1b1   :  { %8044 = vst [vmem:[#allocation94_spill] sm:$0xff] %v5251_v52 }
 0x1b2   :  { %8045 = vst [vmem:[#allocation95_spill] sm:$0xff] %v5253_v57 }
 0x1b5   :  { %v5255_v54 = vpop.f32.mrf.mxu2 }
 0x1b6   :  { %8046 = vst [vmem:[#allocation96_spill] sm:$0xff] %v5255_v54  ;;  %v5257_v2 = vpop.f32.mrf.mxu3 }
 0x1b7   :  { %8047 = vst [vmem:[#allocation97_spill] sm:$0xff] %v5257_v2 }
 0x1b8   :  { %v5259_v49 = vpop.f32.mrf.mxu0  ;;  %v5261_v1 = vpop.f32.mrf.mxu1 }
 0x1b9   :  { %8048 = vst [vmem:[#allocation98_spill] sm:$0xff] %v5259_v49 }
 0x1ba   :  { %8049 = vst [vmem:[#allocation99_spill] sm:$0xff] %v5261_v1 }
 0x1bd   :  { %v5263_v59 = vpop.f32.mrf.mxu2 }
 0x1be   :  { %8050 = vst [vmem:[#allocation100_spill] sm:$0xff] %v5263_v59  ;;  %v5265_v50 = vpop.f32.mrf.mxu3 }
 0x1bf   :  { %8051 = vst [vmem:[#allocation101_spill] sm:$0xff] %v5265_v50  ;;  %v8062_v50 = vld [vmem:[#allocation43_spill] sm:$0xff] }
 0x1c0   :  { %v5267_v4 = vpop.f32.mrf.mxu0  ;;  %v5269_v8 = vpop.f32.mrf.mxu1 }
 0x1c1   :  { %8052 = vst [vmem:[#allocation102_spill] sm:$0xff] %v5267_v4  ;;  %v8063_v4 = vld [vmem:[#allocation48_spill] sm:$0xff] }
 0x1c2   :  { %8053 = vst [vmem:[#allocation103_spill] sm:$0xff] %v5269_v8  ;;  %v1006_v61 = vadd.f32 %v8063_v4, %v8062_v50  ;;  %v8064_v8 = vld [vmem:[#allocation44_spill] sm:$0xff] }
 0x1c5   :  { %v5271_v62 = vpop.f32.mrf.mxu2 }
 0x1c6   :  { %8054 = vst [vmem:[#allocation104_spill] sm:$0xff] %v5271_v62  ;;  %v5273_v52 = vpop.f32.mrf.mxu3  ;;  %v1007_v62 = vadd.f32 %v8065_v3, %v8064_v8 }
 0x1c7   :  { %8055 = vst [vmem:[#allocation105_spill] sm:$0xff] %v5273_v52 }
 0x1c8   :  { %v5275_v57 = vpop.f32.mrf.mxu0  ;;  %v5277_v54 = vpop.f32.mrf.mxu1 }
 0x1c9   :  { %8056 = vst [vmem:[#allocation106_spill] sm:$0xff] %v5275_v57 }
 0x1ca   :  { %8057 = vst [vmem:[#allocation107_spill] sm:$0xff] %v5277_v54 }
 0x1cd   :  { %v5279_v2 = vpop.f32.mrf.mxu2 }
 0x1ce   :  { %8058 = vst [vmem:[#allocation108_spill] sm:$0xff] %v5279_v2  ;;  %v5281_v49 = vpop.f32.mrf.mxu3  ;;  %v8067_v2 = vld [vmem:[#allocation47_spill] sm:$0xff] }
 0x1cf   :  { %8059 = vst [vmem:[#allocation109_spill] sm:$0xff] %v5281_v49  ;;  %v1008_v60 = vadd.f32 %v8067_v2, %v8066_v58  ;;  %v8068_v49 = vld [vmem:[#allocation46_spill] sm:$0xff]  ;;  %v8070_v58 = vld [vmem:[#allocation55_spill] sm:$0xff] }
 0x1d0   :  { %v5283_v1 = vpop.f32.mrf.mxu0  ;;  %v5285_v59 = vpop.f32.mrf.mxu1 }
 0x1d1   :  { %8060 = vst [vmem:[#allocation110_spill] sm:$0xff] %v5283_v1  ;;  %v1009_v1 = vadd.f32 %v8069_v63, %v8068_v49 }
 0x1d2   :  { %8061 = vst [vmem:[#allocation111_spill] sm:$0xff] %v5285_v59 }
 0x1e9   :  { %v978_v53 = vpop.f32.mrf.mxu0  ;;  %v998_v54 = vpop.f32.mrf.mxu1 }
 0x1ea   :  { %v1012_v55 = vadd.f32 %v1008_v60, %v978_v53  ;;  %v1013_v48 = vadd.f32 %v1009_v1, %v998_v54  ;;  %v8099_v1 = vld [vmem:[#allocation51_spill] sm:$0xff] }
 0x1ec   :  { %v1023_v4 = vmul.f32 0.5, %v1013_v48 }
 0x1ee   :  { %v938_v5 = vpop.f32.mrf.mxu2  ;;  %v958_v52 = vpop.f32.mrf.mxu3 }
 0x1ef   :  { %v1010_v56 = vadd.f32 %v1006_v61, %v938_v5  ;;  %v1011_v57 = vadd.f32 %v1007_v62, %v958_v52 }
 0x1f1   :  { %v1014_v0 = vmul.f32 0.5, %v1010_v56  ;;  %v1018_v59 = vmul.f32 0.5, %v1011_v57 }
 0x1f3   :  { %4052 = vtanh.f32 %v1014_v0  ;;  %v8098_v0 = vld [vmem:[#allocation45_spill] sm:$0xff] }
 0x1f4   :  { %4054 = vtanh.f32 %v1018_v59  ;;  %v1119_v59 = vadd.f32 %v8099_v1, %v8098_v0  ;;  %v5384_v1 = vld [vmem:[#allocation8 + $0x450] sm:$0xff] }
 0x1f5   :  { %4056 = vtanh.f32 %v1012_v55 }
 0x1f6   :  { %4058 = vtanh.f32 %v1023_v4 }
 0x1f9   :  { %v4053_v3 = vpop.eup %4052 }
 0x1fa   :  { %v4055_v8 = vpop.eup %4054  ;;  %v1016_v61 = vmul.f32 0.5, %v4053_v3 }
 0x1fb   :  { %v1020_v52 = vmul.f32 0.5, %v4055_v8  ;;  %v4057_v62 = vpop.eup %4056 }
 0x1fc   :  { %v1017_v5 = vadd.f32 0.5, %v1016_v61  ;;  %v4059_v63 = vpop.eup %4058 }
 0x1fd   :  { %v1021_v50 = vadd.f32 0.5, %v1020_v52  ;;  %v1025_v54 = vmul.f32 0.5, %v4059_v63 }
 0x1fe   :  { %v1028_v2 = vmul.f32 %v4057_v62, %v1017_v5 }
 0x1ff   :  { %v1027_v46 = vmul.f32 %v1021_v50, %v8070_v58  ;;  %v1026_v57 = vadd.f32 0.5, %v1025_v54  ;;  %v8100_v50 = vld [vmem:[#allocation54_spill] sm:$0xff] }
 0x200   :  { %v1120_v58 = vadd.f32 %v8100_v50, %v8068_v49  ;;  %v5390_v50 = vld [vmem:[#allocation8 + $0x3f8] sm:$0xff] }
 0x201   :  { %v5296_v56 = vadd.f32 %v1028_v2, %v1027_v46 }
 0x203   :  { %4060 = vtanh.f32 %v5296_v56 }
 0x209   :  { %v4061_v55 = vpop.eup %4060 }
 0x20a   :  { %v1031_v48 = vmul.f32 %v4061_v55, %v1026_v57 }
 0x20c   :  { %1048 = vmatmul.f32.vlgmr.msrb.gmra.mxu2 %v1031_v48  ;;  %1068 = vmatmul.f32.vlgmr.msrb.gmra.mxu3 %v1031_v48 }
 0x20d   :  { %1088 = vmatmul.f32.vlgmr.msrb.gmra.mxu0 %v1031_v48  ;;  %1108 = vmatmul.f32.vlgmr.msra.gmra.mxu1 %v1031_v48 }
 0x20e   :  { %1254 = vmatpush.msrb.mxu2 %v4696_v6  ;;  %1274 = vmatpush.msrb.mxu3 %v4698_v7  ;;  %v8071_v6 = vld [vmem:[#allocation16_spill] sm:$0xff]  ;;  %v8072_v7 = vld [vmem:[#allocation19_spill] sm:$0xff] }
 0x20f   :  { %1294 = vmatpush.msrb.mxu0 %v4720_v11  ;;  %1314 = vmatpush.msra.mxu1 %v4735_v14  ;;  %v8075_v11 = vld [vmem:[#allocation18_spill] sm:$0xff]  ;;  %v8078_v14 = vld [vmem:[#allocation20_spill] sm:$0xff] }
 0x210   :  { %1255 = vmatpush.msrb.mxu2 %v4716_v9  ;;  %1275 = vmatpush.msrb.mxu3 %v4718_v10  ;;  %v8073_v9 = vld [vmem:[#allocation22_spill] sm:$0xff]  ;;  %v8074_v10 = vld [vmem:[#allocation17_spill] sm:$0xff] }
 0x211   :  { %1295 = vmatpush.msrb.mxu0 %v4740_v15  ;;  %1315 = vmatpush.msra.mxu1 %v4753_v18  ;;  %v8079_v15 = vld [vmem:[#allocation21_spill] sm:$0xff] }
 0x212   :  { %1256 = vmatpush.msrb.mxu2 %v4731_v12  ;;  %1276 = vmatpush.msrb.mxu3 %v4733_v13  ;;  %v8076_v12 = vld [vmem:[#allocation23_spill] sm:$0xff]  ;;  %v8077_v13 = vld [vmem:[#allocation25_spill] sm:$0xff] }
 0x213   :  { %1296 = vmatpush.msrb.mxu0 %v4758_v19  ;;  %1316 = vmatpush.msra.mxu1 %v4771_v22  ;;  %v8082_v18 = vld [vmem:[#allocation29_spill] sm:$0xff]  ;;  %v8083_v19 = vld [vmem:[#allocation30_spill] sm:$0xff]  ;;  %v8086_v22 = vld [vmem:[#allocation35_spill] sm:$0xff] }
 0x214   :  { %1257 = vmatpush.msrb.mxu2 %v4749_v16  ;;  %1277 = vmatpush.msrb.mxu3 %v4751_v17  ;;  %v8080_v16 = vld [vmem:[#allocation26_spill] sm:$0xff]  ;;  %v8081_v17 = vld [vmem:[#allocation27_spill] sm:$0xff] }
 0x215   :  { %1297 = vmatpush.msrb.mxu0 %v4776_v23  ;;  %1317 = vmatpush.msra.mxu1 %v4789_v26  ;;  %v8087_v23 = vld [vmem:[#allocation36_spill] sm:$0xff]  ;;  %v8090_v26 = vld [vmem:[#allocation39_spill] sm:$0xff] }
 0x216   :  { %1258 = vmatpush.msrb.mxu2 %v4767_v20  ;;  %1278 = vmatpush.msrb.mxu3 %v4769_v21  ;;  %v8084_v20 = vld [vmem:[#allocation31_spill] sm:$0xff]  ;;  %v8085_v21 = vld [vmem:[#allocation33_spill] sm:$0xff] }
 0x217   :  { %1298 = vmatpush.msrb.mxu0 %v4794_v27  ;;  %1318 = vmatpush.msra.mxu1 %v4807_v30  ;;  %v8091_v27 = vld [vmem:[#allocation40_spill] sm:$0xff]  ;;  %v8094_v30 = vld [vmem:[#allocation43_spill] sm:$0xff] }
 0x218   :  { %1259 = vmatpush.msrb.mxu2 %v4785_v24  ;;  %1279 = vmatpush.msrb.mxu3 %v4787_v25  ;;  %v8088_v24 = vld [vmem:[#allocation37_spill] sm:$0xff]  ;;  %v8089_v25 = vld [vmem:[#allocation38_spill] sm:$0xff] }
 0x219   :  { %1299 = vmatpush.msrb.mxu0 %v4812_v34  ;;  %1319 = vmatpush.msra.mxu1 %v4825_v36  ;;  %v8095_v34 = vld [vmem:[#allocation52_spill] sm:$0xff]  ;;  %v8097_v36 = vld [vmem:[#allocation53_spill] sm:$0xff] }
 0x21a   :  { %1260 = vmatpush.msrb.mxu2 %v4803_v28  ;;  %1280 = vmatpush.msrb.mxu3 %v4805_v29  ;;  %v8092_v28 = vld [vmem:[#allocation41_spill] sm:$0xff]  ;;  %v8093_v29 = vld [vmem:[#allocation42_spill] sm:$0xff] }
 0x21b   :  { %1300 = vmatpush.msrb.mxu0 %v4830_v37  ;;  %1320 = vmatpush.msra.mxu1 %v4843_v40 }
 0x21c   :  { %1261 = vmatpush.msrb.mxu2 %v4821_v31  ;;  %1281 = vmatpush.msrb.mxu3 %v4823_v35  ;;  %v1117_v31 = vadd.f32 %v8095_v34, %v8094_v30  ;;  %v8096_v35 = vld [vmem:[#allocation44_spill] sm:$0xff] }
 0x21d   :  { %1301 = vmatpush.msrb.mxu0 %v4854_v33  ;;  %1321 = vmatpush.msra.mxu1 %v4861_v44  ;;  %v1118_v37 = vadd.f32 %v8097_v36, %v8096_v35 }
 0x21e   :  { %1262 = vmatpush.msrb.mxu2 %v4839_v32  ;;  %1282 = vmatpush.msrb.mxu3 %v4841_v39 }
 0x21f   :  { %1302 = vmatpush.msrb.mxu0 %v4872_v38  ;;  %1322 = vmatpush.msra.mxu1 %v4879_v47 }
 0x220   :  { %1263 = vmatpush.msrb.mxu2 %v4857_v41  ;;  %1283 = vmatpush.msrb.mxu3 %v4859_v42 }
 0x221   :  { %1303 = vmatpush.msrb.mxu0 %v4890_v43  ;;  %1323 = vmatpush.msra.mxu1 %v4897_v51 }
 0x222   :  { %1264 = vmatpush.msrb.mxu2 %v4875_v45  ;;  %1284 = vmatpush.msrb.mxu3 %v8071_v6 }
 0x223   :  { %1304 = vmatpush.msrb.mxu0 %v8072_v7  ;;  %1324 = vmatpush.msra.mxu1 %v8073_v9 }
 0x224   :  { %1265 = vmatpush.msrb.mxu2 %v8074_v10  ;;  %1285 = vmatpush.msrb.mxu3 %v8075_v11 }
 0x225   :  { %1305 = vmatpush.msrb.mxu0 %v8076_v12  ;;  %1325 = vmatpush.msra.mxu1 %v8077_v13 }
 0x226   :  { %1266 = vmatpush.msrb.mxu2 %v8078_v14  ;;  %1286 = vmatpush.msrb.mxu3 %v8079_v15 }
 0x227   :  { %1306 = vmatpush.msrb.mxu0 %v8080_v16  ;;  %1326 = vmatpush.msra.mxu1 %v8081_v17 }
 0x228   :  { %1267 = vmatpush.msrb.mxu2 %v8082_v18  ;;  %1287 = vmatpush.msrb.mxu3 %v8083_v19 }
 0x229   :  { %1307 = vmatpush.msrb.mxu0 %v8084_v20  ;;  %1327 = vmatpush.msra.mxu1 %v8085_v21 }
 0x22a   :  { %1268 = vmatpush.msrb.mxu2 %v8086_v22  ;;  %1288 = vmatpush.msrb.mxu3 %v8087_v23 }
 0x22b   :  { %1308 = vmatpush.msrb.mxu0 %v8088_v24  ;;  %1328 = vmatpush.msra.mxu1 %v8089_v25 }
 0x22c   :  { %1269 = vmatpush.msrb.mxu2 %v8090_v26  ;;  %1289 = vmatpush.msrb.mxu3 %v8091_v27 }
 0x22d   :  { %1309 = vmatpush.msrb.mxu0 %v8092_v28  ;;  %1329 = vmatpush.msra.mxu1 %v8093_v29 }
 0x28a   :  { %v1089_v53 = vpop.f32.mrf.mxu0  ;;  %v1109_v8 = vpop.f32.mrf.mxu1 }
 0x28b   :  { %v1123_v61 = vadd.f32 %v1119_v59, %v1089_v53  ;;  %v1124_v52 = vadd.f32 %v1120_v58, %v1109_v8  ;;  %v5375_v53 = vld [vmem:[#allocation8 + $0x438] sm:$0xff]  ;;  %v5378_v8 = vld [vmem:[#allocation8 + $0x440] sm:$0xff]  ;;  %v5387_v59 = vld [vmem:[#allocation8 + $0x3f0] sm:$0xff] }
 0x28c   :  { %v5393_v58 = vld [vmem:[#allocation8 + $0x400] sm:$0xff] }
 0x28d   :  { %v1134_v5 = vmul.f32 0.5, %v1124_v52  ;;  %v5405_v52 = vld [vmem:[#allocation8 + $0x3b8] sm:$0xff] }
 0x28f   :  { %v1049_v32 = vpop.f32.mrf.mxu2  ;;  %v1069_v39 = vpop.f32.mrf.mxu3 }
 0x290   :  { %v1121_v46 = vadd.f32 %v1117_v31, %v1049_v32  ;;  %v1122_v60 = vadd.f32 %v1118_v37, %v1069_v39 }
 0x292   :  { %v1125_v4 = vmul.f32 0.5, %v1121_v46  ;;  %v1129_v3 = vmul.f32 0.5, %v1122_v60 }
 0x294   :  { %4062 = vtanh.f32 %v1125_v4  ;;  %v5396_v4 = vld [vmem:[#allocation8 + $0x408] sm:$0xff] }
 0x295   :  { %4064 = vtanh.f32 %v1129_v3  ;;  %v5399_v3 = vld [vmem:[#allocation8 + $0x3a8] sm:$0xff] }
 0x296   :  { %4066 = vtanh.f32 %v1123_v61  ;;  %v5402_v61 = vld [vmem:[#allocation8 + $0x3b0] sm:$0xff] }
 0x297   :  { %4068 = vtanh.f32 %v1134_v5  ;;  %v5408_v5 = vld [vmem:[#allocation8 + $0x3c0] sm:$0xff] }
 0x29a   :  { %v4063_v62 = vpop.eup %4062 }
 0x29b   :  { %v4065_v2 = vpop.eup %4064  ;;  %v1127_v63 = vmul.f32 0.5, %v4063_v62  ;;  %v5411_v62 = vld [vmem:[#allocation8 + $0x360] sm:$0xff] }
 0x29c   :  { %v1131_v54 = vmul.f32 0.5, %v4065_v2  ;;  %v4067_v55 = vpop.eup %4066  ;;  %v5414_v2 = vld [vmem:[#allocation8 + $0x368] sm:$0xff] }
 0x29d   :  { %v1128_v57 = vadd.f32 0.5, %v1127_v63  ;;  %v4069_v36 = vpop.eup %4068  ;;  %v5417_v63 = vld [vmem:[#allocation8 + $0x370] sm:$0xff] }
 0x29e   :  { %v1132_v48 = vadd.f32 0.5, %v1131_v54  ;;  %v1136_v32 = vmul.f32 0.5, %v4069_v36  ;;  %v5420_v54 = vld [vmem:[#allocation8 + $0x378] sm:$0xff] }
 0x29f   :  { %v1139_v34 = vmul.f32 %v4067_v55, %v1128_v57  ;;  %v5423_v57 = vld [vmem:[#allocation8 + $0x318] sm:$0xff]  ;;  %v5426_v55 = vld [vmem:[#allocation8 + $0x320] sm:$0xff] }
 0x2a0   :  { %v1138_v31 = vmul.f32 %v1132_v48, %v5296_v56  ;;  %v1137_v39 = vadd.f32 0.5, %v1136_v32  ;;  %v5381_v56 = vld [vmem:[#allocation8 + $0x448] sm:$0xff]  ;;  %v5438_v36 = vld [vmem:[#allocation8 + $0x2d8] sm:$0xff]  ;;  %v5441_v32 = vld [vmem:[#allocation8 + $0x2e0] sm:$0xff] }
 0x2a1   :  { %v5429_v48 = vld [vmem:[#allocation8 + $0x328] sm:$0xff]  ;;  %8102 = vst [vmem:[#allocation49_spill] sm:$0xff] %v5438_v36 }
 0x2a2   :  { %v5372_v37 = vadd.f32 %v1139_v34, %v1138_v31  ;;  %v5432_v34 = vld [vmem:[#allocation8 + $0x330] sm:$0xff]  ;;  %8103 = vst [vmem:[#allocation47_spill] sm:$0xff] %v5441_v32 }
 0x2a3   :  { %v5435_v31 = vld [vmem:[#allocation8 + $0x2d0] sm:$0xff] }
 0x2a4   :  { %4070 = vtanh.f32 %v5372_v37  ;;  %8101 = vst [vmem:[#allocation48_spill] sm:$0xff] %v5435_v31 }
 0x2aa   :  { %v4071_v46 = vpop.eup %4070 }
 0x2ab   :  { %v1142_v60 = vmul.f32 %v4071_v46, %v1137_v39  ;;  %v5444_v39 = vld [vmem:[#allocation8 + $0x2e8] sm:$0xff] }
 0x2ac   :  { %v5447_v46 = vld [vmem:[#allocation8 + $0x288] sm:$0xff] }
 0x2ad   :  { %1159 = vmatmul.f32.vlgmr.msra.gmra.mxu2 %v1142_v60  ;;  %1179 = vmatmul.f32.vlgmr.msra.gmra.mxu3 %v1142_v60  ;;  %8104 = vst [vmem:[#allocation50_spill] sm:$0xff] %v5447_v46 }
 0x2ae   :  { %1199 = vmatmul.f32.vlgmr.msra.gmra.mxu0 %v1142_v60  ;;  %1219 = vmatmul.f32.vlgmr.msrb.gmra.mxu1 %v1142_v60  ;;  %v5450_v60 = vld [vmem:[#allocation8 + $0x290] sm:$0xff] }
 0x2af   :  { %1365 = vmatpush.msra.mxu2 %v5375_v53  ;;  %1385 = vmatpush.msra.mxu3 %v5378_v8  ;;  %8105 = vst [vmem:[#allocation55_spill] sm:$0xff] %v5450_v60 }
 0x2b0   :  { %1405 = vmatpush.msra.mxu0 %v5381_v56  ;;  %1425 = vmatpush.msrb.mxu1 %v5384_v1 }
 0x2b1   :  { %1366 = vmatpush.msra.mxu2 %v5387_v59  ;;  %1386 = vmatpush.msra.mxu3 %v5390_v50 }
 0x2b2   :  { %1406 = vmatpush.msra.mxu0 %v5393_v58  ;;  %1426 = vmatpush.msrb.mxu1 %v5396_v4 }
 0x2b3   :  { %1367 = vmatpush.msra.mxu2 %v5399_v3  ;;  %1387 = vmatpush.msra.mxu3 %v5402_v61 }
 0x2b4   :  { %1407 = vmatpush.msra.mxu0 %v5405_v52  ;;  %1427 = vmatpush.msrb.mxu1 %v5408_v5 }
 0x2b5   :  { %1368 = vmatpush.msra.mxu2 %v5411_v62  ;;  %1388 = vmatpush.msra.mxu3 %v5414_v2 }
 0x2b6   :  { %1408 = vmatpush.msra.mxu0 %v5417_v63  ;;  %1428 = vmatpush.msrb.mxu1 %v5420_v54 }
 0x2b7   :  { %1369 = vmatpush.msra.mxu2 %v5423_v57  ;;  %1389 = vmatpush.msra.mxu3 %v5426_v55 }
 0x2b8   :  { %1409 = vmatpush.msra.mxu0 %v5429_v48  ;;  %1429 = vmatpush.msrb.mxu1 %v5432_v34 }
 0x2b9   :  { %1370 = vmatpush.msra.mxu2 %v5435_v31  ;;  %1390 = vmatpush.msra.mxu3 %v5438_v36  ;;  %v5453_v31 = vld [vmem:[#allocation8 + $0x298] sm:$0xff]  ;;  %v5457_v36 = vld [vmem:[#allocation8 + $0x240] sm:$0xff] }
 0x2ba   :  { %1410 = vmatpush.msra.mxu0 %v5441_v32  ;;  %1430 = vmatpush.msrb.mxu1 %v5444_v39  ;;  %v5460_v32 = vld [vmem:[#allocation8 + $0x248] sm:$0xff] }
 0x2bb   :  { %1371 = vmatpush.msra.mxu2 %v5447_v46  ;;  %1391 = vmatpush.msra.mxu3 %v5450_v60  ;;  %v5465_v46 = vld [vmem:[#allocation8 + $0x1f8] sm:$0xff]  ;;  %v5468_v60 = vld [vmem:[#allocation8 + $0x200] sm:$0xff] }
 0x2bc   :  { %1411 = vmatpush.msra.mxu0 %v5453_v31  ;;  %1431 = vmatpush.msrb.mxu1 %v4843_v40  ;;  %v8106_v40 = vld [vmem:[#allocation56_spill] sm:$0xff] }
 0x2bd   :  { %1372 = vmatpush.msra.mxu2 %v5457_v36  ;;  %1392 = vmatpush.msra.mxu3 %v5460_v32 }
 0x2be   :  { %1412 = vmatpush.msra.mxu0 %v4854_v33  ;;  %1432 = vmatpush.msrb.mxu1 %v4861_v44  ;;  %v1228_v33 = vadd.f32 %v8106_v40, %v8094_v30 }
 0x2bf   :  { %1373 = vmatpush.msra.mxu2 %v5465_v46  ;;  %1393 = vmatpush.msra.mxu3 %v5468_v60 }
 0x2c0   :  { %1413 = vmatpush.msra.mxu0 %v4872_v38  ;;  %1433 = vmatpush.msrb.mxu1 %v4879_v47 }
 0x2c1   :  { %1374 = vmatpush.msra.mxu2 %v4857_v41  ;;  %1394 = vmatpush.msra.mxu3 %v4859_v42  ;;  %v8107_v41 = vld [vmem:[#allocation58_spill] sm:$0xff] }
 0x2c2   :  { %1414 = vmatpush.msra.mxu0 %v4890_v43  ;;  %1434 = vmatpush.msrb.mxu1 %v4897_v51  ;;  %v1229_v42 = vadd.f32 %v8107_v41, %v8096_v35  ;;  %v8112_v41 = vld [vmem:[#allocation47_spill] sm:$0xff] }
 0x2c3   :  { %1375 = vmatpush.msra.mxu2 %v4875_v45  ;;  %1395 = vmatpush.msra.mxu3 %v8071_v6  ;;  %v8108_v6 = vld [vmem:[#allocation57_spill] sm:$0xff] }
 0x2c4   :  { %1415 = vmatpush.msra.mxu0 %v8072_v7  ;;  %1435 = vmatpush.msrb.mxu1 %v8073_v9  ;;  %v1230_v7 = vadd.f32 %v8108_v6, %v8098_v0  ;;  %v8109_v9 = vld [vmem:[#allocation59_spill] sm:$0xff] }
 0x2c5   :  { %1376 = vmatpush.msra.mxu2 %v8074_v10  ;;  %1396 = vmatpush.msra.mxu3 %v8075_v11  ;;  %v1231_v10 = vadd.f32 %v8109_v9, %v8068_v49  ;;  %v5559_v6 = vld [vmem:[#allocation8 + $0x1b0] sm:$0xff]  ;;  %v5565_v9 = vld [vmem:[#allocation8 + $0x1c0] sm:$0xff] }
 0x2c6   :  { %1416 = vmatpush.msra.mxu0 %v8076_v12  ;;  %1436 = vmatpush.msrb.mxu1 %v8077_v13 }
 0x2c7   :  { %1377 = vmatpush.msra.mxu2 %v8078_v14  ;;  %1397 = vmatpush.msra.mxu3 %v8079_v15 }
 0x2c8   :  { %1417 = vmatpush.msra.mxu0 %v8080_v16  ;;  %1437 = vmatpush.msrb.mxu1 %v8081_v17 }
 0x2c9   :  { %1378 = vmatpush.msra.mxu2 %v8082_v18  ;;  %1398 = vmatpush.msra.mxu3 %v8083_v19 }
 0x2ca   :  { %1418 = vmatpush.msra.mxu0 %v8084_v20  ;;  %1438 = vmatpush.msrb.mxu1 %v8085_v21 }
 0x2cb   :  { %1379 = vmatpush.msra.mxu2 %v8086_v22  ;;  %1399 = vmatpush.msra.mxu3 %v8087_v23 }
 0x2cc   :  { %1419 = vmatpush.msra.mxu0 %v8088_v24  ;;  %1439 = vmatpush.msrb.mxu1 %v8089_v25 }
 0x2cd   :  { %1380 = vmatpush.msra.mxu2 %v8090_v26  ;;  %1400 = vmatpush.msra.mxu3 %v8091_v27 }
 0x2ce   :  { %1420 = vmatpush.msra.mxu0 %v8092_v28  ;;  %1440 = vmatpush.msrb.mxu1 %v8093_v29 }
 0x32b   :  { %v1200_v43 = vpop.f32.mrf.mxu0  ;;  %v1220_v51 = vpop.f32.mrf.mxu1 }
 0x32c   :  { %v1234_v13 = vadd.f32 %v1230_v7, %v1200_v43  ;;  %v1235_v14 = vadd.f32 %v1231_v10, %v1220_v51  ;;  %v5553_v43 = vld [vmem:[#allocation8 + $0x208] sm:$0xff]  ;;  %v5556_v51 = vld [vmem:[#allocation8 + $0x210] sm:$0xff]  ;;  %v5562_v7 = vld [vmem:[#allocation8 + $0x1b8] sm:$0xff] }
 0x32d   :  { %v5568_v10 = vld [vmem:[#allocation8 + $0x1c8] sm:$0xff] }
 0x32e   :  { %v1245_v15 = vmul.f32 0.5, %v1235_v14  ;;  %v5580_v14 = vld [vmem:[#allocation8 + $0x180] sm:$0xff] }
 0x32f   :  { %8117 = vst [vmem:[#allocation22_spill] sm:$0xff] %v5580_v14 }
 0x330   :  { %v1160_v44 = vpop.f32.mrf.mxu2  ;;  %v1180_v38 = vpop.f32.mrf.mxu3 }
 0x331   :  { %v1232_v45 = vadd.f32 %v1228_v33, %v1160_v44  ;;  %v1233_v47 = vadd.f32 %v1229_v42, %v1180_v38  ;;  %v8111_v33 = vld [vmem:[#allocation49_spill] sm:$0xff]  ;;  %v8113_v42 = vld [vmem:[#allocation50_spill] sm:$0xff]  ;;  %v8114_v44 = vld [vmem:[#allocation55_spill] sm:$0xff] }
 0x332   :  { %v5540_v38 = vld [vmem:[#allocation8 + $0x2a0] sm:$0xff] }
 0x333   :  { %v1236_v11 = vmul.f32 0.5, %v1232_v45  ;;  %v1240_v12 = vmul.f32 0.5, %v1233_v47  ;;  %v5545_v45 = vld [vmem:[#allocation8 + $0x250] sm:$0xff]  ;;  %v5548_v47 = vld [vmem:[#allocation8 + $0x258] sm:$0xff] }
 0x335   :  { %4072 = vtanh.f32 %v1236_v11  ;;  %v5571_v11 = vld [vmem:[#allocation8 + $0x168] sm:$0xff] }
 0x336   :  { %4074 = vtanh.f32 %v1240_v12  ;;  %v5574_v12 = vld [vmem:[#allocation8 + $0x170] sm:$0xff] }
 0x337   :  { %4076 = vtanh.f32 %v1234_v13  ;;  %8115 = vst [vmem:[#allocation16_spill] sm:$0xff] %v5574_v12  ;;  %v5577_v13 = vld [vmem:[#allocation8 + $0x178] sm:$0xff] }
 0x338   :  { %4078 = vtanh.f32 %v1245_v15  ;;  %8116 = vst [vmem:[#allocation19_spill] sm:$0xff] %v5577_v13  ;;  %v5583_v15 = vld [vmem:[#allocation8 + $0x120] sm:$0xff] }
 0x339   :  { %8118 = vst [vmem:[#allocation17_spill] sm:$0xff] %v5583_v15 }
 0x33b   :  { %v4073_v16 = vpop.eup %4072 }
 0x33c   :  { %v4075_v17 = vpop.eup %4074  ;;  %v1238_v18 = vmul.f32 0.5, %v4073_v16  ;;  %v5586_v16 = vld [vmem:[#allocation8 + $0x128] sm:$0xff] }
 0x33d   :  { %v1242_v19 = vmul.f32 0.5, %v4075_v17  ;;  %v4077_v21 = vpop.eup %4076  ;;  %8119 = vst [vmem:[#allocation18_spill] sm:$0xff] %v5586_v16  ;;  %v5589_v17 = vld [vmem:[#allocation8 + $0x130] sm:$0xff] }
 0x33e   :  { %v1239_v20 = vadd.f32 0.5, %v1238_v18  ;;  %v4079_v25 = vpop.eup %4078  ;;  %8120 = vst [vmem:[#allocation23_spill] sm:$0xff] %v5589_v17  ;;  %v5592_v18 = vld [vmem:[#allocation8 + $0x138] sm:$0xff] }
 0x33f   :  { %v1243_v22 = vadd.f32 0.5, %v1242_v19  ;;  %v1247_v27 = vmul.f32 0.5, %v4079_v25  ;;  %8121 = vst [vmem:[#allocation25_spill] sm:$0xff] %v5592_v18  ;;  %v5595_v19 = vld [vmem:[#allocation8 + $0xd8] sm:$0xff]  ;;  %v5613_v25 = vld [vmem:[#allocation8 + $0xa0] sm:$0xff] }
 0x340   :  { %v1250_v23 = vmul.f32 %v4077_v21, %v1239_v20  ;;  %8122 = vst [vmem:[#allocation20_spill] sm:$0xff] %v5595_v19  ;;  %v5598_v20 = vld [vmem:[#allocation8 + $0xe0] sm:$0xff]  ;;  %v5601_v21 = vld [vmem:[#allocation8 + $0xe8] sm:$0xff] }
 0x341   :  { %v1249_v24 = vmul.f32 %v1243_v22, %v5372_v37  ;;  %v1248_v28 = vadd.f32 0.5, %v1247_v27  ;;  %v8110_v37 = vld [vmem:[#allocation48_spill] sm:$0xff]  ;;  %8123 = vst [vmem:[#allocation21_spill] sm:$0xff] %v5598_v20  ;;  %v5604_v22 = vld [vmem:[#allocation8 + $0xf0] sm:$0xff]  ;;  %v5616_v27 = vld [vmem:[#allocation8 + $0xa8] sm:$0xff] }
 0x342   :  { %8124 = vst [vmem:[#allocation26_spill] sm:$0xff] %v5601_v21 }
 0x343   :  { %v5510_v26 = vadd.f32 %v1250_v23, %v1249_v24  ;;  %8125 = vst [vmem:[#allocation27_spill] sm:$0xff] %v5604_v22  ;;  %v5607_v23 = vld [vmem:[#allocation8 + $0x90] sm:$0xff]  ;;  %v5610_v24 = vld [vmem:[#allocation8 + $0x98] sm:$0xff] }
 0x344   :  { %8126 = vst [vmem:[#allocation29_spill] sm:$0xff] %v5607_v23 }
 0x345   :  { %4080 = vtanh.f32 %v5510_v26  ;;  %8127 = vst [vmem:[#allocation30_spill] sm:$0xff] %v5610_v24 }
 0x346   :  { %8128 = vst [vmem:[#allocation31_spill] sm:$0xff] %v5613_v25 }
 0x347   :  { %8129 = vst [vmem:[#allocation33_spill] sm:$0xff] %v5616_v27 }
 0x34b   :  { %v4081_v29 = vpop.eup %4080 }
 0x34c   :  { %v1253_v40 = vmul.f32 %v4081_v29, %v1248_v28  ;;  %v5619_v28 = vld [vmem:[#allocation8 + $0x48] sm:$0xff]  ;;  %v5622_v29 = vld [vmem:[#allocation8 + $0x50] sm:$0xff] }
 0x34d   :  { %8130 = vst [vmem:[#allocation35_spill] sm:$0xff] %v5619_v28 }
 0x34e   :  { %1270 = vmatmul.f32.vlgmr.msrb.gmra.mxu2 %v1253_v40  ;;  %1290 = vmatmul.f32.vlgmr.msrb.gmra.mxu3 %v1253_v40  ;;  %8131 = vst [vmem:[#allocation36_spill] sm:$0xff] %v5622_v29 }
 0x34f   :  { %1310 = vmatmul.f32.vlgmr.msrb.gmra.mxu0 %v1253_v40  ;;  %1330 = vmatmul.f32.vlgmr.msra.gmra.mxu1 %v1253_v40  ;;  %v5625_v40 = vld [vmem:[#allocation8 + $0x58] sm:$0xff] }
 0x350   :  { %1476 = vmatpush.msrb.mxu2 %v5375_v53  ;;  %1496 = vmatpush.msrb.mxu3 %v5378_v8  ;;  %8132 = vst [vmem:[#allocation37_spill] sm:$0xff] %v5625_v40 }
 0x351   :  { %1516 = vmatpush.msrb.mxu0 %v5381_v56  ;;  %1536 = vmatpush.msra.mxu1 %v5384_v1 }
 0x352   :  { %1477 = vmatpush.msrb.mxu2 %v5387_v59  ;;  %1497 = vmatpush.msrb.mxu3 %v5390_v50 }
 0x353   :  { %1517 = vmatpush.msrb.mxu0 %v5393_v58  ;;  %1537 = vmatpush.msra.mxu1 %v5396_v4 }
 0x354   :  { %1478 = vmatpush.msrb.mxu2 %v5399_v3  ;;  %1498 = vmatpush.msrb.mxu3 %v5402_v61 }
 0x355   :  { %1518 = vmatpush.msrb.mxu0 %v5405_v52  ;;  %1538 = vmatpush.msra.mxu1 %v5408_v5 }
 0x356   :  { %1479 = vmatpush.msrb.mxu2 %v5411_v62  ;;  %1499 = vmatpush.msrb.mxu3 %v5414_v2 }
 0x357   :  { %1519 = vmatpush.msrb.mxu0 %v5417_v63  ;;  %1539 = vmatpush.msra.mxu1 %v5420_v54 }
 0x358   :  { %1480 = vmatpush.msrb.mxu2 %v5423_v57  ;;  %1500 = vmatpush.msrb.mxu3 %v5426_v55 }
 0x359   :  { %1520 = vmatpush.msrb.mxu0 %v5429_v48  ;;  %1540 = vmatpush.msra.mxu1 %v5432_v34 }
 0x35a   :  { %1481 = vmatpush.msrb.mxu2 %v8110_v37  ;;  %1501 = vmatpush.msrb.mxu3 %v8111_v33 }
 0x35b   :  { %1521 = vmatpush.msrb.mxu0 %v8112_v41  ;;  %1541 = vmatpush.msra.mxu1 %v5444_v39 }
 0x35c   :  { %1482 = vmatpush.msrb.mxu2 %v8113_v42  ;;  %1502 = vmatpush.msrb.mxu3 %v8114_v44 }
 0x35d   :  { %1522 = vmatpush.msrb.mxu0 %v5453_v31  ;;  %1542 = vmatpush.msra.mxu1 %v5540_v38 }
 0x35e   :  { %1483 = vmatpush.msrb.mxu2 %v5457_v36  ;;  %1503 = vmatpush.msrb.mxu3 %v5460_v32 }
 0x35f   :  { %1523 = vmatpush.msrb.mxu0 %v5545_v45  ;;  %1543 = vmatpush.msra.mxu1 %v5548_v47 }
 0x360   :  { %1484 = vmatpush.msrb.mxu2 %v5465_v46  ;;  %1504 = vmatpush.msrb.mxu3 %v5468_v60 }
 0x361   :  { %1524 = vmatpush.msrb.mxu0 %v5553_v43  ;;  %1544 = vmatpush.msra.mxu1 %v5556_v51 }
 0x362   :  { %1485 = vmatpush.msrb.mxu2 %v5559_v6  ;;  %1505 = vmatpush.msrb.mxu3 %v5562_v7 }
 0x363   :  { %1525 = vmatpush.msrb.mxu0 %v5565_v9  ;;  %1545 = vmatpush.msra.mxu1 %v5568_v10 }
 0x364   :  { %1486 = vmatpush.msrb.mxu2 %v5571_v11  ;;  %1506 = vmatpush.msrb.mxu3 %v5574_v12 }
 0x365   :  { %1526 = vmatpush.msrb.mxu0 %v5577_v13  ;;  %1546 = vmatpush.msra.mxu1 %v5580_v14 }
 0x366   :  { %1487 = vmatpush.msrb.mxu2 %v5583_v15  ;;  %1507 = vmatpush.msrb.mxu3 %v5586_v16 }
 0x367   :  { %1527 = vmatpush.msrb.mxu0 %v5589_v17  ;;  %1547 = vmatpush.msra.mxu1 %v5592_v18  ;;  %v8140_v17 = vld [vmem:[#allocation62_spill] sm:$0xff] }
 0x368   :  { %1488 = vmatpush.msrb.mxu2 %v5595_v19  ;;  %1508 = vmatpush.msrb.mxu3 %v5598_v20  ;;  %v1341_v16 = vadd.f32 %v8140_v17, %v8098_v0 }
 0x369   :  { %1528 = vmatpush.msrb.mxu0 %v5601_v21  ;;  %1548 = vmatpush.msra.mxu1 %v5604_v22 }
 0x36a   :  { %1489 = vmatpush.msrb.mxu2 %v5607_v23  ;;  %1509 = vmatpush.msrb.mxu3 %v5610_v24  ;;  %v5628_v24 = vld [vmem:[#allocation8 + $0x60] sm:$0xff] }
 0x36b   :  { %1529 = vmatpush.msrb.mxu0 %v5613_v25  ;;  %1549 = vmatpush.msra.mxu1 %v5616_v27  ;;  %8133 = vst [vmem:[#allocation38_spill] sm:$0xff] %v5628_v24  ;;  %v5631_v25 = vld [vmem:[#allocation8] sm:$0xff]  ;;  %v5634_v27 = vld [vmem:[#allocation8 + $0x8] sm:$0xff] }
 0x36c   :  { %1490 = vmatpush.msrb.mxu2 %v5619_v28  ;;  %1510 = vmatpush.msrb.mxu3 %v5622_v29  ;;  %8134 = vst [vmem:[#allocation39_spill] sm:$0xff] %v5631_v25  ;;  %v5637_v28 = vld [vmem:[#allocation8 + $0x10] sm:$0xff]  ;;  %v5640_v29 = vld [vmem:[#allocation8 + $0x18] sm:$0xff] }
 0x36d   :  { %1530 = vmatpush.msrb.mxu0 %v5625_v40  ;;  %1550 = vmatpush.msra.mxu1 %v5628_v24  ;;  %8135 = vst [vmem:[#allocation40_spill] sm:$0xff] %v5634_v27  ;;  %v8138_v40 = vld [vmem:[#allocation60_spill] sm:$0xff]  ;;  %v8139_v24 = vld [vmem:[#allocation61_spill] sm:$0xff] }
 0x36e   :  { %1491 = vmatpush.msrb.mxu2 %v5631_v25  ;;  %1511 = vmatpush.msrb.mxu3 %v5634_v27  ;;  %8136 = vst [vmem:[#allocation41_spill] sm:$0xff] %v5637_v28  ;;  %v1339_v23 = vadd.f32 %v8138_v40, %v8094_v30  ;;  %v1340_v22 = vadd.f32 %v8139_v24, %v8096_v35 }
 0x36f   :  { %1531 = vmatpush.msrb.mxu0 %v5637_v28  ;;  %8137 = vst [vmem:[#allocation42_spill] sm:$0xff] %v5640_v29  ;;  %1551 = vmatpush.msra.mxu1 %v5640_v29  ;;  %v8141_v28 = vld [vmem:[#allocation63_spill] sm:$0xff] }
 0x370   :  { %v1342_v15 = vadd.f32 %v8141_v28, %v8068_v49 }
 0x3cc   :  { %v1311_v18 = vpop.f32.mrf.mxu0  ;;  %v1331_v27 = vpop.f32.mrf.mxu1 }
 0x3cd   :  { %v1345_v13 = vadd.f32 %v1341_v16, %v1311_v18  ;;  %v1346_v12 = vadd.f32 %v1342_v15, %v1331_v27  ;;  %v8146_v16 = vld [vmem:[#allocation18_spill] sm:$0xff]  ;;  %v8147_v18 = vld [vmem:[#allocation23_spill] sm:$0xff]  ;;  %v8149_v27 = vld [vmem:[#allocation20_spill] sm:$0xff] }
 0x3cf   :  { %v1356_v24 = vmul.f32 0.5, %v1346_v12 }
 0x3d1   :  { %v1271_v21 = vpop.f32.mrf.mxu2  ;;  %v1291_v25 = vpop.f32.mrf.mxu3 }
 0x3d2   :  { %v1343_v20 = vadd.f32 %v1339_v23, %v1271_v21  ;;  %v1344_v19 = vadd.f32 %v1340_v22, %v1291_v25 }
 0x3d4   :  { %v1347_v14 = vmul.f32 0.5, %v1343_v20  ;;  %v1351_v29 = vmul.f32 0.5, %v1344_v19  ;;  %v8148_v19 = vld [vmem:[#allocation25_spill] sm:$0xff] }
 0x3d6   :  { %4082 = vtanh.f32 %v1347_v14 }
 0x3d7   :  { %4084 = vtanh.f32 %v1351_v29  ;;  %v8150_v29 = vld [vmem:[#allocation21_spill] sm:$0xff] }
 0x3d8   :  { %4086 = vtanh.f32 %v1345_v13 }
 0x3d9   :  { %4088 = vtanh.f32 %v1356_v24  ;;  %v8151_v24 = vld [vmem:[#allocation26_spill] sm:$0xff] }
 0x3dc   :  { %v4083_v40 = vpop.eup %4082 }
 0x3dd   :  { %v4085_v35 = vpop.eup %4084  ;;  %v1349_v21 = vmul.f32 0.5, %v4083_v40  ;;  %v8152_v40 = vld [vmem:[#allocation27_spill] sm:$0xff] }
 0x3de   :  { %v1353_v22 = vmul.f32 0.5, %v4085_v35  ;;  %v4087_v25 = vpop.eup %4086  ;;  %v8143_v35 = vld [vmem:[#allocation19_spill] sm:$0xff] }
 0x3df   :  { %v1350_v23 = vadd.f32 0.5, %v1349_v21  ;;  %v4089_v28 = vpop.eup %4088  ;;  %v8153_v21 = vld [vmem:[#allocation29_spill] sm:$0xff] }
 0x3e0   :  { %v1354_v30 = vadd.f32 0.5, %v1353_v22  ;;  %v1358_v14 = vmul.f32 0.5, %v4089_v28  ;;  %v8154_v22 = vld [vmem:[#allocation30_spill] sm:$0xff]  ;;  %v8158_v28 = vld [vmem:[#allocation36_spill] sm:$0xff] }
 0x3e1   :  { %v1361_v17 = vmul.f32 %v4087_v25, %v1350_v23  ;;  %v8155_v23 = vld [vmem:[#allocation31_spill] sm:$0xff]  ;;  %v8156_v25 = vld [vmem:[#allocation33_spill] sm:$0xff] }
 0x3e2   :  { %v1360_v0 = vmul.f32 %v1354_v30, %v5510_v26  ;;  %v1359_v15 = vadd.f32 0.5, %v1358_v14  ;;  %v8142_v30 = vld [vmem:[#allocation16_spill] sm:$0xff]  ;;  %v8145_v26 = vld [vmem:[#allocation17_spill] sm:$0xff] }
 0x3e3   :  { %v8159_v14 = vld [vmem:[#allocation37_spill] sm:$0xff] }
 0x3e4   :  { %v5652_v20 = vadd.f32 %v1361_v17, %v1360_v0  ;;  %v8144_v0 = vld [vmem:[#allocation22_spill] sm:$0xff]  ;;  %v8157_v17 = vld [vmem:[#allocation35_spill] sm:$0xff] }
 0x3e6   :  { %4090 = vtanh.f32 %v5652_v20 }
 0x3ec   :  { %v4091_v13 = vpop.eup %4090 }
 0x3ed   :  { %v1364_v12 = vmul.f32 %v4091_v13, %v1359_v15  ;;  %v8160_v15 = vld [vmem:[#allocation38_spill] sm:$0xff]  ;;  %v8161_v13 = vld [vmem:[#allocation39_spill] sm:$0xff] }
 0x3ef   :  { %1381 = vmatmul.f32.vlgmr.msra.gmra.mxu2 %v1364_v12  ;;  %1401 = vmatmul.f32.vlgmr.msra.gmra.mxu3 %v1364_v12 }
 0x3f0   :  { %1421 = vmatmul.f32.vlgmr.msra.gmra.mxu0 %v1364_v12  ;;  %1441 = vmatmul.f32.vlgmr.msrb.gmra.mxu1 %v1364_v12  ;;  %v8162_v12 = vld [vmem:[#allocation40_spill] sm:$0xff] }
 0x3f1   :  { %1587 = vmatpush.msra.mxu2 %v5375_v53  ;;  %1607 = vmatpush.msra.mxu3 %v5378_v8 }
 0x3f2   :  { %1627 = vmatpush.msra.mxu0 %v5381_v56  ;;  %1647 = vmatpush.msrb.mxu1 %v5384_v1 }
 0x3f3   :  { %1588 = vmatpush.msra.mxu2 %v5387_v59  ;;  %1608 = vmatpush.msra.mxu3 %v5390_v50 }
 0x3f4   :  { %1628 = vmatpush.msra.mxu0 %v5393_v58  ;;  %1648 = vmatpush.msrb.mxu1 %v5396_v4 }
 0x3f5   :  { %1589 = vmatpush.msra.mxu2 %v5399_v3  ;;  %1609 = vmatpush.msra.mxu3 %v5402_v61 }
 0x3f6   :  { %1629 = vmatpush.msra.mxu0 %v5405_v52  ;;  %1649 = vmatpush.msrb.mxu1 %v5408_v5 }
 0x3f7   :  { %1590 = vmatpush.msra.mxu2 %v5411_v62  ;;  %1610 = vmatpush.msra.mxu3 %v5414_v2 }
 0x3f8   :  { %1630 = vmatpush.msra.mxu0 %v5417_v63  ;;  %1650 = vmatpush.msrb.mxu1 %v5420_v54 }
 0x3f9   :  { %1591 = vmatpush.msra.mxu2 %v5423_v57  ;;  %1611 = vmatpush.msra.mxu3 %v5426_v55 }
 0x3fa   :  { %1631 = vmatpush.msra.mxu0 %v5429_v48  ;;  %1651 = vmatpush.msrb.mxu1 %v5432_v34 }
 0x3fb   :  { %1592 = vmatpush.msra.mxu2 %v8110_v37  ;;  %1612 = vmatpush.msra.mxu3 %v8111_v33 }
 0x3fc   :  { %1632 = vmatpush.msra.mxu0 %v8112_v41  ;;  %1652 = vmatpush.msrb.mxu1 %v5444_v39 }
 0x3fd   :  { %1593 = vmatpush.msra.mxu2 %v8113_v42  ;;  %1613 = vmatpush.msra.mxu3 %v8114_v44 }
 0x3fe   :  { %1633 = vmatpush.msra.mxu0 %v5453_v31  ;;  %1653 = vmatpush.msrb.mxu1 %v5540_v38 }
 0x3ff   :  { %1594 = vmatpush.msra.mxu2 %v5457_v36  ;;  %1614 = vmatpush.msra.mxu3 %v5460_v32 }
 0x400   :  { %1634 = vmatpush.msra.mxu0 %v5545_v45  ;;  %1654 = vmatpush.msrb.mxu1 %v5548_v47 }
 0x401   :  { %1595 = vmatpush.msra.mxu2 %v5465_v46  ;;  %1615 = vmatpush.msra.mxu3 %v5468_v60 }
 0x402   :  { %1635 = vmatpush.msra.mxu0 %v5553_v43  ;;  %1655 = vmatpush.msrb.mxu1 %v5556_v51 }
 0x403   :  { %1596 = vmatpush.msra.mxu2 %v5559_v6  ;;  %1616 = vmatpush.msra.mxu3 %v5562_v7 }
 0x404   :  { %1636 = vmatpush.msra.mxu0 %v5565_v9  ;;  %1656 = vmatpush.msrb.mxu1 %v5568_v10 }
 0x405   :  { %1597 = vmatpush.msra.mxu2 %v5571_v11  ;;  %1617 = vmatpush.msra.mxu3 %v8142_v30 }
 0x406   :  { %1637 = vmatpush.msra.mxu0 %v8143_v35  ;;  %1657 = vmatpush.msrb.mxu1 %v8144_v0 }
 0x407   :  { %1598 = vmatpush.msra.mxu2 %v8145_v26  ;;  %1618 = vmatpush.msra.mxu3 %v8146_v16  ;;  %v8169_v16 = vld [vmem:[#allocation45_spill] sm:$0xff] }
 0x408   :  { %1638 = vmatpush.msra.mxu0 %v8147_v18  ;;  %1658 = vmatpush.msrb.mxu1 %v8148_v19 }
 0x409   :  { %1599 = vmatpush.msra.mxu2 %v8149_v27  ;;  %1619 = vmatpush.msra.mxu3 %v8150_v29  ;;  %v8168_v29 = vld [vmem:[#allocation65_spill] sm:$0xff] }
 0x40a   :  { %1639 = vmatpush.msra.mxu0 %v8151_v24  ;;  %1659 = vmatpush.msrb.mxu1 %v8152_v40  ;;  %v8163_v40 = vld [vmem:[#allocation41_spill] sm:$0xff] }
 0x40b   :  { %1600 = vmatpush.msra.mxu2 %v8153_v21  ;;  %1620 = vmatpush.msra.mxu3 %v8154_v22  ;;  %v8164_v21 = vld [vmem:[#allocation42_spill] sm:$0xff]  ;;  %v8165_v22 = vld [vmem:[#allocation43_spill] sm:$0xff] }
 0x40c   :  { %1640 = vmatpush.msra.mxu0 %v8155_v23  ;;  %1660 = vmatpush.msrb.mxu1 %v8156_v25  ;;  %v8166_v23 = vld [vmem:[#allocation64_spill] sm:$0xff] }
 0x40d   :  { %1601 = vmatpush.msra.mxu2 %v8157_v17  ;;  %1621 = vmatpush.msra.mxu3 %v8158_v28  ;;  %v1450_v24 = vadd.f32 %v8166_v23, %v8165_v22  ;;  %v8167_v25 = vld [vmem:[#allocation44_spill] sm:$0xff] }
 0x40e   :  { %1641 = vmatpush.msra.mxu0 %v8159_v14  ;;  %1661 = vmatpush.msrb.mxu1 %v8160_v15  ;;  %v1451_v17 = vadd.f32 %v8168_v29, %v8167_v25 }
 0x40f   :  { %1602 = vmatpush.msra.mxu2 %v8161_v13  ;;  %1622 = vmatpush.msra.mxu3 %v8162_v12  ;;  %v8170_v13 = vld [vmem:[#allocation66_spill] sm:$0xff]  ;;  %v8171_v12 = vld [vmem:[#allocation67_spill] sm:$0xff] }
 0x410   :  { %1642 = vmatpush.msra.mxu0 %v8163_v40  ;;  %1662 = vmatpush.msrb.mxu1 %v8164_v21  ;;  %v1452_v26 = vadd.f32 %v8170_v13, %v8169_v16  ;;  %v1453_v40 = vadd.f32 %v8171_v12, %v8068_v49 }
 0x46d   :  { %v1422_v18 = vpop.f32.mrf.mxu0  ;;  %v1442_v15 = vpop.f32.mrf.mxu1 }
 0x46e   :  { %v1456_v35 = vadd.f32 %v1452_v26, %v1422_v18  ;;  %v1457_v30 = vadd.f32 %v1453_v40, %v1442_v15  ;;  %v8174_v18 = vld [vmem:[#allocation22_spill] sm:$0xff]  ;;  %v8175_v40 = vld [vmem:[#allocation17_spill] sm:$0xff] }
 0x46f   :  { %v8180_v15 = vld [vmem:[#allocation21_spill] sm:$0xff] }
 0x470   :  { %v1467_v29 = vmul.f32 0.5, %v1457_v30 }
 0x472   :  { %v1382_v27 = vpop.f32.mrf.mxu2  ;;  %v1402_v28 = vpop.f32.mrf.mxu3 }
 0x473   :  { %v1454_v19 = vadd.f32 %v1450_v24, %v1382_v27  ;;  %v1455_v14 = vadd.f32 %v1451_v17, %v1402_v28 }
 0x475   :  { %v1458_v0 = vmul.f32 0.5, %v1454_v19  ;;  %v1462_v21 = vmul.f32 0.5, %v1455_v14  ;;  %v8179_v14 = vld [vmem:[#allocation20_spill] sm:$0xff] }
 0x477   :  { %4092 = vtanh.f32 %v1458_v0 }
 0x478   :  { %4094 = vtanh.f32 %v1462_v21  ;;  %v8176_v21 = vld [vmem:[#allocation18_spill] sm:$0xff] }
 0x479   :  { %4096 = vtanh.f32 %v1456_v35 }
 0x47a   :  { %4098 = vtanh.f32 %v1467_v29  ;;  %v8181_v29 = vld [vmem:[#allocation26_spill] sm:$0xff] }
 0x47d   :  { %v4093_v23 = vpop.eup %4092 }
 0x47e   :  { %v4095_v25 = vpop.eup %4094  ;;  %v1460_v27 = vmul.f32 0.5, %v4093_v23  ;;  %v8182_v23 = vld [vmem:[#allocation27_spill] sm:$0xff] }
 0x47f   :  { %v1464_v24 = vmul.f32 0.5, %v4095_v25  ;;  %v4097_v28 = vpop.eup %4096  ;;  %v8178_v25 = vld [vmem:[#allocation25_spill] sm:$0xff] }
 0x480   :  { %v1461_v17 = vadd.f32 0.5, %v1460_v27  ;;  %v4099_v12 = vpop.eup %4098  ;;  %v8183_v27 = vld [vmem:[#allocation29_spill] sm:$0xff] }
 0x481   :  { %v1465_v22 = vadd.f32 0.5, %v1464_v24  ;;  %v1469_v0 = vmul.f32 0.5, %v4099_v12  ;;  %v8184_v24 = vld [vmem:[#allocation30_spill] sm:$0xff]  ;;  %v8188_v12 = vld [vmem:[#allocation36_spill] sm:$0xff] }
 0x482   :  { %v1472_v13 = vmul.f32 %v4097_v28, %v1461_v17  ;;  %v8185_v17 = vld [vmem:[#allocation31_spill] sm:$0xff]  ;;  %v8186_v28 = vld [vmem:[#allocation33_spill] sm:$0xff] }
 0x483   :  { %v1471_v16 = vmul.f32 %v1465_v22, %v5652_v20  ;;  %v1470_v26 = vadd.f32 0.5, %v1469_v0  ;;  %v8172_v20 = vld [vmem:[#allocation16_spill] sm:$0xff]  ;;  %v8177_v22 = vld [vmem:[#allocation23_spill] sm:$0xff]  ;;  %v8189_v0 = vld [vmem:[#allocation37_spill] sm:$0xff] }
 0x485   :  { %v5728_v19 = vadd.f32 %v1472_v13, %v1471_v16  ;;  %v8173_v16 = vld [vmem:[#allocation19_spill] sm:$0xff] }
 0x486   :  { %v8187_v13 = vld [vmem:[#allocation35_spill] sm:$0xff] }
 0x487   :  { %4100 = vtanh.f32 %v5728_v19 }
 0x48d   :  { %v4101_v35 = vpop.eup %4100 }
 0x48e   :  { %v1475_v30 = vmul.f32 %v4101_v35, %v1470_v26  ;;  %v8190_v26 = vld [vmem:[#allocation38_spill] sm:$0xff]  ;;  %v8191_v35 = vld [vmem:[#allocation39_spill] sm:$0xff] }
 0x490   :  { %1492 = vmatmul.f32.vlgmr.msrb.gmra.mxu2 %v1475_v30  ;;  %1512 = vmatmul.f32.vlgmr.msrb.gmra.mxu3 %v1475_v30 }
 0x491   :  { %1532 = vmatmul.f32.vlgmr.msrb.gmra.mxu0 %v1475_v30  ;;  %1552 = vmatmul.f32.vlgmr.msra.gmra.mxu1 %v1475_v30  ;;  %v8192_v30 = vld [vmem:[#allocation40_spill] sm:$0xff] }
 0x492   :  { %1698 = vmatpush.msrb.mxu2 %v5375_v53  ;;  %1718 = vmatpush.msrb.mxu3 %v5378_v8 }
 0x493   :  { %1738 = vmatpush.msrb.mxu0 %v5381_v56  ;;  %1758 = vmatpush.msra.mxu1 %v5384_v1 }
 0x494   :  { %1699 = vmatpush.msrb.mxu2 %v5387_v59  ;;  %1719 = vmatpush.msrb.mxu3 %v5390_v50 }
 0x495   :  { %1739 = vmatpush.msrb.mxu0 %v5393_v58  ;;  %1759 = vmatpush.msra.mxu1 %v5396_v4 }
 0x496   :  { %1700 = vmatpush.msrb.mxu2 %v5399_v3  ;;  %1720 = vmatpush.msrb.mxu3 %v5402_v61 }
 0x497   :  { %1740 = vmatpush.msrb.mxu0 %v5405_v52  ;;  %1760 = vmatpush.msra.mxu1 %v5408_v5 }
 0x498   :  { %1701 = vmatpush.msrb.mxu2 %v5411_v62  ;;  %1721 = vmatpush.msrb.mxu3 %v5414_v2 }
 0x499   :  { %1741 = vmatpush.msrb.mxu0 %v5417_v63  ;;  %1761 = vmatpush.msra.mxu1 %v5420_v54 }
 0x49a   :  { %1702 = vmatpush.msrb.mxu2 %v5423_v57  ;;  %1722 = vmatpush.msrb.mxu3 %v5426_v55 }
 0x49b   :  { %1742 = vmatpush.msrb.mxu0 %v5429_v48  ;;  %1762 = vmatpush.msra.mxu1 %v5432_v34 }
 0x49c   :  { %1703 = vmatpush.msrb.mxu2 %v8110_v37  ;;  %1723 = vmatpush.msrb.mxu3 %v8111_v33 }
 0x49d   :  { %1743 = vmatpush.msrb.mxu0 %v8112_v41  ;;  %1763 = vmatpush.msra.mxu1 %v5444_v39 }
 0x49e   :  { %1704 = vmatpush.msrb.mxu2 %v8113_v42  ;;  %1724 = vmatpush.msrb.mxu3 %v8114_v44 }
 0x49f   :  { %1744 = vmatpush.msrb.mxu0 %v5453_v31  ;;  %1764 = vmatpush.msra.mxu1 %v5540_v38 }
 0x4a0   :  { %1705 = vmatpush.msrb.mxu2 %v5457_v36  ;;  %1725 = vmatpush.msrb.mxu3 %v5460_v32 }
 0x4a1   :  { %1745 = vmatpush.msrb.mxu0 %v5545_v45  ;;  %1765 = vmatpush.msra.mxu1 %v5548_v47 }
 0x4a2   :  { %1706 = vmatpush.msrb.mxu2 %v5465_v46  ;;  %1726 = vmatpush.msrb.mxu3 %v5468_v60 }
 0x4a3   :  { %1746 = vmatpush.msrb.mxu0 %v5553_v43  ;;  %1766 = vmatpush.msra.mxu1 %v5556_v51 }
 0x4a4   :  { %1707 = vmatpush.msrb.mxu2 %v5559_v6  ;;  %1727 = vmatpush.msrb.mxu3 %v5562_v7 }
 0x4a5   :  { %1747 = vmatpush.msrb.mxu0 %v5565_v9  ;;  %1767 = vmatpush.msra.mxu1 %v5568_v10 }
 0x4a6   :  { %1708 = vmatpush.msrb.mxu2 %v5571_v11  ;;  %1728 = vmatpush.msrb.mxu3 %v8172_v20 }
 0x4a7   :  { %1748 = vmatpush.msrb.mxu0 %v8173_v16  ;;  %1768 = vmatpush.msra.mxu1 %v8174_v18 }
 0x4a8   :  { %1709 = vmatpush.msrb.mxu2 %v8175_v40  ;;  %1729 = vmatpush.msrb.mxu3 %v8176_v21  ;;  %v8199_v21 = vld [vmem:[#allocation45_spill] sm:$0xff] }
 0x4a9   :  { %1749 = vmatpush.msrb.mxu0 %v8177_v22  ;;  %1769 = vmatpush.msra.mxu1 %v8178_v25 }
 0x4aa   :  { %1710 = vmatpush.msrb.mxu2 %v8179_v14  ;;  %1730 = vmatpush.msrb.mxu3 %v8180_v15  ;;  %v8198_v15 = vld [vmem:[#allocation69_spill] sm:$0xff] }
 0x4ab   :  { %1750 = vmatpush.msrb.mxu0 %v8181_v29  ;;  %1770 = vmatpush.msra.mxu1 %v8182_v23  ;;  %v8193_v23 = vld [vmem:[#allocation41_spill] sm:$0xff] }
 0x4ac   :  { %1711 = vmatpush.msrb.mxu2 %v8183_v27  ;;  %1731 = vmatpush.msrb.mxu3 %v8184_v24  ;;  %v8194_v27 = vld [vmem:[#allocation42_spill] sm:$0xff]  ;;  %v8195_v24 = vld [vmem:[#allocation43_spill] sm:$0xff] }
 0x4ad   :  { %1751 = vmatpush.msrb.mxu0 %v8185_v17  ;;  %1771 = vmatpush.msra.mxu1 %v8186_v28  ;;  %v8196_v17 = vld [vmem:[#allocation68_spill] sm:$0xff] }
 0x4ae   :  { %1712 = vmatpush.msrb.mxu2 %v8187_v13  ;;  %1732 = vmatpush.msrb.mxu3 %v8188_v12  ;;  %v1561_v29 = vadd.f32 %v8196_v17, %v8195_v24  ;;  %v8197_v28 = vld [vmem:[#allocation44_spill] sm:$0xff] }
 0x4af   :  { %1752 = vmatpush.msrb.mxu0 %v8189_v0  ;;  %1772 = vmatpush.msra.mxu1 %v8190_v26  ;;  %v1562_v13 = vadd.f32 %v8198_v15, %v8197_v28 }
 0x4b0   :  { %1713 = vmatpush.msrb.mxu2 %v8191_v35  ;;  %1733 = vmatpush.msrb.mxu3 %v8192_v30  ;;  %v8200_v35 = vld [vmem:[#allocation70_spill] sm:$0xff]  ;;  %v8201_v30 = vld [vmem:[#allocation71_spill] sm:$0xff] }
 0x4b1   :  { %1753 = vmatpush.msrb.mxu0 %v8193_v23  ;;  %1773 = vmatpush.msra.mxu1 %v8194_v27  ;;  %v1563_v40 = vadd.f32 %v8200_v35, %v8199_v21  ;;  %v1564_v23 = vadd.f32 %v8201_v30, %v8068_v49 }
 0x50e   :  { %v1533_v22 = vpop.f32.mrf.mxu0  ;;  %v1553_v26 = vpop.f32.mrf.mxu1 }
 0x50f   :  { %v1567_v16 = vadd.f32 %v1563_v40, %v1533_v22  ;;  %v1568_v20 = vadd.f32 %v1564_v23, %v1553_v26 }
 0x511   :  { %v1578_v15 = vmul.f32 0.5, %v1568_v20 }
 0x513   :  { %v1493_v14 = vpop.f32.mrf.mxu2  ;;  %v1513_v12 = vpop.f32.mrf.mxu3 }
 0x514   :  { %v1565_v25 = vadd.f32 %v1561_v29, %v1493_v14  ;;  %v1566_v0 = vadd.f32 %v1562_v13, %v1513_v12 }
 0x516   :  { %v1569_v18 = vmul.f32 0.5, %v1565_v25  ;;  %v1573_v27 = vmul.f32 0.5, %v1566_v0  ;;  %v8231_v0 = vld [vmem:[#allocation75_spill] sm:$0xff] }
 0x517   :  { %v1675_v26 = vadd.f32 %v8231_v0, %v8068_v49  ;;  %v5898_v0 = vld [vmem:[#allocation8 + $0x3f8] sm:$0xff] }
 0x518   :  { %4102 = vtanh.f32 %v1569_v18 }
 0x519   :  { %4104 = vtanh.f32 %v1573_v27  ;;  %v8229_v27 = vld [vmem:[#allocation45_spill] sm:$0xff] }
 0x51a   :  { %4106 = vtanh.f32 %v1567_v16 }
 0x51b   :  { %4108 = vtanh.f32 %v1578_v15 }
 0x51e   :  { %v4103_v17 = vpop.eup %4102 }
 0x51f   :  { %v4105_v28 = vpop.eup %4104  ;;  %v1571_v14 = vmul.f32 0.5, %v4103_v17 }
 0x520   :  { %v1575_v29 = vmul.f32 0.5, %v4105_v28  ;;  %v4107_v12 = vpop.eup %4106 }
 0x521   :  { %v1572_v13 = vadd.f32 0.5, %v1571_v14  ;;  %v4109_v30 = vpop.eup %4108 }
 0x522   :  { %v1576_v24 = vadd.f32 0.5, %v1575_v29  ;;  %v1580_v18 = vmul.f32 0.5, %v4109_v30 }
 0x523   :  { %v1583_v35 = vmul.f32 %v4107_v12, %v1572_v13 }
 0x524   :  { %v1582_v21 = vmul.f32 %v1576_v24, %v5728_v19  ;;  %v1581_v40 = vadd.f32 0.5, %v1580_v18  ;;  %v8230_v24 = vld [vmem:[#allocation74_spill] sm:$0xff] }
 0x525   :  { %v1674_v28 = vadd.f32 %v8230_v24, %v8229_v27  ;;  %v5892_v24 = vld [vmem:[#allocation8 + $0x450] sm:$0xff] }
 0x526   :  { %v5804_v25 = vadd.f32 %v1583_v35, %v1582_v21 }
 0x528   :  { %4110 = vtanh.f32 %v5804_v25 }
 0x52e   :  { %v4111_v16 = vpop.eup %4110 }
 0x52f   :  { %v1586_v20 = vmul.f32 %v4111_v16, %v1581_v40 }
 0x531   :  { %1603 = vmatmul.f32.vlgmr.msra.gmra.mxu2 %v1586_v20  ;;  %1623 = vmatmul.f32.vlgmr.msra.gmra.mxu3 %v1586_v20 }
 0x532   :  { %1643 = vmatmul.f32.vlgmr.msra.gmra.mxu0 %v1586_v20  ;;  %1663 = vmatmul.f32.vlgmr.msrb.gmra.mxu1 %v1586_v20 }
 0x533   :  { %1809 = vmatpush.msra.mxu2 %v5375_v53  ;;  %1829 = vmatpush.msra.mxu3 %v5378_v8  ;;  %v8202_v53 = vld [vmem:[#allocation16_spill] sm:$0xff]  ;;  %v8203_v8 = vld [vmem:[#allocation19_spill] sm:$0xff] }
 0x534   :  { %1849 = vmatpush.msra.mxu0 %v5381_v56  ;;  %1869 = vmatpush.msrb.mxu1 %v5384_v1  ;;  %v8204_v56 = vld [vmem:[#allocation22_spill] sm:$0xff]  ;;  %v8205_v1 = vld [vmem:[#allocation17_spill] sm:$0xff] }
 0x535   :  { %1810 = vmatpush.msra.mxu2 %v5387_v59  ;;  %1830 = vmatpush.msra.mxu3 %v5390_v50  ;;  %v8206_v59 = vld [vmem:[#allocation18_spill] sm:$0xff]  ;;  %v8207_v50 = vld [vmem:[#allocation23_spill] sm:$0xff] }
 0x536   :  { %1850 = vmatpush.msra.mxu0 %v5393_v58  ;;  %1870 = vmatpush.msrb.mxu1 %v5396_v4  ;;  %v8208_v58 = vld [vmem:[#allocation25_spill] sm:$0xff]  ;;  %v8209_v4 = vld [vmem:[#allocation20_spill] sm:$0xff] }
 0x537   :  { %1811 = vmatpush.msra.mxu2 %v5399_v3  ;;  %1831 = vmatpush.msra.mxu3 %v5402_v61  ;;  %v8210_v3 = vld [vmem:[#allocation21_spill] sm:$0xff]  ;;  %v8211_v61 = vld [vmem:[#allocation26_spill] sm:$0xff] }
 0x538   :  { %1851 = vmatpush.msra.mxu0 %v5405_v52  ;;  %1871 = vmatpush.msrb.mxu1 %v5408_v5  ;;  %v8212_v52 = vld [vmem:[#allocation27_spill] sm:$0xff]  ;;  %v8213_v5 = vld [vmem:[#allocation29_spill] sm:$0xff] }
 0x539   :  { %1812 = vmatpush.msra.mxu2 %v5411_v62  ;;  %1832 = vmatpush.msra.mxu3 %v5414_v2  ;;  %v8214_v62 = vld [vmem:[#allocation30_spill] sm:$0xff]  ;;  %v8215_v2 = vld [vmem:[#allocation31_spill] sm:$0xff] }
 0x53a   :  { %1852 = vmatpush.msra.mxu0 %v5417_v63  ;;  %1872 = vmatpush.msrb.mxu1 %v5420_v54  ;;  %v8216_v63 = vld [vmem:[#allocation33_spill] sm:$0xff]  ;;  %v8217_v54 = vld [vmem:[#allocation35_spill] sm:$0xff] }
 0x53b   :  { %1813 = vmatpush.msra.mxu2 %v5423_v57  ;;  %1833 = vmatpush.msra.mxu3 %v5426_v55  ;;  %v8218_v57 = vld [vmem:[#allocation36_spill] sm:$0xff]  ;;  %v8219_v55 = vld [vmem:[#allocation37_spill] sm:$0xff] }
 0x53c   :  { %1853 = vmatpush.msra.mxu0 %v5429_v48  ;;  %1873 = vmatpush.msrb.mxu1 %v5432_v34  ;;  %v8220_v48 = vld [vmem:[#allocation38_spill] sm:$0xff]  ;;  %v8221_v34 = vld [vmem:[#allocation39_spill] sm:$0xff] }
 0x53d   :  { %1814 = vmatpush.msra.mxu2 %v8110_v37  ;;  %1834 = vmatpush.msra.mxu3 %v8111_v33  ;;  %v8227_v37 = vld [vmem:[#allocation44_spill] sm:$0xff]  ;;  %v8228_v33 = vld [vmem:[#allocation73_spill] sm:$0xff] }
 0x53e   :  { %1854 = vmatpush.msra.mxu0 %v8112_v41  ;;  %1874 = vmatpush.msrb.mxu1 %v5444_v39  ;;  %v8225_v39 = vld [vmem:[#allocation43_spill] sm:$0xff]  ;;  %v1673_v41 = vadd.f32 %v8228_v33, %v8227_v37 }
 0x53f   :  { %1815 = vmatpush.msra.mxu2 %v8113_v42  ;;  %1835 = vmatpush.msra.mxu3 %v8114_v44 }
 0x540   :  { %1855 = vmatpush.msra.mxu0 %v5453_v31  ;;  %1875 = vmatpush.msrb.mxu1 %v5540_v38  ;;  %v8222_v31 = vld [vmem:[#allocation40_spill] sm:$0xff] }
 0x541   :  { %1816 = vmatpush.msra.mxu2 %v5457_v36  ;;  %1836 = vmatpush.msra.mxu3 %v5460_v32  ;;  %v8223_v36 = vld [vmem:[#allocation41_spill] sm:$0xff]  ;;  %v8224_v32 = vld [vmem:[#allocation42_spill] sm:$0xff] }
 0x542   :  { %1856 = vmatpush.msra.mxu0 %v5545_v45  ;;  %1876 = vmatpush.msrb.mxu1 %v5548_v47 }
 0x543   :  { %1817 = vmatpush.msra.mxu2 %v5465_v46  ;;  %1837 = vmatpush.msra.mxu3 %v5468_v60  ;;  %v8226_v46 = vld [vmem:[#allocation72_spill] sm:$0xff] }
 0x544   :  { %1857 = vmatpush.msra.mxu0 %v5553_v43  ;;  %1877 = vmatpush.msrb.mxu1 %v5556_v51  ;;  %v1672_v60 = vadd.f32 %v8226_v46, %v8225_v39 }
 0x545   :  { %1818 = vmatpush.msra.mxu2 %v5559_v6  ;;  %1838 = vmatpush.msra.mxu3 %v5562_v7 }
 0x546   :  { %1858 = vmatpush.msra.mxu0 %v5565_v9  ;;  %1878 = vmatpush.msrb.mxu1 %v5568_v10 }
 0x547   :  { %1819 = vmatpush.msra.mxu2 %v5571_v11  ;;  %1839 = vmatpush.msra.mxu3 %v8202_v53 }
 0x548   :  { %1859 = vmatpush.msra.mxu0 %v8203_v8  ;;  %1879 = vmatpush.msrb.mxu1 %v8204_v56 }
 0x549   :  { %1820 = vmatpush.msra.mxu2 %v8205_v1  ;;  %1840 = vmatpush.msra.mxu3 %v8206_v59 }
 0x54a   :  { %1860 = vmatpush.msra.mxu0 %v8207_v50  ;;  %1880 = vmatpush.msrb.mxu1 %v8208_v58 }
 0x54b   :  { %1821 = vmatpush.msra.mxu2 %v8209_v4  ;;  %1841 = vmatpush.msra.mxu3 %v8210_v3 }
 0x54c   :  { %1861 = vmatpush.msra.mxu0 %v8211_v61  ;;  %1881 = vmatpush.msrb.mxu1 %v8212_v52 }
 0x54d   :  { %1822 = vmatpush.msra.mxu2 %v8213_v5  ;;  %1842 = vmatpush.msra.mxu3 %v8214_v62 }
 0x54e   :  { %1862 = vmatpush.msra.mxu0 %v8215_v2  ;;  %1882 = vmatpush.msrb.mxu1 %v8216_v63 }
 0x54f   :  { %1823 = vmatpush.msra.mxu2 %v8217_v54  ;;  %1843 = vmatpush.msra.mxu3 %v8218_v57 }
 0x550   :  { %1863 = vmatpush.msra.mxu0 %v8219_v55  ;;  %1883 = vmatpush.msrb.mxu1 %v8220_v48 }
 0x551   :  { %1824 = vmatpush.msra.mxu2 %v8221_v34  ;;  %1844 = vmatpush.msra.mxu3 %v8222_v31 }
 0x552   :  { %1864 = vmatpush.msra.mxu0 %v8223_v36  ;;  %1884 = vmatpush.msrb.mxu1 %v8224_v32 }
 0x5af   :  { %v1644_v22 = vpop.f32.mrf.mxu0  ;;  %v1664_v23 = vpop.f32.mrf.mxu1 }
 0x5b0   :  { %v1678_v14 = vadd.f32 %v1674_v28, %v1644_v22  ;;  %v1679_v29 = vadd.f32 %v1675_v26, %v1664_v23  ;;  %v5883_v22 = vld [vmem:[#allocation8 + $0x438] sm:$0xff]  ;;  %v5886_v23 = vld [vmem:[#allocation8 + $0x440] sm:$0xff]  ;;  %v5895_v28 = vld [vmem:[#allocation8 + $0x3f0] sm:$0xff] }
 0x5b1   :  { %v5901_v26 = vld [vmem:[#allocation8 + $0x400] sm:$0xff] }
 0x5b2   :  { %v1689_v13 = vmul.f32 0.5, %v1679_v29  ;;  %v5913_v29 = vld [vmem:[#allocation8 + $0x3b8] sm:$0xff] }
 0x5b4   :  { %v1604_v42 = vpop.f32.mrf.mxu2  ;;  %v1624_v44 = vpop.f32.mrf.mxu3 }
 0x5b5   :  { %v1676_v19 = vadd.f32 %v1672_v60, %v1604_v42  ;;  %v1677_v21 = vadd.f32 %v1673_v41, %v1624_v44 }
 0x5b7   :  { %v1680_v15 = vmul.f32 0.5, %v1676_v19  ;;  %v1684_v17 = vmul.f32 0.5, %v1677_v21 }
 0x5b9   :  { %4112 = vtanh.f32 %v1680_v15  ;;  %v5904_v15 = vld [vmem:[#allocation8 + $0x408] sm:$0xff] }
 0x5ba   :  { %4114 = vtanh.f32 %v1684_v17  ;;  %v5907_v17 = vld [vmem:[#allocation8 + $0x3a8] sm:$0xff] }
 0x5bb   :  { %4116 = vtanh.f32 %v1678_v14  ;;  %v5910_v14 = vld [vmem:[#allocation8 + $0x3b0] sm:$0xff] }
 0x5bc   :  { %4118 = vtanh.f32 %v1689_v13  ;;  %v5916_v13 = vld [vmem:[#allocation8 + $0x3c0] sm:$0xff] }
 0x5bf   :  { %v4113_v12 = vpop.eup %4112 }
 0x5c0   :  { %v4115_v35 = vpop.eup %4114  ;;  %v1682_v30 = vmul.f32 0.5, %v4113_v12  ;;  %v5919_v12 = vld [vmem:[#allocation8 + $0x360] sm:$0xff] }
 0x5c1   :  { %v1686_v18 = vmul.f32 0.5, %v4115_v35  ;;  %v4117_v16 = vpop.eup %4116  ;;  %v5922_v35 = vld [vmem:[#allocation8 + $0x368] sm:$0xff] }
 0x5c2   :  { %v1683_v40 = vadd.f32 0.5, %v1682_v30  ;;  %v4119_v33 = vpop.eup %4118  ;;  %v5925_v30 = vld [vmem:[#allocation8 + $0x370] sm:$0xff] }
 0x5c3   :  { %v1687_v20 = vadd.f32 0.5, %v1686_v18  ;;  %v1691_v42 = vmul.f32 0.5, %v4119_v33  ;;  %v5928_v18 = vld [vmem:[#allocation8 + $0x378] sm:$0xff] }
 0x5c4   :  { %v1694_v46 = vmul.f32 %v4117_v16, %v1683_v40  ;;  %v5931_v40 = vld [vmem:[#allocation8 + $0x318] sm:$0xff]  ;;  %v5934_v16 = vld [vmem:[#allocation8 + $0x320] sm:$0xff] }
 0x5c5   :  { %v1693_v60 = vmul.f32 %v1687_v20, %v5804_v25  ;;  %v1692_v44 = vadd.f32 0.5, %v1691_v42  ;;  %v5889_v25 = vld [vmem:[#allocation8 + $0x448] sm:$0xff]  ;;  %v5946_v33 = vld [vmem:[#allocation8 + $0x2d8] sm:$0xff]  ;;  %v5949_v42 = vld [vmem:[#allocation8 + $0x2e0] sm:$0xff] }
 0x5c6   :  { %v5937_v20 = vld [vmem:[#allocation8 + $0x328] sm:$0xff]  ;;  %8233 = vst [vmem:[#allocation53_spill] sm:$0xff] %v5946_v33 }
 0x5c7   :  { %v5880_v41 = vadd.f32 %v1694_v46, %v1693_v60  ;;  %v5940_v46 = vld [vmem:[#allocation8 + $0x330] sm:$0xff]  ;;  %8234 = vst [vmem:[#allocation51_spill] sm:$0xff] %v5949_v42 }
 0x5c8   :  { %v5943_v60 = vld [vmem:[#allocation8 + $0x2d0] sm:$0xff] }
 0x5c9   :  { %4120 = vtanh.f32 %v5880_v41  ;;  %8232 = vst [vmem:[#allocation52_spill] sm:$0xff] %v5943_v60 }
 0x5cf   :  { %v4121_v19 = vpop.eup %4120 }
 0x5d0   :  { %v1697_v21 = vmul.f32 %v4121_v19, %v1692_v44  ;;  %v5952_v44 = vld [vmem:[#allocation8 + $0x2e8] sm:$0xff] }
 0x5d1   :  { %v5955_v19 = vld [vmem:[#allocation8 + $0x288] sm:$0xff] }
 0x5d2   :  { %1714 = vmatmul.f32.vlgmr.msrb.gmra.mxu2 %v1697_v21  ;;  %1734 = vmatmul.f32.vlgmr.msrb.gmra.mxu3 %v1697_v21  ;;  %8235 = vst [vmem:[#allocation54_spill] sm:$0xff] %v5955_v19 }
 0x5d3   :  { %1754 = vmatmul.f32.vlgmr.msrb.gmra.mxu0 %v1697_v21  ;;  %1774 = vmatmul.f32.vlgmr.msra.gmra.mxu1 %v1697_v21  ;;  %v5958_v21 = vld [vmem:[#allocation8 + $0x290] sm:$0xff] }
 0x5d4   :  { %1920 = vmatpush.msrb.mxu2 %v5883_v22  ;;  %1940 = vmatpush.msrb.mxu3 %v5886_v23  ;;  %8236 = vst [vmem:[#allocation56_spill] sm:$0xff] %v5958_v21 }
 0x5d5   :  { %1960 = vmatpush.msrb.mxu0 %v5889_v25  ;;  %1980 = vmatpush.msra.mxu1 %v5892_v24 }
 0x5d6   :  { %1921 = vmatpush.msrb.mxu2 %v5895_v28  ;;  %1941 = vmatpush.msrb.mxu3 %v5898_v0 }
 0x5d7   :  { %1961 = vmatpush.msrb.mxu0 %v5901_v26  ;;  %1981 = vmatpush.msra.mxu1 %v5904_v15 }
 0x5d8   :  { %1922 = vmatpush.msrb.mxu2 %v5907_v17  ;;  %1942 = vmatpush.msrb.mxu3 %v5910_v14 }
 0x5d9   :  { %1962 = vmatpush.msrb.mxu0 %v5913_v29  ;;  %1982 = vmatpush.msra.mxu1 %v5916_v13 }
 0x5da   :  { %1923 = vmatpush.msrb.mxu2 %v5919_v12  ;;  %1943 = vmatpush.msrb.mxu3 %v5922_v35 }
 0x5db   :  { %1963 = vmatpush.msrb.mxu0 %v5925_v30  ;;  %1983 = vmatpush.msra.mxu1 %v5928_v18 }
 0x5dc   :  { %1924 = vmatpush.msrb.mxu2 %v5931_v40  ;;  %1944 = vmatpush.msrb.mxu3 %v5934_v16 }
 0x5dd   :  { %1964 = vmatpush.msrb.mxu0 %v5937_v20  ;;  %1984 = vmatpush.msra.mxu1 %v5940_v46 }
 0x5de   :  { %1925 = vmatpush.msrb.mxu2 %v5943_v60  ;;  %1945 = vmatpush.msrb.mxu3 %v5946_v33  ;;  %v5961_v60 = vld [vmem:[#allocation8 + $0x298] sm:$0xff]  ;;  %v5965_v33 = vld [vmem:[#allocation8 + $0x240] sm:$0xff] }
 0x5df   :  { %1965 = vmatpush.msrb.mxu0 %v5949_v42  ;;  %1985 = vmatpush.msra.mxu1 %v5952_v44  ;;  %v5968_v42 = vld [vmem:[#allocation8 + $0x248] sm:$0xff] }
 0x5e0   :  { %1926 = vmatpush.msrb.mxu2 %v5955_v19  ;;  %1946 = vmatpush.msrb.mxu3 %v5958_v21  ;;  %v5973_v19 = vld [vmem:[#allocation8 + $0x1f8] sm:$0xff]  ;;  %v5976_v21 = vld [vmem:[#allocation8 + $0x200] sm:$0xff] }
 0x5e1   :  { %1966 = vmatpush.msrb.mxu0 %v5961_v60  ;;  %1986 = vmatpush.msra.mxu1 %v5540_v38  ;;  %v8237_v38 = vld [vmem:[#allocation76_spill] sm:$0xff] }
 0x5e2   :  { %1927 = vmatpush.msrb.mxu2 %v5965_v33  ;;  %1947 = vmatpush.msrb.mxu3 %v5968_v42 }
 0x5e3   :  { %1967 = vmatpush.msrb.mxu0 %v5545_v45  ;;  %1987 = vmatpush.msra.mxu1 %v5548_v47  ;;  %v1783_v45 = vadd.f32 %v8237_v38, %v8225_v39  ;;  %v8238_v47 = vld [vmem:[#allocation77_spill] sm:$0xff] }
 0x5e4   :  { %1928 = vmatpush.msrb.mxu2 %v5973_v19  ;;  %1948 = vmatpush.msrb.mxu3 %v5976_v21 }
 0x5e5   :  { %1968 = vmatpush.msrb.mxu0 %v5553_v43  ;;  %1988 = vmatpush.msra.mxu1 %v5556_v51  ;;  %v1784_v43 = vadd.f32 %v8238_v47, %v8227_v37  ;;  %v8243_v47 = vld [vmem:[#allocation51_spill] sm:$0xff] }
 0x5e6   :  { %1929 = vmatpush.msrb.mxu2 %v5559_v6  ;;  %1949 = vmatpush.msrb.mxu3 %v5562_v7 }
 0x5e7   :  { %1969 = vmatpush.msrb.mxu0 %v5565_v9  ;;  %1989 = vmatpush.msra.mxu1 %v5568_v10 }
 0x5e8   :  { %1930 = vmatpush.msrb.mxu2 %v5571_v11  ;;  %1950 = vmatpush.msrb.mxu3 %v8202_v53  ;;  %v8239_v53 = vld [vmem:[#allocation78_spill] sm:$0xff] }
 0x5e9   :  { %1970 = vmatpush.msrb.mxu0 %v8203_v8  ;;  %1990 = vmatpush.msra.mxu1 %v8204_v56  ;;  %v1785_v8 = vadd.f32 %v8239_v53, %v8229_v27  ;;  %v8240_v56 = vld [vmem:[#allocation79_spill] sm:$0xff] }
 0x5ea   :  { %1931 = vmatpush.msrb.mxu2 %v8205_v1  ;;  %1951 = vmatpush.msrb.mxu3 %v8206_v59  ;;  %v1786_v1 = vadd.f32 %v8240_v56, %v8068_v49  ;;  %v6067_v53 = vld [vmem:[#allocation8 + $0x1b0] sm:$0xff]  ;;  %v6073_v56 = vld [vmem:[#allocation8 + $0x1c0] sm:$0xff] }
 0x5eb   :  { %1971 = vmatpush.msrb.mxu0 %v8207_v50  ;;  %1991 = vmatpush.msra.mxu1 %v8208_v58 }
 0x5ec   :  { %1932 = vmatpush.msrb.mxu2 %v8209_v4  ;;  %1952 = vmatpush.msrb.mxu3 %v8210_v3 }
 0x5ed   :  { %1972 = vmatpush.msrb.mxu0 %v8211_v61  ;;  %1992 = vmatpush.msra.mxu1 %v8212_v52 }
 0x5ee   :  { %1933 = vmatpush.msrb.mxu2 %v8213_v5  ;;  %1953 = vmatpush.msrb.mxu3 %v8214_v62 }
 0x5ef   :  { %1973 = vmatpush.msrb.mxu0 %v8215_v2  ;;  %1993 = vmatpush.msra.mxu1 %v8216_v63 }
 0x5f0   :  { %1934 = vmatpush.msrb.mxu2 %v8217_v54  ;;  %1954 = vmatpush.msrb.mxu3 %v8218_v57 }
 0x5f1   :  { %1974 = vmatpush.msrb.mxu0 %v8219_v55  ;;  %1994 = vmatpush.msra.mxu1 %v8220_v48 }
 0x5f2   :  { %1935 = vmatpush.msrb.mxu2 %v8221_v34  ;;  %1955 = vmatpush.msrb.mxu3 %v8222_v31 }
 0x5f3   :  { %1975 = vmatpush.msrb.mxu0 %v8223_v36  ;;  %1995 = vmatpush.msra.mxu1 %v8224_v32 }
 0x650   :  { %v1755_v10 = vpop.f32.mrf.mxu0  ;;  %v1775_v11 = vpop.f32.mrf.mxu1 }
 0x651   :  { %v1789_v58 = vadd.f32 %v1785_v8, %v1755_v10  ;;  %v1790_v4 = vadd.f32 %v1786_v1, %v1775_v11  ;;  %v6061_v10 = vld [vmem:[#allocation8 + $0x208] sm:$0xff]  ;;  %v6064_v11 = vld [vmem:[#allocation8 + $0x210] sm:$0xff]  ;;  %v6070_v8 = vld [vmem:[#allocation8 + $0x1b8] sm:$0xff] }
 0x652   :  { %v6076_v1 = vld [vmem:[#allocation8 + $0x1c8] sm:$0xff] }
 0x653   :  { %v1800_v3 = vmul.f32 0.5, %v1790_v4  ;;  %v6088_v4 = vld [vmem:[#allocation8 + $0x180] sm:$0xff] }
 0x654   :  { %8248 = vst [vmem:[#allocation59_spill] sm:$0xff] %v6088_v4 }
 0x655   :  { %v1715_v51 = vpop.f32.mrf.mxu2  ;;  %v1735_v6 = vpop.f32.mrf.mxu3 }
 0x656   :  { %v1787_v7 = vadd.f32 %v1783_v45, %v1715_v51  ;;  %v1788_v9 = vadd.f32 %v1784_v43, %v1735_v6  ;;  %v8242_v45 = vld [vmem:[#allocation53_spill] sm:$0xff]  ;;  %v8244_v43 = vld [vmem:[#allocation54_spill] sm:$0xff]  ;;  %v8245_v51 = vld [vmem:[#allocation56_spill] sm:$0xff] }
 0x657   :  { %v6048_v6 = vld [vmem:[#allocation8 + $0x2a0] sm:$0xff] }
 0x658   :  { %v1791_v59 = vmul.f32 0.5, %v1787_v7  ;;  %v1795_v50 = vmul.f32 0.5, %v1788_v9  ;;  %v6053_v7 = vld [vmem:[#allocation8 + $0x250] sm:$0xff]  ;;  %v6056_v9 = vld [vmem:[#allocation8 + $0x258] sm:$0xff] }
 0x65a   :  { %4122 = vtanh.f32 %v1791_v59  ;;  %v6079_v59 = vld [vmem:[#allocation8 + $0x168] sm:$0xff] }
 0x65b   :  { %4124 = vtanh.f32 %v1795_v50  ;;  %v6082_v50 = vld [vmem:[#allocation8 + $0x170] sm:$0xff] }
 0x65c   :  { %4126 = vtanh.f32 %v1789_v58  ;;  %8246 = vst [vmem:[#allocation58_spill] sm:$0xff] %v6082_v50  ;;  %v6085_v58 = vld [vmem:[#allocation8 + $0x178] sm:$0xff] }
 0x65d   :  { %4128 = vtanh.f32 %v1800_v3  ;;  %8247 = vst [vmem:[#allocation57_spill] sm:$0xff] %v6085_v58  ;;  %v6091_v3 = vld [vmem:[#allocation8 + $0x120] sm:$0xff] }
 0x65e   :  { %8249 = vst [vmem:[#allocation48_spill] sm:$0xff] %v6091_v3 }
 0x660   :  { %v4123_v61 = vpop.eup %4122 }
 0x661   :  { %v4125_v52 = vpop.eup %4124  ;;  %v1793_v5 = vmul.f32 0.5, %v4123_v61  ;;  %v6094_v61 = vld [vmem:[#allocation8 + $0x128] sm:$0xff] }
 0x662   :  { %v1797_v62 = vmul.f32 0.5, %v4125_v52  ;;  %v4127_v63 = vpop.eup %4126  ;;  %8250 = vst [vmem:[#allocation49_spill] sm:$0xff] %v6094_v61  ;;  %v6097_v52 = vld [vmem:[#allocation8 + $0x130] sm:$0xff] }
 0x663   :  { %v1794_v2 = vadd.f32 0.5, %v1793_v5  ;;  %v4129_v48 = vpop.eup %4128  ;;  %8251 = vst [vmem:[#allocation47_spill] sm:$0xff] %v6097_v52  ;;  %v6100_v5 = vld [vmem:[#allocation8 + $0x138] sm:$0xff] }
 0x664   :  { %v1798_v54 = vadd.f32 0.5, %v1797_v62  ;;  %v1802_v31 = vmul.f32 0.5, %v4129_v48  ;;  %8252 = vst [vmem:[#allocation50_spill] sm:$0xff] %v6100_v5  ;;  %v6103_v62 = vld [vmem:[#allocation8 + $0xd8] sm:$0xff]  ;;  %v6121_v48 = vld [vmem:[#allocation8 + $0xa0] sm:$0xff] }
 0x665   :  { %v1805_v57 = vmul.f32 %v4127_v63, %v1794_v2  ;;  %8253 = vst [vmem:[#allocation55_spill] sm:$0xff] %v6103_v62  ;;  %v6106_v2 = vld [vmem:[#allocation8 + $0xe0] sm:$0xff]  ;;  %v6109_v63 = vld [vmem:[#allocation8 + $0xe8] sm:$0xff] }
 0x666   :  { %v1804_v55 = vmul.f32 %v1798_v54, %v5880_v41  ;;  %v1803_v36 = vadd.f32 0.5, %v1802_v31  ;;  %v8241_v41 = vld [vmem:[#allocation52_spill] sm:$0xff]  ;;  %8254 = vst [vmem:[#allocation60_spill] sm:$0xff] %v6106_v2  ;;  %v6112_v54 = vld [vmem:[#allocation8 + $0xf0] sm:$0xff]  ;;  %v6124_v31 = vld [vmem:[#allocation8 + $0xa8] sm:$0xff] }
 0x667   :  { %8255 = vst [vmem:[#allocation61_spill] sm:$0xff] %v6109_v63 }
 0x668   :  { %v6018_v34 = vadd.f32 %v1805_v57, %v1804_v55  ;;  %8256 = vst [vmem:[#allocation62_spill] sm:$0xff] %v6112_v54  ;;  %v6115_v57 = vld [vmem:[#allocation8 + $0x90] sm:$0xff]  ;;  %v6118_v55 = vld [vmem:[#allocation8 + $0x98] sm:$0xff] }
 0x669   :  { %8257 = vst [vmem:[#allocation63_spill] sm:$0xff] %v6115_v57 }
 0x66a   :  { %4130 = vtanh.f32 %v6018_v34  ;;  %8258 = vst [vmem:[#allocation64_spill] sm:$0xff] %v6118_v55 }
 0x66b   :  { %8259 = vst [vmem:[#allocation65_spill] sm:$0xff] %v6121_v48 }
 0x66c   :  { %8260 = vst [vmem:[#allocation66_spill] sm:$0xff] %v6124_v31 }
 0x670   :  { %v4131_v32 = vpop.eup %4130 }
 0x671   :  { %v1808_v38 = vmul.f32 %v4131_v32, %v1803_v36  ;;  %v6127_v36 = vld [vmem:[#allocation8 + $0x48] sm:$0xff]  ;;  %v6130_v32 = vld [vmem:[#allocation8 + $0x50] sm:$0xff] }
 0x672   :  { %8261 = vst [vmem:[#allocation67_spill] sm:$0xff] %v6127_v36 }
 0x673   :  { %1825 = vmatmul.f32.vlgmr.msra.gmra.mxu2 %v1808_v38  ;;  %1845 = vmatmul.f32.vlgmr.msra.gmra.mxu3 %v1808_v38  ;;  %8262 = vst [vmem:[#allocation68_spill] sm:$0xff] %v6130_v32 }
 0x674   :  { %1865 = vmatmul.f32.vlgmr.msra.gmra.mxu0 %v1808_v38  ;;  %1885 = vmatmul.f32.vlgmr.msrb.gmra.mxu1 %v1808_v38  ;;  %v6133_v38 = vld [vmem:[#allocation8 + $0x58] sm:$0xff] }
 0x675   :  { %2031 = vmatpush.msra.mxu2 %v5883_v22  ;;  %2051 = vmatpush.msra.mxu3 %v5886_v23  ;;  %8263 = vst [vmem:[#allocation69_spill] sm:$0xff] %v6133_v38 }
 0x676   :  { %2071 = vmatpush.msra.mxu0 %v5889_v25  ;;  %2091 = vmatpush.msrb.mxu1 %v5892_v24 }
 0x677   :  { %2032 = vmatpush.msra.mxu2 %v5895_v28  ;;  %2052 = vmatpush.msra.mxu3 %v5898_v0 }
 0x678   :  { %2072 = vmatpush.msra.mxu0 %v5901_v26  ;;  %2092 = vmatpush.msrb.mxu1 %v5904_v15 }
 0x679   :  { %2033 = vmatpush.msra.mxu2 %v5907_v17  ;;  %2053 = vmatpush.msra.mxu3 %v5910_v14 }
 0x67a   :  { %2073 = vmatpush.msra.mxu0 %v5913_v29  ;;  %2093 = vmatpush.msrb.mxu1 %v5916_v13 }
 0x67b   :  { %2034 = vmatpush.msra.mxu2 %v5919_v12  ;;  %2054 = vmatpush.msra.mxu3 %v5922_v35 }
 0x67c   :  { %2074 = vmatpush.msra.mxu0 %v5925_v30  ;;  %2094 = vmatpush.msrb.mxu1 %v5928_v18 }
 0x67d   :  { %2035 = vmatpush.msra.mxu2 %v5931_v40  ;;  %2055 = vmatpush.msra.mxu3 %v5934_v16 }
 0x67e   :  { %2075 = vmatpush.msra.mxu0 %v5937_v20  ;;  %2095 = vmatpush.msrb.mxu1 %v5940_v46 }
 0x67f   :  { %2036 = vmatpush.msra.mxu2 %v8241_v41  ;;  %2056 = vmatpush.msra.mxu3 %v8242_v45 }
 0x680   :  { %2076 = vmatpush.msra.mxu0 %v8243_v47  ;;  %2096 = vmatpush.msrb.mxu1 %v5952_v44 }
 0x681   :  { %2037 = vmatpush.msra.mxu2 %v8244_v43  ;;  %2057 = vmatpush.msra.mxu3 %v8245_v51 }
 0x682   :  { %2077 = vmatpush.msra.mxu0 %v5961_v60  ;;  %2097 = vmatpush.msrb.mxu1 %v6048_v6 }
 0x683   :  { %2038 = vmatpush.msra.mxu2 %v5965_v33  ;;  %2058 = vmatpush.msra.mxu3 %v5968_v42 }
 0x684   :  { %2078 = vmatpush.msra.mxu0 %v6053_v7  ;;  %2098 = vmatpush.msrb.mxu1 %v6056_v9 }
 0x685   :  { %2039 = vmatpush.msra.mxu2 %v5973_v19  ;;  %2059 = vmatpush.msra.mxu3 %v5976_v21 }
 0x686   :  { %2079 = vmatpush.msra.mxu0 %v6061_v10  ;;  %2099 = vmatpush.msrb.mxu1 %v6064_v11 }
 0x687   :  { %2040 = vmatpush.msra.mxu2 %v6067_v53  ;;  %2060 = vmatpush.msra.mxu3 %v6070_v8 }
 0x688   :  { %2080 = vmatpush.msra.mxu0 %v6073_v56  ;;  %2100 = vmatpush.msrb.mxu1 %v6076_v1 }
 0x689   :  { %2041 = vmatpush.msra.mxu2 %v6079_v59  ;;  %2061 = vmatpush.msra.mxu3 %v6082_v50 }
 0x68a   :  { %2081 = vmatpush.msra.mxu0 %v6085_v58  ;;  %2101 = vmatpush.msrb.mxu1 %v6088_v4 }
 0x68b   :  { %2042 = vmatpush.msra.mxu2 %v6091_v3  ;;  %2062 = vmatpush.msra.mxu3 %v6094_v61 }
 0x68c   :  { %2082 = vmatpush.msra.mxu0 %v6097_v52  ;;  %2102 = vmatpush.msrb.mxu1 %v6100_v5  ;;  %v8271_v52 = vld [vmem:[#allocation82_spill] sm:$0xff] }
 0x68d   :  { %2043 = vmatpush.msra.mxu2 %v6103_v62  ;;  %2063 = vmatpush.msra.mxu3 %v6106_v2  ;;  %v1896_v61 = vadd.f32 %v8271_v52, %v8229_v27 }
 0x68e   :  { %2083 = vmatpush.msra.mxu0 %v6109_v63  ;;  %2103 = vmatpush.msrb.mxu1 %v6112_v54 }
 0x68f   :  { %2044 = vmatpush.msra.mxu2 %v6115_v57  ;;  %2064 = vmatpush.msra.mxu3 %v6118_v55  ;;  %v6136_v55 = vld [vmem:[#allocation8 + $0x60] sm:$0xff] }
 0x690   :  { %2084 = vmatpush.msra.mxu0 %v6121_v48  ;;  %2104 = vmatpush.msrb.mxu1 %v6124_v31  ;;  %8264 = vst [vmem:[#allocation70_spill] sm:$0xff] %v6136_v55  ;;  %v6139_v48 = vld [vmem:[#allocation8] sm:$0xff]  ;;  %v6142_v31 = vld [vmem:[#allocation8 + $0x8] sm:$0xff] }
 0x691   :  { %2045 = vmatpush.msra.mxu2 %v6127_v36  ;;  %2065 = vmatpush.msra.mxu3 %v6130_v32  ;;  %8265 = vst [vmem:[#allocation71_spill] sm:$0xff] %v6139_v48  ;;  %v6145_v36 = vld [vmem:[#allocation8 + $0x10] sm:$0xff]  ;;  %v6148_v32 = vld [vmem:[#allocation8 + $0x18] sm:$0xff] }
 0x692   :  { %2085 = vmatpush.msra.mxu0 %v6133_v38  ;;  %2105 = vmatpush.msrb.mxu1 %v6136_v55  ;;  %8266 = vst [vmem:[#allocation16_spill] sm:$0xff] %v6142_v31  ;;  %v8269_v38 = vld [vmem:[#allocation80_spill] sm:$0xff]  ;;  %v8270_v55 = vld [vmem:[#allocation81_spill] sm:$0xff] }
 0x693   :  { %2046 = vmatpush.msra.mxu2 %v6139_v48  ;;  %2066 = vmatpush.msra.mxu3 %v6142_v31  ;;  %8267 = vst [vmem:[#allocation19_spill] sm:$0xff] %v6145_v36  ;;  %v1894_v57 = vadd.f32 %v8269_v38, %v8225_v39  ;;  %v1895_v54 = vadd.f32 %v8270_v55, %v8227_v37 }
 0x694   :  { %2086 = vmatpush.msra.mxu0 %v6145_v36  ;;  %8268 = vst [vmem:[#allocation22_spill] sm:$0xff] %v6148_v32  ;;  %2106 = vmatpush.msrb.mxu1 %v6148_v32  ;;  %v8272_v36 = vld [vmem:[#allocation83_spill] sm:$0xff] }
 0x695   :  { %v1897_v3 = vadd.f32 %v8272_v36, %v8068_v49 }
 0x6f1   :  { %v1866_v5 = vpop.f32.mrf.mxu0  ;;  %v1886_v31 = vpop.f32.mrf.mxu1 }
 0x6f2   :  { %v1900_v58 = vadd.f32 %v1896_v61, %v1866_v5  ;;  %v1901_v50 = vadd.f32 %v1897_v3, %v1886_v31 }
 0x6f4   :  { %v1911_v55 = vmul.f32 0.5, %v1901_v50 }
 0x6f6   :  { %v1826_v63 = vpop.f32.mrf.mxu2  ;;  %v1846_v48 = vpop.f32.mrf.mxu3 }
 0x6f7   :  { %v1898_v2 = vadd.f32 %v1894_v57, %v1826_v63  ;;  %v1899_v62 = vadd.f32 %v1895_v54, %v1846_v48 }
 0x6f9   :  { %v1902_v4 = vmul.f32 0.5, %v1898_v2  ;;  %v1906_v32 = vmul.f32 0.5, %v1899_v62 }
 0x6fb   :  { %4132 = vtanh.f32 %v1902_v4 }
 0x6fc   :  { %4134 = vtanh.f32 %v1906_v32 }
 0x6fd   :  { %4136 = vtanh.f32 %v1900_v58 }
 0x6fe   :  { %4138 = vtanh.f32 %v1911_v55 }
 0x701   :  { %v4133_v38 = vpop.eup %4132 }
 0x702   :  { %v4135_v37 = vpop.eup %4134  ;;  %v1904_v63 = vmul.f32 0.5, %v4133_v38 }
 0x703   :  { %v1908_v54 = vmul.f32 0.5, %v4135_v37  ;;  %v4137_v48 = vpop.eup %4136  ;;  %v8274_v37 = vld [vmem:[#allocation57_spill] sm:$0xff] }
 0x704   :  { %v1905_v57 = vadd.f32 0.5, %v1904_v63  ;;  %v4139_v36 = vpop.eup %4138 }
 0x705   :  { %v1909_v39 = vadd.f32 0.5, %v1908_v54  ;;  %v1913_v4 = vmul.f32 0.5, %v4139_v36 }
 0x706   :  { %v1916_v52 = vmul.f32 %v4137_v48, %v1905_v57 }
 0x707   :  { %v1915_v27 = vmul.f32 %v1909_v39, %v6018_v34  ;;  %v1914_v3 = vadd.f32 0.5, %v1913_v4  ;;  %v8273_v39 = vld [vmem:[#allocation58_spill] sm:$0xff] }
 0x709   :  { %v6160_v2 = vadd.f32 %v1916_v52, %v1915_v27  ;;  %v8275_v27 = vld [vmem:[#allocation59_spill] sm:$0xff] }
 0x70b   :  { %4140 = vtanh.f32 %v6160_v2 }
 0x711   :  { %v4141_v58 = vpop.eup %4140 }
 0x712   :  { %v1919_v50 = vmul.f32 %v4141_v58, %v1914_v3  ;;  %v6239_v58 = vld [vmem:[#allocation8 + $0x458] sm:$0xff] }
 0x714   :  { %1936 = vmatmul.f32.vlgmr.msrb.gmra.mxu2 %v1919_v50  ;;  %1956 = vmatmul.f32.vlgmr.msrb.gmra.mxu3 %v1919_v50 }
 0x715   :  { %1976 = vmatmul.f32.vlgmr.msrb.gmra.mxu0 %v1919_v50  ;;  %1996 = vmatmul.f32.vlgmr.msra.gmra.mxu1 %v1919_v50  ;;  %v6242_v50 = vld [vmem:[#allocation8 + $0x410] sm:$0xff] }
 0x716   :  { %2142 = vmatpush.msrb.mxu2 %v5883_v22  ;;  %2162 = vmatpush.msrb.mxu3 %v5886_v23  ;;  %v8276_v22 = vld [vmem:[#allocation48_spill] sm:$0xff]  ;;  %v8277_v23 = vld [vmem:[#allocation49_spill] sm:$0xff] }
 0x717   :  { %2182 = vmatpush.msrb.mxu0 %v5889_v25  ;;  %2202 = vmatpush.msra.mxu1 %v5892_v24  ;;  %v8278_v25 = vld [vmem:[#allocation47_spill] sm:$0xff]  ;;  %v8279_v24 = vld [vmem:[#allocation50_spill] sm:$0xff] }
 0x718   :  { %2143 = vmatpush.msrb.mxu2 %v5895_v28  ;;  %2163 = vmatpush.msrb.mxu3 %v5898_v0  ;;  %v8280_v28 = vld [vmem:[#allocation55_spill] sm:$0xff]  ;;  %v8281_v0 = vld [vmem:[#allocation60_spill] sm:$0xff] }
 0x719   :  { %2183 = vmatpush.msrb.mxu0 %v5901_v26  ;;  %2203 = vmatpush.msra.mxu1 %v5904_v15  ;;  %v8282_v26 = vld [vmem:[#allocation61_spill] sm:$0xff]  ;;  %v8283_v15 = vld [vmem:[#allocation62_spill] sm:$0xff] }
 0x71a   :  { %2144 = vmatpush.msrb.mxu2 %v5907_v17  ;;  %2164 = vmatpush.msrb.mxu3 %v5910_v14  ;;  %v8284_v17 = vld [vmem:[#allocation63_spill] sm:$0xff]  ;;  %v8285_v14 = vld [vmem:[#allocation64_spill] sm:$0xff] }
 0x71b   :  { %2184 = vmatpush.msrb.mxu0 %v5913_v29  ;;  %2204 = vmatpush.msra.mxu1 %v5916_v13  ;;  %v8286_v29 = vld [vmem:[#allocation65_spill] sm:$0xff]  ;;  %v8287_v13 = vld [vmem:[#allocation66_spill] sm:$0xff] }
 0x71c   :  { %2145 = vmatpush.msrb.mxu2 %v5919_v12  ;;  %2165 = vmatpush.msrb.mxu3 %v5922_v35  ;;  %v8288_v12 = vld [vmem:[#allocation67_spill] sm:$0xff]  ;;  %v8289_v35 = vld [vmem:[#allocation68_spill] sm:$0xff] }
 0x71d   :  { %2185 = vmatpush.msrb.mxu0 %v5925_v30  ;;  %2205 = vmatpush.msra.mxu1 %v5928_v18  ;;  %v8290_v30 = vld [vmem:[#allocation69_spill] sm:$0xff]  ;;  %v8291_v18 = vld [vmem:[#allocation70_spill] sm:$0xff] }
 0x71e   :  { %2146 = vmatpush.msrb.mxu2 %v5931_v40  ;;  %2166 = vmatpush.msrb.mxu3 %v5934_v16  ;;  %v8292_v40 = vld [vmem:[#allocation71_spill] sm:$0xff]  ;;  %v8293_v16 = vld [vmem:[#allocation16_spill] sm:$0xff] }
 0x71f   :  { %2186 = vmatpush.msrb.mxu0 %v5937_v20  ;;  %2206 = vmatpush.msra.mxu1 %v5940_v46  ;;  %v8294_v20 = vld [vmem:[#allocation19_spill] sm:$0xff]  ;;  %v8295_v46 = vld [vmem:[#allocation22_spill] sm:$0xff] }
 0x720   :  { %2147 = vmatpush.msrb.mxu2 %v8241_v41  ;;  %2167 = vmatpush.msrb.mxu3 %v8242_v45 }
 0x721   :  { %2187 = vmatpush.msrb.mxu0 %v8243_v47  ;;  %2207 = vmatpush.msra.mxu1 %v5952_v44  ;;  %v8298_v44 = vld [vmem:[#allocation44_spill] sm:$0xff] }
 0x722   :  { %2148 = vmatpush.msrb.mxu2 %v8244_v43  ;;  %2168 = vmatpush.msrb.mxu3 %v8245_v51 }
 0x723   :  { %2188 = vmatpush.msrb.mxu0 %v5961_v60  ;;  %2208 = vmatpush.msra.mxu1 %v6048_v6  ;;  %v8296_v60 = vld [vmem:[#allocation43_spill] sm:$0xff]  ;;  %v8300_v6 = vld [vmem:[#allocation45_spill] sm:$0xff] }
 0x724   :  { %2149 = vmatpush.msrb.mxu2 %v5965_v33  ;;  %2169 = vmatpush.msrb.mxu3 %v5968_v42  ;;  %v8297_v33 = vld [vmem:[#allocation84_spill] sm:$0xff] }
 0x725   :  { %2189 = vmatpush.msrb.mxu0 %v6053_v7  ;;  %2209 = vmatpush.msra.mxu1 %v6056_v9  ;;  %v2005_v42 = vadd.f32 %v8297_v33, %v8296_v60  ;;  %v8301_v7 = vld [vmem:[#allocation86_spill] sm:$0xff]  ;;  %v6315_v33 = vld [vmem:[#allocation8 + $0x300] sm:$0xff] }
 0x726   :  { %2150 = vmatpush.msrb.mxu2 %v5973_v19  ;;  %2170 = vmatpush.msrb.mxu3 %v5976_v21  ;;  %v8299_v19 = vld [vmem:[#allocation85_spill] sm:$0xff]  ;;  %v2007_v9 = vadd.f32 %v8301_v7, %v8300_v6  ;;  %v6347_v7 = vld [vmem:[#allocation8 + $0xf8] sm:$0xff] }
 0x727   :  { %2190 = vmatpush.msrb.mxu0 %v6061_v10  ;;  %2210 = vmatpush.msra.mxu1 %v6064_v11  ;;  %v2006_v21 = vadd.f32 %v8299_v19, %v8298_v44  ;;  %v8302_v10 = vld [vmem:[#allocation87_spill] sm:$0xff]  ;;  %v6323_v19 = vld [vmem:[#allocation8 + $0x188] sm:$0xff] }
 0x728   :  { %2151 = vmatpush.msrb.mxu2 %v6067_v53  ;;  %2171 = vmatpush.msrb.mxu3 %v6070_v8  ;;  %v2008_v11 = vadd.f32 %v8302_v10, %v8068_v49  ;;  %v6351_v10 = vld [vmem:[#allocation8 + $0x228] sm:$0xff] }
 0x729   :  { %2191 = vmatpush.msrb.mxu0 %v6073_v56  ;;  %2211 = vmatpush.msra.mxu1 %v6076_v1 }
 0x72a   :  { %2152 = vmatpush.msrb.mxu2 %v6079_v59  ;;  %2172 = vmatpush.msrb.mxu3 %v8273_v39  ;;  %v6248_v39 = vld [vmem:[#allocation8 + $0x380] sm:$0xff] }
 0x72b   :  { %2192 = vmatpush.msrb.mxu0 %v8274_v37  ;;  %2212 = vmatpush.msra.mxu1 %v8275_v27  ;;  %v6251_v37 = vld [vmem:[#allocation8 + $0x338] sm:$0xff]  ;;  %v6253_v27 = vld [vmem:[#allocation8 + $0x460] sm:$0xff] }
 0x72c   :  { %2153 = vmatpush.msrb.mxu2 %v8276_v22  ;;  %2173 = vmatpush.msrb.mxu3 %v8277_v23  ;;  %v6255_v22 = vld [vmem:[#allocation8 + $0x468] sm:$0xff]  ;;  %v6259_v23 = vld [vmem:[#allocation8 + $0x470] sm:$0xff] }
 0x72d   :  { %2193 = vmatpush.msrb.mxu0 %v8278_v25  ;;  %2213 = vmatpush.msra.mxu1 %v8279_v24  ;;  %v6263_v25 = vld [vmem:[#allocation8 + $0x2f0] sm:$0xff]  ;;  %v6265_v24 = vld [vmem:[#allocation8 + $0x418] sm:$0xff] }
 0x72e   :  { %2154 = vmatpush.msrb.mxu2 %v8280_v28  ;;  %2174 = vmatpush.msrb.mxu3 %v8281_v0  ;;  %v6267_v28 = vld [vmem:[#allocation8 + $0x420] sm:$0xff]  ;;  %v6271_v0 = vld [vmem:[#allocation8 + $0x428] sm:$0xff] }
 0x72f   :  { %2194 = vmatpush.msrb.mxu0 %v8282_v26  ;;  %2214 = vmatpush.msra.mxu1 %v8283_v15  ;;  %v6275_v26 = vld [vmem:[#allocation8 + $0x2a8] sm:$0xff]  ;;  %v6277_v15 = vld [vmem:[#allocation8 + $0x3d0] sm:$0xff] }
 0x730   :  { %2155 = vmatpush.msrb.mxu2 %v8284_v17  ;;  %2175 = vmatpush.msrb.mxu3 %v8285_v14  ;;  %v6279_v17 = vld [vmem:[#allocation8 + $0x3d8] sm:$0xff]  ;;  %v6283_v14 = vld [vmem:[#allocation8 + $0x3e0] sm:$0xff] }
 0x731   :  { %2195 = vmatpush.msrb.mxu0 %v8286_v29  ;;  %2215 = vmatpush.msra.mxu1 %v8287_v13  ;;  %v6287_v29 = vld [vmem:[#allocation8 + $0x260] sm:$0xff]  ;;  %v6289_v13 = vld [vmem:[#allocation8 + $0x388] sm:$0xff] }
 0x732   :  { %2156 = vmatpush.msrb.mxu2 %v8288_v12  ;;  %2176 = vmatpush.msrb.mxu3 %v8289_v35  ;;  %v6291_v12 = vld [vmem:[#allocation8 + $0x390] sm:$0xff]  ;;  %v6295_v35 = vld [vmem:[#allocation8 + $0x398] sm:$0xff] }
 0x733   :  { %2196 = vmatpush.msrb.mxu0 %v8290_v30  ;;  %2216 = vmatpush.msra.mxu1 %v8291_v18  ;;  %v6299_v30 = vld [vmem:[#allocation8 + $0x218] sm:$0xff]  ;;  %v6301_v18 = vld [vmem:[#allocation8 + $0x340] sm:$0xff] }
 0x734   :  { %2157 = vmatpush.msrb.mxu2 %v8292_v40  ;;  %2177 = vmatpush.msrb.mxu3 %v8293_v16  ;;  %v6303_v40 = vld [vmem:[#allocation8 + $0x348] sm:$0xff]  ;;  %v6307_v16 = vld [vmem:[#allocation8 + $0x350] sm:$0xff] }
 0x735   :  { %2197 = vmatpush.msrb.mxu0 %v8294_v20  ;;  %2217 = vmatpush.msra.mxu1 %v8295_v46  ;;  %v6311_v20 = vld [vmem:[#allocation8 + $0x1d0] sm:$0xff]  ;;  %v6313_v46 = vld [vmem:[#allocation8 + $0x2f8] sm:$0xff] }
 0x792   :  { %v1977_v43 = vpop.f32.mrf.mxu0  ;;  %v1997_v51 = vpop.f32.mrf.mxu1 }
 0x793   :  { %v2011_v56 = vadd.f32 %v2007_v9, %v1977_v43  ;;  %v2012_v1 = vadd.f32 %v2008_v11, %v1997_v51  ;;  %v6339_v43 = vld [vmem:[#allocation8 + $0x270] sm:$0xff]  ;;  %v6343_v51 = vld [vmem:[#allocation8 + $0x278] sm:$0xff]  ;;  %v6349_v9 = vld [vmem:[#allocation8 + $0x220] sm:$0xff] }
 0x794   :  { %v6355_v11 = vld [vmem:[#allocation8 + $0x230] sm:$0xff] }
 0x795   :  { %v2022_v59 = vmul.f32 0.5, %v2012_v1  ;;  %v6367_v1 = vld [vmem:[#allocation8 + $0x1e8] sm:$0xff] }
 0x796   :  { %8305 = vst [vmem:[#allocation23_spill] sm:$0xff] %v6367_v1 }
 0x797   :  { %v1937_v34 = vpop.f32.mrf.mxu2  ;;  %v1957_v41 = vpop.f32.mrf.mxu3 }
 0x798   :  { %v2009_v45 = vadd.f32 %v2005_v42, %v1937_v34  ;;  %v2010_v47 = vadd.f32 %v2006_v21, %v1957_v41  ;;  %v6319_v42 = vld [vmem:[#allocation8 + $0x308] sm:$0xff]  ;;  %v6325_v21 = vld [vmem:[#allocation8 + $0x2b0] sm:$0xff]  ;;  %v6327_v34 = vld [vmem:[#allocation8 + $0x2b8] sm:$0xff] }
 0x799   :  { %v6331_v41 = vld [vmem:[#allocation8 + $0x2c0] sm:$0xff] }
 0x79a   :  { %v2013_v53 = vmul.f32 0.5, %v2009_v45  ;;  %v2017_v8 = vmul.f32 0.5, %v2010_v47  ;;  %v6335_v45 = vld [vmem:[#allocation8 + $0x140] sm:$0xff]  ;;  %v6337_v47 = vld [vmem:[#allocation8 + $0x268] sm:$0xff] }
 0x79c   :  { %4142 = vtanh.f32 %v2013_v53  ;;  %v6359_v53 = vld [vmem:[#allocation8 + $0xb0] sm:$0xff] }
 0x79d   :  { %4144 = vtanh.f32 %v2017_v8  ;;  %v6361_v8 = vld [vmem:[#allocation8 + $0x1d8] sm:$0xff] }
 0x79e   :  { %4146 = vtanh.f32 %v2011_v56  ;;  %8303 = vst [vmem:[#allocation17_spill] sm:$0xff] %v6361_v8  ;;  %v6363_v56 = vld [vmem:[#allocation8 + $0x1e0] sm:$0xff] }
 0x79f   :  { %4148 = vtanh.f32 %v2022_v59  ;;  %8304 = vst [vmem:[#allocation18_spill] sm:$0xff] %v6363_v56  ;;  %v6371_v59 = vld [vmem:[#allocation8 + $0x68] sm:$0xff] }
 0x7a0   :  { %8306 = vst [vmem:[#allocation25_spill] sm:$0xff] %v6371_v59 }
 0x7a2   :  { %v4143_v61 = vpop.eup %4142 }
 0x7a3   :  { %v4145_v5 = vpop.eup %4144  ;;  %v2015_v62 = vmul.f32 0.5, %v4143_v61  ;;  %v6373_v61 = vld [vmem:[#allocation8 + $0x190] sm:$0xff] }
 0x7a4   :  { %v2019_v31 = vmul.f32 0.5, %v4145_v5  ;;  %v4147_v55 = vpop.eup %4146  ;;  %8307 = vst [vmem:[#allocation20_spill] sm:$0xff] %v6373_v61  ;;  %v6375_v5 = vld [vmem:[#allocation8 + $0x198] sm:$0xff] }
 0x7a5   :  { %v2016_v32 = vadd.f32 0.5, %v2015_v62  ;;  %v4149_v57 = vpop.eup %4148  ;;  %8308 = vst [vmem:[#allocation21_spill] sm:$0xff] %v6375_v5  ;;  %v6379_v62 = vld [vmem:[#allocation8 + $0x1a0] sm:$0xff] }
 0x7a6   :  { %v2020_v38 = vadd.f32 0.5, %v2019_v31  ;;  %v2024_v52 = vmul.f32 0.5, %v4149_v57  ;;  %8309 = vst [vmem:[#allocation26_spill] sm:$0xff] %v6379_v62  ;;  %v6383_v31 = vld [vmem:[#allocation8 + $0x20] sm:$0xff] }
 0x7a7   :  { %v2027_v63 = vmul.f32 %v4147_v55, %v2016_v32  ;;  %8310 = vst [vmem:[#allocation27_spill] sm:$0xff] %v6383_v31  ;;  %v6385_v32 = vld [vmem:[#allocation8 + $0x148] sm:$0xff]  ;;  %v6387_v55 = vld [vmem:[#allocation8 + $0x150] sm:$0xff]  ;;  %v8315_v57 = vld [vmem:[#allocation89_spill] sm:$0xff] }
 0x7a8   :  { %v2026_v54 = vmul.f32 %v2020_v38, %v6160_v2  ;;  %v2025_v36 = vadd.f32 0.5, %v2024_v52  ;;  %v6245_v2 = vld [vmem:[#allocation8 + $0x3c8] sm:$0xff]  ;;  %8311 = vst [vmem:[#allocation29_spill] sm:$0xff] %v6385_v32  ;;  %v6391_v38 = vld [vmem:[#allocation8 + $0x158] sm:$0xff]  ;;  %v2117_v52 = vadd.f32 %v8315_v57, %v8298_v44  ;;  %v6410_v57 = vld [vmem:[#allocation8 + $0xc0] sm:$0xff] }
 0x7a9   :  { %8312 = vst [vmem:[#allocation30_spill] sm:$0xff] %v6387_v55 }
 0x7aa   :  { %v6236_v48 = vadd.f32 %v2027_v63, %v2026_v54  ;;  %8313 = vst [vmem:[#allocation31_spill] sm:$0xff] %v6391_v38  ;;  %v8314_v63 = vld [vmem:[#allocation88_spill] sm:$0xff] }
 0x7ab   :  { %v2116_v54 = vadd.f32 %v8314_v63, %v8296_v60  ;;  %v6408_v63 = vld [vmem:[#allocation8 + $0xb8] sm:$0xff]  ;;  %8319 = vst [vmem:[#allocation37_spill] sm:$0xff] %v6410_v57 }
 0x7ac   :  { %4150 = vtanh.f32 %v6236_v48 }
 0x7b2   :  { %v4151_v4 = vpop.eup %4150 }
 0x7b3   :  { %v2030_v3 = vmul.f32 %v4151_v4, %v2025_v36 }
 0x7b5   :  { %2047 = vmatmul.f32.vlgmr.msra.gmra.mxu2 %v2030_v3  ;;  %2067 = vmatmul.f32.vlgmr.msra.gmra.mxu3 %v2030_v3 }
 0x7b6   :  { %2087 = vmatmul.f32.vlgmr.msra.gmra.mxu0 %v2030_v3  ;;  %2107 = vmatmul.f32.vlgmr.msrb.gmra.mxu1 %v2030_v3  ;;  %v6399_v3 = vld [vmem:[#allocation8 + $0x100] sm:$0xff] }
 0x7b7   :  { %2222 = vmatpush.msra.mxu2 %v6239_v58  ;;  %2242 = vmatpush.msra.mxu3 %v6253_v27  ;;  %8316 = vst [vmem:[#allocation33_spill] sm:$0xff] %v6399_v3 }
 0x7b8   :  { %2262 = vmatpush.msra.mxu0 %v6255_v22  ;;  %2282 = vmatpush.msrb.mxu1 %v6259_v23 }
 0x7b9   :  { %2223 = vmatpush.msra.mxu2 %v6242_v50  ;;  %2243 = vmatpush.msra.mxu3 %v6265_v24 }
 0x7ba   :  { %2263 = vmatpush.msra.mxu0 %v6267_v28  ;;  %2283 = vmatpush.msrb.mxu1 %v6271_v0 }
 0x7bb   :  { %2224 = vmatpush.msra.mxu2 %v6245_v2  ;;  %2244 = vmatpush.msra.mxu3 %v6277_v15 }
 0x7bc   :  { %2264 = vmatpush.msra.mxu0 %v6279_v17  ;;  %2284 = vmatpush.msrb.mxu1 %v6283_v14 }
 0x7bd   :  { %2225 = vmatpush.msra.mxu2 %v6248_v39  ;;  %2245 = vmatpush.msra.mxu3 %v6289_v13 }
 0x7be   :  { %2265 = vmatpush.msra.mxu0 %v6291_v12  ;;  %2285 = vmatpush.msrb.mxu1 %v6295_v35 }
 0x7bf   :  { %2226 = vmatpush.msra.mxu2 %v6251_v37  ;;  %2246 = vmatpush.msra.mxu3 %v6301_v18 }
 0x7c0   :  { %2266 = vmatpush.msra.mxu0 %v6303_v40  ;;  %2286 = vmatpush.msrb.mxu1 %v6307_v16 }
 0x7c1   :  { %2227 = vmatpush.msra.mxu2 %v6263_v25  ;;  %2247 = vmatpush.msra.mxu3 %v6313_v46 }
 0x7c2   :  { %2267 = vmatpush.msra.mxu0 %v6315_v33  ;;  %2287 = vmatpush.msrb.mxu1 %v6319_v42 }
 0x7c3   :  { %2228 = vmatpush.msra.mxu2 %v6275_v26  ;;  %2248 = vmatpush.msra.mxu3 %v6325_v21 }
 0x7c4   :  { %2268 = vmatpush.msra.mxu0 %v6327_v34  ;;  %2288 = vmatpush.msrb.mxu1 %v6331_v41 }
 0x7c5   :  { %2229 = vmatpush.msra.mxu2 %v6287_v29  ;;  %2249 = vmatpush.msra.mxu3 %v6337_v47 }
 0x7c6   :  { %2269 = vmatpush.msra.mxu0 %v6339_v43  ;;  %2289 = vmatpush.msrb.mxu1 %v6343_v51 }
 0x7c7   :  { %2230 = vmatpush.msra.mxu2 %v6299_v30  ;;  %2250 = vmatpush.msra.mxu3 %v6349_v9 }
 0x7c8   :  { %2270 = vmatpush.msra.mxu0 %v6351_v10  ;;  %2290 = vmatpush.msrb.mxu1 %v6355_v11 }
 0x7c9   :  { %2231 = vmatpush.msra.mxu2 %v6311_v20  ;;  %2251 = vmatpush.msra.mxu3 %v6361_v8 }
 0x7ca   :  { %2271 = vmatpush.msra.mxu0 %v6363_v56  ;;  %2291 = vmatpush.msrb.mxu1 %v6367_v1 }
 0x7cb   :  { %2232 = vmatpush.msra.mxu2 %v6323_v19  ;;  %2252 = vmatpush.msra.mxu3 %v6373_v61  ;;  %v6412_v61 = vld [vmem:[#allocation8 + $0xc8] sm:$0xff] }
 0x7cc   :  { %2272 = vmatpush.msra.mxu0 %v6375_v5  ;;  %2292 = vmatpush.msrb.mxu1 %v6379_v62  ;;  %v6401_v62 = vld [vmem:[#allocation8 + $0x108] sm:$0xff]  ;;  %8320 = vst [vmem:[#allocation38_spill] sm:$0xff] %v6412_v61 }
 0x7cd   :  { %2233 = vmatpush.msra.mxu2 %v6335_v45  ;;  %2253 = vmatpush.msra.mxu3 %v6385_v32  ;;  %8317 = vst [vmem:[#allocation35_spill] sm:$0xff] %v6401_v62 }
 0x7ce   :  { %2273 = vmatpush.msra.mxu0 %v6387_v55  ;;  %2293 = vmatpush.msrb.mxu1 %v6391_v38 }
 0x7cf   :  { %2234 = vmatpush.msra.mxu2 %v6347_v7  ;;  %2254 = vmatpush.msra.mxu3 %v6399_v3  ;;  %v6425_v3 = vld [vmem:[#allocation8 + $0x80] sm:$0xff] }
 0x7d0   :  { %2274 = vmatpush.msra.mxu0 %v6401_v62  ;;  %v6423_v62 = vld [vmem:[#allocation8 + $0x78] sm:$0xff]  ;;  %8325 = vst [vmem:[#allocation41_spill] sm:$0xff] %v6425_v3 }
 0x7d1   :  { %2235 = vmatpush.msra.mxu2 %v6359_v53  ;;  %2255 = vmatpush.msra.mxu3 %v6408_v63  ;;  %8324 = vst [vmem:[#allocation40_spill] sm:$0xff] %v6423_v62 }
 0x7d2   :  { %2275 = vmatpush.msra.mxu0 %v6410_v57 }
 0x7d3   :  { %2236 = vmatpush.msra.mxu2 %v6371_v59  ;;  %v8321_v59 = vld [vmem:[#allocation90_spill] sm:$0xff] }
 0x7d4   :  { %v2118_v1 = vadd.f32 %v8321_v59, %v8300_v6  ;;  %2276 = vmatpush.msra.mxu0 %v6423_v62  ;;  %v6430_v59 = vld [vmem:[#allocation8 + $0x28] sm:$0xff] }
 0x7d5   :  { %2237 = vmatpush.msra.mxu2 %v6383_v31  ;;  %v6403_v31 = vld [vmem:[#allocation8 + $0x110] sm:$0xff]  ;;  %8326 = vst [vmem:[#allocation42_spill] sm:$0xff] %v6430_v59 }
 0x7d6   :  { %8318 = vst [vmem:[#allocation36_spill] sm:$0xff] %v6403_v31  ;;  %2294 = vmatpush.msrb.mxu1 %v6403_v31  ;;  %v6421_v31 = vld [vmem:[#allocation8 + $0x70] sm:$0xff] }
 0x7d7   :  { %8323 = vst [vmem:[#allocation39_spill] sm:$0xff] %v6421_v31  ;;  %2256 = vmatpush.msra.mxu3 %v6421_v31 }
 0x7d8   :  { %2295 = vmatpush.msrb.mxu1 %v6412_v61 }
 0x7d9   :  { %2257 = vmatpush.msra.mxu3 %v6430_v59  ;;  %v6445_v59 = vld [vmem:[#allocation8 + $0x478] sm:$0xff] }
 0x7da   :  { %2296 = vmatpush.msrb.mxu1 %v6425_v3 }
 0x833   :  { %v2088_v38 = vpop.f32.mrf.mxu0  ;;  %v2108_v55 = vpop.f32.mrf.mxu1 }
 0x834   :  { %v2122_v56 = vadd.f32 %v2118_v1, %v2088_v38 }
 0x838   :  { %v2048_v36 = vpop.f32.mrf.mxu2  ;;  %v2068_v4 = vpop.f32.mrf.mxu3 }
 0x839   :  { %v2120_v32 = vadd.f32 %v2116_v54, %v2048_v36  ;;  %v2121_v5 = vadd.f32 %v2117_v52, %v2068_v4  ;;  %v8322_v54 = vld [vmem:[#allocation91_spill] sm:$0xff] }
 0x83a   :  { %v2119_v52 = vadd.f32 %v8322_v54, %v8068_v49 }
 0x83b   :  { %v2124_v36 = vmul.f32 0.5, %v2120_v32  ;;  %v2128_v4 = vmul.f32 0.5, %v2121_v5  ;;  %v6432_v5 = vld [vmem:[#allocation8 + $0x30] sm:$0xff]  ;;  %v6434_v32 = vld [vmem:[#allocation8 + $0x38] sm:$0xff] }
 0x83c   :  { %v2123_v8 = vadd.f32 %v2119_v52, %v2108_v55  ;;  %8327 = vst [vmem:[#allocation72_spill] sm:$0xff] %v6432_v5  ;;  %2277 = vmatpush.msra.mxu0 %v6432_v5  ;;  %2297 = vmatpush.msrb.mxu1 %v6434_v32 }
 0x83d   :  { %4152 = vtanh.f32 %v2124_v36  ;;  %8328 = vst [vmem:[#allocation73_spill] sm:$0xff] %v6434_v32 }
 0x83e   :  { %4154 = vtanh.f32 %v2128_v4  ;;  %v2133_v1 = vmul.f32 0.5, %v2123_v8 }
 0x83f   :  { %4156 = vtanh.f32 %v2122_v56 }
 0x840   :  { %4158 = vtanh.f32 %v2133_v1  ;;  %v6470_v1 = vld [vmem:[#allocation8 + $0x3f8] sm:$0xff] }
 0x841   :  { %8332 = vst [vmem:[#allocation77_spill] sm:$0xff] %v6470_v1 }
 0x843   :  { %v4153_v55 = vpop.eup %4152 }
 0x844   :  { %v4155_v38 = vpop.eup %4154  ;;  %v2126_v54 = vmul.f32 0.5, %v4153_v55  ;;  %v6472_v55 = vld [vmem:[#allocation8 + $0x400] sm:$0xff] }
 0x845   :  { %v2130_v52 = vmul.f32 0.5, %v4155_v38  ;;  %v4157_v4 = vpop.eup %4156  ;;  %8333 = vst [vmem:[#allocation78_spill] sm:$0xff] %v6472_v55  ;;  %v6474_v38 = vld [vmem:[#allocation8 + $0x3a0] sm:$0xff] }
 0x846   :  { %v2127_v36 = vadd.f32 0.5, %v2126_v54  ;;  %v4159_v61 = vpop.eup %4158  ;;  %8334 = vst [vmem:[#allocation79_spill] sm:$0xff] %v6474_v38  ;;  %v6478_v54 = vld [vmem:[#allocation8 + $0x3b0] sm:$0xff] }
 0x847   :  { %v2131_v3 = vadd.f32 0.5, %v2130_v52  ;;  %v2135_v5 = vmul.f32 0.5, %v4159_v61  ;;  %v6459_v61 = vld [vmem:[#allocation8 + $0x440] sm:$0xff]  ;;  %8335 = vst [vmem:[#allocation52_spill] sm:$0xff] %v6478_v54  ;;  %v6482_v52 = vld [vmem:[#allocation8 + $0x358] sm:$0xff] }
 0x848   :  { %v2138_v62 = vmul.f32 %v4157_v4, %v2127_v36  ;;  %8336 = vst [vmem:[#allocation53_spill] sm:$0xff] %v6482_v52  ;;  %v6488_v36 = vld [vmem:[#allocation8 + $0x360] sm:$0xff]  ;;  %v6490_v4 = vld [vmem:[#allocation8 + $0x3b8] sm:$0xff] }
 0x849   :  { %v2137_v31 = vmul.f32 %v2131_v3, %v6236_v48  ;;  %v2136_v32 = vadd.f32 0.5, %v2135_v5  ;;  %v6451_v48 = vld [vmem:[#allocation8 + $0x430] sm:$0xff]  ;;  %v6461_v3 = vld [vmem:[#allocation8 + $0x3e8] sm:$0xff]  ;;  %8337 = vst [vmem:[#allocation51_spill] sm:$0xff] %v6488_v36 }
 0x84a   :  { %8330 = vst [vmem:[#allocation75_spill] sm:$0xff] %v6461_v3  ;;  %v6463_v5 = vld [vmem:[#allocation8 + $0x3a8] sm:$0xff] }
 0x84b   :  { %v6440_v57 = vadd.f32 %v2138_v62, %v2137_v31  ;;  %v6453_v62 = vld [vmem:[#allocation8 + $0x438] sm:$0xff]  ;;  %v6455_v31 = vld [vmem:[#allocation8 + $0x3f0] sm:$0xff]  ;;  %8331 = vst [vmem:[#allocation76_spill] sm:$0xff] %v6463_v5 }
 0x84c   :  { %8329 = vst [vmem:[#allocation74_spill] sm:$0xff] %v6455_v31 }
 0x84d   :  { %4160 = vtanh.f32 %v6440_v57 }
 0x853   :  { %v4161_v56 = vpop.eup %4160 }
 0x854   :  { %v6443_v8 = vmul.f32 %v4161_v56, %v2136_v32  ;;  %v6466_v32 = vld [vmem:[#allocation8 + $0x448] sm:$0xff]  ;;  %v6494_v56 = vld [vmem:[#allocation8 + $0x310] sm:$0xff] }
 0x855   :  { %8338 = vst [vmem:[#allocation54_spill] sm:$0xff] %v6494_v56 }
 0x856   :  { %2158 = vmatmul.f32.vlgmr.msrb.gmra.mxu2 %v6443_v8  ;;  %2178 = vmatmul.f32.vlgmr.msrb.gmra.mxu3 %v6443_v8 }
 0x857   :  { %2198 = vmatmul.f32.vlgmr.msrb.gmra.mxu0 %v6443_v8  ;;  %2218 = vmatmul.f32.vlgmr.msra.gmra.mxu1 %v6443_v8 }
 0x858   :  { %2302 = vmatpush.msrb.mxu2 %v6445_v59  ;;  %2520 = vmatpush.msrb.mxu3 %v6453_v62 }
 0x859   :  { %2540 = vmatpush.msrb.mxu0 %v6459_v61  ;;  %2560 = vmatpush.msra.mxu1 %v6466_v32 }
 0x85a   :  { %2303 = vmatpush.msrb.mxu2 %v6451_v48  ;;  %2521 = vmatpush.msrb.mxu3 %v6455_v31  ;;  %v6519_v31 = vld [vmem:[#allocation8 + $0x238] sm:$0xff] }
 0x85b   :  { %2541 = vmatpush.msrb.mxu0 %v6470_v1  ;;  %2561 = vmatpush.msra.mxu1 %v6472_v55  ;;  %v6509_v55 = vld [vmem:[#allocation8 + $0x2d0] sm:$0xff]  ;;  %v6512_v1 = vld [vmem:[#allocation8 + $0x280] sm:$0xff]  ;;  %8345 = vst [vmem:[#allocation57_spill] sm:$0xff] %v6519_v31 }
 0x85c   :  { %2304 = vmatpush.msrb.mxu2 %v6461_v3  ;;  %2522 = vmatpush.msrb.mxu3 %v6463_v5  ;;  %v6496_v5 = vld [vmem:[#allocation8 + $0x368] sm:$0xff]  ;;  %8342 = vst [vmem:[#allocation82_spill] sm:$0xff] %v6509_v55 }
 0x85d   :  { %2542 = vmatpush.msrb.mxu0 %v6478_v54  ;;  %v6500_v54 = vld [vmem:[#allocation8 + $0x318] sm:$0xff]  ;;  %v6504_v3 = vld [vmem:[#allocation8 + $0x2c8] sm:$0xff]  ;;  %2562 = vmatpush.msra.mxu1 %v6490_v4  ;;  %8343 = vst [vmem:[#allocation83_spill] sm:$0xff] %v6512_v1 }
 0x85e   :  { %2305 = vmatpush.msrb.mxu2 %v6474_v38  ;;  %2258 = vmatmul.f32.vlgmr.msra.gmra.mxu3 %v6443_v8  ;;  %8339 = vst [vmem:[#allocation56_spill] sm:$0xff] %v6500_v54  ;;  %v6502_v38 = vld [vmem:[#allocation8 + $0x370] sm:$0xff] }
 0x85f   :  { %2238 = vmatmul.f32.vlgmr.msra.gmra.mxu2 %v6443_v8  ;;  %2278 = vmatmul.f32.vlgmr.msra.gmra.mxu0 %v6443_v8  ;;  %8340 = vst [vmem:[#allocation80_spill] sm:$0xff] %v6502_v38 }
 0x860   :  { %2298 = vmatmul.f32.vlgmr.msrb.gmra.mxu1 %v6443_v8  ;;  %2306 = vmatpush.msrb.mxu2 %v6482_v52  ;;  %8341 = vst [vmem:[#allocation81_spill] sm:$0xff] %v6504_v3  ;;  %v6517_v52 = vld [vmem:[#allocation8 + $0x288] sm:$0xff] }
 0x861   :  { %2523 = vmatpush.msrb.mxu3 %v6488_v36  ;;  %2543 = vmatpush.msrb.mxu0 %v6496_v5  ;;  %8344 = vst [vmem:[#allocation58_spill] sm:$0xff] %v6517_v52  ;;  %v6525_v36 = vld [vmem:[#allocation8 + $0x1f0] sm:$0xff] }
 0x862   :  { %2307 = vmatpush.msrb.mxu2 %v6494_v56  ;;  %2563 = vmatpush.msra.mxu1 %v6502_v38  ;;  %v6523_v56 = vld [vmem:[#allocation8 + $0x240] sm:$0xff]  ;;  %8347 = vst [vmem:[#allocation48_spill] sm:$0xff] %v6525_v36 }
 0x863   :  { %2524 = vmatpush.msrb.mxu3 %v6500_v54  ;;  %8346 = vst [vmem:[#allocation59_spill] sm:$0xff] %v6523_v56  ;;  %v6529_v54 = vld [vmem:[#allocation8 + $0x1a8] sm:$0xff]  ;;  %v6590_v38 = vld [vmem:[#allocation8 + $0x2a0] sm:$0xff] }
 0x864   :  { %2308 = vmatpush.msrb.mxu2 %v6504_v3  ;;  %8348 = vst [vmem:[#allocation49_spill] sm:$0xff] %v6529_v54  ;;  %v6533_v3 = vld [vmem:[#allocation8 + $0x160] sm:$0xff] }
 0x865   :  { %2525 = vmatpush.msrb.mxu3 %v6509_v55  ;;  %8349 = vst [vmem:[#allocation47_spill] sm:$0xff] %v6533_v3  ;;  %v6536_v55 = vld [vmem:[#allocation8 + $0x118] sm:$0xff] }
 0x866   :  { %2309 = vmatpush.msrb.mxu2 %v6512_v1  ;;  %8350 = vst [vmem:[#allocation50_spill] sm:$0xff] %v6536_v55  ;;  %v6539_v1 = vld [vmem:[#allocation8 + $0xd0] sm:$0xff] }
 0x867   :  { %2526 = vmatpush.msrb.mxu3 %v6517_v52  ;;  %8351 = vst [vmem:[#allocation55_spill] sm:$0xff] %v6539_v1  ;;  %v6542_v52 = vld [vmem:[#allocation8 + $0x88] sm:$0xff] }
 0x868   :  { %2310 = vmatpush.msrb.mxu2 %v6519_v31  ;;  %8352 = vst [vmem:[#allocation60_spill] sm:$0xff] %v6542_v52  ;;  %v6545_v31 = vld [vmem:[#allocation8 + $0x40] sm:$0xff] }
 0x869   :  { %2527 = vmatpush.msrb.mxu3 %v6523_v56  ;;  %8353 = vst [vmem:[#allocation61_spill] sm:$0xff] %v6545_v31  ;;  %v6582_v56 = vld [vmem:[#allocation8 + $0x168] sm:$0xff] }
 0x86a   :  { %2311 = vmatpush.msrb.mxu2 %v6525_v36  ;;  %v6548_v36 = vld [vmem:[#allocation8 + $0x450] sm:$0xff]  ;;  %8365 = vst [vmem:[#allocation19_spill] sm:$0xff] %v6582_v56 }
 0x86b   :  { %8354 = vst [vmem:[#allocation62_spill] sm:$0xff] %v6548_v36 }
 0x86c   :  { %2312 = vmatpush.msrb.mxu2 %v6529_v54  ;;  %v6552_v54 = vld [vmem:[#allocation8 + $0x408] sm:$0xff]  ;;  %8367 = vst [vmem:[#allocation84_spill] sm:$0xff] %v6590_v38 }
 0x86d   :  { %8355 = vst [vmem:[#allocation63_spill] sm:$0xff] %v6552_v54 }
 0x86e   :  { %2313 = vmatpush.msrb.mxu2 %v6533_v3  ;;  %v6555_v3 = vld [vmem:[#allocation8 + $0x3c0] sm:$0xff] }
 0x86f   :  { %8356 = vst [vmem:[#allocation64_spill] sm:$0xff] %v6555_v3 }
 0x870   :  { %2314 = vmatpush.msrb.mxu2 %v6536_v55  ;;  %v6558_v55 = vld [vmem:[#allocation8 + $0x378] sm:$0xff] }
 0x871   :  { %8357 = vst [vmem:[#allocation65_spill] sm:$0xff] %v6558_v55 }
 0x872   :  { %2315 = vmatpush.msrb.mxu2 %v6539_v1  ;;  %v6564_v1 = vld [vmem:[#allocation8 + $0x320] sm:$0xff] }
 0x873   :  { %8359 = vst [vmem:[#allocation67_spill] sm:$0xff] %v6564_v1  ;;  %2544 = vmatpush.msrb.mxu0 %v6564_v1  ;;  %v6588_v1 = vld [vmem:[#allocation8 + $0x298] sm:$0xff] }
 0x874   :  { %2316 = vmatpush.msrb.mxu2 %v6542_v52  ;;  %v6562_v52 = vld [vmem:[#allocation8 + $0x1f8] sm:$0xff] }
 0x875   :  { %8358 = vst [vmem:[#allocation66_spill] sm:$0xff] %v6562_v52  ;;  %2528 = vmatpush.msrb.mxu3 %v6562_v52  ;;  %v6586_v52 = vld [vmem:[#allocation8 + $0x290] sm:$0xff] }
 0x876   :  { %2317 = vmatpush.msrb.mxu2 %v6545_v31  ;;  %v6566_v31 = vld [vmem:[#allocation8 + $0x328] sm:$0xff]  ;;  %8366 = vst [vmem:[#allocation22_spill] sm:$0xff] %v6586_v52 }
 0x877   :  { %2318 = vmatmul.f32.vlgmr.msrb.gmra.mxu2 %v6443_v8  ;;  %8360 = vst [vmem:[#allocation68_spill] sm:$0xff] %v6566_v31  ;;  %v6570_v8 = vld [vmem:[#allocation8 + $0x330] sm:$0xff]  ;;  %2564 = vmatpush.msra.mxu1 %v6566_v31  ;;  %v6598_v31 = vld [vmem:[#allocation8 + $0x248] sm:$0xff] }
 0x878   :  { %2580 = vmatpush.msra.mxu2 %v6548_v36  ;;  %8361 = vst [vmem:[#allocation69_spill] sm:$0xff] %v6570_v8  ;;  %v6572_v36 = vld [vmem:[#allocation8 + $0x1b0] sm:$0xff] }
 0x879   :  { %8362 = vst [vmem:[#allocation70_spill] sm:$0xff] %v6572_v36  ;;  %2529 = vmatpush.msrb.mxu3 %v6572_v36  ;;  %v6600_v36 = vld [vmem:[#allocation8 + $0x250] sm:$0xff] }
 0x87a   :  { %2581 = vmatpush.msra.mxu2 %v6552_v54  ;;  %v6574_v54 = vld [vmem:[#allocation8 + $0x2d8] sm:$0xff]  ;;  %8369 = vst [vmem:[#allocation86_spill] sm:$0xff] %v6598_v31 }
 0x87b   :  { %8363 = vst [vmem:[#allocation71_spill] sm:$0xff] %v6574_v54  ;;  %2545 = vmatpush.msrb.mxu0 %v6574_v54  ;;  %2530 = vmatpush.msrb.mxu3 %v6582_v56  ;;  %v6604_v54 = vld [vmem:[#allocation8 + $0x258] sm:$0xff]  ;;  %v6612_v56 = vld [vmem:[#allocation8 + $0x200] sm:$0xff] }
 0x87c   :  { %2582 = vmatpush.msra.mxu2 %v6555_v3  ;;  %v6580_v3 = vld [vmem:[#allocation8 + $0x2e8] sm:$0xff]  ;;  %8370 = vst [vmem:[#allocation87_spill] sm:$0xff] %v6600_v36 }
 0x87d   :  { %8364 = vst [vmem:[#allocation16_spill] sm:$0xff] %v6580_v3  ;;  %2546 = vmatpush.msrb.mxu0 %v6586_v52  ;;  %v6614_v52 = vld [vmem:[#allocation8 + $0x208] sm:$0xff] }
 0x87e   :  { %2583 = vmatpush.msra.mxu2 %v6558_v55  ;;  %v6578_v55 = vld [vmem:[#allocation8 + $0x2e0] sm:$0xff]  ;;  %8371 = vst [vmem:[#allocation88_spill] sm:$0xff] %v6604_v54 }
 0x87f   :  { %2565 = vmatpush.msra.mxu1 %v6578_v55  ;;  %2547 = vmatpush.msrb.mxu0 %v6598_v31  ;;  %8373 = vst [vmem:[#allocation90_spill] sm:$0xff] %v6612_v56  ;;  %v6630_v31 = vld [vmem:[#allocation8 + $0x1c8] sm:$0xff] }
 0x880   :  { %2584 = vmatpush.msra.mxu2 %v6570_v8  ;;  %v6596_v8 = vld [vmem:[#allocation8 + $0x120] sm:$0xff]  ;;  %8374 = vst [vmem:[#allocation91_spill] sm:$0xff] %v6614_v52 }
 0x881   :  { %8368 = vst [vmem:[#allocation85_spill] sm:$0xff] %v6596_v8  ;;  %2566 = vmatpush.msra.mxu1 %v6588_v1  ;;  %2531 = vmatpush.msrb.mxu3 %v6596_v8  ;;  %v6622_v8 = vld [vmem:[#allocation8 + $0x90] sm:$0xff] }
 0x882   :  { %2585 = vmatpush.msra.mxu2 %v6580_v3  ;;  %v6610_v3 = vld [vmem:[#allocation8 + $0xd8] sm:$0xff]  ;;  %2548 = vmatpush.msrb.mxu0 %v6612_v56  ;;  %8376 = vst [vmem:[#allocation113_spill] sm:$0xff] %v6622_v8  ;;  %v6642_v56 = vld [vmem:[#allocation8 + $0x180] sm:$0xff] }
 0x883   :  { %2567 = vmatpush.msra.mxu1 %v6600_v36  ;;  %8372 = vst [vmem:[#allocation89_spill] sm:$0xff] %v6610_v3  ;;  %2532 = vmatpush.msrb.mxu3 %v6610_v3  ;;  %v6624_v36 = vld [vmem:[#allocation8 + $0x1b8] sm:$0xff]  ;;  %v6634_v3 = vld [vmem:[#allocation8 + $0x48] sm:$0xff] }
 0x884   :  { %2586 = vmatpush.msra.mxu2 %v6590_v38  ;;  %v6618_v38 = vld [vmem:[#allocation8 + $0x210] sm:$0xff]  ;;  %8377 = vst [vmem:[#allocation114_spill] sm:$0xff] %v6624_v36  ;;  %2549 = vmatpush.msrb.mxu0 %v6624_v36  ;;  %v6654_v36 = vld [vmem:[#allocation8 + $0x138] sm:$0xff] }
 0x885   :  { %8375 = vst [vmem:[#allocation112_spill] sm:$0xff] %v6618_v38  ;;  %2568 = vmatpush.msra.mxu1 %v6614_v52  ;;  %2533 = vmatpush.msrb.mxu3 %v6622_v8  ;;  %v6636_v52 = vld [vmem:[#allocation8 + $0x170] sm:$0xff]  ;;  %v6646_v8 = vld [vmem:[#allocation8] sm:$0xff] }
 0x886   :  { %2587 = vmatpush.msra.mxu2 %v6604_v54  ;;  %v6626_v54 = vld [vmem:[#allocation8 + $0x1c0] sm:$0xff]  ;;  %8379 = vst [vmem:[#allocation116_spill] sm:$0xff] %v6630_v31  ;;  %2550 = vmatpush.msrb.mxu0 %v6636_v52 }
 0x887   :  { %8378 = vst [vmem:[#allocation115_spill] sm:$0xff] %v6626_v54  ;;  %2569 = vmatpush.msra.mxu1 %v6626_v54  ;;  %2534 = vmatpush.msrb.mxu3 %v6634_v3  ;;  %v6648_v54 = vld [vmem:[#allocation8 + $0x128] sm:$0xff] }
 0x888   :  { %2588 = vmatpush.msra.mxu2 %v6618_v38  ;;  %8380 = vst [vmem:[#allocation117_spill] sm:$0xff] %v6634_v3  ;;  %v6638_v38 = vld [vmem:[#allocation8 + $0x178] sm:$0xff]  ;;  %2551 = vmatpush.msrb.mxu0 %v6648_v54  ;;  %v6658_v3 = vld [vmem:[#allocation8 + $0xe0] sm:$0xff] }
 0x889   :  { %8381 = vst [vmem:[#allocation118_spill] sm:$0xff] %v6638_v38  ;;  %2570 = vmatpush.msra.mxu1 %v6638_v38  ;;  %2535 = vmatpush.msrb.mxu3 %v6646_v8  ;;  %v6660_v38 = vld [vmem:[#allocation8 + $0xe8] sm:$0xff] }
 0x88a   :  { %2589 = vmatpush.msra.mxu2 %v6630_v31  ;;  %8382 = vst [vmem:[#allocation119_spill] sm:$0xff] %v6642_v56  ;;  %v6650_v31 = vld [vmem:[#allocation8 + $0x130] sm:$0xff]  ;;  %2552 = vmatpush.msrb.mxu0 %v6658_v3 }
 0x88b   :  { %8383 = vst [vmem:[#allocation120_spill] sm:$0xff] %v6646_v8  ;;  %2571 = vmatpush.msra.mxu1 %v6650_v31  ;;  %2600 = vmatpush.msra.mxu3 %v6239_v58  ;;  %v6668_v8 = vld [vmem:[#allocation8 + $0x98] sm:$0xff]  ;;  %v6678_v58 = vld [vmem:[#allocation8 + $0x50] sm:$0xff] }
 0x88c   :  { %2590 = vmatpush.msra.mxu2 %v6642_v56  ;;  %8384 = vst [vmem:[#allocation121_spill] sm:$0xff] %v6648_v54  ;;  %v6662_v56 = vld [vmem:[#allocation8 + $0xf0] sm:$0xff]  ;;  %v6670_v54 = vld [vmem:[#allocation8 + $0xa0] sm:$0xff]  ;;  %2553 = vmatpush.msrb.mxu0 %v6668_v8 }
 0x88d   :  { %8385 = vst [vmem:[#allocation122_spill] sm:$0xff] %v6650_v31  ;;  %2572 = vmatpush.msra.mxu1 %v6660_v38  ;;  %v6672_v31 = vld [vmem:[#allocation8 + $0xa8] sm:$0xff]  ;;  %2601 = vmatpush.msra.mxu3 %v6242_v50 }
 0x88e   :  { %8386 = vst [vmem:[#allocation123_spill] sm:$0xff] %v6654_v36  ;;  %2591 = vmatpush.msra.mxu2 %v6654_v36  ;;  %v6680_v36 = vld [vmem:[#allocation8 + $0x58] sm:$0xff]  ;;  %2554 = vmatpush.msrb.mxu0 %v6678_v58  ;;  %v6688_v50 = vld [vmem:[#allocation8 + $0x8] sm:$0xff] }
 0x88f   :  { %8387 = vst [vmem:[#allocation124_spill] sm:$0xff] %v6660_v38  ;;  %2573 = vmatpush.msra.mxu1 %v6670_v54  ;;  %v6682_v38 = vld [vmem:[#allocation8 + $0x60] sm:$0xff]  ;;  %2602 = vmatpush.msra.mxu3 %v6245_v2 }
 0x890   :  { %8388 = vst [vmem:[#allocation125_spill] sm:$0xff] %v6662_v56  ;;  %2592 = vmatpush.msra.mxu2 %v6662_v56  ;;  %v6690_v56 = vld [vmem:[#allocation8 + $0x10] sm:$0xff]  ;;  %2555 = vmatpush.msrb.mxu0 %v6688_v50 }
 0x891   :  { %8389 = vst [vmem:[#allocation126_spill] sm:$0xff] %v6670_v54  ;;  %2574 = vmatpush.msra.mxu1 %v6680_v36  ;;  %v6692_v54 = vld [vmem:[#allocation8 + $0x18] sm:$0xff]  ;;  %2603 = vmatpush.msra.mxu3 %v6248_v39 }
 0x892   :  { %2593 = vmatpush.msra.mxu2 %v6672_v31  ;;  %2620 = vmatpush.msra.mxu0 %v6253_v27 }
 0x893   :  { %2575 = vmatpush.msra.mxu1 %v6690_v56  ;;  %2604 = vmatpush.msra.mxu3 %v6251_v37 }
 0x894   :  { %2594 = vmatpush.msra.mxu2 %v6682_v38  ;;  %2621 = vmatpush.msra.mxu0 %v6265_v24 }
 0x895   :  { %2640 = vmatpush.msrb.mxu1 %v6255_v22  ;;  %2605 = vmatpush.msra.mxu3 %v6263_v25  ;;  %v8390_v22 = vld [vmem:[#allocation93_spill] sm:$0xff]  ;;  %v8391_v25 = vld [vmem:[#allocation92_spill] sm:$0xff] }
 0x896   :  { %2595 = vmatpush.msra.mxu2 %v6692_v54  ;;  %2622 = vmatpush.msra.mxu0 %v6277_v15  ;;  %v2331_v24 = vadd.f32 %v8391_v25, %v8296_v60  ;;  %v8393_v15 = vld [vmem:[#allocation28_spill] sm:$0xff]  ;;  %v8408_v25 = vld [vmem:[#allocation27_spill] sm:$0xff] }
 0x897   :  { %2641 = vmatpush.msrb.mxu1 %v6267_v28  ;;  %2606 = vmatpush.msra.mxu3 %v6275_v26 }
 0x898   :  { %2660 = vmatpush.msrb.mxu2 %v6259_v23  ;;  %2623 = vmatpush.msra.mxu0 %v6289_v13  ;;  %v2332_v23 = vadd.f32 %v8390_v22, %v8298_v44 }
 0x899   :  { %2642 = vmatpush.msrb.mxu1 %v6279_v17  ;;  %2607 = vmatpush.msra.mxu3 %v6287_v29  ;;  %v6749_v17 = vadd.f32 %v8393_v15, %v8298_v44 }
 0x89a   :  { %2661 = vmatpush.msrb.mxu2 %v6271_v0  ;;  %2624 = vmatpush.msra.mxu0 %v6301_v18  ;;  %v8392_v0 = vld [vmem:[#allocation94_spill] sm:$0xff]  ;;  %v8399_v18 = vld [vmem:[#allocation32_spill] sm:$0xff] }
 0x89b   :  { %2643 = vmatpush.msrb.mxu1 %v6291_v12  ;;  %2608 = vmatpush.msra.mxu3 %v6299_v30  ;;  %v2333_v26 = vadd.f32 %v8392_v0, %v8300_v6  ;;  %8394 = vst [vmem:[#allocation93_spill] sm:$0xff] %v6749_v17  ;;  %v8397_v12 = vld [vmem:[#allocation17_spill] sm:$0xff] }
 0x89c   :  { %2662 = vmatpush.msrb.mxu2 %v6283_v14  ;;  %2625 = vmatpush.msra.mxu0 %v6313_v46  ;;  %v8395_v14 = vld [vmem:[#allocation34_spill] sm:$0xff]  ;;  %v2339_v46 = vstv %s2325_s19 }
 0x89d   :  { %2644 = vmatpush.msrb.mxu1 %v6303_v40  ;;  %2609 = vmatpush.msra.mxu3 %v6311_v20  ;;  %v6753_v29 = vadd.f32 %v8395_v14, %v8068_v49  ;;  %v6763_v40 = vadd.f32 %v8399_v18, %v8300_v6  ;;  %v8410_v14 = vld [vmem:[#allocation30_spill] sm:$0xff]  ;;  %v8412_v18 = vld [vmem:[#allocation33_spill] sm:$0xff] }
 0x89e   :  { %2663 = vmatpush.msrb.mxu2 %v6295_v35  ;;  %2626 = vmatpush.msra.mxu0 %v6325_v21  ;;  %v8398_v35 = vld [vmem:[#allocation24_spill] sm:$0xff]  ;;  %v2341_v21 = vmul.f32 %v2339_v46, %v2332_v23 }
 0x89f   :  { %2645 = vmatpush.msrb.mxu1 %v6315_v33  ;;  %2610 = vmatpush.msra.mxu3 %v6323_v19  ;;  %8396 = vst [vmem:[#allocation92_spill] sm:$0xff] %v6753_v29  ;;  %v6759_v30 = vadd.f32 %v8398_v35, %v8296_v60  ;;  %v8403_v19 = vld [vmem:[#allocation23_spill] sm:$0xff] }
 0x8a0   :  { %2664 = vmatpush.msrb.mxu2 %v6307_v16  ;;  %2627 = vmatpush.msra.mxu0 %v6337_v47  ;;  %8400 = vst [vmem:[#allocation94_spill] sm:$0xff] %v6763_v40  ;;  %v8401_v16 = vld [vmem:[#allocation95_spill] sm:$0xff]  ;;  %v8404_v47 = vld [vmem:[#allocation25_spill] sm:$0xff] }
 0x8a1   :  { %2646 = vmatpush.msrb.mxu1 %v6327_v34  ;;  %2611 = vmatpush.msra.mxu3 %v6335_v45  ;;  %v2334_v20 = vadd.f32 %v8401_v16, %v8068_v49  ;;  %v2342_v16 = vmul.f32 %v2339_v46, %v2333_v26  ;;  %v8417_v26 = vld [vmem:[#allocation39_spill] sm:$0xff] }
 0x8a2   :  { %2665 = vmatpush.msrb.mxu2 %v6319_v42  ;;  %2628 = vmatpush.msra.mxu0 %v6349_v9  ;;  %v8402_v42 = vld [vmem:[#allocation18_spill] sm:$0xff]  ;;  %v2349_v9 = vstv %s2348_s0 }
 0x8a3   :  { %2647 = vmatpush.msrb.mxu1 %v6339_v43  ;;  %2612 = vmatpush.msra.mxu3 %v6347_v7  ;;  %v8405_v43 = vld [vmem:[#allocation20_spill] sm:$0xff] }
 0x8a4   :  { %2666 = vmatpush.msrb.mxu2 %v6331_v41  ;;  %2629 = vmatpush.msra.mxu0 %v8397_v12 }
 0x8a5   :  { %2648 = vmatpush.msrb.mxu1 %v6351_v10  ;;  %2613 = vmatpush.msra.mxu3 %v6359_v53  ;;  %v8407_v53 = vld [vmem:[#allocation26_spill] sm:$0xff] }
 0x8a6   :  { %2667 = vmatpush.msrb.mxu2 %v6343_v51  ;;  %2630 = vmatpush.msra.mxu0 %v8405_v43  ;;  %v2340_v51 = vmul.f32 %v2339_v46, %v2331_v24  ;;  %v8411_v24 = vld [vmem:[#allocation31_spill] sm:$0xff]  ;;  %v8418_v43 = vld [vmem:[#allocation40_spill] sm:$0xff] }
 0x8a7   :  { %2649 = vmatpush.msrb.mxu1 %v8402_v42  ;;  %2614 = vmatpush.msra.mxu3 %v8404_v47 }
 0x8a8   :  { %2668 = vmatpush.msrb.mxu2 %v6355_v11  ;;  %v8406_v11 = vld [vmem:[#allocation21_spill] sm:$0xff] }
 0x8a9   :  { %2650 = vmatpush.msrb.mxu1 %v8406_v11  ;;  %2615 = vmatpush.msra.mxu3 %v8408_v25 }
 0x8aa   :  { %2669 = vmatpush.msrb.mxu2 %v8403_v19  ;;  %v8414_v19 = vld [vmem:[#allocation36_spill] sm:$0xff] }
 0x8ab   :  { %2651 = vmatpush.msrb.mxu1 %v8410_v14 }
 0x8ac   :  { %2670 = vmatpush.msrb.mxu2 %v8407_v53 }
 0x8ae   :  { %2671 = vmatpush.msrb.mxu2 %v8411_v24 }
 0x8b0   :  { %2672 = vmatpush.msrb.mxu2 %v8414_v19  ;;  %v8427_v19 = vld [vmem:[#allocation75_spill] sm:$0xff] }
 0x8d4   :  { %v6714_v2 = vpop.f32.mrf.mxu1  ;;  %v6718_v39 = vpop.f32.mrf.mxu0 }
 0x8d9   :  { %v2159_v37 = vpop.f32.mrf.mxu2  ;;  %v2179_v27 = vpop.f32.mrf.mxu3 }
 0x8da   :  { %v2345_v22 = vadd.f32 %v2341_v21, %v2179_v27  ;;  %v2344_v0 = vadd.f32 %v2340_v51, %v2159_v37  ;;  %v8413_v27 = vld [vmem:[#allocation35_spill] sm:$0xff]  ;;  %v8419_v51 = vld [vmem:[#allocation41_spill] sm:$0xff] }
 0x8db   :  { %2652 = vmatpush.msrb.mxu1 %v8413_v27  ;;  %v8426_v27 = vld [vmem:[#allocation78_spill] sm:$0xff] }
 0x8dc   :  { %v2279_v13 = vpop.f32.mrf.mxu0 }
 0x8dd   :  { %v2299_v28 = vpop.f32.mrf.mxu1  ;;  %v2337_v7 = vadd.f32 %v2279_v13, %v6763_v40  ;;  %v2343_v13 = vmul.f32 %v2339_v46, %v2334_v20  ;;  %v8415_v20 = vld [vmem:[#allocation37_spill] sm:$0xff] }
 0x8de   :  { %v2338_v34 = vadd.f32 %v2299_v28, %v6753_v29  ;;  %v8409_v28 = vld [vmem:[#allocation29_spill] sm:$0xff]  ;;  %2653 = vmatpush.msrb.mxu1 %v8415_v20  ;;  %v8438_v20 = vld [vmem:[#allocation68_spill] sm:$0xff] }
 0x8df   :  { %2631 = vmatpush.msra.mxu0 %v8409_v28  ;;  %v2347_v21 = vadd.f32 %v2343_v13, %v6714_v2  ;;  %v8420_v2 = vld [vmem:[#allocation42_spill] sm:$0xff] }
 0x8e0   :  { %v2353_v12 = vmul.f32 %v2349_v9, %v2338_v34  ;;  %v8416_v34 = vld [vmem:[#allocation38_spill] sm:$0xff]  ;;  %2654 = vmatpush.msrb.mxu1 %v8418_v43  ;;  %v8444_v43 = vld [vmem:[#allocation57_spill] sm:$0xff] }
 0x8e1   :  { %v2259_v33 = vpop.f32.mrf.mxu3  ;;  %2632 = vmatpush.msra.mxu0 %v8412_v18  ;;  %2673 = vmatpush.msrb.mxu2 %v8416_v34  ;;  %v8439_v34 = vld [vmem:[#allocation82_spill] sm:$0xff] }
 0x8e2   :  { %v2239_v41 = vpop.f32.mrf.mxu2  ;;  %v2336_v45 = vadd.f32 %v2259_v33, %v6749_v17  ;;  %v2352_v33 = vmul.f32 %v2349_v9, %v2337_v7  ;;  %v2357_v47 = vadd.f32 %v2353_v12, %v2347_v21  ;;  %v8423_v12 = vld [vmem:[#allocation15_spill] sm:$0xff]  ;;  %v8428_v21 = vld [vmem:[#allocation76_spill] sm:$0xff] }
 0x8e3   :  { %v2335_v10 = vadd.f32 %v2239_v41, %v6759_v30  ;;  %2633 = vmatpush.msra.mxu0 %v6408_v63  ;;  %v2346_v41 = vadd.f32 %v2342_v16, %v6718_v39  ;;  %2674 = vmatpush.msrb.mxu2 %v8419_v51  ;;  %v8421_v63 = vld [vmem:[#allocation72_spill] sm:$0xff]  ;;  %v8422_v39 = vld [vmem:[#allocation73_spill] sm:$0xff]  ;;  %v8445_v51 = vld [vmem:[#allocation59_spill] sm:$0xff] }
 0x8e4   :  { %v2351_v23 = vmul.f32 %v2349_v9, %v2336_v45  ;;  %2655 = vmatpush.msrb.mxu1 %v8421_v63  ;;  %v2367_v7 = vmul.f32 0.5, %v2357_v47  ;;  %v8440_v47 = vld [vmem:[#allocation71_spill] sm:$0xff]  ;;  %v8447_v63 = vld [vmem:[#allocation48_spill] sm:$0xff] }
 0x8e5   :  { %v2350_v15 = vmul.f32 %v2349_v9, %v2335_v10  ;;  %2634 = vmatpush.msra.mxu0 %v8417_v26  ;;  %v2356_v46 = vadd.f32 %v2352_v33, %v2346_v41  ;;  %2675 = vmatpush.msrb.mxu2 %v8422_v39  ;;  %v8436_v41 = vld [vmem:[#allocation67_spill] sm:$0xff] }
 0x8e6   :  { %v2355_v35 = vadd.f32 %v2351_v23, %v2345_v22  ;;  %v8441_v26 = vld [vmem:[#allocation83_spill] sm:$0xff] }
 0x8e7   :  { %v2354_v42 = vadd.f32 %v2350_v15, %v2344_v0  ;;  %2635 = vmatpush.msra.mxu0 %v8420_v2  ;;  %v8446_v2 = vld [vmem:[#allocation86_spill] sm:$0xff]  ;;  %v8448_v39 = vld [vmem:[#allocation87_spill] sm:$0xff] }
 0x8e8   :  { %v2362_v37 = vmul.f32 0.5, %v2355_v35 }
 0x8e9   :  { %v2358_v45 = vmul.f32 0.5, %v2354_v42  ;;  %v8425_v42 = vld [vmem:[#allocation77_spill] sm:$0xff] }
 0x8ea   :  { %4162 = vtanh.f32 %v2362_v37  ;;  %v8429_v37 = vld [vmem:[#allocation52_spill] sm:$0xff] }
 0x8eb   :  { %4164 = vtanh.f32 %v2358_v45  ;;  %v8437_v45 = vld [vmem:[#allocation81_spill] sm:$0xff] }
 0x8ec   :  { %4166 = vtanh.f32 %v2356_v46  ;;  %v8443_v46 = vld [vmem:[#allocation22_spill] sm:$0xff] }
 0x8ed   :  { %4168 = vtanh.f32 %v2367_v7  ;;  %v8449_v7 = vld [vmem:[#allocation66_spill] sm:$0xff] }
 0x8f0   :  { %v4163_v9 = vpop.eup %4162 }
 0x8f1   :  { %v4165_v10 = vpop.eup %4164  ;;  %v2364_v11 = vmul.f32 0.5, %v4163_v9  ;;  %v8450_v9 = vld [vmem:[#allocation90_spill] sm:$0xff] }
 0x8f2   :  { %v2360_v53 = vmul.f32 0.5, %v4165_v10  ;;  %v4167_v25 = vpop.eup %4166  ;;  %v8452_v10 = vld [vmem:[#allocation91_spill] sm:$0xff] }
 0x8f3   :  { %v2365_v22 = vadd.f32 0.5, %v2364_v11  ;;  %v4169_v15 = vpop.eup %4168  ;;  %v8453_v11 = vld [vmem:[#allocation70_spill] sm:$0xff] }
 0x8f4   :  { %v2361_v23 = vadd.f32 0.5, %v2360_v53  ;;  %v2369_v13 = vmul.f32 0.5, %v4169_v15  ;;  %v8454_v53 = vld [vmem:[#allocation114_spill] sm:$0xff]  ;;  %v8461_v15 = vld [vmem:[#allocation121_spill] sm:$0xff] }
 0x8f5   :  { %v2371_v28 = vmul.f32 %v2365_v22, %v6440_v57  ;;  %v8424_v57 = vld [vmem:[#allocation74_spill] sm:$0xff]  ;;  %v8456_v22 = vld [vmem:[#allocation115_spill] sm:$0xff] }
 0x8f6   :  { %v2372_v0 = vmul.f32 %v4167_v25, %v2361_v23  ;;  %v2370_v18 = vadd.f32 0.5, %v2369_v13  ;;  %v8457_v23 = vld [vmem:[#allocation19_spill] sm:$0xff]  ;;  %v8458_v25 = vld [vmem:[#allocation50_spill] sm:$0xff] }
 0x8f7   :  { %v8463_v13 = vld [vmem:[#allocation122_spill] sm:$0xff] }
 0x8f8   :  { %v6796_v14 = vadd.f32 %v2372_v0, %v2371_v28  ;;  %v8459_v28 = vld [vmem:[#allocation118_spill] sm:$0xff]  ;;  %v8460_v0 = vld [vmem:[#allocation85_spill] sm:$0xff] }
 0x8fa   :  { %4170 = vtanh.f32 %v6796_v14  ;;  %v2319_v24 = vpop.f32.mrf.mxu2 }
 0x8fb   :  { %v2322_v35 = vadd.f32 %v2319_v24, %v8423_v12  ;;  %v8462_v24 = vld [vmem:[#allocation55_spill] sm:$0xff] }
 0x8fd   :  { %2323 = vst [vmem:[#allocation10] sm:$0xff] %v2322_v35  ;;  %v8464_v35 = vld [vmem:[#allocation89_spill] sm:$0xff] }
 0x900   :  { %v4171_v16 = vpop.eup %4170 }
 0x901   :  { %v6800_v33 = vmul.f32 %v4171_v16, %v2370_v18  ;;  %v8465_v18 = vld [vmem:[#allocation60_spill] sm:$0xff] }
 0x902   :  { %v8466_v16 = vld [vmem:[#allocation124_spill] sm:$0xff] }
 0x903   :  { %2536 = vmatmul.f32.vlgmr.msrb.gmra.mxu3 %v6800_v33  ;;  %2556 = vmatmul.f32.vlgmr.msrb.gmra.mxu0 %v6800_v33 }
 0x904   :  { %2576 = vmatmul.f32.vlgmr.msra.gmra.mxu1 %v6800_v33  ;;  %2596 = vmatmul.f32.vlgmr.msra.gmra.mxu2 %v6800_v33 }
 0x905   :  { %2680 = vmatpush.msrb.mxu3 %v6445_v59  ;;  %2898 = vmatpush.msrb.mxu0 %v6453_v62  ;;  %v8430_v59 = vld [vmem:[#allocation79_spill] sm:$0xff] }
 0x906   :  { %2918 = vmatpush.msra.mxu1 %v6459_v61  ;;  %2938 = vmatpush.msra.mxu2 %v6466_v32  ;;  %v8432_v62 = vld [vmem:[#allocation51_spill] sm:$0xff]  ;;  %v8433_v61 = vld [vmem:[#allocation54_spill] sm:$0xff]  ;;  %v8434_v32 = vld [vmem:[#allocation80_spill] sm:$0xff] }
 0x907   :  { %2681 = vmatpush.msrb.mxu3 %v6451_v48  ;;  %2899 = vmatpush.msrb.mxu0 %v8424_v57  ;;  %v8431_v48 = vld [vmem:[#allocation53_spill] sm:$0xff] }
 0x908   :  { %2919 = vmatpush.msra.mxu1 %v8425_v42  ;;  %2939 = vmatpush.msra.mxu2 %v8426_v27  ;;  %v8468_v57 = vld [vmem:[#allocation61_spill] sm:$0xff]  ;;  %v8469_v42 = vld [vmem:[#allocation126_spill] sm:$0xff] }
 0x909   :  { %2682 = vmatpush.msrb.mxu3 %v8427_v19  ;;  %2900 = vmatpush.msrb.mxu0 %v8428_v21  ;;  %v8470_v27 = vld [vmem:[#allocation117_spill] sm:$0xff]  ;;  %v8471_v19 = vld [vmem:[#allocation62_spill] sm:$0xff]  ;;  %v8473_v21 = vld [vmem:[#allocation63_spill] sm:$0xff] }
 0x90a   :  { %2920 = vmatpush.msra.mxu1 %v8429_v37  ;;  %2940 = vmatpush.msra.mxu2 %v6490_v4  ;;  %v8435_v4 = vld [vmem:[#allocation56_spill] sm:$0xff]  ;;  %v8475_v37 = vld [vmem:[#allocation65_spill] sm:$0xff] }
 0x90b   :  { %2683 = vmatpush.msrb.mxu3 %v8430_v59  ;;  %2636 = vmatmul.f32.vlgmr.msra.gmra.mxu0 %v6800_v33  ;;  %v8477_v59 = vld [vmem:[#allocation16_spill] sm:$0xff] }
 0x90c   :  { %2616 = vmatmul.f32.vlgmr.msra.gmra.mxu3 %v6800_v33  ;;  %2656 = vmatmul.f32.vlgmr.msrb.gmra.mxu1 %v6800_v33 }
 0x90d   :  { %2676 = vmatmul.f32.vlgmr.msrb.gmra.mxu2 %v6800_v33  ;;  %2684 = vmatpush.msrb.mxu3 %v8431_v48  ;;  %v8478_v48 = vld [vmem:[#allocation84_spill] sm:$0xff] }
 0x90e   :  { %2901 = vmatpush.msrb.mxu0 %v8432_v62  ;;  %2921 = vmatpush.msra.mxu1 %v6496_v5  ;;  %v8442_v5 = vld [vmem:[#allocation58_spill] sm:$0xff]  ;;  %v8480_v62 = vld [vmem:[#allocation112_spill] sm:$0xff] }
 0x90f   :  { %2685 = vmatpush.msrb.mxu3 %v8433_v61  ;;  %2941 = vmatpush.msra.mxu2 %v8434_v32  ;;  %v8482_v61 = vld [vmem:[#allocation119_spill] sm:$0xff]  ;;  %v6891_v32 = vld [vmem:[#allocation8 + $0x458] sm:$0xff] }
 0x910   :  { %2902 = vmatpush.msrb.mxu0 %v8435_v4  ;;  %2922 = vmatpush.msra.mxu1 %v8436_v41  ;;  %v6894_v4 = vld [vmem:[#allocation8 + $0x410] sm:$0xff]  ;;  %v6897_v41 = vld [vmem:[#allocation8 + $0x3c8] sm:$0xff] }
 0x911   :  { %2686 = vmatpush.msrb.mxu3 %v8437_v45  ;;  %2942 = vmatpush.msra.mxu2 %v8438_v20  ;;  %v6900_v45 = vld [vmem:[#allocation8 + $0x380] sm:$0xff]  ;;  %v6913_v20 = vld [vmem:[#allocation8 + $0x470] sm:$0xff] }
 0x912   :  { %2903 = vmatpush.msrb.mxu0 %v8439_v34  ;;  %2923 = vmatpush.msra.mxu1 %v8440_v47  ;;  %v6917_v34 = vld [vmem:[#allocation8 + $0x2f0] sm:$0xff]  ;;  %v6919_v47 = vld [vmem:[#allocation8 + $0x418] sm:$0xff] }
 0x913   :  { %2687 = vmatpush.msrb.mxu3 %v8441_v26  ;;  %2943 = vmatpush.msra.mxu2 %v6578_v55  ;;  %v8451_v55 = vld [vmem:[#allocation49_spill] sm:$0xff] }
 0x914   :  { %2904 = vmatpush.msrb.mxu0 %v8442_v5  ;;  %2924 = vmatpush.msra.mxu1 %v8443_v46  ;;  %v6921_v26 = vld [vmem:[#allocation8 + $0x420] sm:$0xff]  ;;  %v6925_v5 = vld [vmem:[#allocation8 + $0x428] sm:$0xff] }
 0x915   :  { %2688 = vmatpush.msrb.mxu3 %v8444_v43  ;;  %2944 = vmatpush.msra.mxu2 %v6588_v1  ;;  %v8455_v1 = vld [vmem:[#allocation47_spill] sm:$0xff]  ;;  %v6929_v46 = vld [vmem:[#allocation8 + $0x2a8] sm:$0xff] }
 0x916   :  { %2905 = vmatpush.msrb.mxu0 %v8445_v51  ;;  %2925 = vmatpush.msra.mxu1 %v8446_v2  ;;  %v6931_v43 = vld [vmem:[#allocation8 + $0x3d0] sm:$0xff]  ;;  %v6933_v51 = vld [vmem:[#allocation8 + $0x3d8] sm:$0xff]  ;;  %v6937_v2 = vld [vmem:[#allocation8 + $0x3e0] sm:$0xff] }
 0x917   :  { %2689 = vmatpush.msrb.mxu3 %v8447_v63  ;;  %2945 = vmatpush.msra.mxu2 %v8448_v39  ;;  %v6941_v63 = vld [vmem:[#allocation8 + $0x260] sm:$0xff]  ;;  %v6943_v39 = vld [vmem:[#allocation8 + $0x388] sm:$0xff] }
 0x918   :  { %2906 = vmatpush.msrb.mxu0 %v8449_v7  ;;  %2926 = vmatpush.msra.mxu1 %v8450_v9  ;;  %v6945_v7 = vld [vmem:[#allocation8 + $0x390] sm:$0xff] }
 0x919   :  { %2690 = vmatpush.msrb.mxu3 %v8451_v55  ;;  %2946 = vmatpush.msra.mxu2 %v8452_v10  ;;  %v6949_v55 = vld [vmem:[#allocation8 + $0x398] sm:$0xff] }
 0x91a   :  { %2907 = vmatpush.msrb.mxu0 %v8453_v11  ;;  %2927 = vmatpush.msra.mxu1 %v8454_v53  ;;  %v6953_v10 = vld [vmem:[#allocation8 + $0x218] sm:$0xff]  ;;  %v6955_v11 = vld [vmem:[#allocation8 + $0x340] sm:$0xff]  ;;  %v6957_v53 = vld [vmem:[#allocation8 + $0x348] sm:$0xff] }
 0x91b   :  { %2691 = vmatpush.msrb.mxu3 %v8455_v1  ;;  %2947 = vmatpush.msra.mxu2 %v8456_v22  ;;  %v6962_v1 = vld [vmem:[#allocation8 + $0x350] sm:$0xff] }
 0x91c   :  { %2908 = vmatpush.msrb.mxu0 %v8457_v23  ;;  %2928 = vmatpush.msra.mxu1 %v6636_v52  ;;  %v8467_v52 = vld [vmem:[#allocation113_spill] sm:$0xff]  ;;  %v6968_v23 = vld [vmem:[#allocation8 + $0x1d0] sm:$0xff] }
 0x91d   :  { %2692 = vmatpush.msrb.mxu3 %v8458_v25  ;;  %2948 = vmatpush.msra.mxu2 %v8459_v28  ;;  %v6970_v25 = vld [vmem:[#allocation8 + $0x2f8] sm:$0xff]  ;;  %v6972_v28 = vld [vmem:[#allocation8 + $0x300] sm:$0xff] }
 0x91e   :  { %2909 = vmatpush.msrb.mxu0 %v8460_v0  ;;  %2929 = vmatpush.msra.mxu1 %v8461_v15  ;;  %v6976_v0 = vld [vmem:[#allocation8 + $0x308] sm:$0xff]  ;;  %v8485_v15 = vld [vmem:[#allocation97_spill] sm:$0xff] }
 0x91f   :  { %2693 = vmatpush.msrb.mxu3 %v8462_v24  ;;  %2949 = vmatpush.msra.mxu2 %v8463_v13  ;;  %v2710_v24 = vadd.f32 %v8485_v15, %v8298_v44  ;;  %v6982_v13 = vld [vmem:[#allocation8 + $0x188] sm:$0xff]  ;;  %v7031_v15 = vld [vmem:[#allocation8 + $0x1d8] sm:$0xff] }
 0x920   :  { %2910 = vmatpush.msrb.mxu0 %v8464_v35  ;;  %2930 = vmatpush.msra.mxu1 %v6658_v3  ;;  %v8472_v3 = vld [vmem:[#allocation120_spill] sm:$0xff]  ;;  %v6984_v35 = vld [vmem:[#allocation8 + $0x2b0] sm:$0xff]  ;;  %8493 = vst [vmem:[#allocation23_spill] sm:$0xff] %v7031_v15 }
 0x921   :  { %2694 = vmatpush.msrb.mxu3 %v8465_v18  ;;  %2950 = vmatpush.msra.mxu2 %v8466_v16  ;;  %v6986_v18 = vld [vmem:[#allocation8 + $0x2b8] sm:$0xff] }
 0x922   :  { %2911 = vmatpush.msrb.mxu0 %v8467_v52  ;;  %2931 = vmatpush.msra.mxu1 %v6668_v8  ;;  %v8474_v8 = vld [vmem:[#allocation64_spill] sm:$0xff]  ;;  %v6992_v52 = vld [vmem:[#allocation8 + $0x2c0] sm:$0xff] }
 0x923   :  { %2695 = vmatpush.msrb.mxu3 %v8468_v57  ;;  %2951 = vmatpush.msra.mxu2 %v8469_v42  ;;  %v6998_v42 = vld [vmem:[#allocation8 + $0x140] sm:$0xff] }
 0x924   :  { %2696 = vmatmul.f32.vlgmr.msrb.gmra.mxu3 %v6800_v33  ;;  %2912 = vmatpush.msrb.mxu0 %v8470_v27  ;;  %v8476_v33 = vld [vmem:[#allocation69_spill] sm:$0xff]  ;;  %v7000_v27 = vld [vmem:[#allocation8 + $0x268] sm:$0xff] }
 0x925   :  { %2958 = vmatpush.msra.mxu3 %v8471_v19  ;;  %2932 = vmatpush.msra.mxu1 %v6678_v58  ;;  %v8479_v58 = vld [vmem:[#allocation88_spill] sm:$0xff]  ;;  %v7002_v19 = vld [vmem:[#allocation8 + $0x270] sm:$0xff] }
 0x926   :  { %2913 = vmatpush.msrb.mxu0 %v8472_v3  ;;  %2952 = vmatpush.msra.mxu2 %v6680_v36  ;;  %v8481_v36 = vld [vmem:[#allocation116_spill] sm:$0xff]  ;;  %8486 = vst [vmem:[#allocation28_spill] sm:$0xff] %v7002_v19  ;;  %v7004_v3 = vstv %s2703_s21 }
 0x927   :  { %2959 = vmatpush.msra.mxu3 %v8473_v21  ;;  %2933 = vmatpush.msra.mxu1 %v6688_v50  ;;  %v8483_v50 = vld [vmem:[#allocation123_spill] sm:$0xff] }
 0x928   :  { %2953 = vmatpush.msra.mxu2 %v6690_v56  ;;  %v8484_v56 = vld [vmem:[#allocation125_spill] sm:$0xff]  ;;  %2978 = vmatpush.msra.mxu0 %v6891_v32 }
 0x929   :  { %2960 = vmatpush.msra.mxu3 %v8474_v8  ;;  %v7006_v8 = vstv %s2726_s22 }
 0x92a   :  { %2979 = vmatpush.msra.mxu0 %v6894_v4 }
 0x92b   :  { %2961 = vmatpush.msra.mxu3 %v8475_v37  ;;  %v7010_v37 = vld [vmem:[#allocation8 + $0x278] sm:$0xff] }
 0x92c   :  { %2980 = vmatpush.msra.mxu0 %v6897_v41  ;;  %8487 = vst [vmem:[#allocation34_spill] sm:$0xff] %v7010_v37 }
 0x92d   :  { %2962 = vmatpush.msra.mxu3 %v8476_v33  ;;  %v2719_v33 = vmul.f32 %v7004_v3, %v2710_v24  ;;  %v7033_v24 = vld [vmem:[#allocation8 + $0x1e0] sm:$0xff] }
 0x92e   :  { %2981 = vmatpush.msra.mxu0 %v6900_v45  ;;  %8494 = vst [vmem:[#allocation25_spill] sm:$0xff] %v7033_v24 }
 0x92f   :  { %2963 = vmatpush.msra.mxu3 %v8477_v59 }
 0x931   :  { %2964 = vmatpush.msra.mxu3 %v8478_v48  ;;  %v7016_v48 = vld [vmem:[#allocation8 + $0xf8] sm:$0xff] }
 0x932   :  { %8488 = vst [vmem:[#allocation17_spill] sm:$0xff] %v7016_v48 }
 0x933   :  { %2965 = vmatpush.msra.mxu3 %v8479_v58  ;;  %v7018_v58 = vld [vmem:[#allocation8 + $0x220] sm:$0xff] }
 0x934   :  { %8489 = vst [vmem:[#allocation24_spill] sm:$0xff] %v7018_v58 }
 0x935   :  { %2966 = vmatpush.msra.mxu3 %v8480_v62  ;;  %v7020_v62 = vld [vmem:[#allocation8 + $0x228] sm:$0xff] }
 0x936   :  { %8490 = vst [vmem:[#allocation32_spill] sm:$0xff] %v7020_v62 }
 0x937   :  { %2967 = vmatpush.msra.mxu3 %v8481_v36  ;;  %v7024_v36 = vld [vmem:[#allocation8 + $0x230] sm:$0xff] }
 0x938   :  { %8491 = vst [vmem:[#allocation95_spill] sm:$0xff] %v7024_v36 }
 0x939   :  { %2968 = vmatpush.msra.mxu3 %v8482_v61 }
 0x93b   :  { %2969 = vmatpush.msra.mxu3 %v8483_v50 }
 0x93d   :  { %2970 = vmatpush.msra.mxu3 %v8484_v56  ;;  %v7029_v56 = vld [vmem:[#allocation8 + $0xb0] sm:$0xff] }
 0x93e   :  { %8492 = vst [vmem:[#allocation18_spill] sm:$0xff] %v7029_v56 }
 0x93f   :  { %2971 = vmatpush.msra.mxu3 %v6672_v31  ;;  %v6903_v31 = vld [vmem:[#allocation8 + $0x338] sm:$0xff] }
 0x940   :  { %2982 = vmatpush.msra.mxu0 %v6903_v31 }
 0x941   :  { %2972 = vmatpush.msra.mxu3 %v6682_v38  ;;  %v6905_v38 = vld [vmem:[#allocation8 + $0x460] sm:$0xff] }
 0x942   :  { %2998 = vmatpush.msrb.mxu1 %v6905_v38  ;;  %2983 = vmatpush.msra.mxu0 %v6917_v34 }
 0x943   :  { %2973 = vmatpush.msra.mxu3 %v6692_v54  ;;  %v6907_v54 = vld [vmem:[#allocation8 + $0x468] sm:$0xff] }
 0x944   :  { %3018 = vmatpush.msrb.mxu2 %v6907_v54  ;;  %2999 = vmatpush.msrb.mxu1 %v6919_v47 }
 0x945   :  { %3038 = vmatpush.msrb.mxu3 %v6913_v20  ;;  %2984 = vmatpush.msra.mxu0 %v6929_v46 }
 0x946   :  { %3019 = vmatpush.msrb.mxu2 %v6921_v26  ;;  %3000 = vmatpush.msrb.mxu1 %v6931_v43 }
 0x947   :  { %3039 = vmatpush.msrb.mxu3 %v6925_v5  ;;  %2985 = vmatpush.msra.mxu0 %v6941_v63 }
 0x948   :  { %3020 = vmatpush.msrb.mxu2 %v6933_v51  ;;  %3001 = vmatpush.msrb.mxu1 %v6943_v39 }
 0x949   :  { %3040 = vmatpush.msrb.mxu3 %v6937_v2  ;;  %2986 = vmatpush.msra.mxu0 %v6953_v10 }
 0x94a   :  { %3021 = vmatpush.msrb.mxu2 %v6945_v7  ;;  %3002 = vmatpush.msrb.mxu1 %v6955_v11 }
 0x94b   :  { %3041 = vmatpush.msrb.mxu3 %v6949_v55  ;;  %2987 = vmatpush.msra.mxu0 %v6968_v23 }
 0x94c   :  { %3022 = vmatpush.msrb.mxu2 %v6957_v53  ;;  %3003 = vmatpush.msrb.mxu1 %v6970_v25 }
 0x94d   :  { %3042 = vmatpush.msrb.mxu3 %v6962_v1  ;;  %2988 = vmatpush.msra.mxu0 %v6982_v13 }
 0x94e   :  { %3023 = vmatpush.msrb.mxu2 %v6972_v28  ;;  %3004 = vmatpush.msrb.mxu1 %v6984_v35 }
 0x94f   :  { %3043 = vmatpush.msrb.mxu3 %v6976_v0  ;;  %2989 = vmatpush.msra.mxu0 %v6998_v42 }
 0x950   :  { %3024 = vmatpush.msrb.mxu2 %v6986_v18  ;;  %3005 = vmatpush.msrb.mxu1 %v7000_v27 }
 0x951   :  { %3044 = vmatpush.msrb.mxu3 %v6992_v52  ;;  %2990 = vmatpush.msra.mxu0 %v7016_v48 }
 0x952   :  { %3025 = vmatpush.msrb.mxu2 %v7002_v19  ;;  %3006 = vmatpush.msrb.mxu1 %v7018_v58  ;;  %v7047_v58 = vld [vmem:[#allocation8 + $0x198] sm:$0xff] }
 0x953   :  { %3045 = vmatpush.msrb.mxu3 %v7010_v37  ;;  %2991 = vmatpush.msra.mxu0 %v7029_v56 }
 0x954   :  { %3026 = vmatpush.msrb.mxu2 %v7020_v62  ;;  %3007 = vmatpush.msrb.mxu1 %v7031_v15  ;;  %v7045_v62 = vld [vmem:[#allocation8 + $0x190] sm:$0xff]  ;;  %v7053_v15 = vld [vmem:[#allocation8 + $0x20] sm:$0xff] }
 0x955   :  { %3046 = vmatpush.msrb.mxu3 %v7024_v36  ;;  %v7043_v36 = vld [vmem:[#allocation8 + $0x68] sm:$0xff]  ;;  %8498 = vst [vmem:[#allocation26_spill] sm:$0xff] %v7045_v62 }
 0x956   :  { %3027 = vmatpush.msrb.mxu2 %v7033_v24  ;;  %8497 = vst [vmem:[#allocation21_spill] sm:$0xff] %v7043_v36  ;;  %2992 = vmatpush.msra.mxu0 %v7043_v36  ;;  %v7063_v36 = vld [vmem:[#allocation8 + $0x150] sm:$0xff] }
 0x957   :  { %3008 = vmatpush.msrb.mxu1 %v7045_v62  ;;  %v7065_v62 = vld [vmem:[#allocation8 + $0x158] sm:$0xff] }
 0x958   :  { %3028 = vmatpush.msrb.mxu2 %v7047_v58  ;;  %2993 = vmatpush.msra.mxu0 %v7053_v15 }
 0x95a   :  { %3029 = vmatpush.msrb.mxu2 %v7063_v36 }
 0x980   :  { %v2557_v9 = vpop.f32.mrf.mxu0 }
 0x981   :  { %v6964_v22 = vpop.f32.mrf.mxu1  ;;  %v2723_v61 = vadd.f32 %v2719_v33, %v2557_v9  ;;  %v7039_v9 = vld [vmem:[#allocation8 + $0x1e8] sm:$0xff] }
 0x982   :  { %8496 = vst [vmem:[#allocation20_spill] sm:$0xff] %v7039_v9  ;;  %3047 = vmatpush.msrb.mxu3 %v7039_v9  ;;  %v8500_v9 = vld [vmem:[#allocation99_spill] sm:$0xff] }
 0x983   :  { %v2712_v56 = vadd.f32 %v8500_v9, %v8068_v49  ;;  %v7077_v49 = vld [vmem:[#allocation8 + $0x100] sm:$0xff] }
 0x986   :  { %v6988_v16 = vpop.f32.mrf.mxu3 }
 0x987   :  { %v6994_v57 = vpop.f32.mrf.mxu2 }
 0x988   :  { %v2637_v21 = vpop.f32.mrf.mxu0 }
 0x989   :  { %v2714_v59 = vadd.f32 %v2637_v21, %v6749_v17  ;;  %v8495_v21 = vld [vmem:[#allocation96_spill] sm:$0xff] }
 0x98a   :  { %v2709_v17 = vadd.f32 %v8495_v21, %v8296_v60  ;;  %v7051_v21 = vld [vmem:[#allocation8 + $0x1a0] sm:$0xff] }
 0x98b   :  { %v2729_v50 = vmul.f32 %v7006_v8, %v2714_v59  ;;  %v2657_v59 = vpop.f32.mrf.mxu1  ;;  %3048 = vmatpush.msrb.mxu3 %v7051_v21 }
 0x98c   :  { %v2718_v44 = vmul.f32 %v7004_v3, %v2709_v17  ;;  %v2715_v37 = vadd.f32 %v2657_v59, %v6763_v40  ;;  %v7079_v59 = vld [vmem:[#allocation8 + $0x108] sm:$0xff]  ;;  %v2721_v40 = vmul.f32 %v7004_v3, %v2712_v56 }
 0x98d   :  { %v2733_v33 = vadd.f32 %v2729_v50, %v2723_v61  ;;  %v7055_v61 = vld [vmem:[#allocation8 + $0x148] sm:$0xff]  ;;  %3049 = vmatpush.msrb.mxu3 %v7065_v62  ;;  %3030 = vmatpush.msrb.mxu2 %v7079_v59 }
 0x98e   :  { %v8499_v50 = vld [vmem:[#allocation98_spill] sm:$0xff]  ;;  %3009 = vmatpush.msrb.mxu1 %v7055_v61  ;;  %v2725_v56 = vadd.f32 %v2721_v40, %v6994_v57 }
 0x98f   :  { %v2711_v24 = vadd.f32 %v8499_v50, %v8300_v6  ;;  %v2740_v60 = vmul.f32 0.5, %v2733_v33  ;;  %v2617_v48 = vpop.f32.mrf.mxu3  ;;  %v2722_v33 = vadd.f32 %v2718_v44, %v6988_v16  ;;  %v7090_v16 = vld [vmem:[#allocation8 + $0xb8] sm:$0xff] }
 0x990   :  { %v2713_v19 = vadd.f32 %v2617_v48, %v6759_v30  ;;  %v2677_v50 = vpop.f32.mrf.mxu2  ;;  %v7081_v48 = vld [vmem:[#allocation8 + $0x110] sm:$0xff]  ;;  %3010 = vmatpush.msrb.mxu1 %v7077_v49 }
 0x991   :  { %v2716_v9 = vadd.f32 %v2677_v50, %v6753_v29  ;;  %4172 = vtanh.f32 %v2740_v60  ;;  %v2720_v50 = vmul.f32 %v7004_v3, %v2711_v24  ;;  %v2730_v60 = vmul.f32 %v7006_v8, %v2715_v37  ;;  %3050 = vmatpush.msrb.mxu3 %v7081_v48  ;;  %v7094_v29 = vld [vmem:[#allocation8 + $0xc8] sm:$0xff]  ;;  %v7103_v37 = vld [vmem:[#allocation8 + $0x78] sm:$0xff]  ;;  %v7105_v24 = vld [vmem:[#allocation8 + $0x80] sm:$0xff] }
 0x992   :  { %v2728_v17 = vmul.f32 %v7006_v8, %v2713_v19  ;;  %v7092_v19 = vld [vmem:[#allocation8 + $0xc0] sm:$0xff]  ;;  %8502 = vst [vmem:[#allocation29_spill] sm:$0xff] %v7094_v29  ;;  %3011 = vmatpush.msrb.mxu1 %v7090_v16 }
 0x993   :  { %v2731_v6 = vmul.f32 %v7006_v8, %v2716_v9  ;;  %8501 = vst [vmem:[#allocation27_spill] sm:$0xff] %v7092_v19  ;;  %3031 = vmatpush.msrb.mxu2 %v7092_v19  ;;  %v2724_v9 = vadd.f32 %v2720_v50, %v6964_v22  ;;  %3051 = vmatpush.msrb.mxu3 %v7094_v29  ;;  %v7101_v8 = vld [vmem:[#allocation8 + $0x70] sm:$0xff]  ;;  %v7110_v22 = vld [vmem:[#allocation8 + $0x28] sm:$0xff]  ;;  %v7114_v50 = vld [vmem:[#allocation8 + $0x38] sm:$0xff] }
 0x994   :  { %v2732_v44 = vadd.f32 %v2728_v17, %v2722_v33  ;;  %8503 = vst [vmem:[#allocation30_spill] sm:$0xff] %v7101_v8  ;;  %3012 = vmatpush.msrb.mxu1 %v7101_v8  ;;  %v7112_v17 = vld [vmem:[#allocation8 + $0x30] sm:$0xff] }
 0x995   :  { %8504 = vst [vmem:[#allocation31_spill] sm:$0xff] %v7103_v37  ;;  %v2735_v33 = vadd.f32 %v2731_v6, %v2725_v56  ;;  %3032 = vmatpush.msrb.mxu2 %v7103_v37  ;;  %v2734_v57 = vadd.f32 %v2730_v60, %v2724_v9  ;;  %3052 = vmatpush.msrb.mxu3 %v7105_v24 }
 0x996   :  { %v2736_v3 = vmul.f32 0.5, %v2732_v44  ;;  %8505 = vst [vmem:[#allocation33_spill] sm:$0xff] %v7105_v24  ;;  %3013 = vmatpush.msrb.mxu1 %v7110_v22 }
 0x997   :  { %v4173_v40 = vpop.eup %4172  ;;  %8506 = vst [vmem:[#allocation35_spill] sm:$0xff] %v7110_v22  ;;  %3033 = vmatpush.msrb.mxu2 %v7112_v17  ;;  %3053 = vmatpush.msrb.mxu3 %v7114_v50  ;;  %v2745_v44 = vmul.f32 0.5, %v2735_v33 }
 0x998   :  { %4174 = vtanh.f32 %v2736_v3  ;;  %8507 = vst [vmem:[#allocation36_spill] sm:$0xff] %v7112_v17  ;;  %v2742_v6 = vmul.f32 0.5, %v4173_v40 }
 0x999   :  { %4176 = vtanh.f32 %v2734_v57 }
 0x99a   :  { %v2743_v60 = vadd.f32 0.5, %v2742_v6  ;;  %4178 = vtanh.f32 %v2745_v44  ;;  %v7126_v44 = vld [vmem:[#allocation8 + $0x478] sm:$0xff] }
 0x99c   :  { %v2749_v37 = vmul.f32 %v2743_v60, %v6796_v14  ;;  %v7132_v14 = vld [vmem:[#allocation8 + $0x430] sm:$0xff]  ;;  %v7153_v60 = vld [vmem:[#allocation8 + $0x400] sm:$0xff] }
 0x99d   :  { %8508 = vst [vmem:[#allocation37_spill] sm:$0xff] %v7132_v14 }
 0x99e   :  { %v4175_v56 = vpop.eup %4174  ;;  %8514 = vst [vmem:[#allocation72_spill] sm:$0xff] %v7153_v60 }
 0x99f   :  { %v2738_v9 = vmul.f32 0.5, %v4175_v56  ;;  %v4177_v24 = vpop.eup %4176  ;;  %v7151_v56 = vld [vmem:[#allocation8 + $0x3f8] sm:$0xff] }
 0x9a0   :  { %v4179_v29 = vpop.eup %4178  ;;  %8513 = vst [vmem:[#allocation42_spill] sm:$0xff] %v7151_v56 }
 0x9a1   :  { %v2739_v3 = vadd.f32 0.5, %v2738_v9  ;;  %v2747_v22 = vmul.f32 0.5, %v4179_v29  ;;  %v7134_v29 = vld [vmem:[#allocation8 + $0x438] sm:$0xff]  ;;  %v7155_v9 = vld [vmem:[#allocation8 + $0x3a0] sm:$0xff] }
 0x9a2   :  { %8515 = vst [vmem:[#allocation73_spill] sm:$0xff] %v7155_v9 }
 0x9a3   :  { %v2750_v8 = vmul.f32 %v4177_v24, %v2739_v3  ;;  %v2748_v33 = vadd.f32 0.5, %v2747_v22  ;;  %v7142_v24 = vld [vmem:[#allocation8 + $0x3e8] sm:$0xff]  ;;  %v7159_v3 = vld [vmem:[#allocation8 + $0x3b0] sm:$0xff] }
 0x9a4   :  { %8510 = vst [vmem:[#allocation39_spill] sm:$0xff] %v7142_v24  ;;  %v7144_v22 = vld [vmem:[#allocation8 + $0x3a8] sm:$0xff] }
 0x9a5   :  { %v7120_v19 = vadd.f32 %v2750_v8, %v2749_v37  ;;  %v7136_v8 = vld [vmem:[#allocation8 + $0x3f0] sm:$0xff]  ;;  %v7140_v37 = vld [vmem:[#allocation8 + $0x440] sm:$0xff]  ;;  %8511 = vst [vmem:[#allocation40_spill] sm:$0xff] %v7144_v22 }
 0x9a6   :  { %8509 = vst [vmem:[#allocation38_spill] sm:$0xff] %v7136_v8 }
 0x9a7   :  { %4180 = vtanh.f32 %v7120_v19  ;;  %v2697_v17 = vpop.f32.mrf.mxu3  ;;  %8516 = vst [vmem:[#allocation15_spill] sm:$0xff] %v7159_v3 }
 0x9a8   :  { %v2700_v40 = vadd.f32 %v2697_v17, %v8423_v12  ;;  %v7147_v17 = vld [vmem:[#allocation8 + $0x448] sm:$0xff] }
 0x9a9   :  { %8512 = vst [vmem:[#allocation41_spill] sm:$0xff] %v7147_v17 }
 0x9aa   :  { %2701 = vst [vmem:[#allocation10 + $0x8] sm:$0xff] %v2700_v40  ;;  %v7163_v40 = vld [vmem:[#allocation8 + $0x358] sm:$0xff] }
 0x9ab   :  { %8517 = vst [vmem:[#allocation74_spill] sm:$0xff] %v7163_v40 }
 0x9ad   :  { %v4181_v57 = vpop.eup %4180 }
 0x9ae   :  { %v7124_v6 = vmul.f32 %v4181_v57, %v2748_v33  ;;  %v7169_v33 = vld [vmem:[#allocation8 + $0x360] sm:$0xff]  ;;  %v7171_v57 = vld [vmem:[#allocation8 + $0x3b8] sm:$0xff] }
 0x9af   :  { %8518 = vst [vmem:[#allocation77_spill] sm:$0xff] %v7169_v33 }
 0x9b0   :  { %2914 = vmatmul.f32.vlgmr.msrb.gmra.mxu0 %v7124_v6  ;;  %2934 = vmatmul.f32.vlgmr.msra.gmra.mxu1 %v7124_v6  ;;  %8519 = vst [vmem:[#allocation78_spill] sm:$0xff] %v7171_v57 }
 0x9b1   :  { %2954 = vmatmul.f32.vlgmr.msra.gmra.mxu2 %v7124_v6  ;;  %2974 = vmatmul.f32.vlgmr.msra.gmra.mxu3 %v7124_v6 }
 0x9b2   :  { %3058 = vmatpush.msrb.mxu0 %v7126_v44  ;;  %3276 = vmatpush.msra.mxu1 %v7134_v29 }
 0x9b3   :  { %3296 = vmatpush.msra.mxu2 %v7140_v37  ;;  %3316 = vmatpush.msra.mxu3 %v7147_v17  ;;  %v7201_v17 = vld [vmem:[#allocation8 + $0x2d8] sm:$0xff] }
 0x9b4   :  { %3059 = vmatpush.msrb.mxu0 %v7132_v14  ;;  %3277 = vmatpush.msra.mxu1 %v7136_v8  ;;  %v7192_v8 = vld [vmem:[#allocation8 + $0x2d0] sm:$0xff]  ;;  %v7195_v14 = vld [vmem:[#allocation8 + $0x328] sm:$0xff]  ;;  %8528 = vst [vmem:[#allocation56_spill] sm:$0xff] %v7201_v17 }
 0x9b5   :  { %3297 = vmatpush.msra.mxu2 %v7151_v56  ;;  %3317 = vmatpush.msra.mxu3 %v7153_v60  ;;  %v7185_v60 = vld [vmem:[#allocation8 + $0x2c8] sm:$0xff]  ;;  %v7189_v56 = vld [vmem:[#allocation8 + $0x320] sm:$0xff]  ;;  %8525 = vst [vmem:[#allocation51_spill] sm:$0xff] %v7192_v8 }
 0x9b6   :  { %3060 = vmatpush.msrb.mxu0 %v7142_v24  ;;  %3278 = vmatpush.msra.mxu1 %v7144_v22  ;;  %v7175_v24 = vld [vmem:[#allocation8 + $0x310] sm:$0xff]  ;;  %v7177_v22 = vld [vmem:[#allocation8 + $0x368] sm:$0xff]  ;;  %8524 = vst [vmem:[#allocation53_spill] sm:$0xff] %v7185_v60 }
 0x9b7   :  { %3298 = vmatpush.msra.mxu2 %v7159_v3  ;;  %8520 = vst [vmem:[#allocation75_spill] sm:$0xff] %v7175_v24  ;;  %v7181_v3 = vld [vmem:[#allocation8 + $0x318] sm:$0xff]  ;;  %3318 = vmatpush.msra.mxu3 %v7171_v57 }
 0x9b8   :  { %3061 = vmatpush.msrb.mxu0 %v7155_v9  ;;  %3014 = vmatmul.f32.vlgmr.msrb.gmra.mxu1 %v7124_v6  ;;  %8521 = vst [vmem:[#allocation76_spill] sm:$0xff] %v7177_v22  ;;  %v7183_v9 = vld [vmem:[#allocation8 + $0x370] sm:$0xff]  ;;  %v7209_v57 = vld [vmem:[#allocation8 + $0x238] sm:$0xff] }
 0x9b9   :  { %2994 = vmatmul.f32.vlgmr.msra.gmra.mxu0 %v7124_v6  ;;  %3034 = vmatmul.f32.vlgmr.msrb.gmra.mxu2 %v7124_v6  ;;  %8522 = vst [vmem:[#allocation52_spill] sm:$0xff] %v7181_v3 }
 0x9ba   :  { %3054 = vmatmul.f32.vlgmr.msrb.gmra.mxu3 %v7124_v6  ;;  %3062 = vmatpush.msrb.mxu0 %v7163_v40  ;;  %8523 = vst [vmem:[#allocation79_spill] sm:$0xff] %v7183_v9  ;;  %v7197_v40 = vld [vmem:[#allocation8 + $0x280] sm:$0xff] }
 0x9bb   :  { %3279 = vmatpush.msra.mxu1 %v7169_v33  ;;  %3299 = vmatpush.msra.mxu2 %v7177_v22  ;;  %8526 = vst [vmem:[#allocation54_spill] sm:$0xff] %v7195_v14  ;;  %v7204_v33 = vld [vmem:[#allocation8 + $0x288] sm:$0xff]  ;;  %v7213_v22 = vld [vmem:[#allocation8 + $0x290] sm:$0xff] }
 0x9bc   :  { %3063 = vmatpush.msrb.mxu0 %v7175_v24  ;;  %8527 = vst [vmem:[#allocation80_spill] sm:$0xff] %v7197_v40  ;;  %3319 = vmatpush.msra.mxu3 %v7183_v9  ;;  %v7207_v24 = vld [vmem:[#allocation8 + $0x2e0] sm:$0xff]  ;;  %v7221_v9 = vld [vmem:[#allocation8 + $0x1f0] sm:$0xff] }
 0x9bd   :  { %3280 = vmatpush.msra.mxu1 %v7181_v3  ;;  %8529 = vst [vmem:[#allocation67_spill] sm:$0xff] %v7204_v33  ;;  %3300 = vmatpush.msra.mxu2 %v7189_v56  ;;  %v7216_v3 = vld [vmem:[#allocation8 + $0x240] sm:$0xff] }
 0x9be   :  { %3064 = vmatpush.msrb.mxu0 %v7185_v60  ;;  %8530 = vst [vmem:[#allocation81_spill] sm:$0xff] %v7209_v57  ;;  %3320 = vmatpush.msra.mxu3 %v7195_v14  ;;  %v7219_v60 = vld [vmem:[#allocation8 + $0x298] sm:$0xff]  ;;  %v7229_v14 = vld [vmem:[#allocation8 + $0x1a8] sm:$0xff] }
 0x9bf   :  { %3281 = vmatpush.msra.mxu1 %v7192_v8  ;;  %8531 = vst [vmem:[#allocation68_spill] sm:$0xff] %v7216_v3  ;;  %3301 = vmatpush.msra.mxu2 %v7201_v17  ;;  %v7226_v8 = vld [vmem:[#allocation8 + $0x1f8] sm:$0xff]  ;;  %v7236_v17 = vld [vmem:[#allocation8 + $0x160] sm:$0xff] }
 0x9c0   :  { %3065 = vmatpush.msrb.mxu0 %v7197_v40  ;;  %8532 = vst [vmem:[#allocation82_spill] sm:$0xff] %v7219_v60  ;;  %3321 = vmatpush.msra.mxu3 %v7207_v24  ;;  %v7234_v40 = vld [vmem:[#allocation8 + $0x1b0] sm:$0xff] }
 0x9c1   :  { %8533 = vst [vmem:[#allocation71_spill] sm:$0xff] %v7221_v9  ;;  %3282 = vmatpush.msra.mxu1 %v7204_v33  ;;  %3302 = vmatpush.msra.mxu2 %v7213_v22  ;;  %v7242_v33 = vld [vmem:[#allocation8 + $0x118] sm:$0xff] }
 0x9c2   :  { %3066 = vmatpush.msrb.mxu0 %v7209_v57  ;;  %8534 = vst [vmem:[#allocation83_spill] sm:$0xff] %v7226_v8  ;;  %3322 = vmatpush.msra.mxu3 %v7219_v60  ;;  %v7240_v57 = vld [vmem:[#allocation8 + $0x168] sm:$0xff] }
 0x9c3   :  { %8535 = vst [vmem:[#allocation58_spill] sm:$0xff] %v7229_v14  ;;  %3283 = vmatpush.msra.mxu1 %v7216_v3  ;;  %v7246_v3 = vld [vmem:[#allocation8 + $0xd0] sm:$0xff]  ;;  %v7307_v60 = vld [vmem:[#allocation8 + $0x1c8] sm:$0xff] }
 0x9c4   :  { %3067 = vmatpush.msrb.mxu0 %v7221_v9  ;;  %8536 = vst [vmem:[#allocation22_spill] sm:$0xff] %v7234_v40  ;;  %v7250_v9 = vld [vmem:[#allocation8 + $0x88] sm:$0xff] }
 0x9c5   :  { %8537 = vst [vmem:[#allocation57_spill] sm:$0xff] %v7236_v17  ;;  %3284 = vmatpush.msra.mxu1 %v7226_v8  ;;  %v7253_v8 = vld [vmem:[#allocation8 + $0x40] sm:$0xff] }
 0x9c6   :  { %3068 = vmatpush.msrb.mxu0 %v7229_v14  ;;  %8538 = vst [vmem:[#allocation59_spill] sm:$0xff] %v7240_v57  ;;  %v7256_v14 = vld [vmem:[#allocation8 + $0x450] sm:$0xff] }
 0x9c7   :  { %8539 = vst [vmem:[#allocation86_spill] sm:$0xff] %v7242_v33  ;;  %3285 = vmatpush.msra.mxu1 %v7234_v40  ;;  %v7299_v40 = vld [vmem:[#allocation8 + $0x90] sm:$0xff] }
 0x9c8   :  { %3069 = vmatpush.msrb.mxu0 %v7236_v17  ;;  %8540 = vst [vmem:[#allocation48_spill] sm:$0xff] %v7246_v3  ;;  %v7260_v17 = vld [vmem:[#allocation8 + $0x408] sm:$0xff] }
 0x9c9   :  { %3286 = vmatpush.msra.mxu1 %v7240_v57  ;;  %8541 = vst [vmem:[#allocation87_spill] sm:$0xff] %v7250_v9  ;;  %v7263_v57 = vld [vmem:[#allocation8 + $0x3c0] sm:$0xff] }
 0x9ca   :  { %3070 = vmatpush.msrb.mxu0 %v7242_v33  ;;  %8542 = vst [vmem:[#allocation66_spill] sm:$0xff] %v7253_v8  ;;  %v7266_v33 = vld [vmem:[#allocation8 + $0x378] sm:$0xff] }
 0x9cb   :  { %8543 = vst [vmem:[#allocation90_spill] sm:$0xff] %v7256_v14 }
 0x9cc   :  { %3071 = vmatpush.msrb.mxu0 %v7246_v3  ;;  %8544 = vst [vmem:[#allocation49_spill] sm:$0xff] %v7260_v17  ;;  %v7269_v3 = vld [vmem:[#allocation8 + $0x330] sm:$0xff] }
 0x9cd   :  { %8545 = vst [vmem:[#allocation91_spill] sm:$0xff] %v7263_v57 }
 0x9ce   :  { %3072 = vmatpush.msrb.mxu0 %v7250_v9  ;;  %8546 = vst [vmem:[#allocation70_spill] sm:$0xff] %v7266_v33  ;;  %v7272_v9 = vld [vmem:[#allocation8 + $0x2e8] sm:$0xff] }
 0x9cf   :  { %8547 = vst [vmem:[#allocation114_spill] sm:$0xff] %v7269_v3 }
 0x9d0   :  { %3073 = vmatpush.msrb.mxu0 %v7253_v8  ;;  %8548 = vst [vmem:[#allocation47_spill] sm:$0xff] %v7272_v9  ;;  %v7283_v8 = vld [vmem:[#allocation8 + $0x250] sm:$0xff] }
 0x9d1   :  { %3074 = vmatmul.f32.vlgmr.msrb.gmra.mxu0 %v7124_v6  ;;  %v7275_v6 = vld [vmem:[#allocation8 + $0x2a0] sm:$0xff]  ;;  %3323 = vmatpush.msra.mxu3 %v7283_v8  ;;  %8557 = vst [vmem:[#allocation89_spill] sm:$0xff] %v7299_v40 }
 0x9d2   :  { %3336 = vmatpush.msra.mxu0 %v7256_v14  ;;  %8549 = vst [vmem:[#allocation115_spill] sm:$0xff] %v7275_v6  ;;  %v7279_v14 = vld [vmem:[#allocation8 + $0x120] sm:$0xff] }
 0x9d3   :  { %8550 = vst [vmem:[#allocation19_spill] sm:$0xff] %v7279_v14  ;;  %3287 = vmatpush.msra.mxu1 %v7279_v14  ;;  %v7303_v14 = vld [vmem:[#allocation8 + $0x1b8] sm:$0xff] }
 0x9d4   :  { %3337 = vmatpush.msra.mxu0 %v7260_v17  ;;  %v7281_v17 = vld [vmem:[#allocation8 + $0x248] sm:$0xff]  ;;  %8559 = vst [vmem:[#allocation124_spill] sm:$0xff] %v7307_v60 }
 0x9d5   :  { %8551 = vst [vmem:[#allocation50_spill] sm:$0xff] %v7281_v17  ;;  %3303 = vmatpush.msra.mxu2 %v7281_v17  ;;  %v7305_v17 = vld [vmem:[#allocation8 + $0x1c0] sm:$0xff] }
 0x9d6   :  { %3338 = vmatpush.msra.mxu0 %v7263_v57  ;;  %v7289_v57 = vld [vmem:[#allocation8 + $0xd8] sm:$0xff]  ;;  %8558 = vst [vmem:[#allocation60_spill] sm:$0xff] %v7305_v17 }
 0x9d7   :  { %8553 = vst [vmem:[#allocation85_spill] sm:$0xff] %v7289_v57  ;;  %3288 = vmatpush.msra.mxu1 %v7289_v57  ;;  %v7317_v57 = vld [vmem:[#allocation8 + $0x170] sm:$0xff] }
 0x9d8   :  { %3339 = vmatpush.msra.mxu0 %v7266_v33  ;;  %v7287_v33 = vld [vmem:[#allocation8 + $0x258] sm:$0xff] }
 0x9d9   :  { %8552 = vst [vmem:[#allocation118_spill] sm:$0xff] %v7287_v33  ;;  %3289 = vmatpush.msra.mxu1 %v7299_v40  ;;  %v7329_v40 = vld [vmem:[#allocation8 + $0x128] sm:$0xff] }
 0x9da   :  { %3340 = vmatpush.msra.mxu0 %v7269_v3  ;;  %v7291_v3 = vld [vmem:[#allocation8 + $0x200] sm:$0xff]  ;;  %8564 = vst [vmem:[#allocation62_spill] sm:$0xff] %v7329_v40 }
 0x9db   :  { %8554 = vst [vmem:[#allocation121_spill] sm:$0xff] %v7291_v3  ;;  %3304 = vmatpush.msra.mxu2 %v7291_v3  ;;  %v7319_v3 = vld [vmem:[#allocation8 + $0x178] sm:$0xff] }
 0x9dc   :  { %3341 = vmatpush.msra.mxu0 %v7272_v9  ;;  %v7297_v9 = vld [vmem:[#allocation8 + $0x210] sm:$0xff]  ;;  %8561 = vst [vmem:[#allocation61_spill] sm:$0xff] %v7319_v3 }
 0x9dd   :  { %8556 = vst [vmem:[#allocation122_spill] sm:$0xff] %v7297_v9  ;;  %3305 = vmatpush.msra.mxu2 %v7303_v14 }
 0x9de   :  { %3342 = vmatpush.msra.mxu0 %v7275_v6  ;;  %v7295_v6 = vld [vmem:[#allocation8 + $0x208] sm:$0xff] }
 0x9df   :  { %8555 = vst [vmem:[#allocation55_spill] sm:$0xff] %v7295_v6  ;;  %3324 = vmatpush.msra.mxu3 %v7295_v6  ;;  %3306 = vmatpush.msra.mxu2 %v7317_v57  ;;  %v7323_v6 = vld [vmem:[#allocation8 + $0x180] sm:$0xff] }
 0x9e0   :  { %3343 = vmatpush.msra.mxu0 %v7287_v33  ;;  %v7315_v33 = vld [vmem:[#allocation8 + $0x48] sm:$0xff]  ;;  %8562 = vst [vmem:[#allocation126_spill] sm:$0xff] %v7323_v6 }
 0x9e1   :  { %3325 = vmatpush.msra.mxu3 %v7305_v17  ;;  %8560 = vst [vmem:[#allocation113_spill] sm:$0xff] %v7315_v33  ;;  %3290 = vmatpush.msra.mxu1 %v7315_v33  ;;  %v7335_v17 = vld [vmem:[#allocation8 + $0x138] sm:$0xff]  ;;  %v7339_v33 = vld [vmem:[#allocation8 + $0xe0] sm:$0xff] }
 0x9e2   :  { %3344 = vmatpush.msra.mxu0 %v7297_v9  ;;  %v7327_v9 = vld [vmem:[#allocation8] sm:$0xff]  ;;  %3307 = vmatpush.msra.mxu2 %v7329_v40  ;;  %8566 = vst [vmem:[#allocation63_spill] sm:$0xff] %v7335_v17 }
 0x9e3   :  { %3326 = vmatpush.msra.mxu3 %v7319_v3  ;;  %8563 = vst [vmem:[#allocation117_spill] sm:$0xff] %v7327_v9  ;;  %3291 = vmatpush.msra.mxu1 %v7327_v9  ;;  %v7341_v3 = vld [vmem:[#allocation8 + $0xe8] sm:$0xff]  ;;  %v7349_v9 = vld [vmem:[#allocation8 + $0x98] sm:$0xff]  ;;  %v7351_v40 = vld [vmem:[#allocation8 + $0xa0] sm:$0xff] }
 0x9e4   :  { %3345 = vmatpush.msra.mxu0 %v7307_v60  ;;  %v7331_v60 = vld [vmem:[#allocation8 + $0x130] sm:$0xff]  ;;  %8567 = vst [vmem:[#allocation64_spill] sm:$0xff] %v7341_v3  ;;  %3308 = vmatpush.msra.mxu2 %v7339_v33 }
 0x9e5   :  { %8565 = vst [vmem:[#allocation120_spill] sm:$0xff] %v7331_v60  ;;  %3327 = vmatpush.msra.mxu3 %v7331_v60  ;;  %3356 = vmatpush.msrb.mxu1 %v6891_v32  ;;  %v7353_v60 = vld [vmem:[#allocation8 + $0xa8] sm:$0xff]  ;;  %v7359_v32 = vld [vmem:[#allocation8 + $0x50] sm:$0xff] }
 0x9e6   :  { %3346 = vmatpush.msra.mxu0 %v7323_v6  ;;  %v7343_v6 = vld [vmem:[#allocation8 + $0xf0] sm:$0xff]  ;;  %8569 = vst [vmem:[#allocation69_spill] sm:$0xff] %v7351_v40  ;;  %3309 = vmatpush.msra.mxu2 %v7349_v9 }
 0x9e7   :  { %8568 = vst [vmem:[#allocation65_spill] sm:$0xff] %v7343_v6  ;;  %3328 = vmatpush.msra.mxu3 %v7341_v3  ;;  %3357 = vmatpush.msrb.mxu1 %v6894_v4  ;;  %v7363_v3 = vld [vmem:[#allocation8 + $0x60] sm:$0xff]  ;;  %v7369_v4 = vld [vmem:[#allocation8 + $0x8] sm:$0xff] }
 0x9e8   :  { %3347 = vmatpush.msra.mxu0 %v7335_v17  ;;  %v7361_v17 = vld [vmem:[#allocation8 + $0x58] sm:$0xff]  ;;  %3310 = vmatpush.msra.mxu2 %v7359_v32 }
 0x9e9   :  { %3329 = vmatpush.msra.mxu3 %v7351_v40  ;;  %3358 = vmatpush.msrb.mxu1 %v6897_v41  ;;  %v7373_v40 = vld [vmem:[#allocation8 + $0x18] sm:$0xff] }
 0x9ea   :  { %3348 = vmatpush.msra.mxu0 %v7343_v6  ;;  %v7371_v6 = vld [vmem:[#allocation8 + $0x10] sm:$0xff]  ;;  %3311 = vmatpush.msra.mxu2 %v7369_v4 }
 0x9eb   :  { %3330 = vmatpush.msra.mxu3 %v7361_v17  ;;  %3359 = vmatpush.msrb.mxu1 %v6900_v45 }
 0x9ec   :  { %3349 = vmatpush.msra.mxu0 %v7353_v60  ;;  %3376 = vmatpush.msrb.mxu2 %v6905_v38  ;;  %v8571_v38 = vld [vmem:[#allocation34_spill] sm:$0xff] }
 0x9ed   :  { %3331 = vmatpush.msra.mxu3 %v7371_v6  ;;  %3360 = vmatpush.msrb.mxu1 %v6903_v31  ;;  %v8570_v31 = vld [vmem:[#allocation28_spill] sm:$0xff] }
 0x9ee   :  { %3350 = vmatpush.msra.mxu0 %v7363_v3  ;;  %3377 = vmatpush.msrb.mxu2 %v6919_v47  ;;  %v8574_v47 = vld [vmem:[#allocation17_spill] sm:$0xff] }
 0x9ef   :  { %3396 = vmatpush.msrb.mxu3 %v6907_v54  ;;  %3361 = vmatpush.msrb.mxu1 %v6917_v34  ;;  %v8572_v54 = vld [vmem:[#allocation44_spill] sm:$0xff] }
 0x9f0   :  { %3351 = vmatpush.msra.mxu0 %v7373_v40  ;;  %3378 = vmatpush.msrb.mxu2 %v6931_v43 }
 0x9f1   :  { %3397 = vmatpush.msrb.mxu3 %v6921_v26  ;;  %3362 = vmatpush.msrb.mxu1 %v6929_v46  ;;  %v8575_v26 = vld [vmem:[#allocation24_spill] sm:$0xff] }
 0x9f2   :  { %3416 = vmatpush.msrb.mxu0 %v6913_v20  ;;  %3379 = vmatpush.msrb.mxu2 %v6943_v39  ;;  %v8573_v20 = vld [vmem:[#allocation101_spill] sm:$0xff]  ;;  %v8577_v46 = vld [vmem:[#allocation100_spill] sm:$0xff] }
 0x9f3   :  { %3398 = vmatpush.msrb.mxu3 %v6933_v51  ;;  %3363 = vmatpush.msrb.mxu1 %v6941_v63  ;;  %v3088_v34 = vadd.f32 %v8573_v20, %v8572_v54  ;;  %v8578_v51 = vld [vmem:[#allocation32_spill] sm:$0xff]  ;;  %v8588_v20 = vld [vmem:[#allocation102_spill] sm:$0xff] }
 0x9f4   :  { %3417 = vmatpush.msrb.mxu0 %v6925_v5  ;;  %3380 = vmatpush.msrb.mxu2 %v6955_v11  ;;  %v8576_v5 = vld [vmem:[#allocation43_spill] sm:$0xff]  ;;  %v3105_v11 = vstv %s3104_s25 }
 0x9f5   :  { %3399 = vmatpush.msrb.mxu3 %v6945_v7  ;;  %3364 = vmatpush.msrb.mxu1 %v6953_v10  ;;  %v3087_v43 = vadd.f32 %v8577_v46, %v8576_v5  ;;  %v8580_v7 = vld [vmem:[#allocation18_spill] sm:$0xff]  ;;  %v3095_v10 = vstv %s3081_s24 }
 0x9f6   :  { %3418 = vmatpush.msrb.mxu0 %v6937_v2  ;;  %3381 = vmatpush.msrb.mxu2 %v6970_v25  ;;  %v8579_v2 = vld [vmem:[#allocation95_spill] sm:$0xff]  ;;  %v3097_v25 = vmul.f32 %v3095_v10, %v3088_v34  ;;  %v8589_v46 = vld [vmem:[#allocation46_spill] sm:$0xff] }
 0x9f7   :  { %3400 = vmatpush.msrb.mxu3 %v6957_v53  ;;  %3365 = vmatpush.msrb.mxu1 %v6968_v23  ;;  %v8583_v23 = vld [vmem:[#allocation20_spill] sm:$0xff] }
 0x9f8   :  { %3419 = vmatpush.msrb.mxu0 %v6949_v55  ;;  %3382 = vmatpush.msrb.mxu2 %v6984_v35  ;;  %v8581_v55 = vld [vmem:[#allocation23_spill] sm:$0xff]  ;;  %v8585_v35 = vld [vmem:[#allocation21_spill] sm:$0xff] }
 0x9f9   :  { %3401 = vmatpush.msrb.mxu3 %v6972_v28  ;;  %3366 = vmatpush.msrb.mxu1 %v6982_v13 }
 0x9fa   :  { %3420 = vmatpush.msrb.mxu0 %v6962_v1  ;;  %3383 = vmatpush.msrb.mxu2 %v7000_v27  ;;  %v8582_v1 = vld [vmem:[#allocation25_spill] sm:$0xff] }
 0x9fb   :  { %3402 = vmatpush.msrb.mxu3 %v6986_v18  ;;  %3367 = vmatpush.msrb.mxu1 %v6998_v42  ;;  %v8586_v18 = vld [vmem:[#allocation26_spill] sm:$0xff] }
 0x9fc   :  { %3421 = vmatpush.msrb.mxu0 %v6976_v0  ;;  %3384 = vmatpush.msrb.mxu2 %v8575_v26  ;;  %v8584_v0 = vld [vmem:[#allocation93_spill] sm:$0xff] }
 0x9fd   :  { %3403 = vmatpush.msrb.mxu3 %v8570_v31  ;;  %3368 = vmatpush.msrb.mxu1 %v8574_v47 }
 0x9fe   :  { %3422 = vmatpush.msrb.mxu0 %v6992_v52  ;;  %3385 = vmatpush.msrb.mxu2 %v8581_v55  ;;  %v3096_v52 = vmul.f32 %v3095_v10, %v3087_v43  ;;  %v8590_v43 = vld [vmem:[#allocation103_spill] sm:$0xff]  ;;  %v8593_v55 = vld [vmem:[#allocation29_spill] sm:$0xff] }
 0x9ff   :  { %3404 = vmatpush.msrb.mxu3 %v8578_v51  ;;  %3369 = vmatpush.msrb.mxu1 %v8580_v7  ;;  %v8592_v7 = vld [vmem:[#allocation27_spill] sm:$0xff] }
 0xa00   :  { %3423 = vmatpush.msrb.mxu0 %v8571_v38  ;;  %3386 = vmatpush.msrb.mxu2 %v8586_v18  ;;  %v8587_v38 = vld [vmem:[#allocation45_spill] sm:$0xff] }
 0xa01   :  { %3405 = vmatpush.msrb.mxu3 %v8582_v1  ;;  %3370 = vmatpush.msrb.mxu1 %v8585_v35  ;;  %v3089_v34 = vadd.f32 %v8588_v20, %v8587_v38  ;;  %v8598_v35 = vld [vmem:[#allocation35_spill] sm:$0xff] }
 0xa02   :  { %3424 = vmatpush.msrb.mxu0 %v8579_v2  ;;  %3387 = vmatpush.msrb.mxu2 %v7055_v61 }
 0xa03   :  { %3406 = vmatpush.msrb.mxu3 %v7047_v58  ;;  %3371 = vmatpush.msrb.mxu1 %v7053_v15  ;;  %v3090_v58 = vadd.f32 %v8590_v43, %v8589_v46 }
 0xa04   :  { %3425 = vmatpush.msrb.mxu0 %v8583_v23  ;;  %3388 = vmatpush.msrb.mxu2 %v7077_v49  ;;  %v8594_v49 = vld [vmem:[#allocation92_spill] sm:$0xff] }
 0xa05   :  { %3407 = vmatpush.msrb.mxu3 %v7063_v36  ;;  %v8591_v36 = vld [vmem:[#allocation94_spill] sm:$0xff] }
 0xa06   :  { %3426 = vmatpush.msrb.mxu0 %v7051_v21  ;;  %3389 = vmatpush.msrb.mxu2 %v7090_v16  ;;  %v8597_v16 = vld [vmem:[#allocation33_spill] sm:$0xff] }
 0xa07   :  { %3408 = vmatpush.msrb.mxu3 %v7079_v59  ;;  %v8595_v59 = vld [vmem:[#allocation30_spill] sm:$0xff] }
 0xa08   :  { %3427 = vmatpush.msrb.mxu0 %v7065_v62  ;;  %3390 = vmatpush.msrb.mxu2 %v8595_v59  ;;  %v8611_v59 = vld [vmem:[#allocation77_spill] sm:$0xff] }
 0xa09   :  { %3409 = vmatpush.msrb.mxu3 %v8592_v7  ;;  %v8604_v7 = vld [vmem:[#allocation72_spill] sm:$0xff] }
 0xa0a   :  { %3428 = vmatpush.msrb.mxu0 %v7081_v48  ;;  %3391 = vmatpush.msrb.mxu2 %v8598_v35  ;;  %v8618_v35 = vld [vmem:[#allocation51_spill] sm:$0xff] }
 0xa0c   :  { %3429 = vmatpush.msrb.mxu0 %v8593_v55  ;;  %v8605_v55 = vld [vmem:[#allocation39_spill] sm:$0xff] }
 0xa0e   :  { %3430 = vmatpush.msrb.mxu0 %v8597_v16  ;;  %v8615_v16 = vld [vmem:[#allocation52_spill] sm:$0xff] }
 0xa10   :  { %3431 = vmatpush.msrb.mxu0 %v7114_v50 }
 0xa2d   :  { %v2915_v41 = vpop.f32.mrf.mxu0  ;;  %v2935_v45 = vpop.f32.mrf.mxu1 }
 0xa2e   :  { %v3101_v27 = vadd.f32 %v3097_v25, %v2935_v45  ;;  %v3100_v47 = vadd.f32 %v3096_v52, %v2915_v41  ;;  %v3098_v41 = vmul.f32 %v3095_v10, %v3089_v34  ;;  %v8596_v25 = vld [vmem:[#allocation31_spill] sm:$0xff]  ;;  %v8599_v52 = vld [vmem:[#allocation36_spill] sm:$0xff] }
 0xa2f   :  { %3410 = vmatpush.msrb.mxu3 %v8596_v25  ;;  %v8614_v25 = vld [vmem:[#allocation79_spill] sm:$0xff] }
 0xa31   :  { %3411 = vmatpush.msrb.mxu3 %v8599_v52  ;;  %v8620_v52 = vld [vmem:[#allocation80_spill] sm:$0xff] }
 0xa34   :  { %v2955_v63 = vpop.f32.mrf.mxu2  ;;  %v2975_v39 = vpop.f32.mrf.mxu3 }
 0xa35   :  { %v3015_v53 = vpop.f32.mrf.mxu1  ;;  %v3102_v48 = vadd.f32 %v3098_v41, %v2955_v63 }
 0xa36   :  { %v2995_v28 = vpop.f32.mrf.mxu0  ;;  %v3092_v13 = vadd.f32 %v3015_v53, %v8584_v0  ;;  %v3099_v53 = vmul.f32 %v3095_v10, %v3090_v58 }
 0xa37   :  { %v3091_v42 = vadd.f32 %v2995_v28, %v6759_v30 }
 0xa38   :  { %v3107_v31 = vmul.f32 %v3105_v11, %v3092_v13  ;;  %v3103_v28 = vadd.f32 %v3099_v53, %v2975_v39  ;;  %v8606_v53 = vld [vmem:[#allocation40_spill] sm:$0xff] }
 0xa39   :  { %v3106_v26 = vmul.f32 %v3105_v11, %v3091_v42 }
 0xa3a   :  { %v3111_v51 = vadd.f32 %v3107_v31, %v3101_v27 }
 0xa3b   :  { %v3110_v21 = vadd.f32 %v3106_v26, %v3100_v47 }
 0xa3c   :  { %v3118_v15 = vmul.f32 0.5, %v3111_v51  ;;  %v3035_v61 = vpop.f32.mrf.mxu2 }
 0xa3d   :  { %v3114_v45 = vmul.f32 0.5, %v3110_v21  ;;  %v3093_v2 = vadd.f32 %v3035_v61, %v8591_v36  ;;  %v3055_v62 = vpop.f32.mrf.mxu3 }
 0xa3e   :  { %4182 = vtanh.f32 %v3118_v15  ;;  %v3094_v1 = vadd.f32 %v3055_v62, %v8594_v49  ;;  %v8603_v62 = vld [vmem:[#allocation42_spill] sm:$0xff] }
 0xa3f   :  { %4184 = vtanh.f32 %v3114_v45  ;;  %v3108_v23 = vmul.f32 %v3105_v11, %v3093_v2  ;;  %v8601_v45 = vld [vmem:[#allocation37_spill] sm:$0xff]  ;;  %v8602_v2 = vld [vmem:[#allocation38_spill] sm:$0xff] }
 0xa40   :  { %v3109_v13 = vmul.f32 %v3105_v11, %v3094_v1  ;;  %v8607_v1 = vld [vmem:[#allocation15_spill] sm:$0xff] }
 0xa41   :  { %v3112_v18 = vadd.f32 %v3108_v23, %v3102_v48  ;;  %v8612_v48 = vld [vmem:[#allocation76_spill] sm:$0xff]  ;;  %v8613_v23 = vld [vmem:[#allocation75_spill] sm:$0xff] }
 0xa42   :  { %v3113_v10 = vadd.f32 %v3109_v13, %v3103_v28  ;;  %v8616_v28 = vld [vmem:[#allocation53_spill] sm:$0xff]  ;;  %v8617_v13 = vld [vmem:[#allocation54_spill] sm:$0xff] }
 0xa43   :  { %4186 = vtanh.f32 %v3112_v18  ;;  %v8619_v18 = vld [vmem:[#allocation56_spill] sm:$0xff] }
 0xa44   :  { %v4183_v42 = vpop.eup %4182  ;;  %v3123_v27 = vmul.f32 0.5, %v3113_v10  ;;  %v8621_v10 = vld [vmem:[#allocation67_spill] sm:$0xff] }
 0xa45   :  { %v4185_v63 = vpop.eup %4184  ;;  %v3120_v31 = vmul.f32 0.5, %v4183_v42  ;;  %v8622_v42 = vld [vmem:[#allocation81_spill] sm:$0xff] }
 0xa46   :  { %v3116_v20 = vmul.f32 0.5, %v4185_v63  ;;  %4188 = vtanh.f32 %v3123_v27  ;;  %v8623_v27 = vld [vmem:[#allocation82_spill] sm:$0xff] }
 0xa47   :  { %v3121_v34 = vadd.f32 0.5, %v3120_v31  ;;  %v8625_v63 = vld [vmem:[#allocation50_spill] sm:$0xff]  ;;  %v8626_v31 = vld [vmem:[#allocation71_spill] sm:$0xff] }
 0xa48   :  { %v3117_v47 = vadd.f32 0.5, %v3116_v20  ;;  %v8627_v20 = vld [vmem:[#allocation83_spill] sm:$0xff] }
 0xa49   :  { %v4187_v26 = vpop.eup %4186  ;;  %v3127_v39 = vmul.f32 %v3121_v34, %v7120_v19  ;;  %v8600_v19 = vld [vmem:[#allocation41_spill] sm:$0xff] }
 0xa4a   :  { %v3128_v11 = vmul.f32 %v4187_v26, %v3117_v47  ;;  %v8628_v34 = vld [vmem:[#allocation121_spill] sm:$0xff]  ;;  %v8630_v47 = vld [vmem:[#allocation55_spill] sm:$0xff] }
 0xa4b   :  { %v8632_v26 = vld [vmem:[#allocation57_spill] sm:$0xff] }
 0xa4c   :  { %v4189_v43 = vpop.eup %4188  ;;  %v7455_v58 = vadd.f32 %v3128_v11, %v3127_v39  ;;  %v8633_v39 = vld [vmem:[#allocation60_spill] sm:$0xff]  ;;  %v8634_v11 = vld [vmem:[#allocation59_spill] sm:$0xff] }
 0xa4d   :  { %v3125_v51 = vmul.f32 0.5, %v4189_v43  ;;  %v8636_v43 = vld [vmem:[#allocation61_spill] sm:$0xff] }
 0xa4e   :  { %4190 = vtanh.f32 %v7455_v58  ;;  %v3075_v50 = vpop.f32.mrf.mxu0 }
 0xa4f   :  { %v3078_v21 = vadd.f32 %v3075_v50, %v8423_v12  ;;  %v3126_v15 = vadd.f32 0.5, %v3125_v51  ;;  %v8637_v50 = vld [vmem:[#allocation19_spill] sm:$0xff]  ;;  %v8638_v51 = vld [vmem:[#allocation62_spill] sm:$0xff] }
 0xa51   :  { %3079 = vst [vmem:[#allocation10 + $0x10] sm:$0xff] %v3078_v21  ;;  %v8639_v21 = vld [vmem:[#allocation48_spill] sm:$0xff] }
 0xa54   :  { %v4191_v61 = vpop.eup %4190 }
 0xa55   :  { %v7459_v41 = vmul.f32 %v4191_v61, %v3126_v15  ;;  %v8640_v15 = vld [vmem:[#allocation120_spill] sm:$0xff]  ;;  %v8642_v61 = vld [vmem:[#allocation87_spill] sm:$0xff] }
 0xa57   :  { %3292 = vmatmul.f32.vlgmr.msra.gmra.mxu1 %v7459_v41  ;;  %3312 = vmatmul.f32.vlgmr.msra.gmra.mxu2 %v7459_v41 }
 0xa58   :  { %3332 = vmatmul.f32.vlgmr.msra.gmra.mxu3 %v7459_v41  ;;  %3352 = vmatmul.f32.vlgmr.msra.gmra.mxu0 %v7459_v41 }
 0xa59   :  { %3436 = vmatpush.msra.mxu1 %v7126_v44  ;;  %3654 = vmatpush.msra.mxu2 %v7134_v29  ;;  %v8608_v44 = vld [vmem:[#allocation78_spill] sm:$0xff]  ;;  %v8609_v29 = vld [vmem:[#allocation73_spill] sm:$0xff] }
 0xa5a   :  { %3674 = vmatpush.msra.mxu3 %v7140_v37  ;;  %3694 = vmatpush.msra.mxu0 %v8600_v19  ;;  %v8610_v37 = vld [vmem:[#allocation74_spill] sm:$0xff]  ;;  %v8643_v19 = vld [vmem:[#allocation64_spill] sm:$0xff] }
 0xa5b   :  { %3437 = vmatpush.msra.mxu1 %v8601_v45  ;;  %3655 = vmatpush.msra.mxu2 %v8602_v2  ;;  %v8645_v45 = vld [vmem:[#allocation66_spill] sm:$0xff]  ;;  %v8646_v2 = vld [vmem:[#allocation69_spill] sm:$0xff] }
 0xa5c   :  { %3675 = vmatpush.msra.mxu3 %v8603_v62  ;;  %3695 = vmatpush.msra.mxu0 %v8604_v7  ;;  %v8647_v62 = vld [vmem:[#allocation113_spill] sm:$0xff]  ;;  %v8648_v7 = vld [vmem:[#allocation90_spill] sm:$0xff] }
 0xa5d   :  { %3438 = vmatpush.msra.mxu1 %v8605_v55  ;;  %3656 = vmatpush.msra.mxu2 %v8606_v53  ;;  %v8650_v55 = vld [vmem:[#allocation49_spill] sm:$0xff]  ;;  %v8652_v53 = vld [vmem:[#allocation70_spill] sm:$0xff] }
 0xa5e   :  { %3676 = vmatpush.msra.mxu3 %v8607_v1  ;;  %3696 = vmatpush.msra.mxu0 %v8608_v44  ;;  %v8654_v1 = vld [vmem:[#allocation47_spill] sm:$0xff] }
 0xa5f   :  { %3439 = vmatpush.msra.mxu1 %v8609_v29  ;;  %3392 = vmatmul.f32.vlgmr.msrb.gmra.mxu2 %v7459_v41  ;;  %v8655_v44 = vld [vmem:[#allocation115_spill] sm:$0xff]  ;;  %v8657_v29 = vld [vmem:[#allocation122_spill] sm:$0xff] }
 0xa60   :  { %3372 = vmatmul.f32.vlgmr.msrb.gmra.mxu1 %v7459_v41  ;;  %3412 = vmatmul.f32.vlgmr.msrb.gmra.mxu3 %v7459_v41 }
 0xa61   :  { %3432 = vmatmul.f32.vlgmr.msrb.gmra.mxu0 %v7459_v41  ;;  %3440 = vmatpush.msra.mxu1 %v8610_v37  ;;  %v8659_v37 = vld [vmem:[#allocation126_spill] sm:$0xff] }
 0xa62   :  { %3657 = vmatpush.msra.mxu2 %v8611_v59  ;;  %3677 = vmatpush.msra.mxu3 %v8612_v48  ;;  %v3649_v59 = vld [vmem:[#allocation8 + $0x458] sm:$0xff]  ;;  %v3640_v48 = vld [vmem:[#allocation8 + $0x410] sm:$0xff] }
 0xa63   :  { %3441 = vmatpush.msra.mxu1 %v8613_v23  ;;  %3697 = vmatpush.msra.mxu0 %v8614_v25  ;;  %v3631_v23 = vld [vmem:[#allocation8 + $0x3c8] sm:$0xff]  ;;  %v3622_v25 = vld [vmem:[#allocation8 + $0x380] sm:$0xff] }
 0xa64   :  { %3658 = vmatpush.msra.mxu2 %v8615_v16  ;;  %3678 = vmatpush.msra.mxu3 %v7189_v56  ;;  %v8624_v56 = vld [vmem:[#allocation68_spill] sm:$0xff] }
 0xa65   :  { %3442 = vmatpush.msra.mxu1 %v8616_v28  ;;  %3698 = vmatpush.msra.mxu0 %v8617_v13  ;;  %v3613_v16 = vld [vmem:[#allocation8 + $0x338] sm:$0xff]  ;;  %v3650_v28 = vld [vmem:[#allocation8 + $0x460] sm:$0xff]  ;;  %v3651_v13 = vld [vmem:[#allocation8 + $0x468] sm:$0xff] }
 0xa66   :  { %3659 = vmatpush.msra.mxu2 %v8618_v35  ;;  %3679 = vmatpush.msra.mxu3 %v8619_v18  ;;  %v3652_v35 = vld [vmem:[#allocation8 + $0x470] sm:$0xff]  ;;  %v3643_v18 = vld [vmem:[#allocation8 + $0x428] sm:$0xff] }
 0xa67   :  { %3443 = vmatpush.msra.mxu1 %v8620_v52  ;;  %3699 = vmatpush.msra.mxu0 %v7207_v24  ;;  %v8629_v24 = vld [vmem:[#allocation58_spill] sm:$0xff] }
 0xa68   :  { %3660 = vmatpush.msra.mxu2 %v8621_v10  ;;  %3680 = vmatpush.msra.mxu3 %v7213_v22  ;;  %v8631_v22 = vld [vmem:[#allocation22_spill] sm:$0xff]  ;;  %v3632_v10 = vld [vmem:[#allocation8 + $0x3d0] sm:$0xff] }
 0xa69   :  { %3444 = vmatpush.msra.mxu1 %v8622_v42  ;;  %3700 = vmatpush.msra.mxu0 %v8623_v27  ;;  %v3595_v52 = vld [vmem:[#allocation8 + $0x2a8] sm:$0xff]  ;;  %v3633_v42 = vld [vmem:[#allocation8 + $0x3d8] sm:$0xff]  ;;  %v3634_v27 = vld [vmem:[#allocation8 + $0x3e0] sm:$0xff] }
 0xa6a   :  { %3661 = vmatpush.msra.mxu2 %v8624_v56  ;;  %3681 = vmatpush.msra.mxu3 %v8625_v63  ;;  %v3586_v56 = vld [vmem:[#allocation8 + $0x260] sm:$0xff]  ;;  %v3623_v63 = vld [vmem:[#allocation8 + $0x388] sm:$0xff] }
 0xa6b   :  { %3445 = vmatpush.msra.mxu1 %v8626_v31  ;;  %3701 = vmatpush.msra.mxu0 %v7283_v8  ;;  %v8635_v8 = vld [vmem:[#allocation86_spill] sm:$0xff]  ;;  %v3624_v31 = vld [vmem:[#allocation8 + $0x390] sm:$0xff] }
 0xa6c   :  { %3662 = vmatpush.msra.mxu2 %v8627_v20  ;;  %3682 = vmatpush.msra.mxu3 %v8628_v34  ;;  %v3625_v34 = vld [vmem:[#allocation8 + $0x398] sm:$0xff] }
 0xa6d   :  { %3446 = vmatpush.msra.mxu1 %v8629_v24  ;;  %3702 = vmatpush.msra.mxu0 %v8630_v47  ;;  %v3577_v47 = vld [vmem:[#allocation8 + $0x218] sm:$0xff] }
 0xa6e   :  { %3663 = vmatpush.msra.mxu2 %v8631_v22  ;;  %3683 = vmatpush.msra.mxu3 %v7303_v14  ;;  %v8641_v14 = vld [vmem:[#allocation85_spill] sm:$0xff] }
 0xa6f   :  { %3447 = vmatpush.msra.mxu1 %v8632_v26  ;;  %3703 = vmatpush.msra.mxu0 %v8633_v39  ;;  %v3614_v22 = vld [vmem:[#allocation8 + $0x340] sm:$0xff]  ;;  %v3615_v26 = vld [vmem:[#allocation8 + $0x348] sm:$0xff]  ;;  %v3616_v39 = vld [vmem:[#allocation8 + $0x350] sm:$0xff] }
 0xa70   :  { %3664 = vmatpush.msra.mxu2 %v8634_v11  ;;  %3684 = vmatpush.msra.mxu3 %v7317_v57  ;;  %v8644_v57 = vld [vmem:[#allocation89_spill] sm:$0xff]  ;;  %v3568_v11 = vld [vmem:[#allocation8 + $0x1d0] sm:$0xff] }
 0xa71   :  { %3448 = vmatpush.msra.mxu1 %v8635_v8  ;;  %3704 = vmatpush.msra.mxu0 %v8636_v43  ;;  %v3605_v8 = vld [vmem:[#allocation8 + $0x2f8] sm:$0xff]  ;;  %v3606_v43 = vld [vmem:[#allocation8 + $0x300] sm:$0xff] }
 0xa72   :  { %3665 = vmatpush.msra.mxu2 %v8637_v50  ;;  %3685 = vmatpush.msra.mxu3 %v8638_v51  ;;  %v3607_v50 = vld [vmem:[#allocation8 + $0x308] sm:$0xff] }
 0xa73   :  { %3449 = vmatpush.msra.mxu1 %v8639_v21  ;;  %3705 = vmatpush.msra.mxu0 %v8640_v15  ;;  %v3559_v51 = vld [vmem:[#allocation8 + $0x188] sm:$0xff]  ;;  %v3596_v21 = vld [vmem:[#allocation8 + $0x2b0] sm:$0xff]  ;;  %v3597_v15 = vld [vmem:[#allocation8 + $0x2b8] sm:$0xff] }
 0xa74   :  { %3666 = vmatpush.msra.mxu2 %v8641_v14  ;;  %3686 = vmatpush.msra.mxu3 %v7339_v33  ;;  %v8649_v33 = vld [vmem:[#allocation117_spill] sm:$0xff]  ;;  %v8662_v14 = vld [vmem:[#allocation104_spill] sm:$0xff] }
 0xa75   :  { %3450 = vmatpush.msra.mxu1 %v8642_v61  ;;  %3706 = vmatpush.msra.mxu0 %v8643_v19  ;;  %v3465_v61 = vadd.f32 %v8662_v14, %v8576_v5 }
 0xa76   :  { %3667 = vmatpush.msra.mxu2 %v8644_v57  ;;  %3687 = vmatpush.msra.mxu3 %v7349_v9  ;;  %v8651_v9 = vld [vmem:[#allocation91_spill] sm:$0xff]  ;;  %v3598_v57 = vld [vmem:[#allocation8 + $0x2c0] sm:$0xff] }
 0xa77   :  { %3451 = vmatpush.msra.mxu1 %v8645_v45  ;;  %3707 = vmatpush.msra.mxu0 %v8646_v2  ;;  %v3550_v2 = vld [vmem:[#allocation8 + $0x140] sm:$0xff] }
 0xa78   :  { %3452 = vmatmul.f32.vlgmr.msra.gmra.mxu1 %v7459_v41  ;;  %3668 = vmatpush.msra.mxu2 %v8647_v62  ;;  %v8653_v41 = vld [vmem:[#allocation114_spill] sm:$0xff] }
 0xa79   :  { %3714 = vmatpush.msrb.mxu1 %v8648_v7  ;;  %3688 = vmatpush.msra.mxu3 %v7359_v32  ;;  %v8656_v32 = vld [vmem:[#allocation118_spill] sm:$0xff]  ;;  %v3588_v7 = vld [vmem:[#allocation8 + $0x270] sm:$0xff] }
 0xa7a   :  { %3669 = vmatpush.msra.mxu2 %v8649_v33  ;;  %3708 = vmatpush.msra.mxu0 %v7361_v17  ;;  %v8658_v17 = vld [vmem:[#allocation124_spill] sm:$0xff]  ;;  %v3587_v62 = vld [vmem:[#allocation8 + $0x268] sm:$0xff] }
 0xa7b   :  { %3715 = vmatpush.msrb.mxu1 %v8650_v55  ;;  %3689 = vmatpush.msra.mxu3 %v7369_v4  ;;  %v8660_v4 = vld [vmem:[#allocation63_spill] sm:$0xff]  ;;  %v3589_v33 = vld [vmem:[#allocation8 + $0x278] sm:$0xff]  ;;  %v3473_v55 = vstv %s3459_s7 }
 0xa7c   :  { %3709 = vmatpush.msra.mxu0 %v7371_v6  ;;  %v8661_v6 = vld [vmem:[#allocation65_spill] sm:$0xff]  ;;  %3734 = vmatpush.msrb.mxu2 %v3649_v59  ;;  %v3532_v59 = vld [vmem:[#allocation8 + $0xb0] sm:$0xff] }
 0xa7d   :  { %3716 = vmatpush.msrb.mxu1 %v8651_v9  ;;  %3754 = vmatpush.msrb.mxu3 %v3650_v28  ;;  %v3571_v28 = vld [vmem:[#allocation8 + $0x1e8] sm:$0xff] }
 0xa7e   :  { %3735 = vmatpush.msrb.mxu2 %v3640_v48  ;;  %3774 = vmatpush.msrb.mxu0 %v3651_v13  ;;  %v3569_v48 = vld [vmem:[#allocation8 + $0x1d8] sm:$0xff]  ;;  %v8664_v13 = vld [vmem:[#allocation106_spill] sm:$0xff] }
 0xa7f   :  { %3717 = vmatpush.msrb.mxu1 %v8652_v53  ;;  %v3483_v53 = vstv %s3482_s6 }
 0xa80   :  { %3736 = vmatpush.msrb.mxu2 %v3631_v23  ;;  %v3570_v23 = vld [vmem:[#allocation8 + $0x1e0] sm:$0xff] }
 0xa81   :  { %3718 = vmatpush.msrb.mxu1 %v8653_v41  ;;  %v3541_v41 = vld [vmem:[#allocation8 + $0xf8] sm:$0xff] }
 0xa82   :  { %3737 = vmatpush.msrb.mxu2 %v3622_v25 }
 0xa83   :  { %3719 = vmatpush.msrb.mxu1 %v8654_v1  ;;  %v3578_v1 = vld [vmem:[#allocation8 + $0x220] sm:$0xff] }
 0xa84   :  { %3738 = vmatpush.msrb.mxu2 %v3613_v16 }
 0xa85   :  { %3720 = vmatpush.msrb.mxu1 %v8655_v44  ;;  %v3579_v44 = vld [vmem:[#allocation8 + $0x228] sm:$0xff] }
 0xa87   :  { %3721 = vmatpush.msrb.mxu1 %v8656_v32  ;;  %v3474_v32 = vmul.f32 %v3473_v55, %v3465_v61 }
 0xa89   :  { %3722 = vmatpush.msrb.mxu1 %v8657_v29 }
 0xa8b   :  { %3723 = vmatpush.msrb.mxu1 %v8658_v17  ;;  %v3580_v17 = vld [vmem:[#allocation8 + $0x230] sm:$0xff] }
 0xa8d   :  { %3724 = vmatpush.msrb.mxu1 %v8659_v37  ;;  %v8663_v37 = vld [vmem:[#allocation105_spill] sm:$0xff] }
 0xa8f   :  { %3725 = vmatpush.msrb.mxu1 %v8660_v4  ;;  %v3466_v4 = vadd.f32 %v8663_v37, %v8572_v54 }
 0xa91   :  { %3726 = vmatpush.msrb.mxu1 %v8661_v6 }
 0xa93   :  { %3727 = vmatpush.msrb.mxu1 %v7353_v60  ;;  %v3604_v60 = vld [vmem:[#allocation8 + $0x2f0] sm:$0xff] }
 0xa94   :  { %3739 = vmatpush.msrb.mxu2 %v3604_v60  ;;  %v3523_v60 = vld [vmem:[#allocation8 + $0x68] sm:$0xff] }
 0xa95   :  { %3728 = vmatpush.msrb.mxu1 %v7363_v3  ;;  %v3641_v3 = vld [vmem:[#allocation8 + $0x418] sm:$0xff] }
 0xa96   :  { %3755 = vmatpush.msrb.mxu3 %v3641_v3  ;;  %3740 = vmatpush.msrb.mxu2 %v3595_v52  ;;  %v3560_v3 = vld [vmem:[#allocation8 + $0x190] sm:$0xff] }
 0xa97   :  { %3729 = vmatpush.msrb.mxu1 %v7373_v40  ;;  %v3642_v40 = vld [vmem:[#allocation8 + $0x420] sm:$0xff] }
 0xa98   :  { %3775 = vmatpush.msrb.mxu0 %v3642_v40  ;;  %3756 = vmatpush.msrb.mxu3 %v3632_v10  ;;  %v3561_v40 = vld [vmem:[#allocation8 + $0x198] sm:$0xff] }
 0xa99   :  { %3794 = vmatpush.msra.mxu1 %v3652_v35  ;;  %3741 = vmatpush.msrb.mxu2 %v3586_v56  ;;  %v3467_v35 = vadd.f32 %v8664_v13, %v8587_v38  ;;  %v3562_v56 = vld [vmem:[#allocation8 + $0x1a0] sm:$0xff] }
 0xa9a   :  { %3776 = vmatpush.msrb.mxu0 %v3633_v42  ;;  %3757 = vmatpush.msrb.mxu3 %v3623_v63  ;;  %v3514_v63 = vld [vmem:[#allocation8 + $0x20] sm:$0xff] }
 0xa9b   :  { %3795 = vmatpush.msra.mxu1 %v3643_v18  ;;  %3742 = vmatpush.msrb.mxu2 %v3577_v47  ;;  %v8665_v18 = vld [vmem:[#allocation107_spill] sm:$0xff] }
 0xa9c   :  { %3777 = vmatpush.msrb.mxu0 %v3624_v31  ;;  %3758 = vmatpush.msrb.mxu3 %v3614_v22  ;;  %v3468_v52 = vadd.f32 %v8665_v18, %v8589_v46  ;;  %v3551_v31 = vld [vmem:[#allocation8 + $0x148] sm:$0xff]  ;;  %v3552_v22 = vld [vmem:[#allocation8 + $0x150] sm:$0xff] }
 0xa9d   :  { %3796 = vmatpush.msra.mxu1 %v3634_v27  ;;  %3743 = vmatpush.msrb.mxu2 %v3568_v11 }
 0xa9e   :  { %3778 = vmatpush.msrb.mxu0 %v3615_v26  ;;  %3759 = vmatpush.msrb.mxu3 %v3605_v8  ;;  %v3553_v26 = vld [vmem:[#allocation8 + $0x158] sm:$0xff]  ;;  %v3477_v14 = vmul.f32 %v3473_v55, %v3468_v52 }
 0xa9f   :  { %3797 = vmatpush.msra.mxu1 %v3625_v34  ;;  %3744 = vmatpush.msrb.mxu2 %v3559_v51  ;;  %v3542_v51 = vld [vmem:[#allocation8 + $0x100] sm:$0xff] }
 0xaa0   :  { %3779 = vmatpush.msrb.mxu0 %v3606_v43  ;;  %3760 = vmatpush.msrb.mxu3 %v3596_v21  ;;  %v3476_v43 = vmul.f32 %v3473_v55, %v3467_v35  ;;  %v3543_v21 = vld [vmem:[#allocation8 + $0x108] sm:$0xff] }
 0xaa1   :  { %3798 = vmatpush.msra.mxu1 %v3616_v39  ;;  %3745 = vmatpush.msrb.mxu2 %v3550_v2 }
 0xaa2   :  { %3780 = vmatpush.msrb.mxu0 %v3597_v15  ;;  %3761 = vmatpush.msrb.mxu3 %v3587_v62  ;;  %v3544_v15 = vld [vmem:[#allocation8 + $0x110] sm:$0xff] }
 0xaa3   :  { %3799 = vmatpush.msra.mxu1 %v3607_v50  ;;  %3746 = vmatpush.msrb.mxu2 %v3541_v41 }
 0xaa4   :  { %3781 = vmatpush.msrb.mxu0 %v3588_v7  ;;  %3762 = vmatpush.msrb.mxu3 %v3578_v1  ;;  %v3533_v7 = vld [vmem:[#allocation8 + $0xb8] sm:$0xff] }
 0xaa5   :  { %3800 = vmatpush.msra.mxu1 %v3598_v57  ;;  %3747 = vmatpush.msrb.mxu2 %v3532_v59 }
 0xaa6   :  { %3782 = vmatpush.msrb.mxu0 %v3579_v44  ;;  %3763 = vmatpush.msrb.mxu3 %v3569_v48  ;;  %v3525_v44 = vld [vmem:[#allocation8 + $0x78] sm:$0xff] }
 0xaa7   :  { %3801 = vmatpush.msra.mxu1 %v3589_v33  ;;  %3748 = vmatpush.msrb.mxu2 %v3523_v60  ;;  %v3534_v33 = vld [vmem:[#allocation8 + $0xc0] sm:$0xff] }
 0xaa8   :  { %3783 = vmatpush.msrb.mxu0 %v3570_v23  ;;  %3764 = vmatpush.msrb.mxu3 %v3560_v3 }
 0xaa9   :  { %3802 = vmatpush.msra.mxu1 %v3580_v17  ;;  %3749 = vmatpush.msrb.mxu2 %v3514_v63  ;;  %v3517_v17 = vld [vmem:[#allocation8 + $0x38] sm:$0xff] }
 0xaaa   :  { %3784 = vmatpush.msrb.mxu0 %v3561_v40  ;;  %3765 = vmatpush.msrb.mxu3 %v3551_v31  ;;  %v3617_v63 = vld [vmem:[#allocation8 + $0x358] sm:$0xff]  ;;  %v3608_v31 = vld [vmem:[#allocation8 + $0x310] sm:$0xff] }
 0xaab   :  { %3803 = vmatpush.msra.mxu1 %v3571_v28 }
 0xaac   :  { %3785 = vmatpush.msrb.mxu0 %v3552_v22  ;;  %3766 = vmatpush.msrb.mxu3 %v3542_v51  ;;  %v3572_v22 = vld [vmem:[#allocation8 + $0x1f0] sm:$0xff] }
 0xaad   :  { %3804 = vmatpush.msra.mxu1 %v3562_v56  ;;  %v3626_v56 = vld [vmem:[#allocation8 + $0x3a0] sm:$0xff] }
 0xaae   :  { %3786 = vmatpush.msrb.mxu0 %v3543_v21  ;;  %3767 = vmatpush.msrb.mxu3 %v3533_v7 }
 0xaaf   :  { %3805 = vmatpush.msra.mxu1 %v3553_v26  ;;  %v3563_v26 = vld [vmem:[#allocation8 + $0x1a8] sm:$0xff] }
 0xab0   :  { %3787 = vmatpush.msrb.mxu0 %v3534_v33 }
 0xab1   :  { %3806 = vmatpush.msra.mxu1 %v3544_v15 }
 0xab2   :  { %3788 = vmatpush.msrb.mxu0 %v3525_v44 }
 0xad4   :  { %v3293_v20 = vpop.f32.mrf.mxu1 }
 0xad5   :  { %v7552_v24 = vpop.f32.mrf.mxu0  ;;  %v3478_v25 = vadd.f32 %v3474_v32, %v3293_v20  ;;  %v3475_v20 = vmul.f32 %v3473_v55, %v3466_v4  ;;  %v3524_v55 = vld [vmem:[#allocation8 + $0x70] sm:$0xff]  ;;  %v3526_v32 = vld [vmem:[#allocation8 + $0x80] sm:$0xff] }
 0xad6   :  { %3768 = vmatpush.msrb.mxu3 %v3524_v55  ;;  %v8669_v55 = vld [vmem:[#allocation111_spill] sm:$0xff] }
 0xad7   :  { %v3846_v44 = vadd.f32 %v8669_v55, %v8589_v46 }
 0xada   :  { %v7557_v19 = vpop.f32.mrf.mxu2 }
 0xadb   :  { %v7559_v45 = vpop.f32.mrf.mxu3  ;;  %v3479_v8 = vadd.f32 %v3475_v20, %v7557_v19  ;;  %v3535_v19 = vld [vmem:[#allocation8 + $0xc8] sm:$0xff] }
 0xadc   :  { %v3480_v2 = vadd.f32 %v3476_v43, %v7559_v45  ;;  %3807 = vmatpush.msra.mxu1 %v3535_v19  ;;  %v3515_v45 = vld [vmem:[#allocation8 + $0x28] sm:$0xff] }
 0xadd   :  { %v3373_v9 = vpop.f32.mrf.mxu1  ;;  %3769 = vmatpush.msrb.mxu3 %v3515_v45  ;;  %v3599_v20 = vld [vmem:[#allocation8 + $0x2c8] sm:$0xff] }
 0xade   :  { %v3469_v29 = vadd.f32 %v3373_v9, %v6759_v30  ;;  %v3433_v6 = vpop.f32.mrf.mxu0  ;;  %v3481_v9 = vadd.f32 %v3477_v14, %v7552_v24  ;;  %3808 = vmatpush.msra.mxu1 %v3526_v32  ;;  %v3527_v43 = vld [vmem:[#allocation8 + $0x88] sm:$0xff] }
 0xadf   :  { %v3472_v42 = vadd.f32 %v3433_v6, %v8594_v49  ;;  %v8668_v19 = vld [vmem:[#allocation110_spill] sm:$0xff] }
 0xae0   :  { %v3484_v16 = vmul.f32 %v3483_v53, %v3469_v29  ;;  %v3516_v29 = vld [vmem:[#allocation8 + $0x30] sm:$0xff]  ;;  %3809 = vmatpush.msra.mxu1 %v3517_v17  ;;  %v3861_v17 = vstv %s3860_s28 }
 0xae1   :  { %v3487_v61 = vmul.f32 %v3483_v53, %v3472_v42  ;;  %3789 = vmatpush.msrb.mxu0 %v3516_v29  ;;  %v3653_v42 = vld [vmem:[#allocation8 + $0x478] sm:$0xff] }
 0xae2   :  { %v3488_v10 = vadd.f32 %v3484_v16, %v3478_v25  ;;  %v3393_v27 = vpop.f32.mrf.mxu2 }
 0xae3   :  { %v3470_v34 = vadd.f32 %v3393_v27, %v8584_v0  ;;  %v3413_v47 = vpop.f32.mrf.mxu3  ;;  %v3644_v27 = vld [vmem:[#allocation8 + $0x430] sm:$0xff] }
 0xae4   :  { %v3492_v39 = vmul.f32 0.5, %v3488_v10  ;;  %v3471_v11 = vadd.f32 %v3413_v47, %v8591_v36  ;;  %v3581_v47 = vld [vmem:[#allocation8 + $0x238] sm:$0xff] }
 0xae5   :  { %v3485_v50 = vmul.f32 %v3483_v53, %v3470_v34  ;;  %v3590_v34 = vld [vmem:[#allocation8 + $0x280] sm:$0xff] }
 0xae6   :  { %4192 = vtanh.f32 %v3492_v39  ;;  %v3486_v57 = vmul.f32 %v3483_v53, %v3471_v11  ;;  %v3491_v53 = vadd.f32 %v3487_v61, %v3481_v9  ;;  %v3554_v39 = vld [vmem:[#allocation8 + $0x160] sm:$0xff]  ;;  %v3545_v11 = vld [vmem:[#allocation8 + $0x118] sm:$0xff]  ;;  %v3845_v9 = vadd.f32 %v8668_v19, %v8587_v38 }
 0xae7   :  { %v3489_v62 = vadd.f32 %v3485_v50, %v3479_v8  ;;  %v3536_v8 = vld [vmem:[#allocation8 + $0xd0] sm:$0xff]  ;;  %v3518_v50 = vld [vmem:[#allocation8 + $0x40] sm:$0xff] }
 0xae8   :  { %v3490_v1 = vadd.f32 %v3486_v57, %v3480_v2  ;;  %v3501_v4 = vmul.f32 0.5, %v3491_v53  ;;  %v8666_v61 = vld [vmem:[#allocation109_spill] sm:$0xff]  ;;  %v8667_v2 = vld [vmem:[#allocation108_spill] sm:$0xff] }
 0xae9   :  { %v3496_v41 = vmul.f32 0.5, %v3489_v62  ;;  %v3844_v57 = vadd.f32 %v8666_v61, %v8572_v54  ;;  %v3843_v62 = vadd.f32 %v8667_v2, %v8576_v5 }
 0xaeb   :  { %4194 = vtanh.f32 %v3496_v41  ;;  %v3851_v41 = vstv %s3837_s27 }
 0xaec   :  { %v4193_v37 = vpop.eup %4192  ;;  %4196 = vtanh.f32 %v3490_v1  ;;  %v3853_v32 = vmul.f32 %v3851_v41, %v3844_v57  ;;  %v3852_v29 = vmul.f32 %v3851_v41, %v3843_v62  ;;  %v3854_v46 = vmul.f32 %v3851_v41, %v3845_v9 }
 0xaed   :  { %v3494_v24 = vmul.f32 0.5, %v4193_v37  ;;  %4198 = vtanh.f32 %v3501_v4 }
 0xaef   :  { %v3495_v59 = vadd.f32 0.5, %v3494_v24 }
 0xaf1   :  { %v4195_v6 = vpop.eup %4194 }
 0xaf2   :  { %v3498_v48 = vmul.f32 0.5, %v4195_v6  ;;  %v4197_v23 = vpop.eup %4196 }
 0xaf3   :  { %v3506_v13 = vmul.f32 %v4197_v23, %v3495_v59  ;;  %v4199_v60 = vpop.eup %4198  ;;  %v3855_v59 = vmul.f32 %v3851_v41, %v3846_v44 }
 0xaf4   :  { %v3499_v25 = vadd.f32 0.5, %v3498_v48  ;;  %v3503_v40 = vmul.f32 0.5, %v4199_v60 }
 0xaf5   :  { %v3453_v16 = vpop.f32.mrf.mxu1 }
 0xaf6   :  { %v3505_v28 = vmul.f32 %v3499_v25, %v7455_v58  ;;  %v3456_v35 = vadd.f32 %v3453_v16, %v8423_v12  ;;  %v3504_v18 = vadd.f32 0.5, %v3503_v40  ;;  %v3635_v58 = vld [vmem:[#allocation8 + $0x3e8] sm:$0xff] }
 0xaf8   :  { %v7576_v3 = vadd.f32 %v3506_v13, %v3505_v28  ;;  %3457 = vst [vmem:[#allocation10 + $0x18] sm:$0xff] %v3456_v35 }
 0xafa   :  { %4200 = vtanh.f32 %v7576_v3 }
 0xb00   :  { %v4201_v52 = vpop.eup %4200 }
 0xb01   :  { %v3509_v10 = vmul.f32 %v4201_v52, %v3504_v18 }
 0xb03   :  { %3670 = vmatmul.f32.vlgmr.msra.gmra.mxu2 %v3509_v10  ;;  %3690 = vmatmul.f32.vlgmr.msra.gmra.mxu3 %v3509_v10 }
 0xb04   :  { %3710 = vmatmul.f32.vlgmr.msra.gmra.mxu0 %v3509_v10  ;;  %3730 = vmatmul.f32.vlgmr.msrb.gmra.mxu1 %v3509_v10 }
 0xb05   :  { %3814 = vmatpush.msra.mxu2 %v3653_v42  ;;  %3904 = vmatpush.msra.mxu3 %v3653_v42 }
 0xb07   :  { %3815 = vmatpush.msra.mxu2 %v3644_v27  ;;  %3905 = vmatpush.msra.mxu3 %v3644_v27 }
 0xb09   :  { %3816 = vmatpush.msra.mxu2 %v3635_v58  ;;  %3906 = vmatpush.msra.mxu3 %v3635_v58 }
 0xb0b   :  { %3817 = vmatpush.msra.mxu2 %v3626_v56  ;;  %3770 = vmatmul.f32.vlgmr.msrb.gmra.mxu3 %v3509_v10 }
 0xb0c   :  { %3750 = vmatmul.f32.vlgmr.msrb.gmra.mxu2 %v3509_v10  ;;  %3790 = vmatmul.f32.vlgmr.msrb.gmra.mxu0 %v3509_v10 }
 0xb0d   :  { %3810 = vmatmul.f32.vlgmr.msra.gmra.mxu1 %v3509_v10  ;;  %3818 = vmatpush.msra.mxu2 %v3617_v63 }
 0xb0e   :  { %3907 = vmatpush.msra.mxu3 %v3626_v56 }
 0xb0f   :  { %3819 = vmatpush.msra.mxu2 %v3608_v31 }
 0xb10   :  { %3908 = vmatpush.msra.mxu3 %v3617_v63 }
 0xb11   :  { %3820 = vmatpush.msra.mxu2 %v3599_v20 }
 0xb12   :  { %3909 = vmatpush.msra.mxu3 %v3608_v31 }
 0xb13   :  { %3821 = vmatpush.msra.mxu2 %v3590_v34 }
 0xb14   :  { %3910 = vmatpush.msra.mxu3 %v3599_v20 }
 0xb15   :  { %3822 = vmatpush.msra.mxu2 %v3581_v47 }
 0xb16   :  { %3911 = vmatpush.msra.mxu3 %v3590_v34 }
 0xb17   :  { %3823 = vmatpush.msra.mxu2 %v3572_v22 }
 0xb18   :  { %3912 = vmatpush.msra.mxu3 %v3581_v47 }
 0xb19   :  { %3824 = vmatpush.msra.mxu2 %v3563_v26 }
 0xb1a   :  { %3913 = vmatpush.msra.mxu3 %v3572_v22 }
 0xb1b   :  { %3825 = vmatpush.msra.mxu2 %v3554_v39 }
 0xb1c   :  { %3914 = vmatpush.msra.mxu3 %v3563_v26 }
 0xb1d   :  { %3826 = vmatpush.msra.mxu2 %v3545_v11 }
 0xb1e   :  { %3915 = vmatpush.msra.mxu3 %v3554_v39 }
 0xb1f   :  { %3827 = vmatpush.msra.mxu2 %v3536_v8 }
 0xb20   :  { %3916 = vmatpush.msra.mxu3 %v3545_v11 }
 0xb21   :  { %3828 = vmatpush.msra.mxu2 %v3527_v43 }
 0xb22   :  { %3917 = vmatpush.msra.mxu3 %v3536_v8 }
 0xb23   :  { %3829 = vmatpush.msra.mxu2 %v3518_v50 }
 0xb24   :  { %3830 = vmatmul.f32.vlgmr.msra.gmra.mxu2 %v3509_v10  ;;  %3918 = vmatpush.msra.mxu3 %v3527_v43 }
 0xb26   :  { %3919 = vmatpush.msra.mxu3 %v3518_v50 }
 0xb81   :  { %v3731_v51 = vpop.f32.mrf.mxu1  ;;  %v3711_v21 = vpop.f32.mrf.mxu0 }
 0xb82   :  { %v3858_v13 = vadd.f32 %v3854_v46, %v3711_v21 }
 0xb86   :  { %v3671_v15 = vpop.f32.mrf.mxu2  ;;  %v3691_v14 = vpop.f32.mrf.mxu3 }
 0xb87   :  { %v3857_v24 = vadd.f32 %v3853_v32, %v3691_v14  ;;  %v3856_v38 = vadd.f32 %v3852_v29, %v3671_v15 }
 0xb89   :  { %v3791_v33 = vpop.f32.mrf.mxu0 }
 0xb8a   :  { %v3811_v7 = vpop.f32.mrf.mxu1  ;;  %v3849_v5 = vadd.f32 %v3791_v33, %v8591_v36 }
 0xb8b   :  { %v3850_v53 = vadd.f32 %v3811_v7, %v8594_v49  ;;  %v3859_v49 = vadd.f32 %v3855_v59, %v3731_v51 }
 0xb8c   :  { %v3864_v25 = vmul.f32 %v3861_v17, %v3849_v5 }
 0xb8d   :  { %v3865_v48 = vmul.f32 %v3861_v17, %v3850_v53 }
 0xb8e   :  { %v3771_v1 = vpop.f32.mrf.mxu3  ;;  %v3868_v36 = vadd.f32 %v3864_v25, %v3858_v13 }
 0xb8f   :  { %v3751_v45 = vpop.f32.mrf.mxu2  ;;  %v3848_v54 = vadd.f32 %v3771_v1, %v8584_v0  ;;  %v3869_v35 = vadd.f32 %v3865_v48, %v3859_v49 }
 0xb90   :  { %v3847_v37 = vadd.f32 %v3751_v45, %v6759_v30 }
 0xb91   :  { %v3863_v4 = vmul.f32 %v3861_v17, %v3848_v54  ;;  %v3879_v60 = vmul.f32 0.5, %v3869_v35 }
 0xb92   :  { %v3862_v6 = vmul.f32 %v3861_v17, %v3847_v37 }
 0xb93   :  { %v3867_v23 = vadd.f32 %v3863_v4, %v3857_v24 }
 0xb94   :  { %v3866_v16 = vadd.f32 %v3862_v6, %v3856_v38 }
 0xb95   :  { %v3874_v28 = vmul.f32 0.5, %v3867_v23 }
 0xb96   :  { %v3870_v0 = vmul.f32 0.5, %v3866_v16 }
 0xb97   :  { %4202 = vtanh.f32 %v3874_v28 }
 0xb98   :  { %4204 = vtanh.f32 %v3870_v0 }
 0xb99   :  { %4206 = vtanh.f32 %v3868_v36 }
 0xb9a   :  { %4208 = vtanh.f32 %v3879_v60 }
 0xb9d   :  { %v4203_v30 = vpop.eup %4202 }
 0xb9e   :  { %v4205_v40 = vpop.eup %4204  ;;  %v3876_v18 = vmul.f32 0.5, %v4203_v30 }
 0xb9f   :  { %v3872_v52 = vmul.f32 0.5, %v4205_v40  ;;  %v4207_v27 = vpop.eup %4206 }
 0xba0   :  { %v3877_v10 = vadd.f32 0.5, %v3876_v18  ;;  %v4209_v63 = vpop.eup %4208 }
 0xba1   :  { %v3873_v42 = vadd.f32 0.5, %v3872_v52  ;;  %v3881_v34 = vmul.f32 0.5, %v4209_v63 }
 0xba2   :  { %v3883_v58 = vmul.f32 %v3877_v10, %v7576_v3 }
 0xba3   :  { %v3884_v56 = vmul.f32 %v4207_v27, %v3873_v42  ;;  %v3882_v22 = vadd.f32 0.5, %v3881_v34 }
 0xba5   :  { %v3885_v31 = vadd.f32 %v3884_v56, %v3883_v58 }
 0xba7   :  { %4210 = vtanh.f32 %v3885_v31  ;;  %v3831_v20 = vpop.f32.mrf.mxu2 }
 0xba8   :  { %v3834_v47 = vadd.f32 %v3831_v20, %v8423_v12 }
 0xbaa   :  { %3835 = vst [vmem:[#allocation10 + $0x20] sm:$0xff] %v3834_v47 }
 0xbad   :  { %v4211_v26 = vpop.eup %4210 }
 0xbae   :  { %v3887_v39 = vmul.f32 %v4211_v26, %v3882_v22 }
 0xbb0   :  { %3920 = vmatmul.f32.vlgmr.msra.gmra.mxu3 %v3887_v39 }
 0xc33   :  { %v3921_v3 = vpop.f32.mrf.mxu3 }
 0xc34   :  { %v3924_v11 = vadd.f32 %v3921_v3, %v8423_v12 }
 0xc36   :  { %3925 = vst [vmem:[#allocation10 + $0x28] sm:$0xff] %v3924_v11 }
 0xc37   :  { %3936 = dma.vmem_to_hbm [thread:$0]  %s3932_s1, 768, %s3934_s11, [#allocation7]  }
 0xc38   :  { %4430 = dma.done.wait [#allocation7], 768  }
 0xc39   :  { %4431 = vsyncadd [#allocation7], 4294966528 }
 0xc3a   :  { %3941 = vsyncpa [#allocation6], 1 }
 0xc3b   :  { %3942 = vsyncpa [#allocation9], 1 }
 0xc3c   :  { %3943 = vsyncpa [#allocation7], 1 }

</bundles_post_ra>
